<compile_context>
chip_gen: v6e
topology: v6e:2x2x1
jax: 0.10.0
libtpu: 0.0.40
codegen_flags: <defaults>
</compile_context>

<pallas_src>
import functools

import jax
import jax.numpy as jnp
from jax import lax
from jax.experimental import pallas as pl
from jax.experimental.pallas import tpu as pltpu

LEAKY_SLOPE = 0.1
BN_EPS = 1e-5


def _leaky(x):
    return jnp.where(x >= 0, x, LEAKY_SLOPE * x)


def _fold_bn(gamma, beta, mean, var, cout):
    """Fold inference-mode BatchNorm into per-channel scale/shift (f32)."""
    inv = gamma / jnp.sqrt(var + BN_EPS)
    scale = inv.reshape(1, cout).astype(jnp.float32)
    shift = (beta - mean * inv).reshape(1, cout).astype(jnp.float32)
    return scale, shift


def _w3x3_to_taps(w_oihw, dtype):
    """OIHW 3x3 weights -> (9, Cin, Cout); tap index = ky*3 + kx."""
    cout, cin = w_oihw.shape[0], w_oihw.shape[1]
    return jnp.transpose(w_oihw, (2, 3, 1, 0)).reshape(9, cin, cout).astype(dtype)


def _round_up(x, m):
    return (x + m - 1) // m * m


# --------------------------------------------------------------------------
# Fused BasicBlock kernel
# --------------------------------------------------------------------------
def _make_block_kernel(H, W, halo, matmul_dtype):
    HW = H * W
    Hh, Wh = H // 2, W // 2

    def conv3x3_bn(src_ref, w_ref, sc_ref, sh_ref, ml, mr):
        """3x3 conv (pad 1) + folded BN: nine (HW,C)x(C,Cout) MXU dots, f32 acc.

        No (HW, 9*C) im2col slab is ever materialized; taps are read straight
        from the matmul-dtype halo staging buffer and masked in that dtype."""
        acc = None
        for dy in range(3):
            for dx in range(3):
                s = halo + (dy - 1) * W + (dx - 1)
                t = src_ref[pl.ds(s, HW), :]            # (HW, C) matmul_dtype
                if dx == 0:                             # zero left-edge wrap
                    t = t * ml
                elif dx == 2:                           # zero right-edge wrap
                    t = t * mr
                d = jnp.dot(t, w_ref[dy * 3 + dx],
                            preferred_element_type=jnp.float32)
                acc = d if acc is None else acc + d
        return acc * sc_ref[...] + sh_ref[...]          # folded BatchNorm (f32)

    def kernel(x_ref,
               w1_ref, s1_ref, b1_ref,
               w2_ref, s2_ref, b2_ref,
               w3_ref, s3_ref, b3_ref,
               wd_ref, sd_ref, bd_ref,
               ml_ref, mr_ref,
               o_ref,
               px, pa, pb, ybuf):
        ml = ml_ref[...]                                # (HW, 1) {0,1} matmul_dtype
        mr = mr_ref[...]
        x = x_ref[...]                                  # (HW, Cin) matmul_dtype

        # Zero only the halo rows that the dy=0/dy=2 taps read (not the full
        # slab).  Re-done every step: cheap, and safe under megacore grid
        # partitioning of the "parallel" batch axis (per-core scratch).
        zin = jnp.zeros((halo, px.shape[1]), px.dtype)
        zout = jnp.zeros((halo, pa.shape[1]), pa.dtype)
        px[pl.ds(0, halo), :] = zin
        px[pl.ds(halo + HW, halo), :] = zin
        pa[pl.ds(0, halo), :] = zout
        pa[pl.ds(halo + HW, halo), :] = zout
        pb[pl.ds(0, halo), :] = zout
        pb[pl.ds(halo + HW, halo), :] = zout

        # stage x (already matmul_dtype) into its zero-halo buffer
        px[pl.ds(halo, HW), :] = x

        # conv1 -> bn1 -> lrelu; cast once at the staging store
        h1 = _leaky(conv3x3_bn(px, w1_ref, s1_ref, b1_ref, ml, mr))
        pa[pl.ds(halo, HW), :] = h1.astype(pa.dtype)

        # conv2 -> bn2 -> lrelu
        h2 = _leaky(conv3x3_bn(pa, w2_ref, s2_ref, b2_ref, ml, mr))
        pb[pl.ds(halo, HW), :] = h2.astype(pb.dtype)

        # conv3 -> bn3
        h3 = conv3x3_bn(pb, w3_ref, s3_ref, b3_ref, ml, mr)

        # downsample residual: 1x1 conv + BN on the x tile already in VMEM
        res = (jnp.dot(x, wd_ref[...], preferred_element_type=jnp.float32)
               * sd_ref[...] + bd_ref[...])

        ybuf[...] = _leaky(h3 + res)                    # (HW, Cout) f32

        # fused MaxPool2d(2), one dense output store:
        #   horizontal 2:1 max = even vs odd flat indices (strided VMEM loads)
        hm = jnp.maximum(ybuf[pl.ds(0, HW // 2, 2), :],
                         ybuf[pl.ds(1, HW // 2, 2), :])        # (H*Wh, Cout)
        #   vertical 2:1 max = view as (Hh, 2*Wh, C), max the two Wh halves.
        #   2*Wh == W; at the test shape W % 8 == 0 so the split is a clean
        #   vreg re-index (at 84x84 it costs sublane shuffles on the XLU).
        hm3 = hm.reshape(Hh, 2 * Wh, -1)
        o_ref[...] = jnp.maximum(hm3[:, :Wh, :],
                                 hm3[:, Wh:, :]).astype(o_ref.dtype)

    return kernel


def basic_block_forward(x_nchw, p, *, matmul_dtype=jnp.bfloat16):
    """Fused BasicBlock forward.  NCHW in / NCHW out (PyTorch layout)."""
    B, Cin, H, W = x_nchw.shape
    Cout = p["conv1_w"].shape[0]
    # stride is realized purely via MaxPool2d(2) in this res12 variant
    assert H % 2 == 0 and W % 2 == 0, "MaxPool2d(2) requires even H and W"
    HW = H * W
    Hh, Wh = H // 2, W // 2
    halo = _round_up(W + 1, 8)               # zero rows above/below the data

    # NCHW -> (B, H*W, C): channels on lanes, flattened space on sublanes.
    # Shipped to the kernel in the matmul dtype (halves input HBM traffic;
    # identical numerics to casting at the dot).
    xf = jnp.transpose(x_nchw, (0, 2, 3, 1)).reshape(B, HW, Cin).astype(matmul_dtype)

    w1 = _w3x3_to_taps(p["conv1_w"], matmul_dtype)
    w2 = _w3x3_to_taps(p["conv2_w"], matmul_dtype)
    w3 = _w3x3_to_taps(p["conv3_w"], matmul_dtype)
    wd = jnp.transpose(p["ds_w"].reshape(Cout, Cin), (1, 0)).astype(matmul_dtype)

    s1, b1 = _fold_bn(p["bn1_g"], p["bn1_b"], p["bn1_m"], p["bn1_v"], Cout)
    s2, b2 = _fold_bn(p["bn2_g"], p["bn2_b"], p["bn2_m"], p["bn2_v"], Cout)
    s3, b3 = _fold_bn(p["bn3_g"], p["bn3_b"], p["bn3_m"], p["bn3_v"], Cout)
    sd, bd = _fold_bn(p["dsbn_g"], p["dsbn_b"], p["dsbn_m"], p["dsbn_v"], Cout)

    # {0,1} masks that zero the wrapped columns of the dx=0 / dx=2 taps
    # (exact in bf16, so masking happens on the packed matmul-dtype taps)
    col = jnp.arange(HW) % W
    mask_l = (col != 0).astype(matmul_dtype).reshape(HW, 1)
    mask_r = (col != W - 1).astype(matmul_dtype).reshape(HW, 1)

    kernel = _make_block_kernel(H, W, halo, matmul_dtype)
    pad_rows = HW + 2 * halo

    def full(a):   # whole (small) grid-invariant array, same block every step
        return pl.BlockSpec(a.shape, lambda b: (0,) * a.ndim)

    flops = B * (2 * HW * 9 * Cin * Cout          # conv1
                 + 2 * 2 * HW * 9 * Cout * Cout   # conv2 + conv3
                 + 2 * HW * Cin * Cout)           # 1x1 downsample
    invariants = (w1, w2, w3, wd, s1, b1, s2, b2, s3, b3, sd, bd, mask_l, mask_r)
    invariant_bytes = sum(int(a.size) * a.dtype.itemsize for a in invariants)
    bytes_accessed = (int(xf.size) * xf.dtype.itemsize
                      + B * Hh * Wh * Cout * 4
                      + invariant_bytes)

    # Explicit scoped-VMEM budget: resident scratch + double-buffered pipeline
    # copies of the blocks, with 2x headroom.  Clamped to [32 MiB, 64 MiB] so
    # it is legal on every generation (raise the cap toward ~100 MiB on
    # v5e/v6e; keep under ~56-60 MiB of v7x's 64 MiB physical VMEM).
    mm_isz = jnp.dtype(matmul_dtype).itemsize
    scratch_bytes = pad_rows * (Cin + 2 * Cout) * mm_isz + HW * Cout * 4
    block_bytes = HW * Cin * mm_isz + Hh * Wh * Cout * 4
    needed = scratch_bytes + 2 * (block_bytes + invariant_bytes)
    vmem_limit = int(min(max(2 * needed, 32 << 20), 64 << 20))

    out = pl.pallas_call(
        kernel,
        out_shape=jax.ShapeDtypeStruct((B, Hh, Wh, Cout), jnp.float32),
        grid=(B,),
        in_specs=[
            pl.BlockSpec((None, HW, Cin), lambda b: (b, 0, 0)),
            full(w1), full(s1), full(b1),
            full(w2), full(s2), full(b2),
            full(w3), full(s3), full(b3),
            full(wd), full(sd), full(bd),
            full(mask_l), full(mask_r),
        ],
        out_specs=pl.BlockSpec((None, Hh, Wh, Cout), lambda b: (b, 0, 0, 0)),
        scratch_shapes=[
            pltpu.VMEM((pad_rows, Cin), matmul_dtype),    # zero-halo x
            pltpu.VMEM((pad_rows, Cout), matmul_dtype),   # zero-halo h1
            pltpu.VMEM((pad_rows, Cout), matmul_dtype),   # zero-halo h2
            pltpu.VMEM((HW, Cout), jnp.float32),          # pre-pool activation
        ],
        compiler_params=pltpu.CompilerParams(
            dimension_semantics=("parallel",),
            vmem_limit_bytes=vmem_limit),
        cost_estimate=pl.CostEstimate(
            flops=flops, transcendentals=0, bytes_accessed=bytes_accessed),
    )(xf, w1, s1, b1, w2, s2, b2, w3, s3, b3, wd, sd, bd, mask_l, mask_r)

    return jnp.transpose(out, (0, 3, 1, 2))               # NHWC(pooled) -> NCHW


# --------------------------------------------------------------------------
# Pure-JAX reference (mirrors the PyTorch forward) for verification
# --------------------------------------------------------------------------
def reference_forward(x, p):
    def conv(x_, w, pad):
        return lax.conv_general_dilated(
            x_, w, (1, 1), [(pad, pad), (pad, pad)],
            dimension_numbers=("NCHW", "OIHW", "NCHW"))

    def bn(x_, g, b, m, v):
        g, b, m, v = (a[None, :, None, None] for a in (g, b, m, v))
        return (x_ - m) / jnp.sqrt(v + BN_EPS) * g + b

    out = _leaky(bn(conv(x, p["conv1_w"], 1), p["bn1_g"], p["bn1_b"], p["bn1_m"], p["bn1_v"]))
    out = _leaky(bn(conv(out, p["conv2_w"], 1), p["bn2_g"], p["bn2_b"], p["bn2_m"], p["bn2_v"]))
    out = bn(conv(out, p["conv3_w"], 1), p["bn3_g"], p["bn3_b"], p["bn3_m"], p["bn3_v"])
    res = bn(conv(x, p["ds_w"], 0), p["dsbn_g"], p["dsbn_b"], p["dsbn_m"], p["dsbn_v"])
    out = _leaky(out + res)
    out = lax.reduce_window(out, -jnp.inf, lax.max,
                            (1, 1, 2, 2), (1, 1, 2, 2), "VALID")
    return out


if __name__ == "__main__":
    B, Cin, H, W = 2, 4, 16, 16
    planes = 8
    # NOTE: this toy shape exercises ~6% of the 128-lane vreg and a tiny MXU N;
    # tune/benchmark only at production ResNet-12 channel counts (64-640).

    key = jax.random.PRNGKey(0)
    keys = jax.random.split(key, 20)

    def nrm(k, shape, s=0.1):
        return (s * jax.random.normal(k, shape)).astype(jnp.float32)

    p = {
        "conv1_w": nrm(keys[0], (planes, Cin, 3, 3)),
        "conv2_w": nrm(keys[1], (planes, planes, 3, 3)),
        "conv3_w": nrm(keys[2], (planes, planes, 3, 3)),
        "ds_w":    nrm(keys[3], (planes, Cin, 1, 1)),
    }
    for i, name in enumerate(["bn1", "bn2", "bn3", "dsbn"]):
        k = jax.random.split(keys[4 + i], 4)
        p[name + "_g"] = (1.0 + 0.1 * jax.random.normal(k[0], (planes,))).astype(jnp.float32)
        p[name + "_b"] = nrm(k[1], (planes,))
        p[name + "_m"] = nrm(k[2], (planes,))
        p[name + "_v"] = (0.5 + jnp.abs(jax.random.normal(k[3], (planes,)))).astype(jnp.float32)

    x = jax.random.normal(keys[10], (B, Cin, H, W), dtype=jnp.float32)

    ref = reference_forward(x, p)

    # float32 MXU-input mode: tight check of the fused kernel's indexing/fusion
    fwd_f32 = jax.jit(functools.partial(basic_block_forward, matmul_dtype=jnp.float32))
    out_f32 = jax.block_until_ready(fwd_f32(x, p))
    assert out_f32.shape == (B, planes, H // 2, W // 2), out_f32.shape
    err_f32 = float(jnp.max(jnp.abs(out_f32 - ref)))
    assert err_f32 < 2e-2, f"f32-mode max abs err {err_f32}"

    # bfloat16 MXU-input mode (production config); tolerance sized for bf16
    # rounding of the matmul operands.
    fwd_bf16 = jax.jit(functools.partial(basic_block_forward, matmul_dtype=jnp.bfloat16))
    out_bf16 = jax.block_until_ready(fwd_bf16(x, p))
    assert out_bf16.shape == (B, planes, H // 2, W // 2), out_bf16.shape
    err_bf16 = float(jnp.max(jnp.abs(out_bf16 - ref)))
    assert err_bf16 < 6e-2, f"bf16-mode max abs err {err_bf16}"

    print("KERNEL_OK")
</pallas_src>

<mosaic_0001>
module attributes {stable_mosaic.version = 11 : i64} {
  func.func @kernel(%arg0: i32, %arg1: memref<1x256x4xf32, #tpu.memory_space<vmem>>, %arg2: memref<9x4x8xf32, #tpu.memory_space<vmem>>, %arg3: memref<1x8xf32, #tpu.memory_space<vmem>>, %arg4: memref<1x8xf32, #tpu.memory_space<vmem>>, %arg5: memref<9x8x8xf32, #tpu.memory_space<vmem>>, %arg6: memref<1x8xf32, #tpu.memory_space<vmem>>, %arg7: memref<1x8xf32, #tpu.memory_space<vmem>>, %arg8: memref<9x8x8xf32, #tpu.memory_space<vmem>>, %arg9: memref<1x8xf32, #tpu.memory_space<vmem>>, %arg10: memref<1x8xf32, #tpu.memory_space<vmem>>, %arg11: memref<4x8xf32, #tpu.memory_space<vmem>>, %arg12: memref<1x8xf32, #tpu.memory_space<vmem>>, %arg13: memref<1x8xf32, #tpu.memory_space<vmem>>, %arg14: memref<256x1xf32, #tpu.memory_space<vmem>>, %arg15: memref<256x1xf32, #tpu.memory_space<vmem>>, %arg16: memref<1x8x8x8xf32, #tpu.memory_space<vmem>>, %arg17: memref<304x4xf32, #tpu.memory_space<vmem>>, %arg18: memref<304x8xf32, #tpu.memory_space<vmem>>, %arg19: memref<304x8xf32, #tpu.memory_space<vmem>>, %arg20: memref<256x8xf32, #tpu.memory_space<vmem>>) attributes {dimension_semantics = [#tpu.dimension_semantics<parallel>], iteration_bounds = array<i64: 2>, scalar_prefetch = 0 : i64, scratch_operands = 4 : i64, tpu.core_type = #tpu.core_type<tc>, window_params = [{transform_indices = @transform_0, window_bounds = array<i64: 1, 256, 4>}, {pipeline_mode = #tpu.pipeline_mode<synchronous>, transform_indices = @transform_1, window_bounds = array<i64: 9, 4, 8>}, {pipeline_mode = #tpu.pipeline_mode<synchronous>, transform_indices = @transform_2, window_bounds = array<i64: 1, 8>}, {pipeline_mode = #tpu.pipeline_mode<synchronous>, transform_indices = @transform_3, window_bounds = array<i64: 1, 8>}, {pipeline_mode = #tpu.pipeline_mode<synchronous>, transform_indices = @transform_4, window_bounds = array<i64: 9, 8, 8>}, {pipeline_mode = #tpu.pipeline_mode<synchronous>, transform_indices = @transform_5, window_bounds = array<i64: 1, 8>}, {pipeline_mode = #tpu.pipeline_mode<synchronous>, transform_indices = @transform_6, window_bounds = array<i64: 1, 8>}, {pipeline_mode = #tpu.pipeline_mode<synchronous>, transform_indices = @transform_7, window_bounds = array<i64: 9, 8, 8>}, {pipeline_mode = #tpu.pipeline_mode<synchronous>, transform_indices = @transform_8, window_bounds = array<i64: 1, 8>}, {pipeline_mode = #tpu.pipeline_mode<synchronous>, transform_indices = @transform_9, window_bounds = array<i64: 1, 8>}, {pipeline_mode = #tpu.pipeline_mode<synchronous>, transform_indices = @transform_10, window_bounds = array<i64: 4, 8>}, {pipeline_mode = #tpu.pipeline_mode<synchronous>, transform_indices = @transform_11, window_bounds = array<i64: 1, 8>}, {pipeline_mode = #tpu.pipeline_mode<synchronous>, transform_indices = @transform_12, window_bounds = array<i64: 1, 8>}, {pipeline_mode = #tpu.pipeline_mode<synchronous>, transform_indices = @transform_13, window_bounds = array<i64: 256, 1>}, {pipeline_mode = #tpu.pipeline_mode<synchronous>, transform_indices = @transform_14, window_bounds = array<i64: 256, 1>}, {transform_indices = @transform_15, window_bounds = array<i64: 1, 8, 8, 8>}]} {
    %c0 = arith.constant 0 : index
    %c0_0 = arith.constant 0 : index
    %0 = vector.load %arg14[%c0, %c0_0] : memref<256x1xf32, #tpu.memory_space<vmem>>, vector<256x1xf32>
    %c0_1 = arith.constant 0 : index
    %c0_2 = arith.constant 0 : index
    %1 = vector.load %arg15[%c0_1, %c0_2] : memref<256x1xf32, #tpu.memory_space<vmem>>, vector<256x1xf32>
    %c0_3 = arith.constant 0 : index
    %c0_4 = arith.constant 0 : index
    %c0_5 = arith.constant 0 : index
    %2 = vector.load %arg1[%c0_3, %c0_4, %c0_5] : memref<1x256x4xf32, #tpu.memory_space<vmem>>, vector<1x256x4xf32>
    %3 = vector.shape_cast %2 : vector<1x256x4xf32> to vector<256x4xf32>
    %cst = arith.constant 0.000000e+00 : f32
    %4 = vector.broadcast %cst : f32 to vector<24x4xf32>
    %cst_6 = arith.constant 0.000000e+00 : f32
    %5 = vector.broadcast %cst_6 : f32 to vector<24x8xf32>
    %c0_7 = arith.constant 0 : index
    %c0_8 = arith.constant 0 : index
    %6 = vector.load %arg17[%c0_7, %c0_8] : memref<304x4xf32, #tpu.memory_space<vmem>>, vector<24x4xf32>
    tpu.vector_store %arg17[%c0_7, %c0_8], %4 {strides = array<i32>} : memref<304x4xf32, #tpu.memory_space<vmem>>, vector<24x4xf32>,
    %c280 = arith.constant 280 : index
    %c0_9 = arith.constant 0 : index
    %7 = vector.load %arg17[%c280, %c0_9] : memref<304x4xf32, #tpu.memory_space<vmem>>, vector<24x4xf32>
    tpu.vector_store %arg17[%c280, %c0_9], %4 {strides = array<i32>} : memref<304x4xf32, #tpu.memory_space<vmem>>, vector<24x4xf32>,
    %c0_10 = arith.constant 0 : index
    %c0_11 = arith.constant 0 : index
    %8 = vector.load %arg18[%c0_10, %c0_11] : memref<304x8xf32, #tpu.memory_space<vmem>>, vector<24x8xf32>
    tpu.vector_store %arg18[%c0_10, %c0_11], %5 {strides = array<i32>} : memref<304x8xf32, #tpu.memory_space<vmem>>, vector<24x8xf32>,
    %c280_12 = arith.constant 280 : index
    %c0_13 = arith.constant 0 : index
    %9 = vector.load %arg18[%c280_12, %c0_13] : memref<304x8xf32, #tpu.memory_space<vmem>>, vector<24x8xf32>
    tpu.vector_store %arg18[%c280_12, %c0_13], %5 {strides = array<i32>} : memref<304x8xf32, #tpu.memory_space<vmem>>, vector<24x8xf32>,
    %c0_14 = arith.constant 0 : index
    %c0_15 = arith.constant 0 : index
    %10 = vector.load %arg19[%c0_14, %c0_15] : memref<304x8xf32, #tpu.memory_space<vmem>>, vector<24x8xf32>
    tpu.vector_store %arg19[%c0_14, %c0_15], %5 {strides = array<i32>} : memref<304x8xf32, #tpu.memory_space<vmem>>, vector<24x8xf32>,
    %c280_16 = arith.constant 280 : index
    %c0_17 = arith.constant 0 : index
    %11 = vector.load %arg19[%c280_16, %c0_17] : memref<304x8xf32, #tpu.memory_space<vmem>>, vector<24x8xf32>
    tpu.vector_store %arg19[%c280_16, %c0_17], %5 {strides = array<i32>} : memref<304x8xf32, #tpu.memory_space<vmem>>, vector<24x8xf32>,
    %c24 = arith.constant 24 : index
    %c0_18 = arith.constant 0 : index
    %12 = vector.load %arg17[%c24, %c0_18] : memref<304x4xf32, #tpu.memory_space<vmem>>, vector<256x4xf32>
    tpu.vector_store %arg17[%c24, %c0_18], %3 {strides = array<i32>} : memref<304x4xf32, #tpu.memory_space<vmem>>, vector<256x4xf32>,
    %c7 = arith.constant 7 : index
    %c0_19 = arith.constant 0 : index
    %13 = vector.load %arg17[%c7, %c0_19] : memref<304x4xf32, #tpu.memory_space<vmem>>, vector<256x4xf32>
    %14 = vector.broadcast %0 : vector<256x1xf32> to vector<256x4xf32>
    %15 = arith.mulf %13, %14 : vector<256x4xf32>
    %c0_20 = arith.constant 0 : index
    %c0_21 = arith.constant 0 : index
    %c0_22 = arith.constant 0 : index
    %16 = vector.load %arg2[%c0_20, %c0_21, %c0_22] : memref<9x4x8xf32, #tpu.memory_space<vmem>>, vector<1x4x8xf32>
    %17 = vector.shape_cast %16 : vector<1x4x8xf32> to vector<4x8xf32>
    %cst_23 = arith.constant dense<0.000000e+00> : vector<256x8xf32>
    %18 = tpu.matmul %15, %17, %cst_23 {dimension_numbers = #tpu.dot_dimension_numbers<[1], [0], [0], [1], [0, 0, 1, 1], [], []>} : vector<256x4xf32>, vector<4x8xf32>, vector<256x8xf32> -> vector<256x8xf32>
    %c8 = arith.constant 8 : index
    %c0_24 = arith.constant 0 : index
    %19 = vector.load %arg17[%c8, %c0_24] : memref<304x4xf32, #tpu.memory_space<vmem>>, vector<256x4xf32>
    %c1 = arith.constant 1 : index
    %c0_25 = arith.constant 0 : index
    %c0_26 = arith.constant 0 : index
    %20 = vector.load %arg2[%c1, %c0_25, %c0_26] : memref<9x4x8xf32, #tpu.memory_space<vmem>>, vector<1x4x8xf32>
    %21 = vector.shape_cast %20 : vector<1x4x8xf32> to vector<4x8xf32>
    %cst_27 = arith.constant dense<0.000000e+00> : vector<256x8xf32>
    %22 = tpu.matmul %19, %21, %cst_27 {dimension_numbers = #tpu.dot_dimension_numbers<[1], [0], [0], [1], [0, 0, 1, 1], [], []>} : vector<256x4xf32>, vector<4x8xf32>, vector<256x8xf32> -> vector<256x8xf32>
    %23 = arith.addf %18, %22 : vector<256x8xf32>
    %c9 = arith.constant 9 : index
    %c0_28 = arith.constant 0 : index
    %24 = vector.load %arg17[%c9, %c0_28] : memref<304x4xf32, #tpu.memory_space<vmem>>, vector<256x4xf32>
    %25 = vector.broadcast %1 : vector<256x1xf32> to vector<256x4xf32>
    %26 = arith.mulf %24, %25 : vector<256x4xf32>
    %c2 = arith.constant 2 : index
    %c0_29 = arith.constant 0 : index
    %c0_30 = arith.constant 0 : index
    %27 = vector.load %arg2[%c2, %c0_29, %c0_30] : memref<9x4x8xf32, #tpu.memory_space<vmem>>, vector<1x4x8xf32>
    %28 = vector.shape_cast %27 : vector<1x4x8xf32> to vector<4x8xf32>
    %cst_31 = arith.constant dense<0.000000e+00> : vector<256x8xf32>
    %29 = tpu.matmul %26, %28, %cst_31 {dimension_numbers = #tpu.dot_dimension_numbers<[1], [0], [0], [1], [0, 0, 1, 1], [], []>} : vector<256x4xf32>, vector<4x8xf32>, vector<256x8xf32> -> vector<256x8xf32>
    %30 = arith.addf %23, %29 : vector<256x8xf32>
    %c23 = arith.constant 23 : index
    %c0_32 = arith.constant 0 : index
    %31 = vector.load %arg17[%c23, %c0_32] : memref<304x4xf32, #tpu.memory_space<vmem>>, vector<256x4xf32>
    %32 = vector.broadcast %0 : vector<256x1xf32> to vector<256x4xf32>
    %33 = arith.mulf %31, %32 : vector<256x4xf32>
    %c3 = arith.constant 3 : index
    %c0_33 = arith.constant 0 : index
    %c0_34 = arith.constant 0 : index
    %34 = vector.load %arg2[%c3, %c0_33, %c0_34] : memref<9x4x8xf32, #tpu.memory_space<vmem>>, vector<1x4x8xf32>
    %35 = vector.shape_cast %34 : vector<1x4x8xf32> to vector<4x8xf32>
    %cst_35 = arith.constant dense<0.000000e+00> : vector<256x8xf32>
    %36 = tpu.matmul %33, %35, %cst_35 {dimension_numbers = #tpu.dot_dimension_numbers<[1], [0], [0], [1], [0, 0, 1, 1], [], []>} : vector<256x4xf32>, vector<4x8xf32>, vector<256x8xf32> -> vector<256x8xf32>
    %37 = arith.addf %30, %36 : vector<256x8xf32>
    %c24_36 = arith.constant 24 : index
    %c0_37 = arith.constant 0 : index
    %38 = vector.load %arg17[%c24_36, %c0_37] : memref<304x4xf32, #tpu.memory_space<vmem>>, vector<256x4xf32>
    %c4 = arith.constant 4 : index
    %c0_38 = arith.constant 0 : index
    %c0_39 = arith.constant 0 : index
    %39 = vector.load %arg2[%c4, %c0_38, %c0_39] : memref<9x4x8xf32, #tpu.memory_space<vmem>>, vector<1x4x8xf32>
    %40 = vector.shape_cast %39 : vector<1x4x8xf32> to vector<4x8xf32>
    %cst_40 = arith.constant dense<0.000000e+00> : vector<256x8xf32>
    %41 = tpu.matmul %38, %40, %cst_40 {dimension_numbers = #tpu.dot_dimension_numbers<[1], [0], [0], [1], [0, 0, 1, 1], [], []>} : vector<256x4xf32>, vector<4x8xf32>, vector<256x8xf32> -> vector<256x8xf32>
    %42 = arith.addf %37, %41 : vector<256x8xf32>
    %c25 = arith.constant 25 : index
    %c0_41 = arith.constant 0 : index
    %43 = vector.load %arg17[%c25, %c0_41] : memref<304x4xf32, #tpu.memory_space<vmem>>, vector<256x4xf32>
    %44 = vector.broadcast %1 : vector<256x1xf32> to vector<256x4xf32>
    %45 = arith.mulf %43, %44 : vector<256x4xf32>
    %c5 = arith.constant 5 : index
    %c0_42 = arith.constant 0 : index
    %c0_43 = arith.constant 0 : index
    %46 = vector.load %arg2[%c5, %c0_42, %c0_43] : memref<9x4x8xf32, #tpu.memory_space<vmem>>, vector<1x4x8xf32>
    %47 = vector.shape_cast %46 : vector<1x4x8xf32> to vector<4x8xf32>
    %cst_44 = arith.constant dense<0.000000e+00> : vector<256x8xf32>
    %48 = tpu.matmul %45, %47, %cst_44 {dimension_numbers = #tpu.dot_dimension_numbers<[1], [0], [0], [1], [0, 0, 1, 1], [], []>} : vector<256x4xf32>, vector<4x8xf32>, vector<256x8xf32> -> vector<256x8xf32>
    %49 = arith.addf %42, %48 : vector<256x8xf32>
    %c39 = arith.constant 39 : index
    %c0_45 = arith.constant 0 : index
    %50 = vector.load %arg17[%c39, %c0_45] : memref<304x4xf32, #tpu.memory_space<vmem>>, vector<256x4xf32>
    %51 = vector.broadcast %0 : vector<256x1xf32> to vector<256x4xf32>
    %52 = arith.mulf %50, %51 : vector<256x4xf32>
    %c6 = arith.constant 6 : index
    %c0_46 = arith.constant 0 : index
    %c0_47 = arith.constant 0 : index
    %53 = vector.load %arg2[%c6, %c0_46, %c0_47] : memref<9x4x8xf32, #tpu.memory_space<vmem>>, vector<1x4x8xf32>
    %54 = vector.shape_cast %53 : vector<1x4x8xf32> to vector<4x8xf32>
    %cst_48 = arith.constant dense<0.000000e+00> : vector<256x8xf32>
    %55 = tpu.matmul %52, %54, %cst_48 {dimension_numbers = #tpu.dot_dimension_numbers<[1], [0], [0], [1], [0, 0, 1, 1], [], []>} : vector<256x4xf32>, vector<4x8xf32>, vector<256x8xf32> -> vector<256x8xf32>
    %56 = arith.addf %49, %55 : vector<256x8xf32>
    %c40 = arith.constant 40 : index
    %c0_49 = arith.constant 0 : index
    %57 = vector.load %arg17[%c40, %c0_49] : memref<304x4xf32, #tpu.memory_space<vmem>>, vector<256x4xf32>
    %c7_50 = arith.constant 7 : index
    %c0_51 = arith.constant 0 : index
    %c0_52 = arith.constant 0 : index
    %58 = vector.load %arg2[%c7_50, %c0_51, %c0_52] : memref<9x4x8xf32, #tpu.memory_space<vmem>>, vector<1x4x8xf32>
    %59 = vector.shape_cast %58 : vector<1x4x8xf32> to vector<4x8xf32>
    %cst_53 = arith.constant dense<0.000000e+00> : vector<256x8xf32>
    %60 = tpu.matmul %57, %59, %cst_53 {dimension_numbers = #tpu.dot_dimension_numbers<[1], [0], [0], [1], [0, 0, 1, 1], [], []>} : vector<256x4xf32>, vector<4x8xf32>, vector<256x8xf32> -> vector<256x8xf32>
    %61 = arith.addf %56, %60 : vector<256x8xf32>
    %c41 = arith.constant 41 : index
    %c0_54 = arith.constant 0 : index
    %62 = vector.load %arg17[%c41, %c0_54] : memref<304x4xf32, #tpu.memory_space<vmem>>, vector<256x4xf32>
    %63 = vector.broadcast %1 : vector<256x1xf32> to vector<256x4xf32>
    %64 = arith.mulf %62, %63 : vector<256x4xf32>
    %c8_55 = arith.constant 8 : index
    %c0_56 = arith.constant 0 : index
    %c0_57 = arith.constant 0 : index
    %65 = vector.load %arg2[%c8_55, %c0_56, %c0_57] : memref<9x4x8xf32, #tpu.memory_space<vmem>>, vector<1x4x8xf32>
    %66 = vector.shape_cast %65 : vector<1x4x8xf32> to vector<4x8xf32>
    %cst_58 = arith.constant dense<0.000000e+00> : vector<256x8xf32>
    %67 = tpu.matmul %64, %66, %cst_58 {dimension_numbers = #tpu.dot_dimension_numbers<[1], [0], [0], [1], [0, 0, 1, 1], [], []>} : vector<256x4xf32>, vector<4x8xf32>, vector<256x8xf32> -> vector<256x8xf32>
    %68 = arith.addf %61, %67 : vector<256x8xf32>
    %c0_59 = arith.constant 0 : index
    %c0_60 = arith.constant 0 : index
    %69 = vector.load %arg3[%c0_59, %c0_60] : memref<1x8xf32, #tpu.memory_space<vmem>>, vector<1x8xf32>
    %70 = vector.broadcast %69 : vector<1x8xf32> to vector<256x8xf32>
    %71 = arith.mulf %68, %70 : vector<256x8xf32>
    %c0_61 = arith.constant 0 : index
    %c0_62 = arith.constant 0 : index
    %72 = vector.load %arg4[%c0_61, %c0_62] : memref<1x8xf32, #tpu.memory_space<vmem>>, vector<1x8xf32>
    %73 = vector.broadcast %72 : vector<1x8xf32> to vector<256x8xf32>
    %74 = arith.addf %71, %73 : vector<256x8xf32>
    %cst_63 = arith.constant 0.000000e+00 : f32
    %75 = vector.broadcast %cst_63 : f32 to vector<256x8xf32>
    %76 = arith.cmpf oge, %74, %75 : vector<256x8xf32>
    %cst_64 = arith.constant 1.000000e-01 : f32
    %77 = vector.broadcast %cst_64 : f32 to vector<256x8xf32>
    %78 = arith.mulf %77, %74 : vector<256x8xf32>
    %79 = arith.select %76, %74, %78 : vector<256x8xi1>, vector<256x8xf32>
    %c24_65 = arith.constant 24 : index
    %c0_66 = arith.constant 0 : index
    %80 = vector.load %arg18[%c24_65, %c0_66] : memref<304x8xf32, #tpu.memory_space<vmem>>, vector<256x8xf32>
    tpu.vector_store %arg18[%c24_65, %c0_66], %79 {strides = array<i32>} : memref<304x8xf32, #tpu.memory_space<vmem>>, vector<256x8xf32>,
    %c7_67 = arith.constant 7 : index
    %c0_68 = arith.constant 0 : index
    %81 = vector.load %arg18[%c7_67, %c0_68] : memref<304x8xf32, #tpu.memory_space<vmem>>, vector<256x8xf32>
    %82 = vector.broadcast %0 : vector<256x1xf32> to vector<256x8xf32>
    %83 = arith.mulf %81, %82 : vector<256x8xf32>
    %c0_69 = arith.constant 0 : index
    %c0_70 = arith.constant 0 : index
    %c0_71 = arith.constant 0 : index
    %84 = vector.load %arg5[%c0_69, %c0_70, %c0_71] : memref<9x8x8xf32, #tpu.memory_space<vmem>>, vector<1x8x8xf32>
    %85 = vector.shape_cast %84 : vector<1x8x8xf32> to vector<8x8xf32>
    %cst_72 = arith.constant dense<0.000000e+00> : vector<256x8xf32>
    %86 = tpu.matmul %83, %85, %cst_72 {dimension_numbers = #tpu.dot_dimension_numbers<[1], [0], [0], [1], [0, 0, 1, 1], [], []>} : vector<256x8xf32>, vector<8x8xf32>, vector<256x8xf32> -> vector<256x8xf32>
    %c8_73 = arith.constant 8 : index
    %c0_74 = arith.constant 0 : index
    %87 = vector.load %arg18[%c8_73, %c0_74] : memref<304x8xf32, #tpu.memory_space<vmem>>, vector<256x8xf32>
    %c1_75 = arith.constant 1 : index
    %c0_76 = arith.constant 0 : index
    %c0_77 = arith.constant 0 : index
    %88 = vector.load %arg5[%c1_75, %c0_76, %c0_77] : memref<9x8x8xf32, #tpu.memory_space<vmem>>, vector<1x8x8xf32>
    %89 = vector.shape_cast %88 : vector<1x8x8xf32> to vector<8x8xf32>
    %cst_78 = arith.constant dense<0.000000e+00> : vector<256x8xf32>
    %90 = tpu.matmul %87, %89, %cst_78 {dimension_numbers = #tpu.dot_dimension_numbers<[1], [0], [0], [1], [0, 0, 1, 1], [], []>} : vector<256x8xf32>, vector<8x8xf32>, vector<256x8xf32> -> vector<256x8xf32>
    %91 = arith.addf %86, %90 : vector<256x8xf32>
    %c9_79 = arith.constant 9 : index
    %c0_80 = arith.constant 0 : index
    %92 = vector.load %arg18[%c9_79, %c0_80] : memref<304x8xf32, #tpu.memory_space<vmem>>, vector<256x8xf32>
    %93 = vector.broadcast %1 : vector<256x1xf32> to vector<256x8xf32>
    %94 = arith.mulf %92, %93 : vector<256x8xf32>
    %c2_81 = arith.constant 2 : index
    %c0_82 = arith.constant 0 : index
    %c0_83 = arith.constant 0 : index
    %95 = vector.load %arg5[%c2_81, %c0_82, %c0_83] : memref<9x8x8xf32, #tpu.memory_space<vmem>>, vector<1x8x8xf32>
    %96 = vector.shape_cast %95 : vector<1x8x8xf32> to vector<8x8xf32>
    %cst_84 = arith.constant dense<0.000000e+00> : vector<256x8xf32>
    %97 = tpu.matmul %94, %96, %cst_84 {dimension_numbers = #tpu.dot_dimension_numbers<[1], [0], [0], [1], [0, 0, 1, 1], [], []>} : vector<256x8xf32>, vector<8x8xf32>, vector<256x8xf32> -> vector<256x8xf32>
    %98 = arith.addf %91, %97 : vector<256x8xf32>
    %c23_85 = arith.constant 23 : index
    %c0_86 = arith.constant 0 : index
    %99 = vector.load %arg18[%c23_85, %c0_86] : memref<304x8xf32, #tpu.memory_space<vmem>>, vector<256x8xf32>
    %100 = vector.broadcast %0 : vector<256x1xf32> to vector<256x8xf32>
    %101 = arith.mulf %99, %100 : vector<256x8xf32>
    %c3_87 = arith.constant 3 : index
    %c0_88 = arith.constant 0 : index
    %c0_89 = arith.constant 0 : index
    %102 = vector.load %arg5[%c3_87, %c0_88, %c0_89] : memref<9x8x8xf32, #tpu.memory_space<vmem>>, vector<1x8x8xf32>
    %103 = vector.shape_cast %102 : vector<1x8x8xf32> to vector<8x8xf32>
    %cst_90 = arith.constant dense<0.000000e+00> : vector<256x8xf32>
    %104 = tpu.matmul %101, %103, %cst_90 {dimension_numbers = #tpu.dot_dimension_numbers<[1], [0], [0], [1], [0, 0, 1, 1], [], []>} : vector<256x8xf32>, vector<8x8xf32>, vector<256x8xf32> -> vector<256x8xf32>
    %105 = arith.addf %98, %104 : vector<256x8xf32>
    %c24_91 = arith.constant 24 : index
    %c0_92 = arith.constant 0 : index
    %106 = vector.load %arg18[%c24_91, %c0_92] : memref<304x8xf32, #tpu.memory_space<vmem>>, vector<256x8xf32>
    %c4_93 = arith.constant 4 : index
    %c0_94 = arith.constant 0 : index
    %c0_95 = arith.constant 0 : index
    %107 = vector.load %arg5[%c4_93, %c0_94, %c0_95] : memref<9x8x8xf32, #tpu.memory_space<vmem>>, vector<1x8x8xf32>
    %108 = vector.shape_cast %107 : vector<1x8x8xf32> to vector<8x8xf32>
    %cst_96 = arith.constant dense<0.000000e+00> : vector<256x8xf32>
    %109 = tpu.matmul %106, %108, %cst_96 {dimension_numbers = #tpu.dot_dimension_numbers<[1], [0], [0], [1], [0, 0, 1, 1], [], []>} : vector<256x8xf32>, vector<8x8xf32>, vector<256x8xf32> -> vector<256x8xf32>
    %110 = arith.addf %105, %109 : vector<256x8xf32>
    %c25_97 = arith.constant 25 : index
    %c0_98 = arith.constant 0 : index
    %111 = vector.load %arg18[%c25_97, %c0_98] : memref<304x8xf32, #tpu.memory_space<vmem>>, vector<256x8xf32>
    %112 = vector.broadcast %1 : vector<256x1xf32> to vector<256x8xf32>
    %113 = arith.mulf %111, %112 : vector<256x8xf32>
    %c5_99 = arith.constant 5 : index
    %c0_100 = arith.constant 0 : index
    %c0_101 = arith.constant 0 : index
    %114 = vector.load %arg5[%c5_99, %c0_100, %c0_101] : memref<9x8x8xf32, #tpu.memory_space<vmem>>, vector<1x8x8xf32>
    %115 = vector.shape_cast %114 : vector<1x8x8xf32> to vector<8x8xf32>
    %cst_102 = arith.constant dense<0.000000e+00> : vector<256x8xf32>
    %116 = tpu.matmul %113, %115, %cst_102 {dimension_numbers = #tpu.dot_dimension_numbers<[1], [0], [0], [1], [0, 0, 1, 1], [], []>} : vector<256x8xf32>, vector<8x8xf32>, vector<256x8xf32> -> vector<256x8xf32>
    %117 = arith.addf %110, %116 : vector<256x8xf32>
    %c39_103 = arith.constant 39 : index
    %c0_104 = arith.constant 0 : index
    %118 = vector.load %arg18[%c39_103, %c0_104] : memref<304x8xf32, #tpu.memory_space<vmem>>, vector<256x8xf32>
    %119 = vector.broadcast %0 : vector<256x1xf32> to vector<256x8xf32>
    %120 = arith.mulf %118, %119 : vector<256x8xf32>
    %c6_105 = arith.constant 6 : index
    %c0_106 = arith.constant 0 : index
    %c0_107 = arith.constant 0 : index
    %121 = vector.load %arg5[%c6_105, %c0_106, %c0_107] : memref<9x8x8xf32, #tpu.memory_space<vmem>>, vector<1x8x8xf32>
    %122 = vector.shape_cast %121 : vector<1x8x8xf32> to vector<8x8xf32>
    %cst_108 = arith.constant dense<0.000000e+00> : vector<256x8xf32>
    %123 = tpu.matmul %120, %122, %cst_108 {dimension_numbers = #tpu.dot_dimension_numbers<[1], [0], [0], [1], [0, 0, 1, 1], [], []>} : vector<256x8xf32>, vector<8x8xf32>, vector<256x8xf32> -> vector<256x8xf32>
    %124 = arith.addf %117, %123 : vector<256x8xf32>
    %c40_109 = arith.constant 40 : index
    %c0_110 = arith.constant 0 : index
    %125 = vector.load %arg18[%c40_109, %c0_110] : memref<304x8xf32, #tpu.memory_space<vmem>>, vector<256x8xf32>
    %c7_111 = arith.constant 7 : index
    %c0_112 = arith.constant 0 : index
    %c0_113 = arith.constant 0 : index
    %126 = vector.load %arg5[%c7_111, %c0_112, %c0_113] : memref<9x8x8xf32, #tpu.memory_space<vmem>>, vector<1x8x8xf32>
    %127 = vector.shape_cast %126 : vector<1x8x8xf32> to vector<8x8xf32>
    %cst_114 = arith.constant dense<0.000000e+00> : vector<256x8xf32>
    %128 = tpu.matmul %125, %127, %cst_114 {dimension_numbers = #tpu.dot_dimension_numbers<[1], [0], [0], [1], [0, 0, 1, 1], [], []>} : vector<256x8xf32>, vector<8x8xf32>, vector<256x8xf32> -> vector<256x8xf32>
    %129 = arith.addf %124, %128 : vector<256x8xf32>
    %c41_115 = arith.constant 41 : index
    %c0_116 = arith.constant 0 : index
    %130 = vector.load %arg18[%c41_115, %c0_116] : memref<304x8xf32, #tpu.memory_space<vmem>>, vector<256x8xf32>
    %131 = vector.broadcast %1 : vector<256x1xf32> to vector<256x8xf32>
    %132 = arith.mulf %130, %131 : vector<256x8xf32>
    %c8_117 = arith.constant 8 : index
    %c0_118 = arith.constant 0 : index
    %c0_119 = arith.constant 0 : index
    %133 = vector.load %arg5[%c8_117, %c0_118, %c0_119] : memref<9x8x8xf32, #tpu.memory_space<vmem>>, vector<1x8x8xf32>
    %134 = vector.shape_cast %133 : vector<1x8x8xf32> to vector<8x8xf32>
    %cst_120 = arith.constant dense<0.000000e+00> : vector<256x8xf32>
    %135 = tpu.matmul %132, %134, %cst_120 {dimension_numbers = #tpu.dot_dimension_numbers<[1], [0], [0], [1], [0, 0, 1, 1], [], []>} : vector<256x8xf32>, vector<8x8xf32>, vector<256x8xf32> -> vector<256x8xf32>
    %136 = arith.addf %129, %135 : vector<256x8xf32>
    %c0_121 = arith.constant 0 : index
    %c0_122 = arith.constant 0 : index
    %137 = vector.load %arg6[%c0_121, %c0_122] : memref<1x8xf32, #tpu.memory_space<vmem>>, vector<1x8xf32>
    %138 = vector.broadcast %137 : vector<1x8xf32> to vector<256x8xf32>
    %139 = arith.mulf %136, %138 : vector<256x8xf32>
    %c0_123 = arith.constant 0 : index
    %c0_124 = arith.constant 0 : index
    %140 = vector.load %arg7[%c0_123, %c0_124] : memref<1x8xf32, #tpu.memory_space<vmem>>, vector<1x8xf32>
    %141 = vector.broadcast %140 : vector<1x8xf32> to vector<256x8xf32>
    %142 = arith.addf %139, %141 : vector<256x8xf32>
    %cst_125 = arith.constant 0.000000e+00 : f32
    %143 = vector.broadcast %cst_125 : f32 to vector<256x8xf32>
    %144 = arith.cmpf oge, %142, %143 : vector<256x8xf32>
    %cst_126 = arith.constant 1.000000e-01 : f32
    %145 = vector.broadcast %cst_126 : f32 to vector<256x8xf32>
    %146 = arith.mulf %145, %142 : vector<256x8xf32>
    %147 = arith.select %144, %142, %146 : vector<256x8xi1>, vector<256x8xf32>
    %c24_127 = arith.constant 24 : index
    %c0_128 = arith.constant 0 : index
    %148 = vector.load %arg19[%c24_127, %c0_128] : memref<304x8xf32, #tpu.memory_space<vmem>>, vector<256x8xf32>
    tpu.vector_store %arg19[%c24_127, %c0_128], %147 {strides = array<i32>} : memref<304x8xf32, #tpu.memory_space<vmem>>, vector<256x8xf32>,
    %c7_129 = arith.constant 7 : index
    %c0_130 = arith.constant 0 : index
    %149 = vector.load %arg19[%c7_129, %c0_130] : memref<304x8xf32, #tpu.memory_space<vmem>>, vector<256x8xf32>
    %150 = vector.broadcast %0 : vector<256x1xf32> to vector<256x8xf32>
    %151 = arith.mulf %149, %150 : vector<256x8xf32>
    %c0_131 = arith.constant 0 : index
    %c0_132 = arith.constant 0 : index
    %c0_133 = arith.constant 0 : index
    %152 = vector.load %arg8[%c0_131, %c0_132, %c0_133] : memref<9x8x8xf32, #tpu.memory_space<vmem>>, vector<1x8x8xf32>
    %153 = vector.shape_cast %152 : vector<1x8x8xf32> to vector<8x8xf32>
    %cst_134 = arith.constant dense<0.000000e+00> : vector<256x8xf32>
    %154 = tpu.matmul %151, %153, %cst_134 {dimension_numbers = #tpu.dot_dimension_numbers<[1], [0], [0], [1], [0, 0, 1, 1], [], []>} : vector<256x8xf32>, vector<8x8xf32>, vector<256x8xf32> -> vector<256x8xf32>
    %c8_135 = arith.constant 8 : index
    %c0_136 = arith.constant 0 : index
    %155 = vector.load %arg19[%c8_135, %c0_136] : memref<304x8xf32, #tpu.memory_space<vmem>>, vector<256x8xf32>
    %c1_137 = arith.constant 1 : index
    %c0_138 = arith.constant 0 : index
    %c0_139 = arith.constant 0 : index
    %156 = vector.load %arg8[%c1_137, %c0_138, %c0_139] : memref<9x8x8xf32, #tpu.memory_space<vmem>>, vector<1x8x8xf32>
    %157 = vector.shape_cast %156 : vector<1x8x8xf32> to vector<8x8xf32>
    %cst_140 = arith.constant dense<0.000000e+00> : vector<256x8xf32>
    %158 = tpu.matmul %155, %157, %cst_140 {dimension_numbers = #tpu.dot_dimension_numbers<[1], [0], [0], [1], [0, 0, 1, 1], [], []>} : vector<256x8xf32>, vector<8x8xf32>, vector<256x8xf32> -> vector<256x8xf32>
    %159 = arith.addf %154, %158 : vector<256x8xf32>
    %c9_141 = arith.constant 9 : index
    %c0_142 = arith.constant 0 : index
    %160 = vector.load %arg19[%c9_141, %c0_142] : memref<304x8xf32, #tpu.memory_space<vmem>>, vector<256x8xf32>
    %161 = vector.broadcast %1 : vector<256x1xf32> to vector<256x8xf32>
    %162 = arith.mulf %160, %161 : vector<256x8xf32>
    %c2_143 = arith.constant 2 : index
    %c0_144 = arith.constant 0 : index
    %c0_145 = arith.constant 0 : index
    %163 = vector.load %arg8[%c2_143, %c0_144, %c0_145] : memref<9x8x8xf32, #tpu.memory_space<vmem>>, vector<1x8x8xf32>
    %164 = vector.shape_cast %163 : vector<1x8x8xf32> to vector<8x8xf32>
    %cst_146 = arith.constant dense<0.000000e+00> : vector<256x8xf32>
    %165 = tpu.matmul %162, %164, %cst_146 {dimension_numbers = #tpu.dot_dimension_numbers<[1], [0], [0], [1], [0, 0, 1, 1], [], []>} : vector<256x8xf32>, vector<8x8xf32>, vector<256x8xf32> -> vector<256x8xf32>
    %166 = arith.addf %159, %165 : vector<256x8xf32>
    %c23_147 = arith.constant 23 : index
    %c0_148 = arith.constant 0 : index
    %167 = vector.load %arg19[%c23_147, %c0_148] : memref<304x8xf32, #tpu.memory_space<vmem>>, vector<256x8xf32>
    %168 = vector.broadcast %0 : vector<256x1xf32> to vector<256x8xf32>
    %169 = arith.mulf %167, %168 : vector<256x8xf32>
    %c3_149 = arith.constant 3 : index
    %c0_150 = arith.constant 0 : index
    %c0_151 = arith.constant 0 : index
    %170 = vector.load %arg8[%c3_149, %c0_150, %c0_151] : memref<9x8x8xf32, #tpu.memory_space<vmem>>, vector<1x8x8xf32>
    %171 = vector.shape_cast %170 : vector<1x8x8xf32> to vector<8x8xf32>
    %cst_152 = arith.constant dense<0.000000e+00> : vector<256x8xf32>
    %172 = tpu.matmul %169, %171, %cst_152 {dimension_numbers = #tpu.dot_dimension_numbers<[1], [0], [0], [1], [0, 0, 1, 1], [], []>} : vector<256x8xf32>, vector<8x8xf32>, vector<256x8xf32> -> vector<256x8xf32>
    %173 = arith.addf %166, %172 : vector<256x8xf32>
    %c24_153 = arith.constant 24 : index
    %c0_154 = arith.constant 0 : index
    %174 = vector.load %arg19[%c24_153, %c0_154] : memref<304x8xf32, #tpu.memory_space<vmem>>, vector<256x8xf32>
    %c4_155 = arith.constant 4 : index
    %c0_156 = arith.constant 0 : index
    %c0_157 = arith.constant 0 : index
    %175 = vector.load %arg8[%c4_155, %c0_156, %c0_157] : memref<9x8x8xf32, #tpu.memory_space<vmem>>, vector<1x8x8xf32>
    %176 = vector.shape_cast %175 : vector<1x8x8xf32> to vector<8x8xf32>
    %cst_158 = arith.constant dense<0.000000e+00> : vector<256x8xf32>
    %177 = tpu.matmul %174, %176, %cst_158 {dimension_numbers = #tpu.dot_dimension_numbers<[1], [0], [0], [1], [0, 0, 1, 1], [], []>} : vector<256x8xf32>, vector<8x8xf32>, vector<256x8xf32> -> vector<256x8xf32>
    %178 = arith.addf %173, %177 : vector<256x8xf32>
    %c25_159 = arith.constant 25 : index
    %c0_160 = arith.constant 0 : index
    %179 = vector.load %arg19[%c25_159, %c0_160] : memref<304x8xf32, #tpu.memory_space<vmem>>, vector<256x8xf32>
    %180 = vector.broadcast %1 : vector<256x1xf32> to vector<256x8xf32>
    %181 = arith.mulf %179, %180 : vector<256x8xf32>
    %c5_161 = arith.constant 5 : index
    %c0_162 = arith.constant 0 : index
    %c0_163 = arith.constant 0 : index
    %182 = vector.load %arg8[%c5_161, %c0_162, %c0_163] : memref<9x8x8xf32, #tpu.memory_space<vmem>>, vector<1x8x8xf32>
    %183 = vector.shape_cast %182 : vector<1x8x8xf32> to vector<8x8xf32>
    %cst_164 = arith.constant dense<0.000000e+00> : vector<256x8xf32>
    %184 = tpu.matmul %181, %183, %cst_164 {dimension_numbers = #tpu.dot_dimension_numbers<[1], [0], [0], [1], [0, 0, 1, 1], [], []>} : vector<256x8xf32>, vector<8x8xf32>, vector<256x8xf32> -> vector<256x8xf32>
    %185 = arith.addf %178, %184 : vector<256x8xf32>
    %c39_165 = arith.constant 39 : index
    %c0_166 = arith.constant 0 : index
    %186 = vector.load %arg19[%c39_165, %c0_166] : memref<304x8xf32, #tpu.memory_space<vmem>>, vector<256x8xf32>
    %187 = vector.broadcast %0 : vector<256x1xf32> to vector<256x8xf32>
    %188 = arith.mulf %186, %187 : vector<256x8xf32>
    %c6_167 = arith.constant 6 : index
    %c0_168 = arith.constant 0 : index
    %c0_169 = arith.constant 0 : index
    %189 = vector.load %arg8[%c6_167, %c0_168, %c0_169] : memref<9x8x8xf32, #tpu.memory_space<vmem>>, vector<1x8x8xf32>
    %190 = vector.shape_cast %189 : vector<1x8x8xf32> to vector<8x8xf32>
    %cst_170 = arith.constant dense<0.000000e+00> : vector<256x8xf32>
    %191 = tpu.matmul %188, %190, %cst_170 {dimension_numbers = #tpu.dot_dimension_numbers<[1], [0], [0], [1], [0, 0, 1, 1], [], []>} : vector<256x8xf32>, vector<8x8xf32>, vector<256x8xf32> -> vector<256x8xf32>
    %192 = arith.addf %185, %191 : vector<256x8xf32>
    %c40_171 = arith.constant 40 : index
    %c0_172 = arith.constant 0 : index
    %193 = vector.load %arg19[%c40_171, %c0_172] : memref<304x8xf32, #tpu.memory_space<vmem>>, vector<256x8xf32>
    %c7_173 = arith.constant 7 : index
    %c0_174 = arith.constant 0 : index
    %c0_175 = arith.constant 0 : index
    %194 = vector.load %arg8[%c7_173, %c0_174, %c0_175] : memref<9x8x8xf32, #tpu.memory_space<vmem>>, vector<1x8x8xf32>
    %195 = vector.shape_cast %194 : vector<1x8x8xf32> to vector<8x8xf32>
    %cst_176 = arith.constant dense<0.000000e+00> : vector<256x8xf32>
    %196 = tpu.matmul %193, %195, %cst_176 {dimension_numbers = #tpu.dot_dimension_numbers<[1], [0], [0], [1], [0, 0, 1, 1], [], []>} : vector<256x8xf32>, vector<8x8xf32>, vector<256x8xf32> -> vector<256x8xf32>
    %197 = arith.addf %192, %196 : vector<256x8xf32>
    %c41_177 = arith.constant 41 : index
    %c0_178 = arith.constant 0 : index
    %198 = vector.load %arg19[%c41_177, %c0_178] : memref<304x8xf32, #tpu.memory_space<vmem>>, vector<256x8xf32>
    %199 = vector.broadcast %1 : vector<256x1xf32> to vector<256x8xf32>
    %200 = arith.mulf %198, %199 : vector<256x8xf32>
    %c8_179 = arith.constant 8 : index
    %c0_180 = arith.constant 0 : index
    %c0_181 = arith.constant 0 : index
    %201 = vector.load %arg8[%c8_179, %c0_180, %c0_181] : memref<9x8x8xf32, #tpu.memory_space<vmem>>, vector<1x8x8xf32>
    %202 = vector.shape_cast %201 : vector<1x8x8xf32> to vector<8x8xf32>
    %cst_182 = arith.constant dense<0.000000e+00> : vector<256x8xf32>
    %203 = tpu.matmul %200, %202, %cst_182 {dimension_numbers = #tpu.dot_dimension_numbers<[1], [0], [0], [1], [0, 0, 1, 1], [], []>} : vector<256x8xf32>, vector<8x8xf32>, vector<256x8xf32> -> vector<256x8xf32>
    %204 = arith.addf %197, %203 : vector<256x8xf32>
    %c0_183 = arith.constant 0 : index
    %c0_184 = arith.constant 0 : index
    %205 = vector.load %arg9[%c0_183, %c0_184] : memref<1x8xf32, #tpu.memory_space<vmem>>, vector<1x8xf32>
    %206 = vector.broadcast %205 : vector<1x8xf32> to vector<256x8xf32>
    %207 = arith.mulf %204, %206 : vector<256x8xf32>
    %c0_185 = arith.constant 0 : index
    %c0_186 = arith.constant 0 : index
    %208 = vector.load %arg10[%c0_185, %c0_186] : memref<1x8xf32, #tpu.memory_space<vmem>>, vector<1x8xf32>
    %209 = vector.broadcast %208 : vector<1x8xf32> to vector<256x8xf32>
    %210 = arith.addf %207, %209 : vector<256x8xf32>
    %c0_187 = arith.constant 0 : index
    %c0_188 = arith.constant 0 : index
    %211 = vector.load %arg11[%c0_187, %c0_188] : memref<4x8xf32, #tpu.memory_space<vmem>>, vector<4x8xf32>
    %cst_189 = arith.constant dense<0.000000e+00> : vector<256x8xf32>
    %212 = tpu.matmul %3, %211, %cst_189 {dimension_numbers = #tpu.dot_dimension_numbers<[1], [0], [0], [1], [0, 0, 1, 1], [], []>} : vector<256x4xf32>, vector<4x8xf32>, vector<256x8xf32> -> vector<256x8xf32>
    %c0_190 = arith.constant 0 : index
    %c0_191 = arith.constant 0 : index
    %213 = vector.load %arg12[%c0_190, %c0_191] : memref<1x8xf32, #tpu.memory_space<vmem>>, vector<1x8xf32>
    %214 = vector.broadcast %213 : vector<1x8xf32> to vector<256x8xf32>
    %215 = arith.mulf %212, %214 : vector<256x8xf32>
    %c0_192 = arith.constant 0 : index
    %c0_193 = arith.constant 0 : index
    %216 = vector.load %arg13[%c0_192, %c0_193] : memref<1x8xf32, #tpu.memory_space<vmem>>, vector<1x8xf32>
    %217 = vector.broadcast %216 : vector<1x8xf32> to vector<256x8xf32>
    %218 = arith.addf %215, %217 : vector<256x8xf32>
    %219 = arith.addf %210, %218 : vector<256x8xf32>
    %cst_194 = arith.constant 0.000000e+00 : f32
    %220 = vector.broadcast %cst_194 : f32 to vector<256x8xf32>
    %221 = arith.cmpf oge, %219, %220 : vector<256x8xf32>
    %cst_195 = arith.constant 1.000000e-01 : f32
    %222 = vector.broadcast %cst_195 : f32 to vector<256x8xf32>
    %223 = arith.mulf %222, %219 : vector<256x8xf32>
    %224 = arith.select %221, %219, %223 : vector<256x8xi1>, vector<256x8xf32>
    %c0_196 = arith.constant 0 : index
    %c0_197 = arith.constant 0 : index
    %225 = vector.load %arg20[%c0_196, %c0_197] : memref<256x8xf32, #tpu.memory_space<vmem>>, vector<256x8xf32>
    tpu.vector_store %arg20[%c0_196, %c0_197], %224 {strides = array<i32>} : memref<256x8xf32, #tpu.memory_space<vmem>>, vector<256x8xf32>,
    %c0_198 = arith.constant 0 : index
    %c0_199 = arith.constant 0 : index
    %226 = tpu.strided_load %arg20[%c0_198, %c0_199] {strides = array<i32: 2, 1>} : memref<256x8xf32, #tpu.memory_space<vmem>>, vector<128x8xf32>
    %c1_200 = arith.constant 1 : index
    %c0_201 = arith.constant 0 : index
    %227 = tpu.strided_load %arg20[%c1_200, %c0_201] {strides = array<i32: 2, 1>} : memref<256x8xf32, #tpu.memory_space<vmem>>, vector<128x8xf32>
    %228 = arith.maximumf %226, %227 : vector<128x8xf32>
    %229 = vector.shape_cast %228 : vector<128x8xf32> to vector<8x16x8xf32>
    %230 = vector.extract_strided_slice %229 {offsets = [0, 0, 0], sizes = [8, 8, 8], strides = [1, 1, 1]} : vector<8x16x8xf32> to vector<8x8x8xf32>
    %231 = vector.extract_strided_slice %229 {offsets = [0, 8, 0], sizes = [8, 8, 8], strides = [1, 1, 1]} : vector<8x16x8xf32> to vector<8x8x8xf32>
    %232 = arith.maximumf %230, %231 : vector<8x8x8xf32>
    %c0_202 = arith.constant 0 : index
    %c0_203 = arith.constant 0 : index
    %c0_204 = arith.constant 0 : index
    %c0_205 = arith.constant 0 : index
    %233 = vector.load %arg16[%c0_202, %c0_203, %c0_204, %c0_205] : memref<1x8x8x8xf32, #tpu.memory_space<vmem>>, vector<1x8x8x8xf32>
    %234 = vector.shape_cast %233 : vector<1x8x8x8xf32> to vector<8x8x8xf32>
    %235 = vector.shape_cast %232 : vector<8x8x8xf32> to vector<1x8x8x8xf32>
    tpu.vector_store %arg16[%c0_202, %c0_203, %c0_204, %c0_205], %235 {strides = array<i32>} : memref<1x8x8x8xf32, #tpu.memory_space<vmem>>, vector<1x8x8x8xf32>,
    return
  }
  func.func @transform_0(%arg0: i32) -> (i32, i32, i32) {
    %c0_i32 = arith.constant 0 : i32
    %c0_i32_0 = arith.constant 0 : i32
    %c0_i32_1 = arith.constant 0 : i32
    return %arg0, %c0_i32, %c0_i32_0 : i32, i32, i32
  }
  func.func @transform_1(%arg0: i32) -> (i32, i32, i32) {
    %c0_i32 = arith.constant 0 : i32
    %c0_i32_0 = arith.constant 0 : i32
    %c0_i32_1 = arith.constant 0 : i32
    %c0_i32_2 = arith.constant 0 : i32
    return %c0_i32, %c0_i32_0, %c0_i32_1 : i32, i32, i32
  }
  func.func @transform_2(%arg0: i32) -> (i32, i32) {
    %c0_i32 = arith.constant 0 : i32
    %c0_i32_0 = arith.constant 0 : i32
    %c0_i32_1 = arith.constant 0 : i32
    return %c0_i32, %c0_i32_0 : i32, i32
  }
  func.func @transform_3(%arg0: i32) -> (i32, i32) {
    %c0_i32 = arith.constant 0 : i32
    %c0_i32_0 = arith.constant 0 : i32
    %c0_i32_1 = arith.constant 0 : i32
    return %c0_i32, %c0_i32_0 : i32, i32
  }
  func.func @transform_4(%arg0: i32) -> (i32, i32, i32) {
    %c0_i32 = arith.constant 0 : i32
    %c0_i32_0 = arith.constant 0 : i32
    %c0_i32_1 = arith.constant 0 : i32
    %c0_i32_2 = arith.constant 0 : i32
    return %c0_i32, %c0_i32_0, %c0_i32_1 : i32, i32, i32
  }
  func.func @transform_5(%arg0: i32) -> (i32, i32) {
    %c0_i32 = arith.constant 0 : i32
    %c0_i32_0 = arith.constant 0 : i32
    %c0_i32_1 = arith.constant 0 : i32
    return %c0_i32, %c0_i32_0 : i32, i32
  }
  func.func @transform_6(%arg0: i32) -> (i32, i32) {
    %c0_i32 = arith.constant 0 : i32
    %c0_i32_0 = arith.constant 0 : i32
    %c0_i32_1 = arith.constant 0 : i32
    return %c0_i32, %c0_i32_0 : i32, i32
  }
  func.func @transform_7(%arg0: i32) -> (i32, i32, i32) {
    %c0_i32 = arith.constant 0 : i32
    %c0_i32_0 = arith.constant 0 : i32
    %c0_i32_1 = arith.constant 0 : i32
    %c0_i32_2 = arith.constant 0 : i32
    return %c0_i32, %c0_i32_0, %c0_i32_1 : i32, i32, i32
  }
  func.func @transform_8(%arg0: i32) -> (i32, i32) {
    %c0_i32 = arith.constant 0 : i32
    %c0_i32_0 = arith.constant 0 : i32
    %c0_i32_1 = arith.constant 0 : i32
    return %c0_i32, %c0_i32_0 : i32, i32
  }
  func.func @transform_9(%arg0: i32) -> (i32, i32) {
    %c0_i32 = arith.constant 0 : i32
    %c0_i32_0 = arith.constant 0 : i32
    %c0_i32_1 = arith.constant 0 : i32
    return %c0_i32, %c0_i32_0 : i32, i32
  }
  func.func @transform_10(%arg0: i32) -> (i32, i32) {
    %c0_i32 = arith.constant 0 : i32
    %c0_i32_0 = arith.constant 0 : i32
    %c0_i32_1 = arith.constant 0 : i32
    return %c0_i32, %c0_i32_0 : i32, i32
  }
  func.func @transform_11(%arg0: i32) -> (i32, i32) {
    %c0_i32 = arith.constant 0 : i32
    %c0_i32_0 = arith.constant 0 : i32
    %c0_i32_1 = arith.constant 0 : i32
    return %c0_i32, %c0_i32_0 : i32, i32
  }
  func.func @transform_12(%arg0: i32) -> (i32, i32) {
    %c0_i32 = arith.constant 0 : i32
    %c0_i32_0 = arith.constant 0 : i32
    %c0_i32_1 = arith.constant 0 : i32
    return %c0_i32, %c0_i32_0 : i32, i32
  }
  func.func @transform_13(%arg0: i32) -> (i32, i32) {
    %c0_i32 = arith.constant 0 : i32
    %c0_i32_0 = arith.constant 0 : i32
    %c0_i32_1 = arith.constant 0 : i32
    return %c0_i32, %c0_i32_0 : i32, i32
  }
  func.func @transform_14(%arg0: i32) -> (i32, i32) {
    %c0_i32 = arith.constant 0 : i32
    %c0_i32_0 = arith.constant 0 : i32
    %c0_i32_1 = arith.constant 0 : i32
    return %c0_i32, %c0_i32_0 : i32, i32
  }
  func.func @transform_15(%arg0: i32) -> (i32, i32, i32, i32) {
    %c0_i32 = arith.constant 0 : i32
    %c0_i32_0 = arith.constant 0 : i32
    %c0_i32_1 = arith.constant 0 : i32
    %c0_i32_2 = arith.constant 0 : i32
    return %arg0, %c0_i32, %c0_i32_0, %c0_i32_1 : i32, i32, i32, i32
  }
}

</mosaic_0001>

<bundles_post_ra>
// kernel: basic_block_forward.1
= control target key start
LH: loop header
LB: loop body
LE: loop exit
PB: predicated region body
PF: predicated region fallthrough
CT: control target
= control target key end

     0   :  { %s16404_s18 = smov 0   ;;  %s22051_s0 = inlined_call_operand.vmem [shape: f32[2,256,4], index: 0, kind: input, shape index: {}]   ;;  %s22052_s1 = inlined_call_operand.vmem [shape: f32[9,4,8], index: 1, kind: input, shape index: {}]   ;;  %s22053_s2 = inlined_call_operand.vmem [shape: f32[1,8], index: 2, kind: input, shape index: {}]   ;;  %s22054_s3 = inlined_call_operand.vmem [shape: f32[1,8], index: 3, kind: input, shape index: {}]   ;;  %s22055_s4 = inlined_call_operand.vmem [shape: f32[9,8,8], index: 4, kind: input, shape index: {}]   ;;  %s22056_s5 = inlined_call_operand.vmem [shape: f32[1,8], index: 5, kind: input, shape index: {}]   ;;  %s22057_s6 = inlined_call_operand.vmem [shape: f32[1,8], index: 6, kind: input, shape index: {}]   ;;  %s22058_s7 = inlined_call_operand.vmem [shape: f32[9,8,8], index: 7, kind: input, shape index: {}]   ;;  %s22059_s8 = inlined_call_operand.vmem [shape: f32[1,8], index: 8, kind: input, shape index: {}]   ;;  %s22060_s9 = inlined_call_operand.vmem [shape: f32[1,8], index: 9, kind: input, shape index: {}]   ;;  %s22061_s10 = inlined_call_operand.vmem [shape: f32[4,8], index: 10, kind: input, shape index: {}]   ;;  %s22062_s11 = inlined_call_operand.vmem [shape: f32[1,8], index: 11, kind: input, shape index: {}]   ;;  %s22063_s12 = inlined_call_operand.vmem [shape: f32[1,8], index: 12, kind: input, shape index: {}]   ;;  %s22064_s13 = inlined_call_operand.vmem [shape: f32[256,1], index: 13, kind: input, shape index: {}]   ;;  %s22065_s14 = inlined_call_operand.vmem [shape: f32[256,1], index: 14, kind: input, shape index: {}]   ;;  %s22066_s15 = inlined_call_operand.vmem [shape: f32[2,8,8,8], index: 15, kind: output, shape index: {}]  }
   0x1 LB: > { %s13024_s19 = sadd.s32 4294967295, %s16320_s18   ;;  %p13028_p0 = scmp.ge.s32.totalorder %s16320_s18, 1  ;;  %s16320_s18 = sphi %s16404_s18, %s25_s18  }
   0x2   : > { %p437_p1 = scmp.lt.s32.totalorder %s16320_s18, 3 }
   0x4   : > { %p438_p2 = pnand %p13028_p0, %p437_p1 }
   0x6   : > { %441 = sbr.rel (%p438_p2) target bundleno = 1627 (0x65b), region = 80 }
   0xb   : > { %v527_v0 = vld [vmem:[%s22065_s14] sm:$0xff]  ;;  %vm591_vm0 = vcmask 31744   ;;  %v16322_v2 = vmov 0   ;;  %p16420_p3 = scmp.lt.s32.totalorder %s13024_s19, 1  ;;  %vm598_vm1 = vcmask 64512   ;;  %v16323_v3 = vmov 0.0  }
   0xc   : > { %v495_v1 = vld [vmem:[%s22064_s13] sm:$0xff]  ;;  %16310 = vset.pattern.permute.xlu1 %v16322_v2  ;;  %16309 = vset.pattern.permute.xlu0 %v16322_v2  ;;  %593 = vst.msk [vmem:[#allocation2 + $0x8] sm:$0xff] %vm591_vm0, %v16323_v3  ;;  %592 = vst.msk [vmem:[#allocation2] sm:$0xff] %vm591_vm0, %v16323_v3  ;;  %v528_v4 = vld [vmem:[%s22065_s14 + $0x8] sm:$0xff]  ;;  %vm998_vm2 = vcmask 1043456  }
   0xd   : > { %1585 = vperm.xlu1 %16310, %v527_v0   ;;  %677 = vperm.xlu0 %16309, %v495_v1   ;;  %594 = vst.msk [vmem:[#allocation2 + $0x10] sm:$0xff] %vm591_vm0, %v16323_v3  ;;  %595 = vst.msk [vmem:[#allocation2 + $0x118] sm:$0xff] %vm591_vm0, %v16323_v3  ;;  %v496_v5 = vld [vmem:[%s22064_s13 + $0x8] sm:$0xff]  ;;  %s23616_s19 = smov (!%p16420_p3, %s13024_s19), 1  ;;  %v498_v6 = vld [vmem:[%s22064_s13 + $0x18] sm:$0xff] }
   0xe   : > { %596 = vst.msk [vmem:[#allocation2 + $0x120] sm:$0xff] %vm591_vm0, %v16323_v3  ;;  %597 = vst.msk [vmem:[#allocation2 + $0x128] sm:$0xff] %vm591_vm0, %v16323_v3  ;;  %v497_v7 = vld [vmem:[%s22064_s13 + $0x10] sm:$0xff]  ;;  %s13973_s20 = sshll.u32 %s23616_s19, 8  ;;  %v13033_v8 = vld [vmem:[%s22052_s1 + $0x4] sm:$0xf] }
   0xf   : > { %599 = vst.msk [vmem:[#allocation3] sm:$0xff] %vm598_vm1, %v16323_v3  ;;  %600 = vst.msk [vmem:[#allocation3 + $0x8] sm:$0xff] %vm598_vm1, %v16323_v3  ;;  %s16467_s25 = scalar_lea.vmem %s22051_s0, %s13973_s20  ;;  %v530_v9 = vld [vmem:[%s22065_s14 + $0x18] sm:$0xff]  ;;  %v529_v10 = vld [vmem:[%s22065_s14 + $0x10] sm:$0xff]  ;;  %14899 = vmatprep.subr.msk.mxu0 %vm998_vm2, %v13033_v8  ;;  %s13974_s16 = sshll.u32 %s23616_s19, 6 }
  0x10   : > { %601 = vst.msk [vmem:[#allocation3 + $0x10] sm:$0xff] %vm598_vm1, %v16323_v3  ;;  %602 = vst.msk [vmem:[#allocation3 + $0x118] sm:$0xff] %vm598_vm1, %v16323_v3  ;;  %14900 = vmatpush3.msk.msra.mxu0 %vm998_vm2, %v13033_v8  ;;  %v16480_v13 = vld [vmem:[%s16467_s25] sm:$0xff]  ;;  %v16483_v14 = vld [vmem:[%s16467_s25 + $0x8] sm:$0xff]  ;;  %s21887_s20 = scalar_lea.vmem %s22066_s15, %s13974_s16 }
  0x11   : > { %603 = vst.msk [vmem:[#allocation3 + $0x120] sm:$0xff] %vm598_vm1, %v16323_v3  ;;  %604 = vst.msk [vmem:[#allocation3 + $0x128] sm:$0xff] %vm598_vm1, %v16323_v3  ;;  %1590 = vperm.xlu1 %16310, %v528_v4   ;;  %682 = vperm.xlu0 %16309, %v496_v5   ;;  %v16490_v15 = vld [vmem:[%s16467_s25 + $0x10] sm:$0xff]  ;;  %v16493_v16 = vld [vmem:[%s16467_s25 + $0x18] sm:$0xff] }
  0x12   : > { %605 = vst.msk [vmem:[#allocation4] sm:$0xff] %vm598_vm1, %v16323_v3  ;;  %606 = vst.msk [vmem:[#allocation4 + $0x8] sm:$0xff] %vm598_vm1, %v16323_v3  ;;  %v500_v17 = vld [vmem:[%s22064_s13 + $0x28] sm:$0xff]  ;;  %v499_v18 = vld [vmem:[%s22064_s13 + $0x20] sm:$0xff] }
  0x13   : > { %607 = vst.msk [vmem:[#allocation4 + $0x10] sm:$0xff] %vm598_vm1, %v16323_v3  ;;  %608 = vst.msk [vmem:[#allocation4 + $0x118] sm:$0xff] %vm598_vm1, %v16323_v3  ;;  %v868_v11 = vld [vmem:[#allocation2 + $0x8] sm:$0xff]  ;;  %v16506_v19 = vld [vmem:[%s16467_s25 + $0x20] sm:$0xff] }
  0x14   : > { %609 = vst.msk [vmem:[#allocation4 + $0x120] sm:$0xff] %vm598_vm1, %v16323_v3  ;;  %610 = vst.msk [vmem:[#allocation4 + $0x128] sm:$0xff] %vm598_vm1, %v16323_v3  ;;  %14901 = vmatprep.mubr.msk.f32.mxu0 %vm591_vm0, %v868_v11  ;;  %v869_v12 = vld [vmem:[#allocation2 + $0x10] sm:$0xff]  ;;  %v16511_v20 = vld [vmem:[%s16467_s25 + $0x28] sm:$0xff] }
  0x15   : > { %692 = vperm.xlu1 %16310, %v498_v6   ;;  %687 = vperm.xlu0 %16309, %v497_v7   ;;  %22479 = vst [vmem:[#allocation6_spill] sm:$0xff] %v16480_v13  ;;  %22480 = vst [vmem:[#allocation7_spill] sm:$0xff] %v16483_v14  ;;  %v16516_v21 = vld [vmem:[%s16467_s25 + $0x30] sm:$0xff]  ;;  %v16519_v22 = vld [vmem:[%s16467_s25 + $0x38] sm:$0xff] }
  0x16   : > { %14902 = vmatmul.mubr.msk.f32.vlgmr.msra.gmra.mxu0 %vm591_vm0, %v869_v12  ;;  %611 = vst.msk [vmem:[#allocation2 + $0x18] sm:$0xff] %vm591_vm0, %v16480_v13  ;;  %612 = vst.msk [vmem:[#allocation2 + $0x20] sm:$0xff] %vm591_vm0, %v16483_v14  ;;  %v16526_v23 = vld [vmem:[%s16467_s25 + $0x40] sm:$0xff]  ;;  %v16529_v24 = vld [vmem:[%s16467_s25 + $0x48] sm:$0xff] }
  0x17   : > { %22481 = vst [vmem:[#allocation8_spill] sm:$0xff] %v16490_v15  ;;  %22482 = vst [vmem:[#allocation9_spill] sm:$0xff] %v16493_v16  ;;  %v532_v25 = vld [vmem:[%s22065_s14 + $0x28] sm:$0xff]  ;;  %v531_v26 = vld [vmem:[%s22065_s14 + $0x20] sm:$0xff] }
  0x18   : > { %613 = vst.msk [vmem:[#allocation2 + $0x28] sm:$0xff] %vm591_vm0, %v16490_v15  ;;  %614 = vst.msk [vmem:[#allocation2 + $0x30] sm:$0xff] %vm591_vm0, %v16493_v16  ;;  %v16542_v27 = vld [vmem:[%s16467_s25 + $0x50] sm:$0xff]  ;;  %v16547_v28 = vld [vmem:[%s16467_s25 + $0x58] sm:$0xff] }
  0x19   : > { %1600 = vperm.xlu1 %16310, %v530_v9   ;;  %1595 = vperm.xlu0 %16309, %v529_v10   ;;  %22483 = vst [vmem:[#allocation10_spill] sm:$0xff] %v16506_v19  ;;  %615 = vst.msk [vmem:[#allocation2 + $0x38] sm:$0xff] %vm591_vm0, %v16506_v19  ;;  %v16556_v31 = vld [vmem:[%s16467_s25 + $0x60] sm:$0xff]  ;;  %v16563_v33 = vld [vmem:[%s16467_s25 + $0x68] sm:$0xff] }
  0x1a   : > { %22484 = vst [vmem:[#allocation11_spill] sm:$0xff] %v16511_v20  ;;  %616 = vst.msk [vmem:[#allocation2 + $0x40] sm:$0xff] %vm591_vm0, %v16511_v20  ;;  %v502_v34 = vld [vmem:[%s22064_s13 + $0x38] sm:$0xff]  ;;  %v501_v35 = vld [vmem:[%s22064_s13 + $0x30] sm:$0xff] }
  0x1b   : > { %22485 = vst [vmem:[#allocation12_spill] sm:$0xff] %v16516_v21  ;;  %22486 = vst [vmem:[#allocation13_spill] sm:$0xff] %v16519_v22  ;;  %v16578_v36 = vld [vmem:[%s16467_s25 + $0x70] sm:$0xff]  ;;  %v16581_v37 = vld [vmem:[%s16467_s25 + $0x78] sm:$0xff] }
  0x1c   : > { %617 = vst.msk [vmem:[#allocation2 + $0x48] sm:$0xff] %vm591_vm0, %v16516_v21  ;;  %618 = vst.msk [vmem:[#allocation2 + $0x50] sm:$0xff] %vm591_vm0, %v16519_v22  ;;  %v534_v39 = vld [vmem:[%s22065_s14 + $0x38] sm:$0xff]  ;;  %v533_v41 = vld [vmem:[%s22065_s14 + $0x30] sm:$0xff] }
  0x1d   : > { %702 = vperm.xlu1 %16310, %v500_v17   ;;  %697 = vperm.xlu0 %16309, %v499_v18   ;;  %22487 = vst [vmem:[#allocation14_spill] sm:$0xff] %v16526_v23  ;;  %22488 = vst [vmem:[#allocation15_spill] sm:$0xff] %v16529_v24  ;;  %v16549_v29 = vld [vmem:[#allocation2 + $0x18] sm:$0xff]  ;;  %v16551_v30 = vld [vmem:[#allocation2 + $0x20] sm:$0xff] }
  0x1e   : > { %619 = vst.msk [vmem:[#allocation2 + $0x58] sm:$0xff] %vm591_vm0, %v16526_v23  ;;  %620 = vst.msk [vmem:[#allocation2 + $0x60] sm:$0xff] %vm591_vm0, %v16529_v24  ;;  %14904 = vmatprep.mubr.msk.f32.mxu0 %vm591_vm0, %v16549_v29  ;;  %v16600_v42 = vld [vmem:[%s16467_s25 + $0x80] sm:$0xff]  ;;  %v16603_v43 = vld [vmem:[%s16467_s25 + $0x88] sm:$0xff] }
  0x1f   : > { %22489 = vst [vmem:[#allocation16_spill] sm:$0xff] %v16542_v27  ;;  %621 = vst.msk [vmem:[#allocation2 + $0x68] sm:$0xff] %vm591_vm0, %v16542_v27  ;;  %v16558_v32 = vld [vmem:[#allocation2 + $0x28] sm:$0xff]  ;;  %14905 = vmatmul.mubr.msk.f32.gmra.mxu0 %vm591_vm0, %v16551_v30  ;;  %v16585_v38 = vld [vmem:[#allocation2 + $0x30] sm:$0xff] }
  0x20   : > { %22490 = vst [vmem:[#allocation17_spill] sm:$0xff] %v16547_v28  ;;  %622 = vst.msk [vmem:[#allocation2 + $0x70] sm:$0xff] %vm591_vm0, %v16547_v28  ;;  %14907 = vmatprep.mubr.msk.f32.mxu0 %vm591_vm0, %v16558_v32  ;;  %v16594_v40 = vld [vmem:[#allocation2 + $0x38] sm:$0xff]  ;;  %v16616_v45 = vld [vmem:[%s16467_s25 + $0x90] sm:$0xff] }
  0x21   : > { %22491 = vst [vmem:[#allocation18_spill] sm:$0xff] %v16556_v31  ;;  %1610 = vperm.xlu1 %16310, %v532_v25   ;;  %1605 = vperm.xlu0 %16309, %v531_v26   ;;  %623 = vst.msk [vmem:[#allocation2 + $0x78] sm:$0xff] %vm591_vm0, %v16556_v31  ;;  %v16613_v44 = vld [vmem:[#allocation2 + $0x40] sm:$0xff]  ;;  %v16619_v46 = vld [vmem:[%s16467_s25 + $0x98] sm:$0xff] }
  0x22   : > { %22492 = vst [vmem:[#allocation19_spill] sm:$0xff] %v16563_v33  ;;  %624 = vst.msk [vmem:[#allocation2 + $0x80] sm:$0xff] %vm591_vm0, %v16563_v33  ;;  %v504_v47 = vld [vmem:[%s22064_s13 + $0x48] sm:$0xff]  ;;  %v503_v49 = vld [vmem:[%s22064_s13 + $0x40] sm:$0xff] }
  0x23   : > { %22493 = vst [vmem:[#allocation20_spill] sm:$0xff] %v16578_v36  ;;  %22494 = vst [vmem:[#allocation21_spill] sm:$0xff] %v16581_v37  ;;  %14908 = vmatmul.mubr.msk.f32.gmra.mxu0 %vm591_vm0, %v16585_v38  ;;  %v16624_v48 = vld [vmem:[#allocation2 + $0x48] sm:$0xff]  ;;  %v16634_v50 = vld [vmem:[%s16467_s25 + $0xa0] sm:$0xff] }
  0x24   : > { %625 = vst.msk [vmem:[#allocation2 + $0x88] sm:$0xff] %vm591_vm0, %v16578_v36  ;;  %626 = vst.msk [vmem:[#allocation2 + $0x90] sm:$0xff] %vm591_vm0, %v16581_v37  ;;  %14910 = vmatprep.mubr.msk.f32.mxu0 %vm591_vm0, %v16594_v40  ;;  %v16637_v51 = vld [vmem:[%s16467_s25 + $0xa8] sm:$0xff]  ;;  %v16647_v52 = vld [vmem:[#allocation2 + $0x50] sm:$0xff] }
  0x25   : > { %712 = vperm.xlu1 %16310, %v502_v34   ;;  %707 = vperm.xlu0 %16309, %v501_v35   ;;  %22495 = vst [vmem:[#allocation22_spill] sm:$0xff] %v16600_v42  ;;  %22496 = vst [vmem:[#allocation23_spill] sm:$0xff] %v16603_v43  ;;  %v16650_v53 = vld [vmem:[%s16467_s25 + $0xb0] sm:$0xff]  ;;  %v16653_v54 = vld [vmem:[%s16467_s25 + $0xb8] sm:$0xff] }
  0x26   : > { %627 = vst.msk [vmem:[#allocation2 + $0x98] sm:$0xff] %vm591_vm0, %v16600_v42  ;;  %628 = vst.msk [vmem:[#allocation2 + $0xa0] sm:$0xff] %vm591_vm0, %v16603_v43  ;;  %v16655_v55 = vld [vmem:[#allocation2 + $0x58] sm:$0xff]  ;;  %v16662_v56 = vld [vmem:[%s16467_s25 + $0xc0] sm:$0xff] }
  0x27   : > { %22497 = vst [vmem:[#allocation24_spill] sm:$0xff] %v16616_v45  ;;  %22498 = vst [vmem:[#allocation25_spill] sm:$0xff] %v16619_v46  ;;  %14911 = vmatmul.mubr.msk.f32.gmra.mxu0 %vm591_vm0, %v16613_v44  ;;  %v16665_v57 = vld [vmem:[%s16467_s25 + $0xc8] sm:$0xff]  ;;  %v535_v59 = vld [vmem:[%s22065_s14 + $0x40] sm:$0xff] }
  0x28   : > { %629 = vst.msk [vmem:[#allocation2 + $0xa8] sm:$0xff] %vm591_vm0, %v16616_v45  ;;  %630 = vst.msk [vmem:[#allocation2 + $0xb0] sm:$0xff] %vm591_vm0, %v16619_v46  ;;  %14913 = vmatprep.mubr.msk.f32.mxu0 %vm591_vm0, %v16624_v48  ;;  %v536_v58 = vld [vmem:[%s22065_s14 + $0x48] sm:$0xff]  ;;  %v16680_v60 = vld [vmem:[%s16467_s25 + $0xd0] sm:$0xff] }
  0x29   : > { %1620 = vperm.xlu1 %16310, %v534_v39   ;;  %1615 = vperm.xlu0 %16309, %v533_v41   ;;  %22499 = vst [vmem:[#allocation26_spill] sm:$0xff] %v16634_v50  ;;  %22500 = vst [vmem:[#allocation27_spill] sm:$0xff] %v16637_v51  ;;  %v16683_v61 = vld [vmem:[%s16467_s25 + $0xd8] sm:$0xff]  ;;  %v16687_v62 = vld [vmem:[#allocation2 + $0x60] sm:$0xff] }
  0x2a   : > { %631 = vst.msk [vmem:[#allocation2 + $0xb8] sm:$0xff] %vm591_vm0, %v16634_v50  ;;  %632 = vst.msk [vmem:[#allocation2 + $0xc0] sm:$0xff] %vm591_vm0, %v16637_v51  ;;  %v16693_v63 = vld [vmem:[#allocation2 + $0x68] sm:$0xff]  ;;  %v16696_v0 = vld [vmem:[%s16467_s25 + $0xe0] sm:$0xff] }
  0x2b   : > { %22501 = vst [vmem:[#allocation28_spill] sm:$0xff] %v16650_v53  ;;  %22502 = vst [vmem:[#allocation29_spill] sm:$0xff] %v16653_v54  ;;  %14914 = vmatmul.mubr.msk.f32.gmra.mxu0 %vm591_vm0, %v16647_v52  ;;  %v16699_v1 = vld [vmem:[%s16467_s25 + $0xe8] sm:$0xff]  ;;  %v506_v2 = vld [vmem:[%s22064_s13 + $0x58] sm:$0xff] }
  0x2c   : > { %633 = vst.msk [vmem:[#allocation2 + $0xc8] sm:$0xff] %vm591_vm0, %v16650_v53  ;;  %634 = vst.msk [vmem:[#allocation2 + $0xd0] sm:$0xff] %vm591_vm0, %v16653_v54  ;;  %14916 = vmatprep.mubr.msk.f32.mxu0 %vm591_vm0, %v16655_v55  ;;  %v505_v3 = vld [vmem:[%s22064_s13 + $0x50] sm:$0xff]  ;;  %v13100_v4 = vld [vmem:[%s22052_s1 + $0x8] sm:$0xf] }
  0x2d   : > { %722 = vperm.xlu1 %16310, %v504_v47   ;;  %717 = vperm.xlu0 %16309, %v503_v49   ;;  %22503 = vst [vmem:[#allocation30_spill] sm:$0xff] %v16662_v56  ;;  %22504 = vst [vmem:[#allocation31_spill] sm:$0xff] %v16665_v57  ;;  %v867_v5 = vld [vmem:[%s22052_s1] sm:$0xf]  ;;  %v16721_v6 = vld [vmem:[#allocation2 + $0x70] sm:$0xff] }
  0x2e   : > { %635 = vst.msk [vmem:[#allocation2 + $0xd8] sm:$0xff] %vm591_vm0, %v16662_v56  ;;  %636 = vst.msk [vmem:[#allocation2 + $0xe0] sm:$0xff] %vm591_vm0, %v16665_v57  ;;  %14999 = vmatprep.subr.msk.mxu0 %vm998_vm2, %v13100_v4  ;;  %v16724_v7 = vld [vmem:[#allocation2 + $0x78] sm:$0xff]  ;;  %v537_v9 = vld [vmem:[%s22065_s14 + $0x50] sm:$0xff]  ;;  %14949 = vmatprep.subr.msk.mxu1 %vm998_vm2, %v867_v5 }
  0x2f   : > { %22505 = vst [vmem:[#allocation32_spill] sm:$0xff] %v16680_v60  ;;  %22506 = vst [vmem:[#allocation33_spill] sm:$0xff] %v16683_v61  ;;  %14917 = vmatmul.mubr.msk.f32.gmra.mxu0 %vm591_vm0, %v16687_v62  ;;  %v538_v8 = vld [vmem:[%s22065_s14 + $0x58] sm:$0xff]  ;;  %14950 = vmatpush3.msk.msra.mxu1 %vm998_vm2, %v867_v5  ;;  %v16739_v10 = vld [vmem:[#allocation2 + $0x80] sm:$0xff] }
  0x30   : > { %637 = vst.msk [vmem:[#allocation2 + $0xe8] sm:$0xff] %vm591_vm0, %v16680_v60  ;;  %638 = vst.msk [vmem:[#allocation2 + $0xf0] sm:$0xff] %vm591_vm0, %v16683_v61  ;;  %14919 = vmatprep.mubr.msk.f32.mxu0 %vm591_vm0, %v16693_v63  ;;  %15000 = vmatpush3.msk.msra.mxu0 %vm998_vm2, %v13100_v4  ;;  %v16741_v11 = vld [vmem:[#allocation2 + $0x88] sm:$0xff]  ;;  %v507_v17 = vld [vmem:[%s22064_s13 + $0x60] sm:$0xff] }
  0x31   : > { %1630 = vperm.xlu1 %16310, %v536_v58   ;;  %1625 = vperm.xlu0 %16309, %v535_v59   ;;  %22507 = vst [vmem:[#allocation34_spill] sm:$0xff] %v16696_v0  ;;  %22508 = vst [vmem:[#allocation35_spill] sm:$0xff] %v16699_v1  ;;  %v508_v12 = vld [vmem:[%s22064_s13 + $0x68] sm:$0xff]  ;;  %v16753_v18 = vld [vmem:[#allocation2 + $0x90] sm:$0xff] }
  0x32   : > { %639 = vst.msk [vmem:[#allocation2 + $0xf8] sm:$0xff] %vm591_vm0, %v16696_v0  ;;  %640 = vst.msk [vmem:[#allocation2 + $0x100] sm:$0xff] %vm591_vm0, %v16699_v1  ;;  %v16755_v25 = vld [vmem:[#allocation2 + $0x98] sm:$0xff]  ;;  %v540_v26 = vld [vmem:[%s22065_s14 + $0x68] sm:$0xff] }
  0x33   : > { %14920 = vmatmul.mubr.msk.f32.gmra.mxu0 %vm591_vm0, %v16721_v6  ;;  %22509 = vst [vmem:[#allocation36_spill] sm:$0xff] %v16753_v18  ;;  %22510 = vst [vmem:[#allocation37_spill] sm:$0xff] %v16755_v25  ;;  %v539_v34 = vld [vmem:[%s22065_s14 + $0x60] sm:$0xff]  ;;  %v16769_v39 = vld [vmem:[#allocation2 + $0xa8] sm:$0xff] }
  0x34   : > { %14922 = vmatprep.mubr.msk.f32.mxu0 %vm591_vm0, %v16724_v7  ;;  %v16767_v35 = vld [vmem:[#allocation2 + $0xa0] sm:$0xff]  ;;  %22512 = vst [vmem:[#allocation39_spill] sm:$0xff] %v16769_v39  ;;  %v510_v41 = vld [vmem:[%s22064_s13 + $0x78] sm:$0xff]  ;;  %v509_v47 = vld [vmem:[%s22064_s13 + $0x70] sm:$0xff] }
  0x35   : > { %732 = vperm.xlu1 %16310, %v506_v2   ;;  %727 = vperm.xlu0 %16309, %v505_v3   ;;  %22511 = vst [vmem:[#allocation38_spill] sm:$0xff] %v16767_v35  ;;  %v16781_v49 = vld [vmem:[#allocation2 + $0xb0] sm:$0xff]  ;;  %v16783_v58 = vld [vmem:[#allocation2 + $0xb8] sm:$0xff]  ;;  %v16795_v3 = vld [vmem:[#allocation2 + $0xc0] sm:$0xff] }
  0x36   : > { %22513 = vst [vmem:[#allocation40_spill] sm:$0xff] %v16781_v49  ;;  %22514 = vst [vmem:[#allocation41_spill] sm:$0xff] %v16783_v58  ;;  %v542_v59 = vld [vmem:[%s22065_s14 + $0x78] sm:$0xff]  ;;  %v541_v2 = vld [vmem:[%s22065_s14 + $0x70] sm:$0xff] }
  0x37   : > { %14923 = vmatmul.mubr.msk.f32.gmra.mxu0 %vm591_vm0, %v16739_v10  ;;  %22515 = vst [vmem:[#allocation42_spill] sm:$0xff] %v16795_v3  ;;  %v16800_v4 = vld [vmem:[%s22052_s1 + $0xc] sm:$0xf]  ;;  %v545_v1 = vld [vmem:[%s22065_s14 + $0x90] sm:$0xff]  ;;  %v17059_v15 = vld [vmem:[#allocation2 + $0x39] sm:$0xff] }
  0x38   : > { %14925 = vmatprep.mubr.msk.f32.mxu0 %vm591_vm0, %v16741_v11  ;;  %v16802_v5 = vld [vmem:[#allocation2 + $0xc8] sm:$0xff]  ;;  %15049 = vmatprep.subr.msk.mxu1 %vm998_vm2, %v16800_v4  ;;  %v16900_v60 = vld [vmem:[%s16467_s25 + $0xf0] sm:$0xff]  ;;  %22546 = vst [vmem:[#allocation73_spill] sm:$0xff] %v17059_v15 }
  0x39   : > { %1640 = vperm.xlu1 %16310, %v538_v8   ;;  %1635 = vperm.xlu0 %16309, %v537_v9   ;;  %22516 = vst [vmem:[#allocation43_spill] sm:$0xff] %v16802_v5  ;;  %v512_v8 = vld [vmem:[%s22064_s13 + $0x88] sm:$0xff]  ;;  %v511_v9 = vld [vmem:[%s22064_s13 + $0x80] sm:$0xff]  ;;  %22524 = vst [vmem:[#allocation51_spill] sm:$0xff] %v16900_v60 }
  0x3a   : > { %v16865_v0 = vld [vmem:[#allocation2 + $0x100] sm:$0xff]  ;;  %v548_v61 = vld [vmem:[%s22065_s14 + $0xa8] sm:$0xff]  ;;  %641 = vst.msk [vmem:[#allocation2 + $0x108] sm:$0xff] %vm591_vm0, %v16900_v60  ;;  %v1552_v53 = vld [vmem:[#allocation2 + $0x11] sm:$0xff] }
  0x3b   : > { %14926 = vmatmul.mubr.msk.f32.gmra.mxu0 %vm591_vm0, %v16753_v18  ;;  %22523 = vst [vmem:[#allocation50_spill] sm:$0xff] %v16865_v0  ;;  %v524_v60 = vld [vmem:[%s22064_s13 + $0xe8] sm:$0xff]  ;;  %v17045_v21 = vld [vmem:[#allocation2 + $0x37] sm:$0xff] }
  0x3c   : > { %14928 = vmatprep.mubr.msk.f32.mxu0 %vm591_vm0, %v16755_v25  ;;  %v17017_v36 = vld [vmem:[#allocation2 + $0x27] sm:$0xff] }
  0x3d   : > { %742 = vperm.xlu1 %16310, %v508_v12   ;;  %737 = vperm.xlu0 %16309, %v507_v17   ;;  %v16817_v12 = vld [vmem:[%s22052_s1 + $0x10] sm:$0xf]  ;;  %v17241_v18 = vld [vmem:[#allocation2 + $0xa7] sm:$0xff] }
  0x3e   : > { %v16821_v17 = vld [vmem:[#allocation2 + $0xd0] sm:$0xff]  ;;  %15099 = vmatprep.subr.msk.mxu0 %vm998_vm2, %v16817_v12  ;;  %22586 = vst [vmem:[#allocation113_spill] sm:$0xff] %v17241_v18 }
  0x3f   : > { %14929 = vmatmul.mubr.msk.f32.gmra.mxu0 %vm591_vm0, %v16767_v35  ;;  %22517 = vst [vmem:[#allocation44_spill] sm:$0xff] %v16821_v17  ;;  %v17031_v27 = vld [vmem:[#allocation2 + $0x29] sm:$0xff] }
  0x40   : > { %14931 = vmatprep.mubr.msk.f32.mxu0 %vm591_vm0, %v16769_v39  ;;  %22540 = vst [vmem:[#allocation67_spill] sm:$0xff] %v17031_v27  ;;  %v17213_v39 = vld [vmem:[#allocation2 + $0x97] sm:$0xff] }
  0x41   : > { %1650 = vperm.xlu1 %16310, %v540_v26   ;;  %1645 = vperm.xlu0 %16309, %v539_v34   ;;  %v16825_v26 = vld [vmem:[#allocation2 + $0xd8] sm:$0xff]  ;;  %v544_v34 = vld [vmem:[%s22065_s14 + $0x88] sm:$0xff] }
  0x42   : > { %22518 = vst [vmem:[#allocation45_spill] sm:$0xff] %v16825_v26 }
  0x43   : > { %14932 = vmatmul.mubr.msk.f32.gmra.mxu0 %vm591_vm0, %v16781_v49 }
  0x44   : > { %14934 = vmatprep.mubr.msk.f32.mxu0 %vm591_vm0, %v16783_v58 }
  0x45   : > { %752 = vperm.xlu1 %16310, %v510_v41   ;;  %747 = vperm.xlu0 %16309, %v509_v47   ;;  %v543_v41 = vld [vmem:[%s22065_s14 + $0x80] sm:$0xff] }
  0x46   : > { %v16837_v47 = vld [vmem:[#allocation2 + $0xe0] sm:$0xff] }
  0x47   : > { %14935 = vmatmul.mubr.msk.f32.gmra.mxu0 %vm591_vm0, %v16795_v3  ;;  %22519 = vst [vmem:[#allocation46_spill] sm:$0xff] %v16837_v47 }
  0x48   : > { %14937 = vmatprep.mubr.msk.f32.mxu0 %vm591_vm0, %v16802_v5  ;;  %v17185_v5 = vld [vmem:[#allocation2 + $0x87] sm:$0xff] }
  0x49   : > { %1660 = vperm.xlu1 %16310, %v542_v59   ;;  %1655 = vperm.xlu0 %16309, %v541_v2   ;;  %v16839_v59 = vld [vmem:[#allocation2 + $0xe8] sm:$0xff]  ;;  %v514_v2 = vld [vmem:[%s22064_s13 + $0x98] sm:$0xff] }
  0x4a   : > { %22520 = vst [vmem:[#allocation47_spill] sm:$0xff] %v16839_v59 }
  0x4b   : > { %14938 = vmatmul.mubr.msk.f32.gmra.mxu0 %vm591_vm0, %v16821_v17 }
  0x4c   : > { %14940 = vmatprep.mubr.msk.f32.mxu0 %vm591_vm0, %v16825_v26 }
  0x4d   : > { %762 = vperm.xlu1 %16310, %v512_v8   ;;  %757 = vperm.xlu0 %16309, %v511_v9   ;;  %v513_v8 = vld [vmem:[%s22064_s13 + $0x90] sm:$0xff] }
  0x4e   : > { %v16851_v9 = vld [vmem:[#allocation2 + $0xf0] sm:$0xff] }
  0x4f   : > { %14941 = vmatmul.mubr.msk.f32.gmra.mxu0 %vm591_vm0, %v16837_v47  ;;  %22521 = vst [vmem:[#allocation48_spill] sm:$0xff] %v16851_v9 }
  0x50   : > { %14943 = vmatprep.mubr.msk.f32.mxu0 %vm591_vm0, %v16839_v59  ;;  %v17157_v59 = vld [vmem:[#allocation2 + $0x77] sm:$0xff] }
  0x51   : > { %1670 = vperm.xlu1 %16310, %v544_v34   ;;  %1665 = vperm.xlu0 %16309, %v543_v41   ;;  %v16853_v34 = vld [vmem:[#allocation2 + $0xf8] sm:$0xff] }
  0x52   : > { %22522 = vst [vmem:[#allocation49_spill] sm:$0xff] %v16853_v34  ;;  %v546_v41 = vld [vmem:[%s22065_s14 + $0x98] sm:$0xff] }
  0x53   : > { %14944 = vmatmul.mubr.msk.f32.gmra.mxu0 %vm591_vm0, %v16851_v9 }
  0x54   : > { %14946 = vmatprep.mubr.msk.f32.mxu0 %vm591_vm0, %v16853_v34 }
  0x55   : > { %772 = vperm.xlu1 %16310, %v514_v2   ;;  %767 = vperm.xlu0 %16309, %v513_v8   ;;  %v516_v2 = vld [vmem:[%s22064_s13 + $0xa8] sm:$0xff]  ;;  %v515_v8 = vld [vmem:[%s22064_s13 + $0xa0] sm:$0xff] }
  0x57   : > { %14947 = vmatmul.mubr.msk.f32.gmra.mxu0 %vm591_vm0, %v16865_v0 }
  0x59   : > { %1680 = vperm.xlu1 %16310, %v546_v41   ;;  %1675 = vperm.xlu0 %16309, %v545_v1   ;;  %v547_v1 = vld [vmem:[%s22065_s14 + $0xa0] sm:$0xff]  ;;  %v518_v41 = vld [vmem:[%s22064_s13 + $0xb8] sm:$0xff] }
  0x5d   : > { %782 = vperm.xlu1 %16310, %v516_v2   ;;  %777 = vperm.xlu0 %16309, %v515_v8   ;;  %v517_v2 = vld [vmem:[%s22064_s13 + $0xb0] sm:$0xff]  ;;  %v550_v8 = vld [vmem:[%s22065_s14 + $0xb8] sm:$0xff] }
  0x61   : > { %1690 = vperm.xlu1 %16310, %v548_v61   ;;  %1685 = vperm.xlu0 %16309, %v547_v1   ;;  %v549_v61 = vld [vmem:[%s22065_s14 + $0xb0] sm:$0xff]  ;;  %v520_v1 = vld [vmem:[%s22064_s13 + $0xc8] sm:$0xff] }
  0x65   : > { %792 = vperm.xlu1 %16310, %v518_v41   ;;  %787 = vperm.xlu0 %16309, %v517_v2   ;;  %v519_v41 = vld [vmem:[%s22064_s13 + $0xc0] sm:$0xff]  ;;  %v552_v2 = vld [vmem:[%s22065_s14 + $0xc8] sm:$0xff] }
  0x69   : > { %1700 = vperm.xlu1 %16310, %v550_v8   ;;  %1695 = vperm.xlu0 %16309, %v549_v61   ;;  %v551_v8 = vld [vmem:[%s22065_s14 + $0xc0] sm:$0xff]  ;;  %v16911_v61 = vld [vmem:[%s16467_s25 + $0xf8] sm:$0xff] }
  0x6a   : > { %22525 = vst [vmem:[#allocation52_spill] sm:$0xff] %v16911_v61  ;;  %642 = vst.msk [vmem:[#allocation2 + $0x110] sm:$0xff] %vm591_vm0, %v16911_v61  ;;  %v523_v61 = vld [vmem:[%s22064_s13 + $0xe0] sm:$0xff] }
  0x6d   : > { %802 = vperm.xlu1 %16310, %v520_v1   ;;  %797 = vperm.xlu0 %16309, %v519_v41   ;;  %v522_v1 = vld [vmem:[%s22064_s13 + $0xd8] sm:$0xff]  ;;  %v521_v41 = vld [vmem:[%s22064_s13 + $0xd0] sm:$0xff] }
  0x71   : > { %1710 = vperm.xlu1 %16310, %v552_v2   ;;  %1705 = vperm.xlu0 %16309, %v551_v8   ;;  %v554_v2 = vld [vmem:[%s22065_s14 + $0xd8] sm:$0xff]  ;;  %v553_v8 = vld [vmem:[%s22065_s14 + $0xd0] sm:$0xff] }
  0x75   : > { %812 = vperm.xlu1 %16310, %v522_v1   ;;  %807 = vperm.xlu0 %16309, %v521_v41   ;;  %v556_v1 = vld [vmem:[%s22065_s14 + $0xe8] sm:$0xff]  ;;  %v555_v41 = vld [vmem:[%s22065_s14 + $0xe0] sm:$0xff] }
  0x79   : > { %1720 = vperm.xlu1 %16310, %v554_v2   ;;  %1715 = vperm.xlu0 %16309, %v553_v8   ;;  %v526_v2 = vld [vmem:[%s22064_s13 + $0xf8] sm:$0xff]  ;;  %v525_v8 = vld [vmem:[%s22064_s13 + $0xf0] sm:$0xff] }
  0x7d   : > { %822 = vperm.xlu1 %16310, %v524_v60   ;;  %817 = vperm.xlu0 %16309, %v523_v61   ;;  %v558_v60 = vld [vmem:[%s22065_s14 + $0xf8] sm:$0xff]  ;;  %v557_v61 = vld [vmem:[%s22065_s14 + $0xf0] sm:$0xff] }
  0x81   : > { %1730 = vperm.xlu1 %16310, %v556_v1   ;;  %1725 = vperm.xlu0 %16309, %v555_v41   ;;  %v643_v1 = vld [vmem:[#allocation2 + $0x7] sm:$0xff] }
  0x82   : > { %v1551_v41 = vld [vmem:[#allocation2 + $0x9] sm:$0xff] }
  0x85   : > { %832 = vperm.xlu1 %16310, %v526_v2   ;;  %827 = vperm.xlu0 %16309, %v525_v8   ;;  %v644_v8 = vld [vmem:[#allocation2 + $0xf] sm:$0xff] }
  0x88   : > { %v16951_v57 = vpop.permute.xlu1 %1585  ;;  %v16953_v56 = vpop.permute.xlu0 %677 }
  0x89   : > { %22526 = vst [vmem:[#allocation53_spill] sm:$0xff] %v16951_v57  ;;  %22527 = vst [vmem:[#allocation54_spill] sm:$0xff] %v16953_v56  ;;  %1740 = vperm.xlu1 %16310, %v558_v60   ;;  %1735 = vperm.xlu0 %16309, %v557_v61   ;;  %v835_v54 = vmul.f32 %v16953_v56, %v643_v1  ;;  %v1743_v2 = vmul.f32 %v16951_v57, %v1551_v41  ;;  %v16968_v60 = vld [vmem:[%s22052_s1 + $0x14] sm:$0xf]  ;;  %v16973_v61 = vld [vmem:[%s22052_s1 + $0x18] sm:$0xf] }
  0x8a   : > { %v16981_v41 = vld [vmem:[#allocation2 + $0x17] sm:$0xff]  ;;  %v17129_v57 = vld [vmem:[#allocation2 + $0x67] sm:$0xff] }
  0x8b   : > { %14951 = vmatprep.mubr.msk.f32.mxu1 %vm591_vm0, %v835_v54  ;;  %15001 = vmatprep.mubr.msk.f32.mxu0 %vm591_vm0, %v1743_v2 }
  0x8c   : > { %v16959_v51 = vpop.permute.xlu1 %1590  ;;  %v16961_v50 = vpop.permute.xlu0 %682 }
  0x8d   : > { %22528 = vst [vmem:[#allocation55_spill] sm:$0xff] %v16959_v51  ;;  %22529 = vst [vmem:[#allocation56_spill] sm:$0xff] %v16961_v50  ;;  %v836_v46 = vmul.f32 %v16961_v50, %v644_v8  ;;  %v1744_v45 = vmul.f32 %v16959_v51, %v1552_v53  ;;  %v16983_v53 = vld [vmem:[#allocation2 + $0x1f] sm:$0xff] }
  0x8e   : > { %v17005_v8 = vld [vmem:[#allocation2 + $0x21] sm:$0xff] }
  0x8f   : > { %14952 = vmatmul.mubr.msk.f32.vlgmr.msra.gmra.mxu1 %vm591_vm0, %v836_v46  ;;  %15002 = vmatmul.mubr.msk.f32.vlgmr.msra.gmra.mxu0 %vm591_vm0, %v1744_v45  ;;  %22535 = vst [vmem:[#allocation62_spill] sm:$0xff] %v17005_v8 }
  0x90   : > { %v16977_v54 = vpop.permute.xlu1 %692  ;;  %v16979_v1 = vpop.permute.xlu0 %687  ;;  %15050 = vmatpush3.msk.msra.mxu1 %vm998_vm2, %v16800_v4  ;;  %15100 = vmatpush3.msk.msra.mxu0 %vm998_vm2, %v16817_v12  ;;  %v17003_v12 = vld [vmem:[#allocation2 + $0x19] sm:$0xff] }
  0x91   : > { %22530 = vst [vmem:[#allocation57_spill] sm:$0xff] %v16977_v54  ;;  %22531 = vst [vmem:[#allocation58_spill] sm:$0xff] %v16979_v1  ;;  %v837_v2 = vmul.f32 %v16979_v1, %v16981_v41  ;;  %v838_v45 = vmul.f32 %v16977_v54, %v16983_v53  ;;  %15149 = vmatprep.subr.msk.mxu1 %vm998_vm2, %v16968_v60  ;;  %15199 = vmatprep.subr.msk.mxu0 %vm998_vm2, %v16973_v61 }
  0x92   : > { %22534 = vst [vmem:[#allocation61_spill] sm:$0xff] %v17003_v12 }
  0x93   : > { %14954 = vmatprep.mubr.msk.f32.mxu1 %vm591_vm0, %v837_v2 }
  0x94   : > { %v16998_v46 = vpop.permute.xlu1 %1600  ;;  %v17000_v4 = vpop.permute.xlu0 %1595  ;;  %14955 = vmatmul.mubr.msk.f32.gmra.mxu1 %vm591_vm0, %v838_v45  ;;  %v17019_v45 = vld [vmem:[#allocation2 + $0x2f] sm:$0xff] }
  0x95   : > { %22532 = vst [vmem:[#allocation59_spill] sm:$0xff] %v16998_v46  ;;  %22533 = vst [vmem:[#allocation60_spill] sm:$0xff] %v17000_v4  ;;  %v1745_v43 = vmul.f32 %v17000_v4, %v17003_v12  ;;  %v1746_v42 = vmul.f32 %v16998_v46, %v17005_v8 }
  0x97   : > { %15004 = vmatprep.mubr.msk.f32.mxu0 %vm591_vm0, %v1745_v43 }
  0x98   : > { %v17012_v37 = vpop.permute.xlu1 %702  ;;  %v17014_v2 = vpop.permute.xlu0 %697  ;;  %15005 = vmatmul.mubr.msk.f32.gmra.mxu0 %vm591_vm0, %v1746_v42  ;;  %v17033_v42 = vld [vmem:[#allocation2 + $0x31] sm:$0xff] }
  0x99   : > { %22536 = vst [vmem:[#allocation63_spill] sm:$0xff] %v17012_v37  ;;  %22537 = vst [vmem:[#allocation64_spill] sm:$0xff] %v17014_v2  ;;  %v839_v33 = vmul.f32 %v17014_v2, %v17017_v36  ;;  %v840_v31 = vmul.f32 %v17012_v37, %v17019_v45 }
  0x9a   : > { %22541 = vst [vmem:[#allocation68_spill] sm:$0xff] %v17033_v42 }
  0x9b   : > { %14957 = vmatprep.mubr.msk.f32.mxu1 %vm591_vm0, %v839_v33 }
  0x9c   : > { %v17026_v28 = vpop.permute.xlu1 %1610  ;;  %v17028_v43 = vpop.permute.xlu0 %1605  ;;  %14958 = vmatmul.mubr.msk.f32.gmra.mxu1 %vm591_vm0, %v840_v31  ;;  %v17047_v31 = vld [vmem:[#allocation2 + $0x3f] sm:$0xff] }
  0x9d   : > { %22538 = vst [vmem:[#allocation65_spill] sm:$0xff] %v17026_v28  ;;  %22539 = vst [vmem:[#allocation66_spill] sm:$0xff] %v17028_v43  ;;  %v1747_v24 = vmul.f32 %v17028_v43, %v17031_v27  ;;  %v1748_v23 = vmul.f32 %v17026_v28, %v17033_v42  ;;  %v17073_v43 = vld [vmem:[#allocation2 + $0x47] sm:$0xff]  ;;  %v17101_v27 = vld [vmem:[#allocation2 + $0x57] sm:$0xff] }
  0x9f   : > { %15007 = vmatprep.mubr.msk.f32.mxu0 %vm591_vm0, %v1747_v24 }
  0xa0   : > { %v17040_v22 = vpop.permute.xlu1 %712  ;;  %v17042_v33 = vpop.permute.xlu0 %707  ;;  %15008 = vmatmul.mubr.msk.f32.gmra.mxu0 %vm591_vm0, %v1748_v23  ;;  %v17061_v23 = vld [vmem:[#allocation2 + $0x41] sm:$0xff] }
  0xa1   : > { %22542 = vst [vmem:[#allocation69_spill] sm:$0xff] %v17040_v22  ;;  %22543 = vst [vmem:[#allocation70_spill] sm:$0xff] %v17042_v33  ;;  %v841_v20 = vmul.f32 %v17042_v33, %v17045_v21  ;;  %v842_v19 = vmul.f32 %v17040_v22, %v17047_v31 }
  0xa2   : > { %22547 = vst [vmem:[#allocation74_spill] sm:$0xff] %v17061_v23 }
  0xa3   : > { %14960 = vmatprep.mubr.msk.f32.mxu1 %vm591_vm0, %v841_v20 }
  0xa4   : > { %v17054_v16 = vpop.permute.xlu1 %1620  ;;  %v17056_v24 = vpop.permute.xlu0 %1615  ;;  %14961 = vmatmul.mubr.msk.f32.gmra.mxu1 %vm591_vm0, %v842_v19  ;;  %v17075_v19 = vld [vmem:[#allocation2 + $0x4f] sm:$0xff] }
  0xa5   : > { %22544 = vst [vmem:[#allocation71_spill] sm:$0xff] %v17054_v16  ;;  %22545 = vst [vmem:[#allocation72_spill] sm:$0xff] %v17056_v24  ;;  %v1749_v14 = vmul.f32 %v17056_v24, %v17059_v15  ;;  %v1750_v13 = vmul.f32 %v17054_v16, %v17061_v23  ;;  %v17087_v23 = vld [vmem:[#allocation2 + $0x49] sm:$0xff] }
  0xa6   : > { %22552 = vst [vmem:[#allocation79_spill] sm:$0xff] %v17087_v23 }
  0xa7   : > { %15010 = vmatprep.mubr.msk.f32.mxu0 %vm591_vm0, %v1749_v14 }
  0xa8   : > { %v17068_v28 = vpop.permute.xlu1 %722  ;;  %v17070_v20 = vpop.permute.xlu0 %717  ;;  %15011 = vmatmul.mubr.msk.f32.gmra.mxu0 %vm591_vm0, %v1750_v13  ;;  %v17089_v13 = vld [vmem:[#allocation2 + $0x51] sm:$0xff] }
  0xa9   : > { %22548 = vst [vmem:[#allocation75_spill] sm:$0xff] %v17068_v28  ;;  %22549 = vst [vmem:[#allocation76_spill] sm:$0xff] %v17070_v20  ;;  %v843_v46 = vmul.f32 %v17070_v20, %v17073_v43  ;;  %v844_v24 = vmul.f32 %v17068_v28, %v17075_v19 }
  0xaa   : > { %22553 = vst [vmem:[#allocation80_spill] sm:$0xff] %v17089_v13 }
  0xab   : > { %14963 = vmatprep.mubr.msk.f32.mxu1 %vm591_vm0, %v843_v46 }
  0xac   : > { %v17082_v16 = vpop.permute.xlu1 %1630  ;;  %v17084_v14 = vpop.permute.xlu0 %1625  ;;  %14964 = vmatmul.mubr.msk.f32.gmra.mxu1 %vm591_vm0, %v844_v24  ;;  %v17103_v24 = vld [vmem:[#allocation2 + $0x5f] sm:$0xff] }
  0xad   : > { %22550 = vst [vmem:[#allocation77_spill] sm:$0xff] %v17082_v16  ;;  %22551 = vst [vmem:[#allocation78_spill] sm:$0xff] %v17084_v14  ;;  %v1751_v15 = vmul.f32 %v17084_v14, %v17087_v23  ;;  %v1752_v42 = vmul.f32 %v17082_v16, %v17089_v13  ;;  %v17115_v13 = vld [vmem:[#allocation2 + $0x59] sm:$0xff] }
  0xae   : > { %22558 = vst [vmem:[#allocation85_spill] sm:$0xff] %v17115_v13 }
  0xaf   : > { %15013 = vmatprep.mubr.msk.f32.mxu0 %vm591_vm0, %v1751_v15 }
  0xb0   : > { %v17096_v4 = vpop.permute.xlu1 %732  ;;  %v17098_v46 = vpop.permute.xlu0 %727  ;;  %15014 = vmatmul.mubr.msk.f32.gmra.mxu0 %vm591_vm0, %v1752_v42  ;;  %v17117_v42 = vld [vmem:[#allocation2 + $0x61] sm:$0xff] }
  0xb1   : > { %22554 = vst [vmem:[#allocation81_spill] sm:$0xff] %v17096_v4  ;;  %22555 = vst [vmem:[#allocation82_spill] sm:$0xff] %v17098_v46  ;;  %v845_v51 = vmul.f32 %v17098_v46, %v17101_v27  ;;  %v846_v14 = vmul.f32 %v17096_v4, %v17103_v24 }
  0xb2   : > { %22559 = vst [vmem:[#allocation86_spill] sm:$0xff] %v17117_v42 }
  0xb3   : > { %14966 = vmatprep.mubr.msk.f32.mxu1 %vm591_vm0, %v845_v51 }
  0xb4   : > { %v17110_v16 = vpop.permute.xlu1 %1640  ;;  %v17112_v15 = vpop.permute.xlu0 %1635  ;;  %14967 = vmatmul.mubr.msk.f32.gmra.mxu1 %vm591_vm0, %v846_v14  ;;  %v17131_v14 = vld [vmem:[#allocation2 + $0x6f] sm:$0xff] }
  0xb5   : > { %22556 = vst [vmem:[#allocation83_spill] sm:$0xff] %v17110_v16  ;;  %22557 = vst [vmem:[#allocation84_spill] sm:$0xff] %v17112_v15  ;;  %v1753_v23 = vmul.f32 %v17112_v15, %v17115_v13  ;;  %v1754_v8 = vmul.f32 %v17110_v16, %v17117_v42  ;;  %v17143_v42 = vld [vmem:[#allocation2 + $0x69] sm:$0xff] }
  0xb6   : > { %22564 = vst [vmem:[#allocation91_spill] sm:$0xff] %v17143_v42 }
  0xb7   : > { %15016 = vmatprep.mubr.msk.f32.mxu0 %vm591_vm0, %v1753_v23 }
  0xb8   : > { %v17124_v0 = vpop.permute.xlu1 %742  ;;  %v17126_v51 = vpop.permute.xlu0 %737  ;;  %15017 = vmatmul.mubr.msk.f32.gmra.mxu0 %vm591_vm0, %v1754_v8  ;;  %v17145_v8 = vld [vmem:[#allocation2 + $0x71] sm:$0xff] }
  0xb9   : > { %22560 = vst [vmem:[#allocation87_spill] sm:$0xff] %v17124_v0  ;;  %22561 = vst [vmem:[#allocation88_spill] sm:$0xff] %v17126_v51  ;;  %v847_v12 = vmul.f32 %v17126_v51, %v17129_v57  ;;  %v848_v15 = vmul.f32 %v17124_v0, %v17131_v14 }
  0xba   : > { %22565 = vst [vmem:[#allocation92_spill] sm:$0xff] %v17145_v8 }
  0xbb   : > { %14969 = vmatprep.mubr.msk.f32.mxu1 %vm591_vm0, %v847_v12 }
  0xbc   : > { %v17138_v16 = vpop.permute.xlu1 %1650  ;;  %v17140_v23 = vpop.permute.xlu0 %1645  ;;  %14970 = vmatmul.mubr.msk.f32.gmra.mxu1 %vm591_vm0, %v848_v15  ;;  %v17159_v15 = vld [vmem:[#allocation2 + $0x7f] sm:$0xff] }
  0xbd   : > { %22562 = vst [vmem:[#allocation89_spill] sm:$0xff] %v17138_v16  ;;  %22563 = vst [vmem:[#allocation90_spill] sm:$0xff] %v17140_v23  ;;  %v1755_v13 = vmul.f32 %v17140_v23, %v17143_v42  ;;  %v1756_v34 = vmul.f32 %v17138_v16, %v17145_v8  ;;  %v17171_v8 = vld [vmem:[#allocation2 + $0x79] sm:$0xff] }
  0xbe   : > { %22570 = vst [vmem:[#allocation97_spill] sm:$0xff] %v17171_v8 }
  0xbf   : > { %15019 = vmatprep.mubr.msk.f32.mxu0 %vm591_vm0, %v1755_v13 }
  0xc0   : > { %v17152_v9 = vpop.permute.xlu1 %752  ;;  %v17154_v12 = vpop.permute.xlu0 %747  ;;  %15020 = vmatmul.mubr.msk.f32.gmra.mxu0 %vm591_vm0, %v1756_v34  ;;  %v17173_v34 = vld [vmem:[#allocation2 + $0x81] sm:$0xff] }
  0xc1   : > { %22566 = vst [vmem:[#allocation93_spill] sm:$0xff] %v17152_v9  ;;  %22567 = vst [vmem:[#allocation94_spill] sm:$0xff] %v17154_v12  ;;  %v849_v47 = vmul.f32 %v17154_v12, %v17157_v59  ;;  %v850_v23 = vmul.f32 %v17152_v9, %v17159_v15 }
  0xc2   : > { %22571 = vst [vmem:[#allocation98_spill] sm:$0xff] %v17173_v34 }
  0xc3   : > { %14972 = vmatprep.mubr.msk.f32.mxu1 %vm591_vm0, %v849_v47 }
  0xc4   : > { %v17166_v16 = vpop.permute.xlu1 %1660  ;;  %v17168_v13 = vpop.permute.xlu0 %1655  ;;  %14973 = vmatmul.mubr.msk.f32.gmra.mxu1 %vm591_vm0, %v850_v23  ;;  %v17187_v23 = vld [vmem:[#allocation2 + $0x8f] sm:$0xff] }
  0xc5   : > { %22568 = vst [vmem:[#allocation95_spill] sm:$0xff] %v17166_v16  ;;  %22569 = vst [vmem:[#allocation96_spill] sm:$0xff] %v17168_v13  ;;  %v1757_v42 = vmul.f32 %v17168_v13, %v17171_v8  ;;  %v1758_v26 = vmul.f32 %v17166_v16, %v17173_v34  ;;  %v17199_v34 = vld [vmem:[#allocation2 + $0x89] sm:$0xff] }
  0xc6   : > { %22576 = vst [vmem:[#allocation103_spill] sm:$0xff] %v17199_v34 }
  0xc7   : > { %15022 = vmatprep.mubr.msk.f32.mxu0 %vm591_vm0, %v1757_v42 }
  0xc8   : > { %v17180_v17 = vpop.permute.xlu1 %762  ;;  %v17182_v47 = vpop.permute.xlu0 %757  ;;  %15023 = vmatmul.mubr.msk.f32.gmra.mxu0 %vm591_vm0, %v1758_v26  ;;  %v17201_v26 = vld [vmem:[#allocation2 + $0x91] sm:$0xff] }
  0xc9   : > { %22572 = vst [vmem:[#allocation99_spill] sm:$0xff] %v17180_v17  ;;  %22573 = vst [vmem:[#allocation100_spill] sm:$0xff] %v17182_v47  ;;  %v851_v3 = vmul.f32 %v17182_v47, %v17185_v5  ;;  %v852_v13 = vmul.f32 %v17180_v17, %v17187_v23  ;;  %v17309_v17 = vld [vmem:[#allocation2 + $0xcf] sm:$0xff] }
  0xca   : > { %22577 = vst [vmem:[#allocation104_spill] sm:$0xff] %v17201_v26  ;;  %22608 = vst [vmem:[#allocation135_spill] sm:$0xff] %v17309_v17 }
  0xcb   : > { %14975 = vmatprep.mubr.msk.f32.mxu1 %vm591_vm0, %v851_v3 }
  0xcc   : > { %v17194_v16 = vpop.permute.xlu1 %1670  ;;  %v17196_v42 = vpop.permute.xlu0 %1665  ;;  %14976 = vmatmul.mubr.msk.f32.gmra.mxu1 %vm591_vm0, %v852_v13  ;;  %v17215_v13 = vld [vmem:[#allocation2 + $0x9f] sm:$0xff] }
  0xcd   : > { %22574 = vst [vmem:[#allocation101_spill] sm:$0xff] %v17194_v16  ;;  %22575 = vst [vmem:[#allocation102_spill] sm:$0xff] %v17196_v42  ;;  %v1759_v8 = vmul.f32 %v17196_v42, %v17199_v34  ;;  %v1760_v58 = vmul.f32 %v17194_v16, %v17201_v26  ;;  %v17227_v26 = vld [vmem:[#allocation2 + $0x99] sm:$0xff] }
  0xce   : > { %22582 = vst [vmem:[#allocation109_spill] sm:$0xff] %v17227_v26 }
  0xcf   : > { %15025 = vmatprep.mubr.msk.f32.mxu0 %vm591_vm0, %v1759_v8 }
  0xd0   : > { %v17208_v49 = vpop.permute.xlu1 %772  ;;  %v17210_v3 = vpop.permute.xlu0 %767  ;;  %15026 = vmatmul.mubr.msk.f32.gmra.mxu0 %vm591_vm0, %v1760_v58  ;;  %v17229_v58 = vld [vmem:[#allocation2 + $0xa1] sm:$0xff] }
  0xd1   : > { %22578 = vst [vmem:[#allocation105_spill] sm:$0xff] %v17208_v49  ;;  %22579 = vst [vmem:[#allocation106_spill] sm:$0xff] %v17210_v3  ;;  %v853_v35 = vmul.f32 %v17210_v3, %v17213_v39  ;;  %v854_v42 = vmul.f32 %v17208_v49, %v17215_v13 }
  0xd2   : > { %22583 = vst [vmem:[#allocation110_spill] sm:$0xff] %v17229_v58 }
  0xd3   : > { %14978 = vmatprep.mubr.msk.f32.mxu1 %vm591_vm0, %v853_v35 }
  0xd4   : > { %v17222_v16 = vpop.permute.xlu1 %1680  ;;  %v17224_v8 = vpop.permute.xlu0 %1675  ;;  %14979 = vmatmul.mubr.msk.f32.gmra.mxu1 %vm591_vm0, %v854_v42  ;;  %v17243_v42 = vld [vmem:[#allocation2 + $0xaf] sm:$0xff] }
  0xd5   : > { %22580 = vst [vmem:[#allocation107_spill] sm:$0xff] %v17222_v16  ;;  %22581 = vst [vmem:[#allocation108_spill] sm:$0xff] %v17224_v8  ;;  %v1761_v34 = vmul.f32 %v17224_v8, %v17227_v26  ;;  %v1762_v25 = vmul.f32 %v17222_v16, %v17229_v58  ;;  %v17259_v26 = vld [vmem:[#allocation2 + $0xb1] sm:$0xff] }
  0xd6   : > { %22587 = vst [vmem:[#allocation114_spill] sm:$0xff] %v17243_v42  ;;  %v17250_v16 = vpop.f32.mrf.mxu0  ;;  %22592 = vst [vmem:[#allocation119_spill] sm:$0xff] %v17259_v26 }
  0xd7   : > { %15028 = vmatprep.mubr.msk.f32.mxu0 %vm591_vm0, %v1761_v34  ;;  %22588 = vst [vmem:[#allocation115_spill] sm:$0xff] %v17250_v16 }
  0xd8   : > { %v17236_v49 = vpop.permute.xlu1 %782  ;;  %v17238_v35 = vpop.permute.xlu0 %777  ;;  %15029 = vmatmul.mubr.msk.f32.gmra.mxu0 %vm591_vm0, %v1762_v25  ;;  %v17257_v25 = vld [vmem:[#allocation2 + $0xa9] sm:$0xff] }
  0xd9   : > { %22584 = vst [vmem:[#allocation111_spill] sm:$0xff] %v17236_v49  ;;  %22585 = vst [vmem:[#allocation112_spill] sm:$0xff] %v17238_v35  ;;  %v855_v3 = vmul.f32 %v17238_v35, %v17241_v18  ;;  %v856_v8 = vmul.f32 %v17236_v49, %v17243_v42  ;;  %v17275_v18 = vld [vmem:[#allocation2 + $0xbf] sm:$0xff] }
  0xda   : > { %22591 = vst [vmem:[#allocation118_spill] sm:$0xff] %v17257_v25  ;;  %22597 = vst [vmem:[#allocation124_spill] sm:$0xff] %v17275_v18 }
  0xdb   : > { %14981 = vmatprep.mubr.msk.f32.mxu1 %vm591_vm0, %v855_v3  ;;  %v17266_v3 = vpop.f32.mrf.mxu0 }
  0xdc   : > { %v17252_v34 = vpop.permute.xlu1 %1690  ;;  %v17254_v58 = vpop.permute.xlu0 %1685  ;;  %14982 = vmatmul.mubr.msk.f32.gmra.mxu1 %vm591_vm0, %v856_v8  ;;  %22593 = vst [vmem:[#allocation120_spill] sm:$0xff] %v17266_v3  ;;  %v17273_v8 = vld [vmem:[#allocation2 + $0xb7] sm:$0xff] }
  0xdd   : > { %22589 = vst [vmem:[#allocation116_spill] sm:$0xff] %v17252_v34  ;;  %22590 = vst [vmem:[#allocation117_spill] sm:$0xff] %v17254_v58  ;;  %v1763_v35 = vmul.f32 %v17254_v58, %v17257_v25  ;;  %v1764_v49 = vmul.f32 %v17252_v34, %v17259_v26  ;;  %v17291_v25 = vld [vmem:[#allocation2 + $0xc1] sm:$0xff] }
  0xde   : > { %22596 = vst [vmem:[#allocation123_spill] sm:$0xff] %v17273_v8  ;;  %22602 = vst [vmem:[#allocation129_spill] sm:$0xff] %v17291_v25 }
  0xdf   : > { %15031 = vmatprep.mubr.msk.f32.mxu0 %vm591_vm0, %v1763_v35  ;;  %v17282_v35 = vpop.f32.mrf.mxu0 }
  0xe0   : > { %v17268_v16 = vpop.permute.xlu1 %792  ;;  %v17270_v42 = vpop.permute.xlu0 %787  ;;  %15032 = vmatmul.mubr.msk.f32.gmra.mxu0 %vm591_vm0, %v1764_v49  ;;  %22598 = vst [vmem:[#allocation125_spill] sm:$0xff] %v17282_v35  ;;  %v17289_v49 = vld [vmem:[#allocation2 + $0xb9] sm:$0xff] }
  0xe1   : > { %22594 = vst [vmem:[#allocation121_spill] sm:$0xff] %v17268_v16  ;;  %22595 = vst [vmem:[#allocation122_spill] sm:$0xff] %v17270_v42  ;;  %v857_v58 = vmul.f32 %v17270_v42, %v17273_v8  ;;  %v858_v34 = vmul.f32 %v17268_v16, %v17275_v18  ;;  %v17297_v18 = vpop.f32.mrf.mxu0 }
  0xe2   : > { %22601 = vst [vmem:[#allocation128_spill] sm:$0xff] %v17289_v49  ;;  %22603 = vst [vmem:[#allocation130_spill] sm:$0xff] %v17297_v18 }
  0xe3   : > { %14984 = vmatprep.mubr.msk.f32.mxu1 %vm591_vm0, %v857_v58  ;;  %v17300_v58 = vpop.f32.mrf.mxu0 }
  0xe4   : > { %v17284_v3 = vpop.permute.xlu1 %1700  ;;  %v17286_v26 = vpop.permute.xlu0 %1695  ;;  %14985 = vmatmul.mubr.msk.f32.gmra.mxu1 %vm591_vm0, %v858_v34  ;;  %22604 = vst [vmem:[#allocation131_spill] sm:$0xff] %v17300_v58  ;;  %v17307_v34 = vld [vmem:[#allocation2 + $0xc7] sm:$0xff]  ;;  %v17327_v58 = vld [vmem:[#allocation2 + $0xd1] sm:$0xff] }
  0xe5   : > { %22599 = vst [vmem:[#allocation126_spill] sm:$0xff] %v17284_v3  ;;  %22600 = vst [vmem:[#allocation127_spill] sm:$0xff] %v17286_v26  ;;  %v1765_v42 = vmul.f32 %v17286_v26, %v17289_v49  ;;  %v1766_v16 = vmul.f32 %v17284_v3, %v17291_v25  ;;  %v17315_v3 = vpop.f32.mrf.mxu0 }
  0xe6   : > { %22607 = vst [vmem:[#allocation134_spill] sm:$0xff] %v17307_v34  ;;  %22609 = vst [vmem:[#allocation136_spill] sm:$0xff] %v17315_v3 }
  0xe7   : > { %15034 = vmatprep.mubr.msk.f32.mxu0 %vm591_vm0, %v1765_v42  ;;  %v17318_v42 = vpop.f32.mrf.mxu0  ;;  %22614 = vst [vmem:[#allocation141_spill] sm:$0xff] %v17327_v58 }
  0xe8   : > { %v17302_v35 = vpop.permute.xlu1 %802  ;;  %v17304_v8 = vpop.permute.xlu0 %797  ;;  %15035 = vmatmul.mubr.msk.f32.gmra.mxu0 %vm591_vm0, %v1766_v16  ;;  %22610 = vst [vmem:[#allocation137_spill] sm:$0xff] %v17318_v42  ;;  %v17325_v16 = vld [vmem:[#allocation2 + $0xc9] sm:$0xff] }
  0xe9   : > { %22605 = vst [vmem:[#allocation132_spill] sm:$0xff] %v17302_v35  ;;  %22606 = vst [vmem:[#allocation133_spill] sm:$0xff] %v17304_v8  ;;  %v859_v26 = vmul.f32 %v17304_v8, %v17307_v34  ;;  %v860_v18 = vmul.f32 %v17302_v35, %v17309_v17  ;;  %v17333_v35 = vpop.f32.mrf.mxu0  ;;  %v17343_v17 = vld [vmem:[#allocation2 + $0xdf] sm:$0xff] }
  0xea   : > { %22613 = vst [vmem:[#allocation140_spill] sm:$0xff] %v17325_v16  ;;  %22615 = vst [vmem:[#allocation142_spill] sm:$0xff] %v17333_v35  ;;  %v17425_v34 = vld [vmem:[#allocation2 + $0x101] sm:$0xff] }
  0xeb   : > { %14987 = vmatprep.mubr.msk.f32.mxu1 %vm591_vm0, %v859_v26  ;;  %22619 = vst [vmem:[#allocation146_spill] sm:$0xff] %v17343_v17  ;;  %22644 = vst [vmem:[#allocation171_spill] sm:$0xff] %v17425_v34 }
  0xec   : > { %v17320_v25 = vpop.permute.xlu1 %1710  ;;  %v17322_v49 = vpop.permute.xlu0 %1705  ;;  %14988 = vmatmul.mubr.msk.f32.gmra.mxu1 %vm591_vm0, %v860_v18  ;;  %v17341_v18 = vld [vmem:[#allocation2 + $0xd7] sm:$0xff] }
  0xed   : > { %22611 = vst [vmem:[#allocation138_spill] sm:$0xff] %v17320_v25  ;;  %22612 = vst [vmem:[#allocation139_spill] sm:$0xff] %v17322_v49  ;;  %v1767_v8 = vmul.f32 %v17322_v49, %v17325_v16  ;;  %v1768_v3 = vmul.f32 %v17320_v25, %v17327_v58  ;;  %v17349_v58 = vpop.f32.mrf.mxu0  ;;  %v17359_v16 = vld [vmem:[#allocation2 + $0xe1] sm:$0xff] }
  0xee   : > { %22618 = vst [vmem:[#allocation145_spill] sm:$0xff] %v17341_v18  ;;  %22620 = vst [vmem:[#allocation147_spill] sm:$0xff] %v17349_v58 }
  0xef   : > { %15037 = vmatprep.mubr.msk.f32.mxu0 %vm591_vm0, %v1767_v8  ;;  %22624 = vst [vmem:[#allocation151_spill] sm:$0xff] %v17359_v16 }
  0xf0   : > { %v17336_v26 = vpop.permute.xlu1 %812  ;;  %v17338_v42 = vpop.permute.xlu0 %807  ;;  %15038 = vmatmul.mubr.msk.f32.gmra.mxu0 %vm591_vm0, %v1768_v3  ;;  %v17357_v3 = vld [vmem:[#allocation2 + $0xd9] sm:$0xff] }
  0xf1   : > { %22616 = vst [vmem:[#allocation143_spill] sm:$0xff] %v17336_v26  ;;  %22617 = vst [vmem:[#allocation144_spill] sm:$0xff] %v17338_v42  ;;  %v861_v49 = vmul.f32 %v17338_v42, %v17341_v18  ;;  %v862_v25 = vmul.f32 %v17336_v26, %v17343_v17  ;;  %v17365_v17 = vpop.f32.mrf.mxu0  ;;  %v17375_v18 = vld [vmem:[#allocation2 + $0xef] sm:$0xff] }
  0xf2   : > { %22623 = vst [vmem:[#allocation150_spill] sm:$0xff] %v17357_v3  ;;  %22625 = vst [vmem:[#allocation152_spill] sm:$0xff] %v17365_v17 }
  0xf3   : > { %14990 = vmatprep.mubr.msk.f32.mxu1 %vm591_vm0, %v861_v49  ;;  %22629 = vst [vmem:[#allocation156_spill] sm:$0xff] %v17375_v18 }
  0xf4   : > { %v17352_v8 = vpop.permute.xlu1 %1720  ;;  %v17354_v35 = vpop.permute.xlu0 %1715  ;;  %14991 = vmatmul.mubr.msk.f32.gmra.mxu1 %vm591_vm0, %v862_v25  ;;  %v17373_v25 = vld [vmem:[#allocation2 + $0xe7] sm:$0xff] }
  0xf5   : > { %22621 = vst [vmem:[#allocation148_spill] sm:$0xff] %v17352_v8  ;;  %22622 = vst [vmem:[#allocation149_spill] sm:$0xff] %v17354_v35  ;;  %v1769_v42 = vmul.f32 %v17354_v35, %v17357_v3  ;;  %v1770_v26 = vmul.f32 %v17352_v8, %v17359_v16  ;;  %v17381_v16 = vpop.f32.mrf.mxu0  ;;  %v17391_v3 = vld [vmem:[#allocation2 + $0xf1] sm:$0xff] }
  0xf6   : > { %22628 = vst [vmem:[#allocation155_spill] sm:$0xff] %v17373_v25  ;;  %22630 = vst [vmem:[#allocation157_spill] sm:$0xff] %v17381_v16 }
  0xf7   : > { %15040 = vmatprep.mubr.msk.f32.mxu0 %vm591_vm0, %v1769_v42  ;;  %22634 = vst [vmem:[#allocation161_spill] sm:$0xff] %v17391_v3 }
  0xf8   : > { %v17368_v49 = vpop.permute.xlu1 %822  ;;  %v17370_v58 = vpop.permute.xlu0 %817  ;;  %15041 = vmatmul.mubr.msk.f32.gmra.mxu0 %vm591_vm0, %v1770_v26  ;;  %v17389_v26 = vld [vmem:[#allocation2 + $0xe9] sm:$0xff] }
  0xf9   : > { %22626 = vst [vmem:[#allocation153_spill] sm:$0xff] %v17368_v49  ;;  %22627 = vst [vmem:[#allocation154_spill] sm:$0xff] %v17370_v58  ;;  %v863_v35 = vmul.f32 %v17370_v58, %v17373_v25  ;;  %v864_v8 = vmul.f32 %v17368_v49, %v17375_v18  ;;  %v17397_v18 = vpop.f32.mrf.mxu0  ;;  %v17407_v25 = vld [vmem:[#allocation2 + $0xff] sm:$0xff] }
  0xfa   : > { %22633 = vst [vmem:[#allocation160_spill] sm:$0xff] %v17389_v26  ;;  %22635 = vst [vmem:[#allocation162_spill] sm:$0xff] %v17397_v18 }
  0xfb   : > { %14993 = vmatprep.mubr.msk.f32.mxu1 %vm591_vm0, %v863_v35  ;;  %22639 = vst [vmem:[#allocation166_spill] sm:$0xff] %v17407_v25 }
  0xfc   : > { %v17384_v42 = vpop.permute.xlu1 %1730  ;;  %v17386_v17 = vpop.permute.xlu0 %1725  ;;  %14994 = vmatmul.mubr.msk.f32.gmra.mxu1 %vm591_vm0, %v864_v8  ;;  %v17405_v8 = vld [vmem:[#allocation2 + $0xf7] sm:$0xff] }
  0xfd   : > { %22631 = vst [vmem:[#allocation158_spill] sm:$0xff] %v17384_v42  ;;  %22632 = vst [vmem:[#allocation159_spill] sm:$0xff] %v17386_v17  ;;  %v1771_v58 = vmul.f32 %v17386_v17, %v17389_v26  ;;  %v1772_v49 = vmul.f32 %v17384_v42, %v17391_v3  ;;  %v17413_v3 = vpop.f32.mrf.mxu0  ;;  %v17423_v26 = vld [vmem:[#allocation2 + $0xf9] sm:$0xff] }
  0xfe   : > { %22638 = vst [vmem:[#allocation165_spill] sm:$0xff] %v17405_v8  ;;  %22640 = vst [vmem:[#allocation167_spill] sm:$0xff] %v17413_v3 }
  0xff   : > { %15043 = vmatprep.mubr.msk.f32.mxu0 %vm591_vm0, %v1771_v58  ;;  %v2165_v58 = vmul.f32 %v16953_v56, %v16981_v41  ;;  %22643 = vst [vmem:[#allocation170_spill] sm:$0xff] %v17423_v26  ;;  %v2166_v41 = vmul.f32 %v16961_v50, %v16983_v53 }
 0x100   : > { %v17400_v35 = vpop.permute.xlu1 %832  ;;  %v17402_v16 = vpop.permute.xlu0 %827  ;;  %15044 = vmatmul.mubr.msk.f32.gmra.mxu0 %vm591_vm0, %v1772_v49 }
 0x101   : > { %22636 = vst [vmem:[#allocation163_spill] sm:$0xff] %v17400_v35  ;;  %22637 = vst [vmem:[#allocation164_spill] sm:$0xff] %v17402_v16  ;;  %v865_v17 = vmul.f32 %v17402_v16, %v17405_v8  ;;  %v866_v42 = vmul.f32 %v17400_v35, %v17407_v25  ;;  %v17432_v35 = vpop.f32.mrf.mxu0 }
 0x102   : > { %22645 = vst [vmem:[#allocation172_spill] sm:$0xff] %v17432_v35 }
 0x103   : > { %14996 = vmatprep.mubr.msk.f32.mxu1 %vm591_vm0, %v865_v17  ;;  %v17449_v53 = vpop.f32.mrf.mxu0 }
 0x104   : > { %v17418_v18 = vpop.permute.xlu1 %1740  ;;  %v17420_v49 = vpop.permute.xlu0 %1735  ;;  %14997 = vmatmul.mubr.msk.f32.gmra.mxu1 %vm591_vm0, %v866_v42  ;;  %v2167_v42 = vmul.f32 %v16979_v1, %v17017_v36  ;;  %22646 = vst [vmem:[#allocation173_spill] sm:$0xff] %v17449_v53 }
 0x105   : > { %22641 = vst [vmem:[#allocation168_spill] sm:$0xff] %v17418_v18  ;;  %22642 = vst [vmem:[#allocation169_spill] sm:$0xff] %v17420_v49  ;;  %15051 = vmatprep.mubr.msk.f32.mxu1 %vm591_vm0, %v2165_v58  ;;  %v1773_v3 = vmul.f32 %v17420_v49, %v17423_v26  ;;  %v1774_v17 = vmul.f32 %v17418_v18, %v17425_v34  ;;  %v17442_v58 = vld [vmem:[%s22052_s1 + $0x1c] sm:$0xf]  ;;  %v22678_v18 = vld [vmem:[#allocation42_spill] sm:$0xff] }
 0x106   : > { %v22683_v49 = vld [vmem:[#allocation155_spill] sm:$0xff]  ;;  %v22684_v34 = vld [vmem:[#allocation144_spill] sm:$0xff] }
 0x107   : > { %15046 = vmatprep.mubr.msk.f32.mxu0 %vm591_vm0, %v1773_v3  ;;  %v2168_v3 = vmul.f32 %v16977_v54, %v17019_v45  ;;  %v2191_v26 = vmul.f32 %v22684_v34, %v22683_v49  ;;  %v22691_v34 = vld [vmem:[#allocation46_spill] sm:$0xff] }
 0x108   : > { %15047 = vmatmul.mubr.msk.f32.gmra.mxu0 %vm591_vm0, %v1774_v17  ;;  %15052 = vmatmul.mubr.msk.f32.vlgmr.msra.gmra.mxu1 %vm591_vm0, %v2166_v41  ;;  %v2169_v17 = vmul.f32 %v17014_v2, %v17045_v21  ;;  %v17462_v41 = vld [vmem:[%s22052_s1 + $0x20] sm:$0xf] }
 0x109   : > { %15054 = vmatprep.mubr.msk.f32.mxu1 %vm591_vm0, %v2167_v42  ;;  %15150 = vmatpush3.msk.msra.mxu1 %vm998_vm2, %v16968_v60  ;;  %v2170_v60 = vmul.f32 %v17012_v37, %v17047_v31  ;;  %v2171_v42 = vmul.f32 %v17042_v33, %v17073_v43 }
 0x10a   : > { %15101 = vmatprep.mubr.msk.f32.mxu0 %vm591_vm0, %v16549_v29  ;;  %15249 = vmatprep.subr.msk.mxu1 %vm998_vm2, %v17442_v58  ;;  %v17470_v29 = vpop.f32.mrf.mxu0 }
 0x10b   : > { %22647 = vst [vmem:[#allocation174_spill] sm:$0xff] %v17470_v29  ;;  %v22677_v29 = vld [vmem:[#allocation133_spill] sm:$0xff] }
 0x10c   : > { %15055 = vmatmul.mubr.msk.f32.gmra.mxu1 %vm591_vm0, %v2168_v3  ;;  %15102 = vmatmul.mubr.msk.f32.vlgmr.msra.gmra.mxu0 %vm591_vm0, %v16551_v30  ;;  %v17486_v30 = vpop.f32.mrf.mxu0  ;;  %v2175_v3 = vmul.f32 %v17098_v46, %v17129_v57 }
 0x10d   : > { %15200 = vmatpush3.msk.msra.mxu0 %vm998_vm2, %v16973_v61  ;;  %15057 = vmatprep.mubr.msk.f32.mxu1 %vm591_vm0, %v2169_v17  ;;  %22648 = vst [vmem:[#allocation175_spill] sm:$0xff] %v17486_v30  ;;  %v2173_v61 = vmul.f32 %v17070_v20, %v17101_v27  ;;  %v2177_v17 = vmul.f32 %v17126_v51, %v17157_v59  ;;  %v22676_v30 = vld [vmem:[#allocation145_spill] sm:$0xff] }
 0x10e   : > { %15104 = vmatprep.mubr.msk.f32.mxu0 %vm591_vm0, %v16558_v32  ;;  %15299 = vmatprep.subr.msk.mxu0 %vm998_vm2, %v17462_v41  ;;  %v2172_v32 = vmul.f32 %v17040_v22, %v17075_v19  ;;  %v2189_v53 = vmul.f32 %v22677_v29, %v22676_v30  ;;  %v22685_v29 = vld [vmem:[#allocation44_spill] sm:$0xff] }
 0x110   : > { %15058 = vmatmul.mubr.msk.f32.gmra.mxu1 %vm591_vm0, %v2170_v60  ;;  %15105 = vmatmul.mubr.msk.f32.gmra.mxu0 %vm591_vm0, %v16585_v38  ;;  %v17498_v38 = vpop.f32.mrf.mxu0  ;;  %v2179_v60 = vmul.f32 %v17154_v12, %v17185_v5 }
 0x111   : > { %15060 = vmatprep.mubr.msk.f32.mxu1 %vm591_vm0, %v2171_v42  ;;  %15107 = vmatprep.mubr.msk.f32.mxu0 %vm591_vm0, %v16594_v40  ;;  %22649 = vst [vmem:[#allocation176_spill] sm:$0xff] %v17498_v38  ;;  %v2174_v40 = vmul.f32 %v17068_v28, %v17103_v24  ;;  %v2181_v42 = vmul.f32 %v17182_v47, %v17213_v39  ;;  %v22671_v38 = vld [vmem:[#allocation40_spill] sm:$0xff] }
 0x114   : > { %15061 = vmatmul.mubr.msk.f32.gmra.mxu1 %vm591_vm0, %v2172_v32  ;;  %15108 = vmatmul.mubr.msk.f32.gmra.mxu0 %vm591_vm0, %v16613_v44  ;;  %v17510_v44 = vpop.f32.mrf.mxu0 }
 0x115   : > { %15063 = vmatprep.mubr.msk.f32.mxu1 %vm591_vm0, %v2173_v61  ;;  %15110 = vmatprep.mubr.msk.f32.mxu0 %vm591_vm0, %v16624_v48  ;;  %22650 = vst [vmem:[#allocation177_spill] sm:$0xff] %v17510_v44  ;;  %v2176_v48 = vmul.f32 %v17096_v4, %v17131_v14  ;;  %v22655_v61 = vld [vmem:[#allocation113_spill] sm:$0xff] }
 0x118   : > { %15064 = vmatmul.mubr.msk.f32.gmra.mxu1 %vm591_vm0, %v2174_v40  ;;  %15111 = vmatmul.mubr.msk.f32.gmra.mxu0 %vm591_vm0, %v16647_v52  ;;  %v17522_v52 = vpop.f32.mrf.mxu0  ;;  %v22656_v40 = vld [vmem:[#allocation106_spill] sm:$0xff] }
 0x119   : > { %15066 = vmatprep.mubr.msk.f32.mxu1 %vm591_vm0, %v2175_v3  ;;  %15113 = vmatprep.mubr.msk.f32.mxu0 %vm591_vm0, %v16655_v55  ;;  %22651 = vst [vmem:[#allocation178_spill] sm:$0xff] %v17522_v52  ;;  %v2178_v55 = vmul.f32 %v17124_v0, %v17159_v15  ;;  %v2183_v3 = vmul.f32 %v22656_v40, %v22655_v61  ;;  %v22664_v52 = vld [vmem:[#allocation38_spill] sm:$0xff] }
 0x11c   : > { %15067 = vmatmul.mubr.msk.f32.gmra.mxu1 %vm591_vm0, %v2176_v48  ;;  %15114 = vmatmul.mubr.msk.f32.gmra.mxu0 %vm591_vm0, %v16687_v62  ;;  %v17534_v62 = vpop.f32.mrf.mxu0  ;;  %v22657_v48 = vld [vmem:[#allocation36_spill] sm:$0xff] }
 0x11d   : > { %15069 = vmatprep.mubr.msk.f32.mxu1 %vm591_vm0, %v2177_v17  ;;  %15116 = vmatprep.mubr.msk.f32.mxu0 %vm591_vm0, %v16693_v63  ;;  %22652 = vst [vmem:[#allocation179_spill] sm:$0xff] %v17534_v62  ;;  %v2180_v63 = vmul.f32 %v17152_v9, %v17187_v23  ;;  %v22670_v62 = vld [vmem:[#allocation122_spill] sm:$0xff] }
 0x120   : > { %15070 = vmatmul.mubr.msk.f32.gmra.mxu1 %vm591_vm0, %v2178_v55  ;;  %15117 = vmatmul.mubr.msk.f32.gmra.mxu0 %vm591_vm0, %v16721_v6  ;;  %v17546_v6 = vpop.f32.mrf.mxu0  ;;  %v22661_v55 = vld [vmem:[#allocation105_spill] sm:$0xff] }
 0x121   : > { %15072 = vmatprep.mubr.msk.f32.mxu1 %vm591_vm0, %v2179_v60  ;;  %15119 = vmatprep.mubr.msk.f32.mxu0 %vm591_vm0, %v16724_v7  ;;  %22653 = vst [vmem:[#allocation180_spill] sm:$0xff] %v17546_v6  ;;  %v22654_v7 = vld [vmem:[#allocation99_spill] sm:$0xff] }
 0x122   : > { %v2182_v32 = vmul.f32 %v22654_v7, %v17215_v13  ;;  %v17558_v17 = vpop.f32.mrf.mxu0 }
 0x123   : > { %22659 = vst [vmem:[#allocation113_spill] sm:$0xff] %v17558_v17  ;;  %v22669_v17 = vld [vmem:[#allocation134_spill] sm:$0xff] }
 0x124   : > { %15073 = vmatmul.mubr.msk.f32.gmra.mxu1 %vm591_vm0, %v2180_v63  ;;  %15120 = vmatmul.mubr.msk.f32.gmra.mxu0 %vm591_vm0, %v16739_v10  ;;  %v22658_v10 = vld [vmem:[#allocation37_spill] sm:$0xff]  ;;  %v22662_v63 = vld [vmem:[#allocation123_spill] sm:$0xff]  ;;  %v2187_v44 = vmul.f32 %v22670_v62, %v22669_v17 }
 0x125   : > { %15075 = vmatprep.mubr.msk.f32.mxu1 %vm591_vm0, %v2181_v42  ;;  %15122 = vmatprep.mubr.msk.f32.mxu0 %vm591_vm0, %v16741_v11  ;;  %v22660_v11 = vld [vmem:[#allocation114_spill] sm:$0xff]  ;;  %v22663_v42 = vld [vmem:[#allocation112_spill] sm:$0xff] }
 0x126   : > { %v2184_v60 = vmul.f32 %v22661_v55, %v22660_v11  ;;  %v2185_v6 = vmul.f32 %v22663_v42, %v22662_v63 }
 0x128   : > { %15076 = vmatmul.mubr.msk.f32.gmra.mxu1 %vm591_vm0, %v2182_v32  ;;  %15123 = vmatmul.mubr.msk.f32.gmra.mxu0 %vm591_vm0, %v22657_v48  ;;  %v22665_v32 = vld [vmem:[#allocation39_spill] sm:$0xff]  ;;  %v22667_v48 = vld [vmem:[#allocation124_spill] sm:$0xff] }
 0x129   : > { %15078 = vmatprep.mubr.msk.f32.mxu1 %vm591_vm0, %v2183_v3  ;;  %15125 = vmatprep.mubr.msk.f32.mxu0 %vm591_vm0, %v22658_v10  ;;  %v17570_v3 = vpop.f32.mrf.mxu0  ;;  %v22668_v10 = vld [vmem:[#allocation111_spill] sm:$0xff] }
 0x12a   : > { %22666 = vst [vmem:[#allocation36_spill] sm:$0xff] %v17570_v3  ;;  %v2186_v35 = vmul.f32 %v22668_v10, %v22667_v48 }
 0x12c   : > { %15079 = vmatmul.mubr.msk.f32.gmra.mxu1 %vm591_vm0, %v2184_v60  ;;  %15126 = vmatmul.mubr.msk.f32.gmra.mxu0 %vm591_vm0, %v22664_v52  ;;  %v22672_v52 = vld [vmem:[#allocation41_spill] sm:$0xff]  ;;  %v22674_v60 = vld [vmem:[#allocation135_spill] sm:$0xff] }
 0x12d   : > { %15081 = vmatprep.mubr.msk.f32.mxu1 %vm591_vm0, %v2185_v6  ;;  %15128 = vmatprep.mubr.msk.f32.mxu0 %vm591_vm0, %v22665_v32  ;;  %v17582_v6 = vpop.f32.mrf.mxu0  ;;  %v22675_v32 = vld [vmem:[#allocation121_spill] sm:$0xff] }
 0x12e   : > { %22673 = vst [vmem:[#allocation37_spill] sm:$0xff] %v17582_v6  ;;  %v2188_v3 = vmul.f32 %v22675_v32, %v22674_v60 }
 0x130   : > { %15082 = vmatmul.mubr.msk.f32.gmra.mxu1 %vm591_vm0, %v2186_v35  ;;  %15129 = vmatmul.mubr.msk.f32.gmra.mxu0 %vm591_vm0, %v22671_v38  ;;  %v22679_v35 = vld [vmem:[#allocation43_spill] sm:$0xff]  ;;  %v17594_v38 = vpop.f32.mrf.mxu0 }
 0x131   : > { %15084 = vmatprep.mubr.msk.f32.mxu1 %vm591_vm0, %v2187_v44  ;;  %15131 = vmatprep.mubr.msk.f32.mxu0 %vm591_vm0, %v22672_v52  ;;  %22680 = vst [vmem:[#allocation114_spill] sm:$0xff] %v17594_v38  ;;  %v22681_v44 = vld [vmem:[#allocation146_spill] sm:$0xff]  ;;  %v22682_v52 = vld [vmem:[#allocation132_spill] sm:$0xff] }
 0x132   : > { %v2190_v6 = vmul.f32 %v22682_v52, %v22681_v44  ;;  %v22690_v52 = vld [vmem:[#allocation154_spill] sm:$0xff] }
 0x133   : > { %v2193_v32 = vmul.f32 %v22690_v52, %v17405_v8  ;;  %v22709_v8 = vld [vmem:[#allocation60_spill] sm:$0xff] }
 0x134   : > { %15085 = vmatmul.mubr.msk.f32.gmra.mxu1 %vm591_vm0, %v2188_v3  ;;  %15132 = vmatmul.mubr.msk.f32.gmra.mxu0 %vm591_vm0, %v22678_v18  ;;  %v22686_v18 = vld [vmem:[#allocation45_spill] sm:$0xff]  ;;  %v22688_v3 = vld [vmem:[#allocation156_spill] sm:$0xff] }
 0x135   : > { %15087 = vmatprep.mubr.msk.f32.mxu1 %vm591_vm0, %v2189_v53  ;;  %15134 = vmatprep.mubr.msk.f32.mxu0 %vm591_vm0, %v22679_v35  ;;  %v17606_v53 = vpop.f32.mrf.mxu0  ;;  %v22689_v35 = vld [vmem:[#allocation143_spill] sm:$0xff] }
 0x136   : > { %22687 = vst [vmem:[#allocation123_spill] sm:$0xff] %v17606_v53  ;;  %v2192_v38 = vmul.f32 %v22689_v35, %v22688_v3  ;;  %v17622_v53 = vld [vmem:[#allocation2 + $0x107] sm:$0xff] }
 0x137   : > { %22695 = vst [vmem:[#allocation39_spill] sm:$0xff] %v17622_v53  ;;  %v2195_v52 = vmul.f32 %v17622_v53, %v17402_v16  ;;  %v17638_v35 = vld [vmem:[#allocation2 + $0x108] sm:$0xff] }
 0x138   : > { %15088 = vmatmul.mubr.msk.f32.gmra.mxu1 %vm591_vm0, %v2190_v6  ;;  %15135 = vmatmul.mubr.msk.f32.gmra.mxu0 %vm591_vm0, %v22685_v29  ;;  %v22692_v29 = vld [vmem:[#allocation47_spill] sm:$0xff]  ;;  %v22694_v6 = vld [vmem:[#allocation153_spill] sm:$0xff] }
 0x139   : > { %15090 = vmatprep.mubr.msk.f32.mxu1 %vm591_vm0, %v2191_v26  ;;  %15137 = vmatprep.mubr.msk.f32.mxu0 %vm591_vm0, %v22686_v18  ;;  %v17618_v26 = vpop.f32.mrf.mxu0  ;;  %v2194_v18 = vmul.f32 %v22694_v6, %v17407_v25  ;;  %v22701_v16 = vld [vmem:[#allocation61_spill] sm:$0xff]  ;;  %v22708_v25 = vld [vmem:[#allocation67_spill] sm:$0xff] }
 0x13a   : > { %22693 = vst [vmem:[#allocation38_spill] sm:$0xff] %v17618_v26  ;;  %v22700_v26 = vld [vmem:[#allocation163_spill] sm:$0xff]  ;;  %v22702_v53 = vld [vmem:[#allocation53_spill] sm:$0xff] }
 0x13c   : > { %15091 = vmatmul.mubr.msk.f32.gmra.mxu1 %vm591_vm0, %v2192_v38  ;;  %15138 = vmatmul.mubr.msk.f32.gmra.mxu0 %vm591_vm0, %v22691_v34  ;;  %v22696_v38 = vld [vmem:[#allocation48_spill] sm:$0xff]  ;;  %v22697_v34 = vld [vmem:[#allocation49_spill] sm:$0xff] }
 0x13d   : > { %15093 = vmatprep.mubr.msk.f32.mxu1 %vm591_vm0, %v2193_v32  ;;  %15140 = vmatprep.mubr.msk.f32.mxu0 %vm591_vm0, %v22692_v29  ;;  %v17632_v32 = vld [vmem:[#allocation2 + $0x10f] sm:$0xff]  ;;  %v17634_v29 = vpop.f32.mrf.mxu0 }
 0x13e   : > { %22698 = vst [vmem:[#allocation124_spill] sm:$0xff] %v17632_v32  ;;  %22699 = vst [vmem:[#allocation134_spill] sm:$0xff] %v17634_v29  ;;  %v2196_v6 = vmul.f32 %v17632_v32, %v22700_v26  ;;  %v22706_v29 = vld [vmem:[#allocation62_spill] sm:$0xff]  ;;  %v22707_v26 = vld [vmem:[#allocation55_spill] sm:$0xff] }
 0x13f   : > { %v2978_v32 = vmul.f32 %v22707_v26, %v22706_v29  ;;  %v22711_v29 = vld [vmem:[#allocation68_spill] sm:$0xff] }
 0x140   : > { %15094 = vmatmul.mubr.msk.f32.gmra.mxu1 %vm591_vm0, %v2194_v18  ;;  %15141 = vmatmul.mubr.msk.f32.gmra.mxu0 %vm591_vm0, %v22696_v38  ;;  %v2977_v18 = vmul.f32 %v22702_v53, %v22701_v16  ;;  %v22703_v38 = vld [vmem:[#allocation50_spill] sm:$0xff]  ;;  %v2979_v16 = vmul.f32 %v22709_v8, %v22708_v25 }
 0x141   : > { %15096 = vmatprep.mubr.msk.f32.mxu1 %vm591_vm0, %v2195_v52  ;;  %15143 = vmatprep.mubr.msk.f32.mxu0 %vm591_vm0, %v22697_v34  ;;  %v17648_v52 = vld [vmem:[#allocation2 + $0x110] sm:$0xff]  ;;  %v17650_v34 = vpop.f32.mrf.mxu0 }
 0x142   : > { %22704 = vst [vmem:[#allocation40_spill] sm:$0xff] %v17648_v52  ;;  %22705 = vst [vmem:[#allocation41_spill] sm:$0xff] %v17650_v34  ;;  %v17674_v34 = vld [vmem:[%s22055_s4 + $0x8] sm:$0xff] }
 0x144   : > { %15097 = vmatmul.mubr.msk.f32.gmra.mxu1 %vm591_vm0, %v2196_v6  ;;  %15144 = vmatmul.mubr.msk.f32.gmra.mxu0 %vm591_vm0, %v22703_v38  ;;  %v3399_v6 = vmul.f32 %v16953_v56, %v17017_v36  ;;  %v22712_v38 = vld [vmem:[#allocation59_spill] sm:$0xff]  ;;  %v3400_v36 = vmul.f32 %v16961_v50, %v17019_v45  ;;  %v3401_v45 = vmul.f32 %v16979_v1, %v17045_v21  ;;  %v22719_v21 = vld [vmem:[#allocation72_spill] sm:$0xff] }
 0x145   : > { %15151 = vmatprep.mubr.msk.f32.mxu1 %vm591_vm0, %v2977_v18  ;;  %15146 = vmatprep.mubr.msk.f32.mxu0 %vm591_vm0, %v17638_v35  ;;  %v17663_v18 = vpop.f32.mrf.mxu0  ;;  %v2980_v25 = vmul.f32 %v22712_v38, %v22711_v29  ;;  %v22716_v29 = vld [vmem:[#allocation74_spill] sm:$0xff] }
 0x146   : > { %22710 = vst [vmem:[#allocation135_spill] sm:$0xff] %v17663_v18  ;;  %v22718_v18 = vld [vmem:[#allocation79_spill] sm:$0xff] }
 0x147   : > { %v2983_v1 = vmul.f32 %v22719_v21, %v22718_v18  ;;  %v22722_v18 = vld [vmem:[#allocation71_spill] sm:$0xff] }
 0x148   : > { %15147 = vmatmul.mubr.msk.f32.gmra.mxu0 %vm591_vm0, %v17648_v52  ;;  %15152 = vmatmul.mubr.msk.f32.vlgmr.msra.gmra.mxu1 %vm591_vm0, %v2978_v32  ;;  %v22713_v32 = vld [vmem:[#allocation73_spill] sm:$0xff] }
 0x149   : > { %15154 = vmatprep.mubr.msk.f32.mxu1 %vm591_vm0, %v2979_v16  ;;  %15201 = vmatprep.mubr.msk.f32.mxu0 %vm591_vm0, %v3399_v6  ;;  %v22714_v16 = vld [vmem:[#allocation66_spill] sm:$0xff]  ;;  %v17690_v6 = vpop.f32.mrf.mxu0 }
 0x14a   : > { %15250 = vmatpush3.msk.msra.mxu1 %vm998_vm2, %v17442_v58  ;;  %v2981_v56 = vmul.f32 %v22714_v16, %v22713_v32  ;;  %v17682_v58 = vld [vmem:[%s22055_s4] sm:$0xff]  ;;  %22715 = vst [vmem:[#allocation145_spill] sm:$0xff] %v17690_v6  ;;  %v22717_v32 = vld [vmem:[#allocation65_spill] sm:$0xff]  ;;  %v22720_v6 = vld [vmem:[#allocation115_spill] sm:$0xff] }
 0x14b   : > { %15349 = vmatprep.subr.mxu1 %v17674_v34  ;;  %v2982_v50 = vmul.f32 %v22717_v32, %v22716_v29  ;;  %v22721_v29 = vld [vmem:[#allocation80_spill] sm:$0xff] }
 0x14c   : > { %15155 = vmatmul.mubr.msk.f32.gmra.mxu1 %vm591_vm0, %v2980_v25  ;;  %15202 = vmatmul.mubr.msk.f32.vlgmr.msra.gmra.mxu0 %vm591_vm0, %v3400_v36  ;;  %v3402_v25 = vmul.f32 %v16977_v54, %v17047_v31  ;;  %v2984_v54 = vmul.f32 %v22722_v18, %v22721_v29  ;;  %v22728_v29 = vld [vmem:[#allocation125_spill] sm:$0xff] }
 0x14d   : > { %15300 = vmatpush3.msk.msra.mxu0 %vm998_vm2, %v17462_v41  ;;  %15157 = vmatprep.mubr.msk.f32.mxu1 %vm591_vm0, %v2981_v56  ;;  %v3403_v41 = vmul.f32 %v17014_v2, %v17073_v43  ;;  %v3404_v43 = vmul.f32 %v17012_v37, %v17075_v19 }
 0x14e   : > { %15204 = vmatprep.mubr.msk.f32.mxu0 %vm591_vm0, %v3401_v45  ;;  %15399 = vmatprep.subr.mxu0 %v17682_v58 }
 0x14f   : > { %v14953_v36 = vpop.f32.mrf.mxu1  ;;  %v15003_v56 = vpop.f32.mrf.mxu0 }
 0x150   : > { %v1398_v52 = vadd.f32 %v14953_v36, %v22720_v6  ;;  %15158 = vmatmul.mubr.msk.f32.gmra.mxu1 %vm591_vm0, %v2982_v50  ;;  %15205 = vmatmul.mubr.msk.f32.gmra.mxu0 %vm591_vm0, %v3402_v25  ;;  %v22723_v6 = vld [vmem:[#allocation85_spill] sm:$0xff]  ;;  %v22724_v36 = vld [vmem:[#allocation78_spill] sm:$0xff]  ;;  %v3405_v25 = vmul.f32 %v17042_v33, %v17101_v27  ;;  %v22729_v27 = vld [vmem:[#allocation91_spill] sm:$0xff] }
 0x151   : > { %v17706_v45 = vpop.f32.mrf.mxu1  ;;  %15160 = vmatprep.mubr.msk.f32.mxu1 %vm591_vm0, %v2983_v1  ;;  %15207 = vmatprep.mubr.msk.f32.mxu0 %vm591_vm0, %v3403_v41  ;;  %v2985_v50 = vmul.f32 %v22724_v36, %v22723_v6  ;;  %v17724_v1 = vpop.f32.mrf.mxu0  ;;  %v22727_v41 = vld [vmem:[#allocation77_spill] sm:$0xff]  ;;  %v22730_v33 = vld [vmem:[#allocation84_spill] sm:$0xff] }
 0x152   : > { %v17710_v31 = vadd.f32 %v15003_v56, %v1398_v52  ;;  %22725 = vst [vmem:[#allocation42_spill] sm:$0xff] %v17724_v1  ;;  %v22726_v52 = vld [vmem:[#allocation86_spill] sm:$0xff]  ;;  %v3406_v56 = vmul.f32 %v17040_v22, %v17103_v24  ;;  %v2987_v37 = vmul.f32 %v22730_v33, %v22729_v27  ;;  %v22799_v1 = vld [vmem:[#allocation173_spill] sm:$0xff] }
 0x153   : > { %v2986_v19 = vmul.f32 %v22727_v41, %v22726_v52  ;;  %v22734_v27 = vld [vmem:[#allocation90_spill] sm:$0xff] }
 0x154   : > { %v14956_v2 = vpop.f32.mrf.mxu1  ;;  %15161 = vmatmul.mubr.msk.f32.gmra.mxu1 %vm591_vm0, %v2984_v54  ;;  %15208 = vmatmul.mubr.msk.f32.gmra.mxu0 %vm591_vm0, %v3404_v43  ;;  %v3407_v54 = vmul.f32 %v17070_v20, %v17129_v57  ;;  %v22733_v57 = vld [vmem:[#allocation97_spill] sm:$0xff] }
 0x155   : > { %15163 = vmatprep.mubr.msk.f32.mxu1 %vm591_vm0, %v2985_v50  ;;  %15210 = vmatprep.mubr.msk.f32.mxu0 %vm591_vm0, %v3405_v25  ;;  %v1408_v6 = vadd.f32 %v14956_v2, %v22728_v29  ;;  %v22731_v2 = vld [vmem:[#allocation92_spill] sm:$0xff]  ;;  %v22732_v25 = vld [vmem:[#allocation83_spill] sm:$0xff]  ;;  %v3408_v29 = vmul.f32 %v17068_v28, %v17131_v14  ;;  %v2989_v20 = vmul.f32 %v22734_v27, %v22733_v57  ;;  %v17885_v22 = vld [vmem:[#allocation2 + $0x109] sm:$0xff] }
 0x156   : > { %v17741_v24 = vpop.f32.mrf.mxu1  ;;  %v2988_v52 = vmul.f32 %v22732_v25, %v22731_v2  ;;  %v22738_v2 = vld [vmem:[#allocation131_spill] sm:$0xff] }
 0x158   : > { %v15006_v43 = vpop.f32.mrf.mxu0  ;;  %15164 = vmatmul.mubr.msk.f32.gmra.mxu1 %vm591_vm0, %v2986_v19  ;;  %15211 = vmatmul.mubr.msk.f32.gmra.mxu0 %vm591_vm0, %v3406_v56  ;;  %v3409_v19 = vmul.f32 %v17098_v46, %v17157_v59  ;;  %v22739_v59 = vld [vmem:[#allocation103_spill] sm:$0xff]  ;;  %v22740_v46 = vld [vmem:[#allocation96_spill] sm:$0xff] }
 0x159   : > { %v17737_v50 = vadd.f32 %v15006_v43, %v1408_v6  ;;  %15166 = vmatprep.mubr.msk.f32.mxu1 %vm591_vm0, %v2987_v37  ;;  %15213 = vmatprep.mubr.msk.f32.mxu0 %vm591_vm0, %v3407_v54  ;;  %v22736_v6 = vld [vmem:[#allocation98_spill] sm:$0xff]  ;;  %v22737_v54 = vld [vmem:[#allocation89_spill] sm:$0xff]  ;;  %v3410_v43 = vmul.f32 %v17096_v4, %v17159_v15  ;;  %v2991_v28 = vmul.f32 %v22740_v46, %v22739_v59  ;;  %v22783_v4 = vld [vmem:[#allocation144_spill] sm:$0xff] }
 0x15a   : > { %v17755_v37 = vpop.f32.mrf.mxu0  ;;  %v2990_v14 = vmul.f32 %v22737_v54, %v22736_v6  ;;  %v22745_v59 = vld [vmem:[#allocation102_spill] sm:$0xff] }
 0x15b   : > { %22735 = vst [vmem:[#allocation43_spill] sm:$0xff] %v17755_v37  ;;  %v22797_v37 = vld [vmem:[#allocation164_spill] sm:$0xff] }
 0x15c   : > { %v14959_v56 = vpop.f32.mrf.mxu1  ;;  %15167 = vmatmul.mubr.msk.f32.gmra.mxu1 %vm591_vm0, %v2988_v52  ;;  %15214 = vmatmul.mubr.msk.f32.gmra.mxu0 %vm591_vm0, %v3408_v29  ;;  %v3411_v52 = vmul.f32 %v17126_v51, %v17185_v5  ;;  %v22744_v5 = vld [vmem:[#allocation109_spill] sm:$0xff] }
 0x15d   : > { %15169 = vmatprep.mubr.msk.f32.mxu1 %vm591_vm0, %v2989_v20  ;;  %15216 = vmatprep.mubr.msk.f32.mxu0 %vm591_vm0, %v3409_v19  ;;  %v1418_v57 = vadd.f32 %v14959_v56, %v22738_v2  ;;  %v22742_v19 = vld [vmem:[#allocation104_spill] sm:$0xff]  ;;  %v22743_v56 = vld [vmem:[#allocation95_spill] sm:$0xff]  ;;  %v3412_v2 = vmul.f32 %v17124_v0, %v17187_v23  ;;  %v2993_v51 = vmul.f32 %v22745_v59, %v22744_v5 }
 0x15e   : > { %v17772_v15 = vpop.f32.mrf.mxu1  ;;  %v2992_v6 = vmul.f32 %v22743_v56, %v22742_v19  ;;  %v22749_v19 = vld [vmem:[#allocation137_spill] sm:$0xff] }
 0x15f   : > { %22741 = vst [vmem:[#allocation146_spill] sm:$0xff] %v17772_v15 }
 0x160   : > { %v15009_v29 = vpop.f32.mrf.mxu0  ;;  %15170 = vmatmul.mubr.msk.f32.gmra.mxu1 %vm591_vm0, %v2990_v14  ;;  %15217 = vmatmul.mubr.msk.f32.gmra.mxu0 %vm591_vm0, %v3410_v43  ;;  %v3413_v14 = vmul.f32 %v17154_v12, %v17213_v39  ;;  %v22750_v39 = vld [vmem:[#allocation118_spill] sm:$0xff]  ;;  %v22751_v12 = vld [vmem:[#allocation108_spill] sm:$0xff] }
 0x161   : > { %v17768_v20 = vadd.f32 %v15009_v29, %v1418_v57  ;;  %15172 = vmatprep.mubr.msk.f32.mxu1 %vm591_vm0, %v2991_v28  ;;  %15219 = vmatprep.mubr.msk.f32.mxu0 %vm591_vm0, %v3411_v52  ;;  %v22747_v57 = vld [vmem:[#allocation110_spill] sm:$0xff]  ;;  %v22748_v52 = vld [vmem:[#allocation101_spill] sm:$0xff]  ;;  %v3414_v29 = vmul.f32 %v17152_v9, %v17215_v13  ;;  %v2995_v0 = vmul.f32 %v22751_v12, %v22750_v39 }
 0x162   : > { %v17786_v28 = vpop.f32.mrf.mxu0  ;;  %v2994_v23 = vmul.f32 %v22748_v52, %v22747_v57  ;;  %v22756_v39 = vld [vmem:[#allocation117_spill] sm:$0xff] }
 0x163   : > { %22746 = vst [vmem:[#allocation155_spill] sm:$0xff] %v17786_v28 }
 0x164   : > { %v14962_v43 = vpop.f32.mrf.mxu1  ;;  %15173 = vmatmul.mubr.msk.f32.gmra.mxu1 %vm591_vm0, %v2992_v6  ;;  %15220 = vmatmul.mubr.msk.f32.gmra.mxu0 %vm591_vm0, %v3412_v2  ;;  %v3415_v6 = vmul.f32 %v17182_v47, %v22655_v61  ;;  %v22755_v61 = vld [vmem:[#allocation128_spill] sm:$0xff] }
 0x165   : > { %15175 = vmatprep.mubr.msk.f32.mxu1 %vm591_vm0, %v2993_v51  ;;  %15222 = vmatprep.mubr.msk.f32.mxu0 %vm591_vm0, %v3413_v14  ;;  %v1428_v5 = vadd.f32 %v14962_v43, %v22749_v19  ;;  %v22753_v14 = vld [vmem:[#allocation119_spill] sm:$0xff]  ;;  %v3416_v19 = vmul.f32 %v22654_v7, %v22660_v11  ;;  %v2997_v47 = vmul.f32 %v22756_v39, %v22755_v61 }
 0x166   : > { %v17803_v13 = vpop.f32.mrf.mxu1  ;;  %v22754_v43 = vld [vmem:[#allocation107_spill] sm:$0xff] }
 0x167   : > { %22752 = vst [vmem:[#allocation44_spill] sm:$0xff] %v17803_v13  ;;  %v2996_v57 = vmul.f32 %v22754_v43, %v22753_v14  ;;  %v22760_v14 = vld [vmem:[#allocation147_spill] sm:$0xff] }
 0x168   : > { %v15012_v2 = vpop.f32.mrf.mxu0  ;;  %15176 = vmatmul.mubr.msk.f32.gmra.mxu1 %vm591_vm0, %v2994_v23  ;;  %15223 = vmatmul.mubr.msk.f32.gmra.mxu0 %vm591_vm0, %v3414_v29  ;;  %v3417_v23 = vmul.f32 %v22656_v40, %v22662_v63  ;;  %v22761_v63 = vld [vmem:[#allocation140_spill] sm:$0xff]  ;;  %v22762_v40 = vld [vmem:[#allocation127_spill] sm:$0xff] }
 0x169   : > { %v17799_v51 = vadd.f32 %v15012_v2, %v1428_v5  ;;  %15178 = vmatprep.mubr.msk.f32.mxu1 %vm591_vm0, %v2995_v0  ;;  %15225 = vmatprep.mubr.msk.f32.mxu0 %vm591_vm0, %v3415_v6  ;;  %v22758_v5 = vld [vmem:[#allocation129_spill] sm:$0xff]  ;;  %v22759_v6 = vld [vmem:[#allocation116_spill] sm:$0xff]  ;;  %v3418_v2 = vmul.f32 %v22661_v55, %v22667_v48  ;;  %v2999_v7 = vmul.f32 %v22762_v40, %v22761_v63  ;;  %v22767_v63 = vld [vmem:[#allocation139_spill] sm:$0xff] }
 0x16a   : > { %v17817_v0 = vpop.f32.mrf.mxu0  ;;  %v2998_v11 = vmul.f32 %v22759_v6, %v22758_v5  ;;  %v4180_v13 = vld [vmem:[#allocation2 + $0x31] sm:$0xff] }
 0x16b   : > { %22757 = vst [vmem:[#allocation45_spill] sm:$0xff] %v17817_v0  ;;  %v22792_v0 = vld [vmem:[#allocation39_spill] sm:$0xff] }
 0x16c   : > { %v14965_v29 = vpop.f32.mrf.mxu1  ;;  %15179 = vmatmul.mubr.msk.f32.gmra.mxu1 %vm591_vm0, %v2996_v57  ;;  %15226 = vmatmul.mubr.msk.f32.gmra.mxu0 %vm591_vm0, %v3416_v19  ;;  %v3419_v57 = vmul.f32 %v22663_v42, %v22669_v17  ;;  %v22766_v17 = vld [vmem:[#allocation150_spill] sm:$0xff] }
 0x16d   : > { %15181 = vmatprep.mubr.msk.f32.mxu1 %vm591_vm0, %v2997_v47  ;;  %15228 = vmatprep.mubr.msk.f32.mxu0 %vm591_vm0, %v3417_v23  ;;  %v1438_v61 = vadd.f32 %v14965_v29, %v22760_v14  ;;  %v22764_v23 = vld [vmem:[#allocation141_spill] sm:$0xff]  ;;  %v22765_v29 = vld [vmem:[#allocation126_spill] sm:$0xff]  ;;  %v3420_v14 = vmul.f32 %v22668_v10, %v22674_v60  ;;  %v3001_v42 = vmul.f32 %v22767_v63, %v22766_v17 }
 0x16e   : > { %v17834_v48 = vpop.f32.mrf.mxu1  ;;  %v3000_v5 = vmul.f32 %v22765_v29, %v22764_v23  ;;  %v22772_v17 = vld [vmem:[#allocation157_spill] sm:$0xff] }
 0x16f   : > { %22763 = vst [vmem:[#allocation156_spill] sm:$0xff] %v17834_v48  ;;  %v22798_v48 = vld [vmem:[#allocation163_spill] sm:$0xff] }
 0x170   : > { %v15015_v19 = vpop.f32.mrf.mxu0  ;;  %15182 = vmatmul.mubr.msk.f32.gmra.mxu1 %vm591_vm0, %v2998_v11  ;;  %15229 = vmatmul.mubr.msk.f32.gmra.mxu0 %vm591_vm0, %v3418_v2  ;;  %v3421_v11 = vmul.f32 %v22670_v62, %v22676_v30  ;;  %v22773_v30 = vld [vmem:[#allocation160_spill] sm:$0xff]  ;;  %v22774_v62 = vld [vmem:[#allocation149_spill] sm:$0xff] }
 0x171   : > { %v17830_v47 = vadd.f32 %v15015_v19, %v1438_v61  ;;  %15184 = vmatprep.mubr.msk.f32.mxu1 %vm591_vm0, %v2999_v7  ;;  %15231 = vmatprep.mubr.msk.f32.mxu0 %vm591_vm0, %v3419_v57  ;;  %v22769_v61 = vld [vmem:[#allocation151_spill] sm:$0xff]  ;;  %v22770_v57 = vld [vmem:[#allocation138_spill] sm:$0xff]  ;;  %v22771_v19 = vld [vmem:[#allocation121_spill] sm:$0xff]  ;;  %v3003_v55 = vmul.f32 %v22774_v62, %v22773_v30 }
 0x172   : > { %v17848_v7 = vpop.f32.mrf.mxu0  ;;  %v3002_v60 = vmul.f32 %v22770_v57, %v22769_v61  ;;  %v3422_v23 = vmul.f32 %v22771_v19, %v22681_v44 }
 0x173   : > { %22768 = vst [vmem:[#allocation46_spill] sm:$0xff] %v17848_v7  ;;  %v22790_v7 = vld [vmem:[#allocation169_spill] sm:$0xff] }
 0x174   : > { %v14968_v2 = vpop.f32.mrf.mxu1  ;;  %15185 = vmatmul.mubr.msk.f32.gmra.mxu1 %vm591_vm0, %v3000_v5  ;;  %15232 = vmatmul.mubr.msk.f32.gmra.mxu0 %vm591_vm0, %v3420_v14  ;;  %v22775_v5 = vld [vmem:[#allocation133_spill] sm:$0xff] }
 0x175   : > { %15187 = vmatprep.mubr.msk.f32.mxu1 %vm591_vm0, %v3001_v42  ;;  %15234 = vmatprep.mubr.msk.f32.mxu0 %vm591_vm0, %v3421_v11  ;;  %v1448_v10 = vadd.f32 %v14968_v2, %v22772_v17  ;;  %v3423_v14 = vmul.f32 %v22775_v5, %v22683_v49  ;;  %v22777_v11 = vld [vmem:[#allocation161_spill] sm:$0xff]  ;;  %v22778_v2 = vld [vmem:[#allocation148_spill] sm:$0xff]  ;;  %v22780_v49 = vld [vmem:[#allocation170_spill] sm:$0xff] }
 0x176   : > { %v17865_v44 = vpop.f32.mrf.mxu1  ;;  %v3004_v61 = vmul.f32 %v22778_v2, %v22777_v11  ;;  %v22779_v17 = vld [vmem:[#allocation132_spill] sm:$0xff]  ;;  %v22781_v5 = vld [vmem:[#allocation159_spill] sm:$0xff]  ;;  %v22787_v11 = vld [vmem:[#allocation166_spill] sm:$0xff] }
 0x177   : > { %22776 = vst [vmem:[#allocation47_spill] sm:$0xff] %v17865_v44  ;;  %v3424_v30 = vmul.f32 %v22779_v17, %v22688_v3  ;;  %v3005_v19 = vmul.f32 %v22781_v5, %v22780_v49  ;;  %v22788_v17 = vld [vmem:[#allocation143_spill] sm:$0xff] }
 0x178   : > { %v15018_v9 = vpop.f32.mrf.mxu0  ;;  %15188 = vmatmul.mubr.msk.f32.gmra.mxu1 %vm591_vm0, %v3002_v60  ;;  %15235 = vmatmul.mubr.msk.f32.gmra.mxu0 %vm591_vm0, %v3422_v23  ;;  %v22782_v60 = vld [vmem:[#allocation165_spill] sm:$0xff]  ;;  %v3426_v49 = vmul.f32 %v22788_v17, %v22787_v11  ;;  %v17898_v11 = vld [vmem:[#allocation2 + $0x111] sm:$0xff]  ;;  %v3398_v44 = vld [vmem:[#allocation2 + $0x11f] sm:$0xff] }
 0x179   : > { %v17861_v42 = vadd.f32 %v15018_v9, %v1448_v10  ;;  %15190 = vmatprep.mubr.msk.f32.mxu1 %vm591_vm0, %v3003_v55  ;;  %15237 = vmatprep.mubr.msk.f32.mxu0 %vm591_vm0, %v3423_v14  ;;  %v3425_v23 = vmul.f32 %v22783_v4, %v22782_v60  ;;  %v22785_v10 = vld [vmem:[#allocation171_spill] sm:$0xff]  ;;  %v22786_v14 = vld [vmem:[#allocation158_spill] sm:$0xff] }
 0x17a   : > { %v17879_v55 = vpop.f32.mrf.mxu0  ;;  %v3006_v3 = vmul.f32 %v22786_v14, %v22785_v10  ;;  %v22789_v60 = vld [vmem:[#allocation167_spill] sm:$0xff] }
 0x17b   : > { %22784 = vst [vmem:[#allocation48_spill] sm:$0xff] %v17879_v55 }
 0x17c   : > { %v14971_v9 = vpop.f32.mrf.mxu1  ;;  %15191 = vmatmul.mubr.msk.f32.gmra.mxu1 %vm591_vm0, %v3004_v61  ;;  %15238 = vmatmul.mubr.msk.f32.gmra.mxu0 %vm591_vm0, %v3424_v30  ;;  %v3007_v61 = vmul.f32 %v17885_v22, %v22790_v7  ;;  %v22791_v30 = vld [vmem:[#allocation154_spill] sm:$0xff] }
 0x17d   : > { %15193 = vmatprep.mubr.msk.f32.mxu1 %vm591_vm0, %v3005_v19  ;;  %15240 = vmatprep.mubr.msk.f32.mxu0 %vm591_vm0, %v3425_v23  ;;  %v1458_v4 = vadd.f32 %v14971_v9, %v22789_v60  ;;  %v3427_v19 = vmul.f32 %v22792_v0, %v22791_v30  ;;  %v3397_v23 = vld [vmem:[#allocation2 + $0x117] sm:$0xff]  ;;  %v22794_v60 = vld [vmem:[#allocation168_spill] sm:$0xff]  ;;  %v22795_v0 = vld [vmem:[#allocation153_spill] sm:$0xff] }
 0x17e   : > { %v17900_v9 = vpop.f32.mrf.mxu1  ;;  %v3008_v17 = vmul.f32 %v17898_v11, %v22794_v60  ;;  %v22796_v30 = vld [vmem:[#allocation124_spill] sm:$0xff] }
 0x17f   : > { %22793 = vst [vmem:[#allocation49_spill] sm:$0xff] %v17900_v9  ;;  %v3428_v55 = vmul.f32 %v22796_v30, %v22795_v0  ;;  %v3430_v30 = vmul.f32 %v3398_v44, %v22798_v48  ;;  %v3791_v0 = vld [vmem:[#allocation2 + $0x38] sm:$0xff]  ;;  %v3792_v44 = vld [vmem:[#allocation2 + $0x40] sm:$0xff] }
 0x180   : > { %v15021_v28 = vpop.f32.mrf.mxu0  ;;  %15194 = vmatmul.mubr.msk.f32.gmra.mxu1 %vm591_vm0, %v3006_v3  ;;  %15241 = vmatmul.mubr.msk.f32.gmra.mxu0 %vm591_vm0, %v3426_v49  ;;  %v3789_v3 = vld [vmem:[#allocation2 + $0x28] sm:$0xff]  ;;  %v3429_v49 = vmul.f32 %v3397_v23, %v22797_v37 }
 0x181   : > { %v17894_v10 = vadd.f32 %v15021_v28, %v1458_v4  ;;  %15196 = vmatprep.mubr.msk.f32.mxu1 %vm591_vm0, %v3007_v61  ;;  %15243 = vmatprep.mubr.msk.f32.mxu0 %vm591_vm0, %v3427_v19  ;;  %v4179_v28 = vld [vmem:[#allocation2 + $0x29] sm:$0xff] }
 0x182   : > { %v3790_v61 = vld [vmem:[#allocation2 + $0x30] sm:$0xff]  ;;  %v17911_v19 = vpop.f32.mrf.mxu0  ;;  %v4211_v37 = vmul.f32 %v4179_v28, %v22702_v53 }
 0x184   : > { %v14974_v4 = vpop.f32.mrf.mxu1  ;;  %15197 = vmatmul.mubr.msk.f32.gmra.mxu1 %vm591_vm0, %v3008_v17  ;;  %15244 = vmatmul.mubr.msk.f32.gmra.mxu0 %vm591_vm0, %v3428_v55  ;;  %v4181_v55 = vld [vmem:[#allocation2 + $0x39] sm:$0xff] }
 0x185   : > { %15246 = vmatprep.mubr.msk.f32.mxu0 %vm591_vm0, %v3429_v49  ;;  %15251 = vmatprep.mubr.msk.f32.mxu1 %vm591_vm0, %v3789_v3  ;;  %v1468_v23 = vadd.f32 %v14974_v4, %v22799_v1  ;;  %v22800_v49 = vld [vmem:[#allocation174_spill] sm:$0xff]  ;;  %v4212_v1 = vmul.f32 %v4180_v13, %v22707_v26  ;;  %v3793_v4 = vld [vmem:[#allocation2 + $0x48] sm:$0xff] }
 0x186   : > { %v1462_v9 = vpop.f32.mrf.mxu1 }
 0x187   : > { %v1463_v3 = vadd.f32 %v1462_v9, %v22800_v49  ;;  %v3794_v9 = vld [vmem:[#allocation2 + $0x50] sm:$0xff] }
 0x188   : > { %v15024_v17 = vpop.f32.mrf.mxu0  ;;  %15247 = vmatmul.mubr.msk.f32.gmra.mxu0 %vm591_vm0, %v3430_v30  ;;  %15252 = vmatmul.mubr.msk.f32.vlgmr.msra.gmra.mxu1 %vm591_vm0, %v3790_v61  ;;  %v4213_v61 = vmul.f32 %v4181_v55, %v22709_v8  ;;  %v4182_v30 = vld [vmem:[#allocation2 + $0x41] sm:$0xff]  ;;  %v4184_v55 = vld [vmem:[#allocation2 + $0x51] sm:$0xff] }
 0x189   : > { %v17919_v15 = vadd.f32 %v15024_v17, %v1468_v23  ;;  %15301 = vmatprep.mubr.msk.f32.mxu0 %vm591_vm0, %v4211_v37  ;;  %15254 = vmatprep.mubr.msk.f32.mxu1 %vm591_vm0, %v3791_v0  ;;  %v4183_v37 = vld [vmem:[#allocation2 + $0x49] sm:$0xff]  ;;  %v4214_v0 = vmul.f32 %v4182_v30, %v22712_v38 }
 0x18a   : > { %v2012_v48 = vpop.f32.mrf.mxu0  ;;  %15350 = vmatpush3.msra.mxu1 %v17674_v34  ;;  %v3795_v34 = vld [vmem:[#allocation2 + $0x58] sm:$0xff]  ;;  %v4215_v17 = vmul.f32 %v4183_v37, %v22714_v16  ;;  %v3797_v30 = vld [vmem:[#allocation2 + $0x68] sm:$0xff] }
 0x18b   : > { %v17925_v28 = vadd.f32 %v2012_v48, %v1463_v3  ;;  %v22801_v48 = vld [vmem:[#allocation175_spill] sm:$0xff] }
 0x18c   : > { %v14977_v53 = vpop.f32.mrf.mxu1  ;;  %15255 = vmatmul.mubr.msk.f32.gmra.mxu1 %vm591_vm0, %v3792_v44  ;;  %15302 = vmatmul.mubr.msk.f32.vlgmr.msra.gmra.mxu0 %vm591_vm0, %v4212_v1  ;;  %v4185_v3 = vld [vmem:[#allocation2 + $0x59] sm:$0xff] }
 0x18d   : > { %15304 = vmatprep.mubr.msk.f32.mxu0 %vm591_vm0, %v4213_v61  ;;  %15257 = vmatprep.mubr.msk.f32.mxu1 %vm591_vm0, %v3793_v4  ;;  %v1478_v23 = vadd.f32 %v14977_v53, %v22801_v48  ;;  %v22802_v44 = vld [vmem:[#allocation176_spill] sm:$0xff]  ;;  %v4216_v53 = vmul.f32 %v4184_v55, %v22717_v32  ;;  %v22803_v55 = vld [vmem:[#allocation177_spill] sm:$0xff] }
 0x18e   : > { %v1472_v13 = vpop.f32.mrf.mxu1  ;;  %15400 = vmatpush3.msra.mxu0 %v17682_v58  ;;  %v3796_v58 = vld [vmem:[#allocation2 + $0x60] sm:$0xff] }
 0x18f   : > { %v1473_v1 = vadd.f32 %v1472_v13, %v22802_v44  ;;  %v4186_v48 = vld [vmem:[#allocation2 + $0x61] sm:$0xff]  ;;  %v4187_v13 = vld [vmem:[#allocation2 + $0x69] sm:$0xff] }
 0x190   : > { %v15027_v49 = vpop.f32.mrf.mxu0  ;;  %15258 = vmatmul.mubr.msk.f32.gmra.mxu1 %vm591_vm0, %v3794_v9  ;;  %15305 = vmatmul.mubr.msk.f32.gmra.mxu0 %vm591_vm0, %v4214_v0  ;;  %v4217_v9 = vmul.f32 %v4185_v3, %v22719_v21  ;;  %v4219_v44 = vmul.f32 %v4187_v13, %v22724_v36  ;;  %v4188_v3 = vld [vmem:[#allocation2 + $0x71] sm:$0xff]  ;;  %v4190_v13 = vld [vmem:[#allocation2 + $0x81] sm:$0xff] }
 0x191   : > { %v17939_v4 = vadd.f32 %v15027_v49, %v1478_v23  ;;  %15307 = vmatprep.mubr.msk.f32.mxu0 %vm591_vm0, %v4215_v17  ;;  %15260 = vmatprep.mubr.msk.f32.mxu1 %vm591_vm0, %v3795_v34  ;;  %v3798_v34 = vld [vmem:[#allocation2 + $0x70] sm:$0xff]  ;;  %v4218_v23 = vmul.f32 %v4186_v48, %v22722_v18  ;;  %v3799_v17 = vld [vmem:[#allocation2 + $0x78] sm:$0xff]  ;;  %v3801_v48 = vld [vmem:[#allocation2 + $0x88] sm:$0xff] }
 0x192   : > { %v2022_v61 = vpop.f32.mrf.mxu0 }
 0x193   : > { %v17944_v37 = vadd.f32 %v2022_v61, %v1473_v1 }
 0x194   : > { %v14980_v0 = vpop.f32.mrf.mxu1  ;;  %15261 = vmatmul.mubr.msk.f32.gmra.mxu1 %vm591_vm0, %v3796_v58  ;;  %15308 = vmatmul.mubr.msk.f32.gmra.mxu0 %vm591_vm0, %v4216_v53  ;;  %v4189_v58 = vld [vmem:[#allocation2 + $0x79] sm:$0xff] }
 0x195   : > { %15310 = vmatprep.mubr.msk.f32.mxu0 %vm591_vm0, %v4217_v9  ;;  %15263 = vmatprep.mubr.msk.f32.mxu1 %vm591_vm0, %v3797_v30  ;;  %v1488_v49 = vadd.f32 %v14980_v0, %v22803_v55  ;;  %v3800_v53 = vld [vmem:[#allocation2 + $0x80] sm:$0xff]  ;;  %v4220_v9 = vmul.f32 %v4188_v3, %v22727_v41  ;;  %v4221_v0 = vmul.f32 %v4189_v58, %v22730_v33  ;;  %v22804_v3 = vld [vmem:[#allocation179_spill] sm:$0xff] }
 0x196   : > { %v17960_v30 = vpop.f32.mrf.mxu1  ;;  %v4192_v33 = vld [vmem:[#allocation2 + $0x91] sm:$0xff] }
 0x198   : > { %v15030_v1 = vpop.f32.mrf.mxu0  ;;  %15264 = vmatmul.mubr.msk.f32.gmra.mxu1 %vm591_vm0, %v3798_v34  ;;  %15311 = vmatmul.mubr.msk.f32.gmra.mxu0 %vm591_vm0, %v4218_v23  ;;  %v4191_v34 = vld [vmem:[#allocation2 + $0x89] sm:$0xff] }
 0x199   : > { %v17956_v61 = vadd.f32 %v15030_v1, %v1488_v49  ;;  %15313 = vmatprep.mubr.msk.f32.mxu0 %vm591_vm0, %v4219_v44  ;;  %15266 = vmatprep.mubr.msk.f32.mxu1 %vm591_vm0, %v3799_v17  ;;  %v3802_v23 = vld [vmem:[#allocation2 + $0x90] sm:$0xff]  ;;  %v4222_v49 = vmul.f32 %v4190_v13, %v22732_v25  ;;  %v3803_v44 = vld [vmem:[#allocation2 + $0x98] sm:$0xff]  ;;  %v4223_v58 = vmul.f32 %v4191_v34, %v22734_v27 }
 0x19a   : > { %v17968_v17 = vpop.f32.mrf.mxu0  ;;  %v4224_v13 = vmul.f32 %v4192_v33, %v22737_v54  ;;  %v3807_v33 = vld [vmem:[#allocation2 + $0xb8] sm:$0xff] }
 0x19c   : > { %v14983_v55 = vpop.f32.mrf.mxu1  ;;  %15267 = vmatmul.mubr.msk.f32.gmra.mxu1 %vm591_vm0, %v3800_v53  ;;  %15314 = vmatmul.mubr.msk.f32.gmra.mxu0 %vm591_vm0, %v4220_v9  ;;  %v4193_v53 = vld [vmem:[#allocation2 + $0x99] sm:$0xff] }
 0x19d   : > { %15316 = vmatprep.mubr.msk.f32.mxu0 %vm591_vm0, %v4221_v0  ;;  %15269 = vmatprep.mubr.msk.f32.mxu1 %vm591_vm0, %v3801_v48  ;;  %v1498_v1 = vadd.f32 %v14983_v55, %v22804_v3  ;;  %v3804_v48 = vld [vmem:[#allocation2 + $0xa0] sm:$0xff]  ;;  %v3805_v55 = vld [vmem:[#allocation2 + $0xa8] sm:$0xff]  ;;  %v4225_v34 = vmul.f32 %v4193_v53, %v22740_v46  ;;  %v4196_v46 = vld [vmem:[#allocation2 + $0xb1] sm:$0xff] }
 0x19e   : > { %v17979_v0 = vpop.f32.mrf.mxu1  ;;  %v4194_v3 = vld [vmem:[#allocation2 + $0xa1] sm:$0xff] }
 0x1a0   : > { %v15033_v41 = vpop.f32.mrf.mxu0  ;;  %15270 = vmatmul.mubr.msk.f32.gmra.mxu1 %vm591_vm0, %v3802_v23  ;;  %15317 = vmatmul.mubr.msk.f32.gmra.mxu0 %vm591_vm0, %v4222_v49  ;;  %v3806_v23 = vld [vmem:[#allocation2 + $0xb0] sm:$0xff] }
 0x1a1   : > { %v17975_v9 = vadd.f32 %v15033_v41, %v1498_v1  ;;  %15319 = vmatprep.mubr.msk.f32.mxu0 %vm591_vm0, %v4223_v58  ;;  %15272 = vmatprep.mubr.msk.f32.mxu1 %vm591_vm0, %v3803_v44  ;;  %v4195_v41 = vld [vmem:[#allocation2 + $0xa9] sm:$0xff]  ;;  %v4226_v44 = vmul.f32 %v4194_v3, %v22743_v56 }
 0x1a2   : > { %v17987_v49 = vpop.f32.mrf.mxu0  ;;  %v22805_v1 = vld [vmem:[#allocation113_spill] sm:$0xff]  ;;  %v4227_v53 = vmul.f32 %v4195_v41, %v22745_v59 }
 0x1a3   : > { %v3809_v3 = vld [vmem:[#allocation2 + $0xc8] sm:$0xff] }
 0x1a4   : > { %v14986_v27 = vpop.f32.mrf.mxu1  ;;  %15273 = vmatmul.mubr.msk.f32.gmra.mxu1 %vm591_vm0, %v3804_v48  ;;  %15320 = vmatmul.mubr.msk.f32.gmra.mxu0 %vm591_vm0, %v4224_v13  ;;  %v4197_v48 = vld [vmem:[#allocation2 + $0xb9] sm:$0xff] }
 0x1a5   : > { %15322 = vmatprep.mubr.msk.f32.mxu0 %vm591_vm0, %v4225_v34  ;;  %15275 = vmatprep.mubr.msk.f32.mxu1 %vm591_vm0, %v3805_v55  ;;  %v1508_v58 = vadd.f32 %v14986_v27, %v22805_v1  ;;  %v3808_v55 = vld [vmem:[#allocation2 + $0xc0] sm:$0xff]  ;;  %v4228_v27 = vmul.f32 %v4196_v46, %v22748_v52  ;;  %v4229_v41 = vmul.f32 %v4197_v48, %v22751_v12  ;;  %v3811_v46 = vld [vmem:[#allocation2 + $0xd8] sm:$0xff] }
 0x1a6   : > { %v17998_v34 = vpop.f32.mrf.mxu1  ;;  %v4198_v1 = vld [vmem:[#allocation2 + $0xc1] sm:$0xff]  ;;  %v4200_v12 = vld [vmem:[#allocation2 + $0xd1] sm:$0xff] }
 0x1a8   : > { %v15036_v54 = vpop.f32.mrf.mxu0  ;;  %15276 = vmatmul.mubr.msk.f32.gmra.mxu1 %vm591_vm0, %v3806_v23  ;;  %15323 = vmatmul.mubr.msk.f32.gmra.mxu0 %vm591_vm0, %v4226_v44  ;;  %v3810_v23 = vld [vmem:[#allocation2 + $0xd0] sm:$0xff] }
 0x1a9   : > { %v17994_v13 = vadd.f32 %v15036_v54, %v1508_v58  ;;  %15325 = vmatprep.mubr.msk.f32.mxu0 %vm591_vm0, %v4227_v53  ;;  %15278 = vmatprep.mubr.msk.f32.mxu1 %vm591_vm0, %v3807_v33  ;;  %v4199_v54 = vld [vmem:[#allocation2 + $0xc9] sm:$0xff]  ;;  %v4230_v33 = vmul.f32 %v4198_v1, %v22754_v43 }
 0x1aa   : > { %v18006_v44 = vpop.f32.mrf.mxu0  ;;  %v22806_v58 = vld [vmem:[#allocation37_spill] sm:$0xff]  ;;  %v4231_v48 = vmul.f32 %v4199_v54, %v22756_v39 }
 0x1ab   : > { %v3813_v1 = vld [vmem:[#allocation2 + $0xe8] sm:$0xff] }
 0x1ac   : > { %v14989_v59 = vpop.f32.mrf.mxu1  ;;  %15279 = vmatmul.mubr.msk.f32.gmra.mxu1 %vm591_vm0, %v3808_v55  ;;  %15326 = vmatmul.mubr.msk.f32.gmra.mxu0 %vm591_vm0, %v4228_v27  ;;  %v4201_v55 = vld [vmem:[#allocation2 + $0xd9] sm:$0xff] }
 0x1ad   : > { %15328 = vmatprep.mubr.msk.f32.mxu0 %vm591_vm0, %v4229_v41  ;;  %15281 = vmatprep.mubr.msk.f32.mxu1 %vm591_vm0, %v3809_v3  ;;  %v1518_v53 = vadd.f32 %v14989_v59, %v22806_v58  ;;  %v3812_v3 = vld [vmem:[#allocation2 + $0xe0] sm:$0xff]  ;;  %v4232_v59 = vmul.f32 %v4200_v12, %v22759_v6  ;;  %v4233_v54 = vmul.f32 %v4201_v55, %v22762_v40  ;;  %v3815_v12 = vld [vmem:[#allocation2 + $0xf8] sm:$0xff] }
 0x1ae   : > { %v18017_v41 = vpop.f32.mrf.mxu1  ;;  %v4202_v58 = vld [vmem:[#allocation2 + $0xe1] sm:$0xff]  ;;  %v4204_v40 = vld [vmem:[#allocation2 + $0xf1] sm:$0xff] }
 0x1b0   : > { %v15039_v52 = vpop.f32.mrf.mxu0  ;;  %15282 = vmatmul.mubr.msk.f32.gmra.mxu1 %vm591_vm0, %v3810_v23  ;;  %15329 = vmatmul.mubr.msk.f32.gmra.mxu0 %vm591_vm0, %v4230_v33  ;;  %v3814_v23 = vld [vmem:[#allocation2 + $0xf0] sm:$0xff] }
 0x1b1   : > { %v18013_v27 = vadd.f32 %v15039_v52, %v1518_v53  ;;  %15331 = vmatprep.mubr.msk.f32.mxu0 %vm591_vm0, %v4231_v48  ;;  %15284 = vmatprep.mubr.msk.f32.mxu1 %vm591_vm0, %v3811_v46  ;;  %v4203_v52 = vld [vmem:[#allocation2 + $0xe9] sm:$0xff]  ;;  %v4234_v46 = vmul.f32 %v4202_v58, %v22765_v29  ;;  %v22807_v53 = vld [vmem:[#allocation123_spill] sm:$0xff] }
 0x1b2   : > { %v18025_v33 = vpop.f32.mrf.mxu0  ;;  %v4235_v55 = vmul.f32 %v4203_v52, %v22767_v63  ;;  %v4206_v52 = vld [vmem:[#allocation2 + $0x101] sm:$0xff] }
 0x1b4   : > { %v14992_v39 = vpop.f32.mrf.mxu1  ;;  %15285 = vmatmul.mubr.msk.f32.gmra.mxu1 %vm591_vm0, %v3812_v3  ;;  %15332 = vmatmul.mubr.msk.f32.gmra.mxu0 %vm591_vm0, %v4232_v59  ;;  %v4205_v3 = vld [vmem:[#allocation2 + $0xf9] sm:$0xff] }
 0x1b5   : > { %15334 = vmatprep.mubr.msk.f32.mxu0 %vm591_vm0, %v4233_v54  ;;  %15287 = vmatprep.mubr.msk.f32.mxu1 %vm591_vm0, %v3813_v1  ;;  %v1528_v48 = vadd.f32 %v14992_v39, %v22807_v53  ;;  %v3816_v1 = vld [vmem:[#allocation2 + $0x100] sm:$0xff]  ;;  %v4236_v39 = vmul.f32 %v4204_v40, %v22770_v57  ;;  %v4237_v58 = vmul.f32 %v4205_v3, %v22774_v62 }
 0x1b6   : > { %v18036_v54 = vpop.f32.mrf.mxu1  ;;  %v22809_v3 = vld [vmem:[#allocation40_spill] sm:$0xff] }
 0x1b8   : > { %v15042_v6 = vpop.f32.mrf.mxu0  ;;  %15288 = vmatmul.mubr.msk.f32.gmra.mxu1 %vm591_vm0, %v3814_v23  ;;  %15335 = vmatmul.mubr.msk.f32.gmra.mxu0 %vm591_vm0, %v4234_v46  ;;  %v4238_v23 = vmul.f32 %v4206_v52, %v22778_v2  ;;  %v3819_v46 = vld [vmem:[#allocation2 + $0x118] sm:$0xff]  ;;  %v4240_v52 = vmul.f32 %v17898_v11, %v22786_v14 }
 0x1b9   : > { %v18032_v59 = vadd.f32 %v15042_v6, %v1528_v48  ;;  %15337 = vmatprep.mubr.msk.f32.mxu0 %vm591_vm0, %v4235_v55  ;;  %15290 = vmatprep.mubr.msk.f32.mxu1 %vm591_vm0, %v3815_v12  ;;  %v22808_v12 = vld [vmem:[#allocation134_spill] sm:$0xff]  ;;  %v4239_v48 = vmul.f32 %v17885_v22, %v22781_v5  ;;  %v4872_v22 = vld [vmem:[#allocation3 + $0x8] sm:$0xff] }
 0x1ba   : > { %v18045_v6 = vpop.f32.mrf.mxu0  ;;  %v4808_v5 = vld [vmem:[#allocation3 + $0xf] sm:$0xff] }
 0x1bc   : > { %v14995_v53 = vpop.f32.mrf.mxu1  ;;  %15291 = vmatmul.mubr.msk.f32.gmra.mxu1 %vm591_vm0, %v3816_v1  ;;  %15338 = vmatmul.mubr.msk.f32.gmra.mxu0 %vm591_vm0, %v4236_v39  ;;  %v4209_v1 = vld [vmem:[#allocation2 + $0x119] sm:$0xff] }
 0x1bd   : > { %15340 = vmatprep.mubr.msk.f32.mxu0 %vm591_vm0, %v4237_v58  ;;  %15293 = vmatprep.mubr.msk.f32.mxu1 %vm591_vm0, %v17638_v35  ;;  %v1538_v40 = vadd.f32 %v14995_v53, %v22808_v12  ;;  %v3820_v35 = vld [vmem:[#allocation2 + $0x120] sm:$0xff]  ;;  %v4241_v53 = vmul.f32 %v4209_v1, %v22790_v7  ;;  %v22811_v7 = vld [vmem:[#allocation54_spill] sm:$0xff] }
 0x1be   : > { %v18058_v58 = vpop.f32.mrf.mxu1  ;;  %v4210_v12 = vld [vmem:[#allocation2 + $0x121] sm:$0xff] }
 0x1bf   : > { %v4242_v11 = vmul.f32 %v4210_v12, %v22794_v60 }
 0x1c0   : > { %v15045_v55 = vpop.f32.mrf.mxu0  ;;  %15294 = vmatmul.mubr.msk.f32.gmra.mxu1 %vm591_vm0, %v22809_v3  ;;  %15341 = vmatmul.mubr.msk.f32.gmra.mxu0 %vm591_vm0, %v4238_v23  ;;  %v4807_v23 = vld [vmem:[#allocation3 + $0x7] sm:$0xff] }
 0x1c1   : > { %v18054_v39 = vadd.f32 %v15045_v55, %v1538_v40  ;;  %15343 = vmatprep.mubr.msk.f32.mxu0 %vm591_vm0, %v4239_v48  ;;  %15296 = vmatprep.mubr.msk.f32.mxu1 %vm591_vm0, %v3819_v46  ;;  %v4873_v46 = vld [vmem:[#allocation3 + $0x10] sm:$0xff]  ;;  %v22810_v55 = vld [vmem:[#allocation135_spill] sm:$0xff]  ;;  %v4839_v14 = vmul.f32 %v4807_v23, %v22811_v7 }
 0x1c2   : > { %v18067_v40 = vpop.f32.mrf.mxu0 }
 0x1c4   : > { %v14998_v3 = vpop.f32.mrf.mxu1  ;;  %15297 = vmatmul.mubr.msk.f32.gmra.mxu1 %vm591_vm0, %v3820_v35  ;;  %15344 = vmatmul.mubr.msk.f32.gmra.mxu0 %vm591_vm0, %v4240_v52 }
 0x1c5   : > { %15346 = vmatprep.mubr.msk.f32.mxu0 %vm591_vm0, %v4241_v53  ;;  %15351 = vmatprep.mubr.msk.f32.mxu1 %vm598_vm1, %v4872_v22  ;;  %v1548_v1 = vadd.f32 %v14998_v3, %v22810_v55  ;;  %v22812_v3 = vld [vmem:[#allocation56_spill] sm:$0xff] }
 0x1c6   : > { %v18069_v48 = vpop.f32.mrf.mxu1  ;;  %v4840_v55 = vmul.f32 %v4808_v5, %v22812_v3 }
 0x1c8   : > { %v15048_v35 = vpop.f32.mrf.mxu0  ;;  %v15053_v2 = vpop.f32.mrf.mxu1  ;;  %15347 = vmatmul.mubr.msk.f32.gmra.mxu0 %vm591_vm0, %v4242_v11  ;;  %15352 = vmatmul.mubr.msk.f32.vlgmr.msra.gmra.mxu1 %vm598_vm1, %v4873_v46 }
 0x1c9   : > { %v18076_v52 = vadd.f32 %v15048_v35, %v1548_v1  ;;  %v2524_v22 = vadd.f32 %v15053_v2, %v17710_v31  ;;  %15401 = vmatprep.mubr.msk.f32.mxu0 %vm598_vm1, %v4839_v14 }
 0x1ca   : > { %v18080_v53 = vpop.f32.mrf.mxu0  ;;  %v18082_v12 = vpop.f32.mrf.mxu1 }
 0x1cc   : > { %v15056_v23 = vpop.f32.mrf.mxu1  ;;  %v15103_v60 = vpop.f32.mrf.mxu0  ;;  %15402 = vmatmul.mubr.msk.f32.vlgmr.msra.gmra.mxu0 %vm598_vm1, %v4840_v55 }
 0x1cd   : > { %v2526_v11 = vadd.f32 %v15056_v23, %v17737_v50  ;;  %v18087_v62 = vadd.f32 %v15103_v60, %v2524_v22 }
 0x1ce   : > { %v18089_v46 = vpop.f32.mrf.mxu1  ;;  %v18091_v1 = vpop.f32.mrf.mxu0 }
 0x1cf   : > { %22813 = vst [vmem:[#allocation61_spill] sm:$0xff] %v18087_v62  ;;  %v22886_v62 = vld [vmem:[#allocation42_spill] sm:$0xff] }
 0x1d0   : > { %v15059_v31 = vpop.f32.mrf.mxu1  ;;  %v15106_v2 = vpop.f32.mrf.mxu0 }
 0x1d1   : > { %v2528_v14 = vadd.f32 %v15059_v31, %v17768_v20  ;;  %v18094_v35 = vadd.f32 %v15106_v2, %v2526_v11 }
 0x1d2   : > { %v18096_v57 = vpop.f32.mrf.mxu1  ;;  %v18098_v5 = vpop.f32.mrf.mxu0 }
 0x1d3   : > { %22814 = vst [vmem:[#allocation50_spill] sm:$0xff] %v18094_v35 }
 0x1d4   : > { %v15062_v63 = vpop.f32.mrf.mxu1  ;;  %v15109_v55 = vpop.f32.mrf.mxu0 }
 0x1d5   : > { %v2530_v50 = vadd.f32 %v15062_v63, %v17799_v51  ;;  %v18101_v60 = vadd.f32 %v15109_v55, %v2528_v14 }
 0x1d6   : > { %v18103_v22 = vpop.f32.mrf.mxu1  ;;  %v18105_v23 = vpop.f32.mrf.mxu0 }
 0x1d7   : > { %22815 = vst [vmem:[#allocation62_spill] sm:$0xff] %v18101_v60 }
 0x1d8   : > { %v15065_v29 = vpop.f32.mrf.mxu1  ;;  %v15112_v43 = vpop.f32.mrf.mxu0 }
 0x1d9   : > { %v2532_v20 = vadd.f32 %v15065_v29, %v17830_v47  ;;  %v18108_v11 = vadd.f32 %v15112_v43, %v2530_v50 }
 0x1da   : > { %v18110_v31 = vpop.f32.mrf.mxu1  ;;  %v18112_v2 = vpop.f32.mrf.mxu0 }
 0x1db   : > { %22816 = vst [vmem:[#allocation67_spill] sm:$0xff] %v18108_v11 }
 0x1dc   : > { %v15068_v56 = vpop.f32.mrf.mxu1  ;;  %v15115_v25 = vpop.f32.mrf.mxu0 }
 0x1dd   : > { %v2534_v51 = vadd.f32 %v15068_v56, %v17861_v42  ;;  %v18115_v63 = vadd.f32 %v15115_v25, %v2532_v20 }
 0x1de   : > { %v18117_v14 = vpop.f32.mrf.mxu1  ;;  %v18119_v55 = vpop.f32.mrf.mxu0 }
 0x1df   : > { %22817 = vst [vmem:[#allocation68_spill] sm:$0xff] %v18115_v63 }
 0x1e0   : > { %v15071_v36 = vpop.f32.mrf.mxu1  ;;  %v15118_v18 = vpop.f32.mrf.mxu0 }
 0x1e1   : > { %v2536_v47 = vadd.f32 %v15071_v36, %v17894_v10  ;;  %v18122_v43 = vadd.f32 %v15118_v18, %v2534_v51  ;;  %v13405_v36 = vld [vmem:[%s22055_s4 + $0x10] sm:$0xff] }
 0x1e2   : > { %v18124_v29 = vpop.f32.mrf.mxu1  ;;  %v18126_v50 = vpop.f32.mrf.mxu0  ;;  %15449 = vmatprep.subr.mxu1 %v13405_v36 }
 0x1e3   : > { %22818 = vst [vmem:[#allocation73_spill] sm:$0xff] %v18122_v43  ;;  %15450 = vmatpush3.msra.mxu1 %v13405_v36 }
 0x1e4   : > { %v15074_v21 = vpop.f32.mrf.mxu1  ;;  %v15121_v32 = vpop.f32.mrf.mxu0 }
 0x1e5   : > { %v2538_v56 = vadd.f32 %v15074_v21, %v17919_v15  ;;  %v18129_v25 = vadd.f32 %v15121_v32, %v2536_v47 }
 0x1e6   : > { %v18131_v42 = vpop.f32.mrf.mxu1  ;;  %v18133_v20 = vpop.f32.mrf.mxu0 }
 0x1e7   : > { %22819 = vst [vmem:[#allocation74_spill] sm:$0xff] %v18129_v25 }
 0x1e8   : > { %v15077_v18 = vpop.f32.mrf.mxu1  ;;  %v15124_v10 = vpop.f32.mrf.mxu0 }
 0x1e9   : > { %v2540_v51 = vadd.f32 %v15077_v18, %v17939_v4  ;;  %v18139_v16 = vadd.f32 %v15124_v10, %v2538_v56 }
 0x1ea   : > { %v18141_v3 = vpop.f32.mrf.mxu1  ;;  %v18143_v32 = vpop.f32.mrf.mxu0 }
 0x1eb   : > { %22820 = vst [vmem:[#allocation79_spill] sm:$0xff] %v18139_v16 }
 0x1ec   : > { %v15080_v21 = vpop.f32.mrf.mxu1  ;;  %v15127_v15 = vpop.f32.mrf.mxu0 }
 0x1ed   : > { %v2542_v47 = vadd.f32 %v15080_v21, %v17956_v61  ;;  %v18146_v38 = vadd.f32 %v15127_v15, %v2540_v51 }
 0x1ee   : > { %v18148_v8 = vpop.f32.mrf.mxu1  ;;  %v18150_v7 = vpop.f32.mrf.mxu0 }
 0x1ef   : > { %22821 = vst [vmem:[#allocation115_spill] sm:$0xff] %v18146_v38 }
 0x1f0   : > { %v15083_v26 = vpop.f32.mrf.mxu1  ;;  %v15130_v36 = vpop.f32.mrf.mxu0 }
 0x1f1   : > { %v2544_v4 = vadd.f32 %v15083_v26, %v17975_v9  ;;  %v18153_v56 = vadd.f32 %v15130_v36, %v2542_v47 }
 0x1f2   : > { %v18155_v18 = vpop.f32.mrf.mxu1  ;;  %v18157_v10 = vpop.f32.mrf.mxu0 }
 0x1f3   : > { %22822 = vst [vmem:[#allocation80_spill] sm:$0xff] %v18153_v56  ;;  %22823 = vst [vmem:[#allocation85_spill] sm:$0xff] %v18157_v10  ;;  %v22899_v10 = vld [vmem:[#allocation48_spill] sm:$0xff] }
 0x1f4   : > { %v15086_v16 = vpop.f32.mrf.mxu1  ;;  %v15133_v25 = vpop.f32.mrf.mxu0 }
 0x1f5   : > { %v2546_v61 = vadd.f32 %v15086_v16, %v17994_v13  ;;  %v18160_v51 = vadd.f32 %v15133_v25, %v2544_v4 }
 0x1f6   : > { %v18162_v21 = vpop.f32.mrf.mxu1  ;;  %v18164_v15 = vpop.f32.mrf.mxu0 }
 0x1f7   : > { %22824 = vst [vmem:[#allocation86_spill] sm:$0xff] %v18160_v51  ;;  %22825 = vst [vmem:[#allocation125_spill] sm:$0xff] %v18164_v15  ;;  %v22896_v15 = vld [vmem:[#allocation172_spill] sm:$0xff] }
 0x1f8   : > { %v15089_v38 = vpop.f32.mrf.mxu1  ;;  %v15136_v43 = vpop.f32.mrf.mxu0 }
 0x1f9   : > { %v2548_v26 = vadd.f32 %v15089_v38, %v18013_v27  ;;  %v18167_v9 = vadd.f32 %v15136_v43, %v2546_v61 }
 0x1fa   : > { %v18169_v47 = vpop.f32.mrf.mxu1  ;;  %v18171_v36 = vpop.f32.mrf.mxu0 }
 0x1fb   : > { %22826 = vst [vmem:[#allocation91_spill] sm:$0xff] %v18167_v9  ;;  %22827 = vst [vmem:[#allocation92_spill] sm:$0xff] %v18171_v36 }
 0x1fc   : > { %v15092_v56 = vpop.f32.mrf.mxu1  ;;  %v15139_v63 = vpop.f32.mrf.mxu0 }
 0x1fd   : > { %v2550_v16 = vadd.f32 %v15092_v56, %v18032_v59  ;;  %v18174_v13 = vadd.f32 %v15139_v63, %v2548_v26 }
 0x1fe   : > { %v18176_v25 = vpop.f32.mrf.mxu1  ;;  %v18178_v4 = vpop.f32.mrf.mxu0 }
 0x1ff   : > { %22828 = vst [vmem:[#allocation97_spill] sm:$0xff] %v18174_v13  ;;  %22829 = vst [vmem:[#allocation98_spill] sm:$0xff] %v18178_v4  ;;  %v22889_v4 = vld [vmem:[#allocation162_spill] sm:$0xff] }
 0x200   : > { %v15095_v51 = vpop.f32.mrf.mxu1  ;;  %v15142_v11 = vpop.f32.mrf.mxu0 }
 0x201   : > { %v2552_v38 = vadd.f32 %v15095_v51, %v18054_v39  ;;  %v18181_v27 = vadd.f32 %v15142_v11, %v2550_v16 }
 0x202   : > { %v18183_v43 = vpop.f32.mrf.mxu1  ;;  %v18185_v61 = vpop.f32.mrf.mxu0 }
 0x203   : > { %22830 = vst [vmem:[#allocation131_spill] sm:$0xff] %v18181_v27  ;;  %22831 = vst [vmem:[#allocation103_spill] sm:$0xff] %v18183_v43 }
 0x204   : > { %22832 = vst [vmem:[#allocation104_spill] sm:$0xff] %v18185_v61  ;;  %v15098_v9 = vpop.f32.mrf.mxu1  ;;  %v15145_v60 = vpop.f32.mrf.mxu0 }
 0x205   : > { %v2554_v59 = vadd.f32 %v15098_v9, %v18076_v52  ;;  %v18188_v63 = vadd.f32 %v15145_v60, %v2552_v38 }
 0x206   : > { %v18190_v56 = vpop.f32.mrf.mxu1  ;;  %v18192_v26 = vpop.f32.mrf.mxu0 }
 0x207   : > { %22833 = vst [vmem:[#allocation109_spill] sm:$0xff] %v18188_v63  ;;  %22834 = vst [vmem:[#allocation110_spill] sm:$0xff] %v18190_v56  ;;  %v22893_v56 = vld [vmem:[#allocation43_spill] sm:$0xff] }
 0x208   : > { %22835 = vst [vmem:[#allocation137_spill] sm:$0xff] %v18192_v26  ;;  %v15148_v13 = vpop.f32.mrf.mxu0  ;;  %v18194_v35 = vpop.f32.mrf.mxu1 }
 0x209   : > { %22836 = vst [vmem:[#allocation118_spill] sm:$0xff] %v18194_v35  ;;  %v18196_v39 = vadd.f32 %v15148_v13, %v2554_v59  ;;  %v22885_v35 = vld [vmem:[#allocation44_spill] sm:$0xff] }
 0x20a   : > { %v18198_v11 = vpop.f32.mrf.mxu0  ;;  %v18200_v51 = vpop.f32.mrf.mxu1 }
 0x20b   : > { %22837 = vst [vmem:[#allocation119_spill] sm:$0xff] %v18196_v39  ;;  %22838 = vst [vmem:[#allocation128_spill] sm:$0xff] %v18198_v11  ;;  %v22882_v11 = vld [vmem:[#allocation136_spill] sm:$0xff] }
 0x20c   : > { %22839 = vst [vmem:[#allocation129_spill] sm:$0xff] %v18200_v51  ;;  %v18202_v16 = vpop.f32.mrf.mxu1  ;;  %v18204_v27 = vpop.f32.mrf.mxu0 }
 0x20d   : > { %22840 = vst [vmem:[#allocation147_spill] sm:$0xff] %v18202_v16  ;;  %22841 = vst [vmem:[#allocation140_spill] sm:$0xff] %v18204_v27 }
 0x20e   : > { %v18206_v52 = vpop.f32.mrf.mxu1  ;;  %v18208_v60 = vpop.f32.mrf.mxu0 }
 0x20f   : > { %22842 = vst [vmem:[#allocation141_spill] sm:$0xff] %v18206_v52  ;;  %22843 = vst [vmem:[#allocation150_spill] sm:$0xff] %v18208_v60 }
 0x210   : > { %v18210_v9 = vpop.f32.mrf.mxu1  ;;  %v18212_v38 = vpop.f32.mrf.mxu0 }
 0x211   : > { %22844 = vst [vmem:[#allocation151_spill] sm:$0xff] %v18210_v9  ;;  %22845 = vst [vmem:[#allocation157_spill] sm:$0xff] %v18212_v38 }
 0x212   : > { %v18214_v63 = vpop.f32.mrf.mxu1  ;;  %v18216_v13 = vpop.f32.mrf.mxu0 }
 0x213   : > { %22846 = vst [vmem:[#allocation160_spill] sm:$0xff] %v18214_v63  ;;  %22847 = vst [vmem:[#allocation161_spill] sm:$0xff] %v18216_v13 }
 0x214   : > { %v18218_v59 = vpop.f32.mrf.mxu1  ;;  %v18220_v39 = vpop.f32.mrf.mxu0 }
 0x215   : > { %22848 = vst [vmem:[#allocation170_spill] sm:$0xff] %v18218_v59  ;;  %22849 = vst [vmem:[#allocation165_spill] sm:$0xff] %v18220_v39  ;;  %v13438_v39 = vld [vmem:[%s22055_s4 + $0x18] sm:$0xff] }
 0x216   : > { %v18222_v51 = vpop.f32.mrf.mxu1  ;;  %v18224_v16 = vpop.f32.mrf.mxu0  ;;  %15499 = vmatprep.subr.mxu0 %v13438_v39 }
 0x217   : > { %22850 = vst [vmem:[#allocation171_spill] sm:$0xff] %v18222_v51  ;;  %22851 = vst [vmem:[#allocation166_spill] sm:$0xff] %v18224_v16  ;;  %15500 = vmatpush3.msra.mxu0 %v13438_v39 }
 0x218   : > { %v18226_v27 = vpop.f32.mrf.mxu1  ;;  %v18228_v52 = vpop.f32.mrf.mxu0 }
 0x219   : > { %22852 = vst [vmem:[#allocation167_spill] sm:$0xff] %v18226_v27  ;;  %22853 = vst [vmem:[#allocation39_spill] sm:$0xff] %v18228_v52 }
 0x21a   : > { %v18230_v60 = vpop.f32.mrf.mxu1  ;;  %v18232_v9 = vpop.f32.mrf.mxu0 }
 0x21b   : > { %22854 = vst [vmem:[#allocation124_spill] sm:$0xff] %v18230_v60  ;;  %22855 = vst [vmem:[#allocation173_spill] sm:$0xff] %v18232_v9 }
 0x21c   : > { %v18234_v38 = vpop.f32.mrf.mxu1  ;;  %v18236_v63 = vpop.f32.mrf.mxu0 }
 0x21d   : > { %22856 = vst [vmem:[#allocation174_spill] sm:$0xff] %v18234_v38  ;;  %22857 = vst [vmem:[#allocation175_spill] sm:$0xff] %v18236_v63  ;;  %v13471_v38 = vld [vmem:[%s22055_s4 + $0x20] sm:$0xff] }
 0x21e   : > { %v18241_v13 = vpop.f32.mrf.mxu1  ;;  %v18243_v51 = vpop.f32.mrf.mxu0  ;;  %15549 = vmatprep.subr.mxu1 %v13471_v38 }
 0x21f   : > { %22858 = vst [vmem:[#allocation176_spill] sm:$0xff] %v18241_v13  ;;  %22859 = vst [vmem:[#allocation177_spill] sm:$0xff] %v18243_v51 }
 0x220   : > { %v18245_v27 = vpop.f32.mrf.mxu1  ;;  %v18247_v52 = vpop.f32.mrf.mxu0 }
 0x221   : > { %22860 = vst [vmem:[#allocation179_spill] sm:$0xff] %v18245_v27  ;;  %22861 = vst [vmem:[#allocation113_spill] sm:$0xff] %v18247_v52 }
 0x222   : > { %v18252_v9 = vpop.f32.mrf.mxu1  ;;  %v18254_v63 = vpop.f32.mrf.mxu0 }
 0x223   : > { %22862 = vst [vmem:[#allocation37_spill] sm:$0xff] %v18252_v9  ;;  %22863 = vst [vmem:[#allocation123_spill] sm:$0xff] %v18254_v63 }
 0x224   : > { %v18256_v60 = vpop.f32.mrf.mxu1  ;;  %v18258_v13 = vpop.f32.mrf.mxu0 }
 0x225   : > { %22864 = vst [vmem:[#allocation134_spill] sm:$0xff] %v18256_v60  ;;  %22865 = vst [vmem:[#allocation40_spill] sm:$0xff] %v18258_v13  ;;  %v22876_v13 = vld [vmem:[#allocation120_spill] sm:$0xff] }
 0x226   : > { %v18260_v51 = vpop.f32.mrf.mxu1  ;;  %v18262_v39 = vpop.f32.mrf.mxu0 }
 0x227   : > { %22866 = vst [vmem:[#allocation135_spill] sm:$0xff] %v18260_v51  ;;  %22867 = vst [vmem:[#allocation181_spill] sm:$0xff] %v18262_v39  ;;  %v1393_v51 = vadd.f32 %v17706_v45, %v22876_v13  ;;  %v22887_v45 = vld [vmem:[#allocation152_spill] sm:$0xff] }
 0x228   : > { %v18264_v27 = vpop.f32.mrf.mxu1  ;;  %v18266_v52 = vpop.f32.mrf.mxu0  ;;  %v22888_v13 = vld [vmem:[#allocation156_spill] sm:$0xff] }
 0x229   : > { %22868 = vst [vmem:[#allocation182_spill] sm:$0xff] %v18264_v27  ;;  %22869 = vst [vmem:[#allocation183_spill] sm:$0xff] %v18266_v52  ;;  %v2101_v61 = vadd.f32 %v22886_v62, %v1393_v51  ;;  %v22898_v62 = vld [vmem:[#allocation46_spill] sm:$0xff] }
 0x22a   : > { %v18268_v16 = vpop.f32.mrf.mxu1  ;;  %v18270_v59 = vpop.f32.mrf.mxu0 }
 0x22b   : > { %22870 = vst [vmem:[#allocation184_spill] sm:$0xff] %v18268_v16  ;;  %22871 = vst [vmem:[#allocation185_spill] sm:$0xff] %v18270_v59  ;;  %v22881_v59 = vld [vmem:[#allocation130_spill] sm:$0xff] }
 0x22c   : > { %v18272_v9 = vpop.f32.mrf.mxu1  ;;  %v18274_v63 = vpop.f32.mrf.mxu0 }
 0x22d   : > { %22872 = vst [vmem:[#allocation186_spill] sm:$0xff] %v18272_v9  ;;  %22873 = vst [vmem:[#allocation187_spill] sm:$0xff] %v18274_v63  ;;  %v1403_v9 = vadd.f32 %v17741_v24, %v22881_v59  ;;  %v22883_v63 = vld [vmem:[#allocation146_spill] sm:$0xff]  ;;  %v22894_v59 = vld [vmem:[#allocation155_spill] sm:$0xff] }
 0x22e   : > { %v18276_v38 = vpop.f32.mrf.mxu1  ;;  %v18278_v60 = vpop.f32.mrf.mxu0  ;;  %v1413_v26 = vadd.f32 %v22883_v63, %v22882_v11  ;;  %v22895_v63 = vld [vmem:[#allocation45_spill] sm:$0xff] }
 0x22f   : > { %22874 = vst [vmem:[#allocation188_spill] sm:$0xff] %v18276_v38  ;;  %22875 = vst [vmem:[#allocation189_spill] sm:$0xff] %v18278_v60  ;;  %v22884_v38 = vld [vmem:[#allocation142_spill] sm:$0xff]  ;;  %v2103_v24 = vadd.f32 %v22893_v56, %v1403_v9 }
 0x230   : > { %v18282_v39 = vpop.f32.mrf.mxu1  ;;  %v18284_v27 = vpop.f32.mrf.mxu0  ;;  %v1423_v60 = vadd.f32 %v22885_v35, %v22884_v38  ;;  %v2105_v43 = vadd.f32 %v22894_v59, %v1413_v26  ;;  %v22897_v35 = vld [vmem:[#allocation49_spill] sm:$0xff]  ;;  %v22904_v59 = vld [vmem:[#allocation38_spill] sm:$0xff] }
 0x231   : > { %22877 = vst [vmem:[#allocation120_spill] sm:$0xff] %v18282_v39  ;;  %22878 = vst [vmem:[#allocation190_spill] sm:$0xff] %v18284_v27  ;;  %v1433_v39 = vadd.f32 %v22888_v13, %v22887_v45  ;;  %v22890_v27 = vld [vmem:[#allocation47_spill] sm:$0xff]  ;;  %v1453_v38 = vadd.f32 %v22897_v35, %v22896_v15  ;;  %v22900_v13 = vld [vmem:[#allocation178_spill] sm:$0xff] }
 0x232   : > { %v18286_v52 = vpop.f32.mrf.mxu1  ;;  %v18288_v16 = vpop.f32.mrf.mxu0  ;;  %v1443_v36 = vadd.f32 %v22890_v27, %v22889_v4  ;;  %v2107_v11 = vadd.f32 %v22895_v63, %v1423_v60  ;;  %v1483_v4 = vadd.f32 %v17960_v30, %v22900_v13  ;;  %v22901_v27 = vld [vmem:[#allocation180_spill] sm:$0xff]  ;;  %v22903_v15 = vld [vmem:[#allocation114_spill] sm:$0xff]  ;;  %v22906_v35 = vld [vmem:[#allocation145_spill] sm:$0xff] }
 0x233   : > { %22879 = vst [vmem:[#allocation191_spill] sm:$0xff] %v18286_v52  ;;  %22880 = vst [vmem:[#allocation192_spill] sm:$0xff] %v18288_v16  ;;  %v2109_v51 = vadd.f32 %v22898_v62, %v1433_v39  ;;  %v2113_v26 = vadd.f32 %v17911_v19, %v1453_v38  ;;  %v22902_v60 = vld [vmem:[#allocation36_spill] sm:$0xff]  ;;  %v1513_v39 = vadd.f32 %v18017_v41, %v22903_v15  ;;  %v22914_v15 = vld [vmem:[#allocation61_spill] sm:$0xff] }
 0x234   : > { %v18301_v52 = vpop.f32.mrf.mxu1  ;;  %v18303_v16 = vpop.f32.mrf.mxu0  ;;  %v2111_v45 = vadd.f32 %v22899_v10, %v1443_v36  ;;  %v1503_v9 = vadd.f32 %v17998_v34, %v22902_v60  ;;  %v1523_v10 = vadd.f32 %v18036_v54, %v22904_v59  ;;  %v2119_v30 = vadd.f32 %v17968_v17, %v1483_v4  ;;  %v22911_v60 = vld [vmem:[#allocation92_spill] sm:$0xff] }
 0x235   : > { %22891 = vst [vmem:[#allocation130_spill] sm:$0xff] %v18301_v52  ;;  %22892 = vst [vmem:[#allocation136_spill] sm:$0xff] %v18303_v16  ;;  %v1493_v52 = vadd.f32 %v17979_v0, %v22901_v27  ;;  %v22905_v0 = vld [vmem:[#allocation41_spill] sm:$0xff]  ;;  %v1543_v62 = vadd.f32 %v18069_v48, %v22906_v35  ;;  %v2125_v41 = vadd.f32 %v18025_v33, %v1513_v39  ;;  %v22915_v39 = vld [vmem:[#allocation118_spill] sm:$0xff] }
 0x236   : > { %v18316_v16 = vpop.f32.mrf.mxu1  ;;  %v18318_v56 = vpop.f32.mrf.mxu0  ;;  %v1533_v63 = vadd.f32 %v18058_v58, %v22905_v0  ;;  %v2123_v34 = vadd.f32 %v18006_v44, %v1503_v9  ;;  %v2127_v54 = vadd.f32 %v18045_v6, %v1523_v10  ;;  %v2523_v17 = vadd.f32 %v18082_v12, %v2101_v61  ;;  %v22916_v10 = vld [vmem:[#allocation137_spill] sm:$0xff] }
 0x237   : > { %v2121_v36 = vadd.f32 %v17987_v49, %v1493_v52  ;;  %v2131_v52 = vadd.f32 %v18080_v53, %v1543_v62  ;;  %v2525_v58 = vadd.f32 %v18089_v46, %v2103_v24  ;;  %v2527_v48 = vadd.f32 %v18096_v57, %v2105_v43  ;;  %v22919_v62 = vld [vmem:[#allocation50_spill] sm:$0xff] }
 0x238   : > { %v18333_v19 = vpop.f32.mrf.mxu1  ;;  %v18335_v38 = vpop.f32.mrf.mxu0  ;;  %v2129_v49 = vadd.f32 %v18067_v40, %v1533_v63  ;;  %v2913_v44 = vadd.f32 %v18091_v1, %v2523_v17  ;;  %v2529_v33 = vadd.f32 %v18103_v22, %v2107_v11  ;;  %v2531_v6 = vadd.f32 %v18110_v31, %v2109_v51  ;;  %v22908_v11 = vld [vmem:[#allocation125_spill] sm:$0xff]  ;;  %v22909_v51 = vld [vmem:[#allocation103_spill] sm:$0xff] }
 0x239   : > { %v2533_v12 = vadd.f32 %v18117_v14, %v2111_v45  ;;  %v2915_v40 = vadd.f32 %v18098_v5, %v2525_v58  ;;  %v2917_v53 = vadd.f32 %v18105_v23, %v2527_v48  ;;  %v2535_v46 = vadd.f32 %v18124_v29, %v2113_v26  ;;  %v22910_v45 = vld [vmem:[#allocation110_spill] sm:$0xff]  ;;  %v22918_v63 = vld [vmem:[#allocation129_spill] sm:$0xff] }
 0x23a   : > { %v18345_v13 = vpop.f32.mrf.mxu1  ;;  %v18347_v4 = vpop.f32.mrf.mxu0  ;;  %v2537_v57 = vadd.f32 %v18131_v42, %v17925_v28  ;;  %v2919_v1 = vadd.f32 %v18112_v2, %v2529_v33  ;;  %v2921_v22 = vadd.f32 %v18119_v55, %v2531_v6  ;;  %v2539_v5 = vadd.f32 %v18141_v3, %v17944_v37  ;;  %v22907_v3 = vld [vmem:[#allocation85_spill] sm:$0xff]  ;;  %v22923_v33 = vld [vmem:[#allocation62_spill] sm:$0xff]  ;;  %v22924_v6 = vld [vmem:[#allocation151_spill] sm:$0xff] }
 0x23b   : > { %v2923_v31 = vadd.f32 %v18126_v50, %v2533_v12  ;;  %v2925_v23 = vadd.f32 %v18133_v20, %v2535_v46  ;;  %v2541_v29 = vadd.f32 %v18148_v8, %v2119_v30  ;;  %v2543_v28 = vadd.f32 %v18155_v18, %v2121_v36  ;;  %v22917_v36 = vld [vmem:[#allocation128_spill] sm:$0xff]  ;;  %v22922_v58 = vld [vmem:[#allocation141_spill] sm:$0xff] }
 0x23c   : > { %v18358_v43 = vpop.f32.mrf.mxu1  ;;  %v18360_v61 = vpop.f32.mrf.mxu0  ;;  %v2927_v14 = vadd.f32 %v18143_v32, %v2537_v57  ;;  %v2929_v2 = vadd.f32 %v18150_v7, %v2539_v5  ;;  %v2545_v55 = vadd.f32 %v18162_v21, %v2123_v34  ;;  %v2547_v50 = vadd.f32 %v18169_v47, %v2125_v41  ;;  %v22912_v21 = vld [vmem:[#allocation98_spill] sm:$0xff]  ;;  %v22913_v47 = vld [vmem:[#allocation104_spill] sm:$0xff]  ;;  %v22920_v34 = vld [vmem:[#allocation147_spill] sm:$0xff] }
 0x23d   : > { %v2549_v37 = vadd.f32 %v18176_v25, %v2127_v54  ;;  %v2931_v20 = vadd.f32 %v22907_v3, %v2541_v29  ;;  %v2933_v32 = vadd.f32 %v22908_v11, %v2543_v28  ;;  %v2551_v8 = vadd.f32 %v22909_v51, %v2129_v49  ;;  %v22921_v49 = vld [vmem:[#allocation140_spill] sm:$0xff]  ;;  %v22926_v5 = vld [vmem:[#allocation150_spill] sm:$0xff]  ;;  %v22927_v28 = vld [vmem:[#allocation157_spill] sm:$0xff] }
 0x23e   : > { %v18371_v42 = vpop.f32.mrf.mxu1  ;;  %v18373_v24 = vpop.f32.mrf.mxu0  ;;  %v2553_v18 = vadd.f32 %v22910_v45, %v2131_v52  ;;  %v18388_v7 = vadd.f32 %v22911_v60, %v2545_v55  ;;  %v18391_v9 = vadd.f32 %v22912_v21, %v2547_v50  ;;  %v3336_v59 = vadd.f32 %v22915_v39, %v22914_v15  ;;  %v22925_v46 = vld [vmem:[#allocation160_spill] sm:$0xff]  ;;  %v22928_v55 = vld [vmem:[#allocation67_spill] sm:$0xff]  ;;  %v22929_v50 = vld [vmem:[#allocation170_spill] sm:$0xff] }
 0x23f   : > { %v18394_v25 = vadd.f32 %v22913_v47, %v2549_v37  ;;  %v18399_v30 = vadd.f32 %v22916_v10, %v2551_v8  ;;  %v3335_v35 = vadd.f32 %v22918_v63, %v2913_v44  ;;  %v3338_v41 = vadd.f32 %v22920_v34, %v22919_v62  ;;  %v22930_v3 = vld [vmem:[#allocation171_spill] sm:$0xff]  ;;  %v22931_v45 = vld [vmem:[#allocation161_spill] sm:$0xff]  ;;  %v22934_v47 = vld [vmem:[#allocation68_spill] sm:$0xff] }
 0x240   : > { %v18383_v27 = vpop.f32.mrf.mxu1  ;;  %v18385_v26 = vpop.f32.mrf.mxu0  ;;  %v18402_v0 = vadd.f32 %v22917_v36, %v2553_v18  ;;  %v3758_v52 = vadd.f32 %v22921_v49, %v3336_v59  ;;  %v3337_v48 = vadd.f32 %v22922_v58, %v2915_v40  ;;  %v3340_v12 = vadd.f32 %v22924_v6, %v22923_v33  ;;  %v22932_v18 = vld [vmem:[#allocation165_spill] sm:$0xff]  ;;  %v22935_v15 = vld [vmem:[#allocation167_spill] sm:$0xff]  ;;  %v22940_v34 = vld [vmem:[#allocation174_spill] sm:$0xff] }
 0x241   : > { %v3339_v57 = vadd.f32 %v22925_v46, %v2917_v53  ;;  %v3757_v29 = vadd.f32 %v22926_v5, %v3335_v35  ;;  %v3760_v44 = vadd.f32 %v22927_v28, %v3338_v41  ;;  %v3342_v37 = vadd.f32 %v22929_v50, %v22928_v55  ;;  %v22933_v53 = vld [vmem:[#allocation166_spill] sm:$0xff]  ;;  %v22936_v59 = vld [vmem:[#allocation39_spill] sm:$0xff]  ;;  %v22938_v63 = vld [vmem:[#allocation173_spill] sm:$0xff] }
 0x242   : > { %v18407_v54 = vpop.f32.mrf.mxu1  ;;  %v18409_v17 = vpop.f32.mrf.mxu0  ;;  %v3341_v11 = vadd.f32 %v22930_v3, %v2919_v1  ;;  %v18426_v40 = vadd.f32 %v22931_v45, %v3337_v48  ;;  %v18429_v60 = vadd.f32 %v22932_v18, %v3340_v12  ;;  %v3344_v39 = vadd.f32 %v22935_v15, %v22934_v47  ;;  %v22937_v1 = vld [vmem:[#allocation124_spill] sm:$0xff]  ;;  %v22939_v62 = vld [vmem:[#allocation73_spill] sm:$0xff]  ;;  %v22941_v48 = vld [vmem:[#allocation175_spill] sm:$0xff] }
 0x243   : > { %v18432_v21 = vadd.f32 %v22933_v53, %v3339_v57  ;;  %v18437_v10 = vadd.f32 %v22936_v59, %v3342_v37  ;;  %v3343_v36 = vadd.f32 %v22937_v1, %v2921_v22  ;;  %v3346_v41 = vadd.f32 %v22940_v34, %v22939_v62  ;;  %v22942_v6 = vld [vmem:[#allocation176_spill] sm:$0xff]  ;;  %v22943_v46 = vld [vmem:[#allocation74_spill] sm:$0xff]  ;;  %v22944_v57 = vld [vmem:[#allocation179_spill] sm:$0xff] }
 0x244   : > { %v18421_v51 = vpop.f32.mrf.mxu1  ;;  %v18423_v8 = vpop.f32.mrf.mxu0  ;;  %v18441_v35 = vadd.f32 %v22938_v63, %v3341_v11  ;;  %v18450_v33 = vadd.f32 %v22941_v48, %v3344_v39  ;;  %v3345_v12 = vadd.f32 %v22942_v6, %v2923_v31  ;;  %v3348_v5 = vadd.f32 %v22944_v57, %v22943_v46  ;;  %v22945_v28 = vld [vmem:[#allocation37_spill] sm:$0xff]  ;;  %v22948_v11 = vld [vmem:[#allocation79_spill] sm:$0xff]  ;;  %v22949_v45 = vld [vmem:[#allocation134_spill] sm:$0xff] }
 0x245   : > { %v3347_v22 = vadd.f32 %v22945_v28, %v2925_v23  ;;  %v22946_v55 = vld [vmem:[#allocation177_spill] sm:$0xff]  ;;  %v3350_v18 = vadd.f32 %v22949_v45, %v22948_v11  ;;  %v22950_v53 = vld [vmem:[#allocation135_spill] sm:$0xff]  ;;  %v22952_v1 = vld [vmem:[#allocation40_spill] sm:$0xff] }
 0x246   : > { %v18445_v49 = vpop.f32.mrf.mxu1  ;;  %v18447_v58 = vpop.f32.mrf.mxu0  ;;  %v18457_v50 = vadd.f32 %v22946_v55, %v3343_v36  ;;  %v22947_v37 = vld [vmem:[#allocation113_spill] sm:$0xff]  ;;  %v3349_v47 = vadd.f32 %v22950_v53, %v2927_v14  ;;  %v22951_v31 = vld [vmem:[#allocation123_spill] sm:$0xff]  ;;  %v18471_v63 = vadd.f32 %v22952_v1, %v3348_v5  ;;  %v22955_v34 = vld [vmem:[#allocation182_spill] sm:$0xff] }
 0x247   : > { %v18460_v3 = vadd.f32 %v22947_v37, %v3346_v41  ;;  %v18468_v59 = vadd.f32 %v22951_v31, %v3345_v12  ;;  %v22953_v23 = vld [vmem:[#allocation181_spill] sm:$0xff]  ;;  %v22954_v62 = vld [vmem:[#allocation115_spill] sm:$0xff]  ;;  %v22958_v46 = vld [vmem:[#allocation184_spill] sm:$0xff] }
 0x248   : > { %v18465_v15 = vpop.f32.mrf.mxu0  ;;  %v15253_v39 = vpop.f32.mrf.mxu1  ;;  %v18474_v36 = vadd.f32 %v22953_v23, %v3347_v22  ;;  %v3352_v41 = vadd.f32 %v22955_v34, %v22954_v62  ;;  %v22956_v48 = vld [vmem:[#allocation183_spill] sm:$0xff]  ;;  %v3351_v14 = vadd.f32 %v22958_v46, %v2929_v2  ;;  %v22959_v57 = vld [vmem:[#allocation185_spill] sm:$0xff]  ;;  %v22961_v55 = vld [vmem:[#allocation80_spill] sm:$0xff] }
 0x249   : > { %v18479_v6 = vadd.f32 %v22956_v48, %v3350_v18  ;;  %v18483_v28 = vadd.f32 %v22959_v57, %v3349_v47  ;;  %v22962_v12 = vld [vmem:[#allocation186_spill] sm:$0xff]  ;;  %v22963_v45 = vld [vmem:[#allocation187_spill] sm:$0xff]  ;;  %v22964_v53 = vld [vmem:[#allocation188_spill] sm:$0xff]  ;;  %v4148_v62 = vadd.f32 %v15253_v39, %v3758_v52 }
 0x24a   : > { %v3354_v37 = vadd.f32 %v22962_v12, %v22961_v55  ;;  %v18487_v11 = vpop.f32.mrf.mxu0  ;;  %v3988_v5 = vpop.f32.mrf.mxu1  ;;  %v18490_v22 = vadd.f32 %v22963_v45, %v3352_v41  ;;  %v3353_v31 = vadd.f32 %v22964_v53, %v2931_v20  ;;  %v22965_v1 = vld [vmem:[#allocation86_spill] sm:$0xff]  ;;  %v22966_v23 = vld [vmem:[#allocation120_spill] sm:$0xff]  ;;  %v22967_v34 = vld [vmem:[#allocation189_spill] sm:$0xff] }
 0x24b   : > { %22957 = vst [vmem:[#allocation146_spill] sm:$0xff] %v18479_v6  ;;  %22960 = vst [vmem:[#allocation142_spill] sm:$0xff] %v18483_v28  ;;  %v3356_v18 = vadd.f32 %v22966_v23, %v22965_v1  ;;  %v18496_v2 = vadd.f32 %v22967_v34, %v3351_v14  ;;  %v22968_v47 = vld [vmem:[#allocation190_spill] sm:$0xff]  ;;  %v22969_v46 = vld [vmem:[#allocation191_spill] sm:$0xff] }
 0x24c   : > { %v18499_v48 = vadd.f32 %v22968_v47, %v3354_v37  ;;  %v3355_v57 = vadd.f32 %v22969_v46, %v2933_v32  ;;  %v22970_v55 = vld [vmem:[#allocation91_spill] sm:$0xff]  ;;  %v22971_v12 = vld [vmem:[#allocation130_spill] sm:$0xff]  ;;  %v15256_v6 = vpop.f32.mrf.mxu1  ;;  %v15303_v41 = vpop.f32.mrf.mxu0  ;;  %v18507_v20 = vld [vmem:[%s22053_s2] ss:$0 sm:$0xff]  ;;  %v4147_v37 = vadd.f32 %v3988_v5, %v3757_v29  ;;  %v3357_v32 = vadd.f32 %v18316_v16, %v18388_v7 }
 0x24d   : > { %v3358_v28 = vadd.f32 %v22971_v12, %v22970_v55  ;;  %v22972_v45 = vld [vmem:[#allocation192_spill] sm:$0xff]  ;;  %v4570_v53 = vadd.f32 %v15303_v41, %v4148_v62  ;;  %v22974_v23 = vld [vmem:[#allocation97_spill] sm:$0xff]  ;;  %v3359_v5 = vadd.f32 %v18345_v13, %v18391_v9  ;;  %v4150_v16 = vadd.f32 %v15256_v6, %v3760_v44 }
 0x24e   : > { %v18510_v52 = vadd.f32 %v22972_v45, %v3353_v31  ;;  %v22973_v39 = vld [vmem:[#allocation136_spill] sm:$0xff]  ;;  %v18518_v1 = vadd.f32 %v18318_v56, %v3355_v57  ;;  %v3360_v34 = vadd.f32 %v18333_v19, %v22974_v23  ;;  %v4410_v29 = vpop.f32.mrf.mxu0  ;;  %v18534_v62 = vadd.f32 %v18347_v4, %v3357_v32  ;;  %v22975_v19 = vld [vmem:[#allocation131_spill] sm:$0xff]  ;;  %v22976_v6 = vld [vmem:[#allocation109_spill] sm:$0xff] }
 0x24f   : > { %v18513_v14 = vadd.f32 %v22973_v39, %v3356_v18  ;;  %v18523_v47 = vadd.f32 %v18335_v38, %v3358_v28  ;;  %v18528_v31 = vld [vmem:[%s22054_s3] ss:$0 sm:$0xff]  ;;  %v3998_v18 = vpop.f32.mrf.mxu1  ;;  %v4609_v56 = vmul.f32 %v18507_v20, %v4570_v53  ;;  %v4569_v7 = vadd.f32 %v4410_v29, %v4147_v37 }
 0x250   : > { %v3362_v38 = vadd.f32 %v18358_v43, %v22975_v19  ;;  %v18539_v28 = vadd.f32 %v18360_v61, %v3360_v34  ;;  %v3361_v46 = vadd.f32 %v18371_v42, %v18394_v25  ;;  %v15306_v55 = vpop.f32.mrf.mxu0  ;;  %v18544_v13 = vadd.f32 %v18373_v24, %v3359_v5 }
 0x251   : > { %v15259_v57 = vpop.f32.mrf.mxu1  ;;  %v4648_v9 = vadd.f32 %v18528_v31, %v4609_v56  ;;  %v4608_v44 = vmul.f32 %v18507_v20, %v4569_v7  ;;  %v4572_v4 = vadd.f32 %v15306_v55, %v4150_v16  ;;  %v3364_v12 = vadd.f32 %v18383_v27, %v22976_v6  ;;  %v22977_v27 = vld [vmem:[#allocation119_spill] sm:$0xff] }
 0x252   : > { %v18551_v43 = vadd.f32 %v18385_v26, %v3362_v38  ;;  %v3363_v61 = vadd.f32 %v18407_v54, %v18399_v30  ;;  %v4149_v42 = vadd.f32 %v3998_v18, %v18426_v40  ;;  %v4420_v41 = vpop.f32.mrf.mxu0  ;;  %v18559_v37 = vadd.f32 %v18409_v17, %v3361_v46 }
 0x253   : > { %v4008_v25 = vpop.f32.mrf.mxu1  ;;  %vm4680_vm3 = vcmp.ge.f32.partialorder %v4648_v9, 0.0  ;;  %v4712_v24 = vmul.f32 0.1, %v4648_v9  ;;  %v4647_v45 = vadd.f32 %v18528_v31, %v4608_v44  ;;  %v4611_v39 = vmul.f32 %v18507_v20, %v4572_v4 }
 0x254   : > { %v3366_v26 = vadd.f32 %v18421_v51, %v22977_v27  ;;  %v4152_v53 = vadd.f32 %v15259_v57, %v18429_v60  ;;  %v4571_v32 = vadd.f32 %v4420_v41, %v4149_v42  ;;  %v15309_v54 = vpop.f32.mrf.mxu0  ;;  %v18566_v18 = vadd.f32 %v18423_v8, %v3364_v12 }
 0x255   : > { %v15262_v30 = vpop.f32.mrf.mxu1  ;;  %v4744_v40 = vsel %vm4680_vm3, %v4648_v9, %v4712_v24  ;;  %vm4679_vm4 = vcmp.ge.f32.partialorder %v4647_v45, 0.0  ;;  %v4711_v23 = vmul.f32 0.1, %v4647_v45  ;;  %v4650_v34 = vadd.f32 %v18528_v31, %v4611_v39 }
 0x256   : > { %4776 = vst.msk [vmem:[#allocation3 + $0x20] sm:$0xff] %vm598_vm1, %v4744_v40  ;;  %v4151_v17 = vadd.f32 %v4008_v25, %v18432_v21  ;;  %v4610_v29 = vmul.f32 %v18507_v20, %v4571_v32  ;;  %v4574_v51 = vadd.f32 %v15309_v54, %v4152_v53  ;;  %v4430_v60 = vpop.f32.mrf.mxu0  ;;  %v4154_v7 = vadd.f32 %v15262_v30, %v18437_v10  ;;  %v18599_v53 = vld [vmem:[%s22055_s4 + $0x28] sm:$0xff] }
 0x257   : > { %v4018_v5 = vpop.f32.mrf.mxu1  ;;  %v4743_v16 = vsel %vm4679_vm4, %v4647_v45, %v4711_v23  ;;  %vm4682_vm5 = vcmp.ge.f32.partialorder %v4650_v34, 0.0  ;;  %v4714_v56 = vmul.f32 0.1, %v4650_v34  ;;  %v3365_v19 = vadd.f32 %v18445_v49, %v18402_v0  ;;  %15599 = vmatprep.subr.mxu0 %v18599_v53 }
 0x258   : > { %4775 = vst.msk [vmem:[#allocation3 + $0x18] sm:$0xff] %vm598_vm1, %v4743_v16  ;;  %v4649_v8 = vadd.f32 %v18528_v31, %v4610_v29  ;;  %v4613_v38 = vmul.f32 %v18507_v20, %v4574_v51  ;;  %v4573_v21 = vadd.f32 %v4430_v60, %v4151_v17  ;;  %v15312_v57 = vpop.f32.mrf.mxu0  ;;  %v18578_v55 = vadd.f32 %v18447_v58, %v3363_v61 }
 0x259   : > { %v15265_v46 = vpop.f32.mrf.mxu1  ;;  %v4746_v9 = vsel %vm4682_vm5, %v4650_v34, %v4714_v56  ;;  %v4153_v44 = vadd.f32 %v4018_v5, %v18441_v35  ;;  %v4576_v4 = vadd.f32 %v15312_v57, %v4154_v7  ;;  %v18585_v42 = vadd.f32 %v18465_v15, %v3366_v26 }
 0x25a   : > { %4778 = vst.msk [vmem:[#allocation3 + $0x30] sm:$0xff] %vm598_vm1, %v4746_v9  ;;  %vm4681_vm6 = vcmp.ge.f32.partialorder %v4649_v8, 0.0  ;;  %v4713_v0 = vmul.f32 0.1, %v4649_v8  ;;  %v4652_v10 = vadd.f32 %v18528_v31, %v4613_v38  ;;  %v4612_v49 = vmul.f32 %v18507_v20, %v4573_v21  ;;  %v4440_v12 = vpop.f32.mrf.mxu0 }
 0x25b   : > { %v4028_v6 = vpop.f32.mrf.mxu1  ;;  %v4156_v58 = vadd.f32 %v15265_v46, %v18450_v33  ;;  %v4615_v61 = vmul.f32 %v18507_v20, %v4576_v4  ;;  %v4575_v25 = vadd.f32 %v4440_v12, %v4153_v44  ;;  %v18591_v27 = vadd.f32 %v18487_v11, %v3365_v19 }
 0x25c   : > { %v4745_v35 = vsel %vm4681_vm6, %v4649_v8, %v4713_v0  ;;  %vm4684_vm7 = vcmp.ge.f32.partialorder %v4652_v10, 0.0  ;;  %v4716_v41 = vmul.f32 0.1, %v4652_v10  ;;  %v4651_v24 = vadd.f32 %v18528_v31, %v4612_v49  ;;  %v15315_v39 = vpop.f32.mrf.mxu0  ;;  %v22978_v8 = vld [vmem:[#allocation58_spill] sm:$0xff] }
 0x25d   : > { %v15268_v45 = vpop.f32.mrf.mxu1  ;;  %4777 = vst.msk [vmem:[#allocation3 + $0x28] sm:$0xff] %vm598_vm1, %v4745_v35  ;;  %v4654_v15 = vadd.f32 %v18528_v31, %v4615_v61  ;;  %v4614_v26 = vmul.f32 %v18507_v20, %v4575_v25  ;;  %v4578_v33 = vadd.f32 %v15315_v39, %v4156_v58  ;;  %v4155_v54 = vadd.f32 %v4028_v6, %v18457_v50  ;;  %v4875_v19 = vld [vmem:[#allocation3 + $0x20] sm:$0xff] }
 0x25e   : > { %v4748_v32 = vsel %vm4684_vm7, %v4652_v10, %v4716_v41  ;;  %vm4683_vm8 = vcmp.ge.f32.partialorder %v4651_v24, 0.0  ;;  %v4715_v30 = vmul.f32 0.1, %v4651_v24  ;;  %v4450_v11 = vpop.f32.mrf.mxu0  ;;  %v4158_v50 = vadd.f32 %v15268_v45, %v18460_v3  ;;  %v22979_v10 = vld [vmem:[#allocation57_spill] sm:$0xff] }
 0x25f   : > { %v4038_v40 = vpop.f32.mrf.mxu1  ;;  %4780 = vst.msk [vmem:[#allocation3 + $0x40] sm:$0xff] %vm598_vm1, %v4748_v32  ;;  %vm4686_vm9 = vcmp.ge.f32.partialorder %v4654_v15, 0.0  ;;  %v4718_v23 = vmul.f32 0.1, %v4654_v15  ;;  %v4653_v34 = vadd.f32 %v18528_v31, %v4614_v26  ;;  %v4617_v17 = vmul.f32 %v18507_v20, %v4578_v33  ;;  %v4874_v29 = vld [vmem:[#allocation3 + $0x18] sm:$0xff] }
 0x260   : > { %v18606_v51 = vld [vmem:[#allocation3 + $0x17] sm:$0xff]  ;;  %v18608_v5 = vld [vmem:[#allocation3 + $0x1f] sm:$0xff]  ;;  %v4747_v60 = vsel %vm4683_vm8, %v4651_v24, %v4715_v30  ;;  %v4577_v16 = vadd.f32 %v4450_v11, %v4155_v54  ;;  %v15318_v7 = vpop.f32.mrf.mxu0  ;;  %15354 = vmatprep.mubr.msk.f32.mxu1 %vm598_vm1, %v4874_v29  ;;  %v4157_v3 = vadd.f32 %v4038_v40, %v18468_v59 }
 0x261   : > { %v15271_v56 = vpop.f32.mrf.mxu1  ;;  %v4841_v38 = vmul.f32 %v18606_v51, %v22978_v8  ;;  %4779 = vst.msk [vmem:[#allocation3 + $0x38] sm:$0xff] %vm598_vm1, %v4747_v60  ;;  %v4750_v21 = vsel %vm4686_vm9, %v4654_v15, %v4718_v23  ;;  %vm4685_vm10 = vcmp.ge.f32.partialorder %v4653_v34, 0.0  ;;  %v4717_v46 = vmul.f32 0.1, %v4653_v34  ;;  %15355 = vmatmul.mubr.msk.f32.gmra.mxu1 %vm598_vm1, %v4875_v19  ;;  %v4877_v30 = vld [vmem:[#allocation3 + $0x30] sm:$0xff]  ;;  %v22982_v60 = vld [vmem:[#allocation142_spill] sm:$0xff] }
 0x262   : > { %v4656_v57 = vadd.f32 %v18528_v31, %v4617_v17  ;;  %4782 = vst.msk [vmem:[#allocation3 + $0x50] sm:$0xff] %vm598_vm1, %v4750_v21  ;;  %v4616_v9 = vmul.f32 %v18507_v20, %v4577_v16  ;;  %v4580_v44 = vadd.f32 %v15318_v7, %v4158_v50  ;;  %v4460_v0 = vpop.f32.mrf.mxu0  ;;  %v4842_v49 = vmul.f32 %v18608_v5, %v22979_v10  ;;  %v22981_v54 = vld [vmem:[#allocation64_spill] sm:$0xff] }
 0x263   : > { %v4048_v4 = vpop.f32.mrf.mxu1  ;;  %15404 = vmatprep.mubr.msk.f32.mxu0 %vm598_vm1, %v4841_v38  ;;  %v4749_v6 = vsel %vm4685_vm10, %v4653_v34, %v4717_v46  ;;  %v4160_v58 = vadd.f32 %v15271_v56, %v18471_v63  ;;  %v4579_v35 = vadd.f32 %v4460_v0, %v4157_v3  ;;  %v22980_v63 = vld [vmem:[#allocation146_spill] sm:$0xff]  ;;  %v22983_v56 = vld [vmem:[#allocation63_spill] sm:$0xff] }
 0x264   : > { %vm4688_vm11 = vcmp.ge.f32.partialorder %v4656_v57, 0.0  ;;  %v4720_v12 = vmul.f32 0.1, %v4656_v57  ;;  %4781 = vst.msk [vmem:[#allocation3 + $0x48] sm:$0xff] %vm598_vm1, %v4749_v6  ;;  %v4655_v61 = vadd.f32 %v18528_v31, %v4616_v9  ;;  %v4619_v59 = vmul.f32 %v18507_v20, %v4580_v44  ;;  %15405 = vmatmul.mubr.msk.f32.gmra.mxu0 %vm598_vm1, %v4842_v49  ;;  %v15321_v24 = vpop.f32.mrf.mxu0  ;;  %v4876_v45 = vld [vmem:[#allocation3 + $0x28] sm:$0xff] }
 0x265   : > { %v4159_v25 = vadd.f32 %v4048_v4, %v18474_v36  ;;  %v15274_v41 = vpop.f32.mrf.mxu1  ;;  %v18630_v39 = vld [vmem:[#allocation3 + $0x27] sm:$0xff]  ;;  %v18632_v15 = vld [vmem:[#allocation3 + $0x2f] sm:$0xff]  ;;  %v4582_v32 = vadd.f32 %v15321_v24, %v4160_v58  ;;  %15357 = vmatprep.mubr.msk.f32.mxu1 %vm598_vm1, %v4876_v45  ;;  %v4618_v23 = vmul.f32 %v18507_v20, %v4579_v35 }
 0x266   : > { %v4752_v26 = vsel %vm4688_vm11, %v4656_v57, %v4720_v12  ;;  %v4162_v33 = vadd.f32 %v15274_v41, %v22980_v63  ;;  %v4843_v36 = vmul.f32 %v18630_v39, %v22981_v54  ;;  %vm4687_vm12 = vcmp.ge.f32.partialorder %v4655_v61, 0.0  ;;  %15358 = vmatmul.mubr.msk.f32.gmra.mxu1 %vm598_vm1, %v4877_v30  ;;  %v4470_v17 = vpop.f32.mrf.mxu0  ;;  %v22984_v35 = vld [vmem:[#allocation70_spill] sm:$0xff] }
 0x267   : > { %4784 = vst.msk [vmem:[#allocation3 + $0x60] sm:$0xff] %vm598_vm1, %v4752_v26  ;;  %v4719_v40 = vmul.f32 0.1, %v4655_v61  ;;  %v4658_v11 = vadd.f32 %v18528_v31, %v4619_v59  ;;  %v4058_v34 = vpop.f32.mrf.mxu1  ;;  %v4621_v29 = vmul.f32 %v18507_v20, %v4582_v32  ;;  %v4581_v16 = vadd.f32 %v4470_v17, %v4159_v25 }
 0x268   : > { %v4161_v50 = vadd.f32 %v4058_v34, %v22982_v60  ;;  %15407 = vmatprep.mubr.msk.f32.mxu0 %vm598_vm1, %v4843_v36  ;;  %v4844_v7 = vmul.f32 %v18632_v15, %v22983_v56  ;;  %v4657_v21 = vadd.f32 %v18528_v31, %v4618_v23  ;;  %v15324_v57 = vpop.f32.mrf.mxu0  ;;  %v4878_v3 = vld [vmem:[#allocation3 + $0x38] sm:$0xff] }
 0x269   : > { %v4751_v19 = vsel %vm4687_vm12, %v4655_v61, %v4719_v40  ;;  %vm4690_vm13 = vcmp.ge.f32.partialorder %v4658_v11, 0.0  ;;  %v4722_v38 = vmul.f32 0.1, %v4658_v11  ;;  %v15277_v46 = vpop.f32.mrf.mxu1  ;;  %v18648_v9 = vld [vmem:[#allocation3 + $0x37] sm:$0xff]  ;;  %v4660_v44 = vadd.f32 %v18528_v31, %v4621_v29  ;;  %v18655_v6 = vld [vmem:[#allocation3 + $0x3f] sm:$0xff]  ;;  %15360 = vmatprep.mubr.msk.f32.mxu1 %vm598_vm1, %v4878_v3 }
 0x26a   : > { %4783 = vst.msk [vmem:[#allocation3 + $0x58] sm:$0xff] %vm598_vm1, %v4751_v19  ;;  %v4620_v4 = vmul.f32 %v18507_v20, %v4581_v16  ;;  %15408 = vmatmul.mubr.msk.f32.gmra.mxu0 %vm598_vm1, %v4844_v7  ;;  %v4164_v0 = vadd.f32 %v15277_v46, %v18490_v22  ;;  %v4584_v49 = vadd.f32 %v15324_v57, %v4162_v33  ;;  %vm4689_vm14 = vcmp.ge.f32.partialorder %v4657_v21, 0.0  ;;  %v4879_v61 = vld [vmem:[#allocation3 + $0x40] sm:$0xff]  ;;  %v4480_v25 = vpop.f32.mrf.mxu0  ;;  %v22986_v36 = vld [vmem:[#allocation69_spill] sm:$0xff]  ;;  %v18682_v7 = vld [vmem:[#allocation3 + $0x50] sm:$0xff] }
 0x26b   : > { %v4754_v12 = vsel %vm4690_vm13, %v4658_v11, %v4722_v38  ;;  %v4721_v58 = vmul.f32 0.1, %v4657_v21  ;;  %v4068_v59 = vpop.f32.mrf.mxu1  ;;  %v4845_v41 = vmul.f32 %v18648_v9, %v22984_v35  ;;  %vm4692_vm15 = vcmp.ge.f32.partialorder %v4660_v44, 0.0  ;;  %15361 = vmatmul.mubr.msk.f32.gmra.mxu1 %vm598_vm1, %v4879_v61  ;;  %v18664_v26 = vld [vmem:[#allocation3 + $0x48] sm:$0xff]  ;;  %22987 = vst [vmem:[#allocation42_spill] sm:$0xff] %v18682_v7 }
 0x26c   : > { %4786 = vst.msk [vmem:[#allocation3 + $0x70] sm:$0xff] %vm598_vm1, %v4754_v12  ;;  %v4724_v24 = vmul.f32 0.1, %v4660_v44  ;;  %v4659_v22 = vadd.f32 %v18528_v31, %v4620_v4  ;;  %v4623_v45 = vmul.f32 %v18507_v20, %v4584_v49  ;;  %22985 = vst [vmem:[#allocation44_spill] sm:$0xff] %v18664_v26  ;;  %v18666_v63 = vld [vmem:[#allocation3 + $0x47] sm:$0xff]  ;;  %v4163_v32 = vadd.f32 %v4068_v59, %v18496_v2  ;;  %v15327_v23 = vpop.f32.mrf.mxu0  ;;  %v18676_v60 = vld [vmem:[#allocation3 + $0x4f] sm:$0xff] }
 0x26d   : > { %v4753_v33 = vsel %vm4689_vm14, %v4657_v21, %v4721_v58  ;;  %v4583_v30 = vadd.f32 %v4480_v25, %v4161_v50  ;;  %15410 = vmatprep.mubr.msk.f32.mxu0 %vm598_vm1, %v4845_v41  ;;  %v4846_v40 = vmul.f32 %v18655_v6, %v22986_v36  ;;  %v15280_v11 = vpop.f32.mrf.mxu1  ;;  %15363 = vmatprep.mubr.msk.f32.mxu1 %vm598_vm1, %v18664_v26  ;;  %v22988_v21 = vld [vmem:[#allocation76_spill] sm:$0xff]  ;;  %v22989_v49 = vld [vmem:[#allocation75_spill] sm:$0xff] }
 0x26e   : > { %4785 = vst.msk [vmem:[#allocation3 + $0x68] sm:$0xff] %vm598_vm1, %v4753_v33  ;;  %v4756_v34 = vsel %vm4692_vm15, %v4660_v44, %v4724_v24  ;;  %vm4691_vm3 = vcmp.ge.f32.partialorder %v4659_v22, 0.0  ;;  %v4723_v17 = vmul.f32 0.1, %v4659_v22  ;;  %v4662_v29 = vadd.f32 %v18528_v31, %v4623_v45  ;;  %v4490_v38 = vpop.f32.mrf.mxu0 }
 0x26f   : > { %4788 = vst.msk [vmem:[#allocation3 + $0x80] sm:$0xff] %vm598_vm1, %v4756_v34  ;;  %v4622_v2 = vmul.f32 %v18507_v20, %v4583_v30  ;;  %15411 = vmatmul.mubr.msk.f32.gmra.mxu0 %vm598_vm1, %v4846_v40  ;;  %v4166_v50 = vadd.f32 %v15280_v11, %v18499_v48  ;;  %v4586_v16 = vadd.f32 %v15327_v23, %v4164_v0  ;;  %v4078_v19 = vpop.f32.mrf.mxu1  ;;  %v18708_v40 = vld [vmem:[#allocation3 + $0x60] sm:$0xff] }
 0x270   : > { %v4847_v46 = vmul.f32 %v18666_v63, %v22988_v21  ;;  %v4755_v57 = vsel %vm4691_vm3, %v4659_v22, %v4723_v17  ;;  %vm4694_vm4 = vcmp.ge.f32.partialorder %v4662_v29, 0.0  ;;  %v4726_v3 = vmul.f32 0.1, %v4662_v29  ;;  %15364 = vmatmul.mubr.msk.f32.gmra.mxu1 %vm598_vm1, %v18682_v7  ;;  %v15330_v61 = vpop.f32.mrf.mxu0  ;;  %v22991_v22 = vld [vmem:[#allocation82_spill] sm:$0xff]  ;;  %22992 = vst [vmem:[#allocation156_spill] sm:$0xff] %v18708_v40 }
 0x271   : > { %v4165_v44 = vadd.f32 %v4078_v19, %v18510_v52  ;;  %4787 = vst.msk [vmem:[#allocation3 + $0x78] sm:$0xff] %vm598_vm1, %v4755_v57  ;;  %v4661_v48 = vadd.f32 %v18528_v31, %v4622_v2  ;;  %v4625_v4 = vmul.f32 %v18507_v20, %v4586_v16  ;;  %v4585_v0 = vadd.f32 %v4490_v38, %v4163_v32  ;;  %v15283_v58 = vpop.f32.mrf.mxu1  ;;  %v18695_v59 = vld [vmem:[#allocation3 + $0x58] sm:$0xff] }
 0x272   : > { %15413 = vmatprep.mubr.msk.f32.mxu0 %vm598_vm1, %v4847_v46  ;;  %v4848_v12 = vmul.f32 %v18676_v60, %v22989_v49  ;;  %22990 = vst [vmem:[#allocation152_spill] sm:$0xff] %v18695_v59  ;;  %v18697_v25 = vld [vmem:[#allocation3 + $0x57] sm:$0xff]  ;;  %v4758_v41 = vsel %vm4694_vm4, %v4662_v29, %v4726_v3  ;;  %v4168_v52 = vadd.f32 %v15283_v58, %v18513_v14  ;;  %v4500_v11 = vpop.f32.mrf.mxu0  ;;  %v18710_v23 = vld [vmem:[#allocation3 + $0x5f] sm:$0xff] }
 0x273   : > { %v4588_v24 = vadd.f32 %v15330_v61, %v4166_v50  ;;  %15366 = vmatprep.mubr.msk.f32.mxu1 %vm598_vm1, %v18695_v59  ;;  %v4849_v45 = vmul.f32 %v18697_v25, %v22991_v22  ;;  %4790 = vst.msk [vmem:[#allocation3 + $0x90] sm:$0xff] %vm598_vm1, %v4758_v41  ;;  %vm4693_vm5 = vcmp.ge.f32.partialorder %v4661_v48, 0.0  ;;  %v4725_v33 = vmul.f32 0.1, %v4661_v48  ;;  %v4088_v14 = vpop.f32.mrf.mxu1  ;;  %v18730_v61 = vld [vmem:[#allocation3 + $0x70] sm:$0xff] }
 0x274   : > { %v4664_v32 = vadd.f32 %v18528_v31, %v4625_v4  ;;  %v4624_v30 = vmul.f32 %v18507_v20, %v4585_v0  ;;  %15414 = vmatmul.mubr.msk.f32.gmra.mxu0 %vm598_vm1, %v4848_v12  ;;  %15367 = vmatmul.mubr.msk.f32.gmra.mxu1 %vm598_vm1, %v18708_v40  ;;  %v4167_v17 = vadd.f32 %v4088_v14, %v18518_v1  ;;  %v15333_v38 = vpop.f32.mrf.mxu0  ;;  %v22994_v4 = vld [vmem:[#allocation81_spill] sm:$0xff] }
 0x275   : > { %v4627_v34 = vmul.f32 %v18507_v20, %v4588_v24  ;;  %v4587_v29 = vadd.f32 %v4500_v11, %v4165_v44  ;;  %15416 = vmatprep.mubr.msk.f32.mxu0 %vm598_vm1, %v4849_v45  ;;  %v4757_v2 = vsel %vm4693_vm5, %v4661_v48, %v4725_v33  ;;  %v15286_v19 = vpop.f32.mrf.mxu1  ;;  %v18718_v46 = vld [vmem:[#allocation3 + $0x68] sm:$0xff]  ;;  %v4850_v1 = vmul.f32 %v18710_v23, %v22994_v4 }
 0x276   : > { %vm4696_vm6 = vcmp.ge.f32.partialorder %v4664_v32, 0.0  ;;  %v4728_v50 = vmul.f32 0.1, %v4664_v32  ;;  %v4663_v16 = vadd.f32 %v18528_v31, %v4624_v30  ;;  %22993 = vst [vmem:[#allocation162_spill] sm:$0xff] %v18718_v46  ;;  %4789 = vst.msk [vmem:[#allocation3 + $0x88] sm:$0xff] %vm598_vm1, %v4757_v2  ;;  %v4170_v44 = vadd.f32 %v15286_v19, %v18523_v47  ;;  %15369 = vmatprep.mubr.msk.f32.mxu1 %vm598_vm1, %v18718_v46  ;;  %v18728_v48 = vld [vmem:[#allocation3 + $0x67] sm:$0xff]  ;;  %v4510_v24 = vpop.f32.mrf.mxu0 }
 0x277   : > { %v4666_v57 = vadd.f32 %v18528_v31, %v4627_v34  ;;  %v4626_v3 = vmul.f32 %v18507_v20, %v4587_v29  ;;  %v4590_v58 = vadd.f32 %v15333_v38, %v4168_v52  ;;  %22995 = vst [vmem:[#allocation47_spill] sm:$0xff] %v18730_v61  ;;  %v4098_v41 = vpop.f32.mrf.mxu1  ;;  %v18732_v45 = vld [vmem:[#allocation3 + $0x6f] sm:$0xff]  ;;  %v4589_v11 = vadd.f32 %v4510_v24, %v4167_v17 }
 0x278   : > { %v4760_v0 = vsel %vm4696_vm6, %v4664_v32, %v4728_v50  ;;  %vm4695_vm7 = vcmp.ge.f32.partialorder %v4663_v16, 0.0  ;;  %v4727_v12 = vmul.f32 0.1, %v4663_v16  ;;  %15417 = vmatmul.mubr.msk.f32.gmra.mxu0 %vm598_vm1, %v4850_v1  ;;  %15370 = vmatmul.mubr.msk.f32.gmra.mxu1 %vm598_vm1, %v18730_v61  ;;  %v4169_v32 = vadd.f32 %v4098_v41, %v18534_v62  ;;  %v18740_v52 = vld [vmem:[#allocation3 + $0x78] sm:$0xff]  ;;  %v22997_v34 = vld [vmem:[#allocation88_spill] sm:$0xff]  ;;  %v15336_v50 = vpop.f32.mrf.mxu0  ;;  %v22998_v62 = vld [vmem:[#allocation87_spill] sm:$0xff] }
 0x279   : > { %4792 = vst.msk [vmem:[#allocation3 + $0xa0] sm:$0xff] %vm598_vm1, %v4760_v0  ;;  %vm4698_vm8 = vcmp.ge.f32.partialorder %v4666_v57, 0.0  ;;  %v4730_v33 = vmul.f32 0.1, %v4666_v57  ;;  %v4665_v47 = vadd.f32 %v18528_v31, %v4626_v3  ;;  %22996 = vst [vmem:[#allocation43_spill] sm:$0xff] %v18740_v52  ;;  %v4629_v14 = vmul.f32 %v18507_v20, %v4590_v58  ;;  %v15289_v2 = vpop.f32.mrf.mxu1  ;;  %15372 = vmatprep.mubr.msk.f32.mxu1 %vm598_vm1, %v18740_v52  ;;  %v18757_v41 = vld [vmem:[#allocation3 + $0x77] sm:$0xff] }
 0x27a   : > { %v4759_v30 = vsel %vm4695_vm7, %v4663_v16, %v4727_v12  ;;  %v4851_v29 = vmul.f32 %v18728_v48, %v22997_v34  ;;  %v4852_v3 = vmul.f32 %v18732_v45, %v22998_v62  ;;  %v4628_v16 = vmul.f32 %v18507_v20, %v4589_v11  ;;  %v18755_v12 = vld [vmem:[#allocation3 + $0x80] sm:$0xff] }
 0x27b   : > { %4791 = vst.msk [vmem:[#allocation3 + $0x98] sm:$0xff] %vm598_vm1, %v4759_v30  ;;  %v4762_v19 = vsel %vm4698_vm8, %v4666_v57, %v4730_v33  ;;  %vm4697_vm9 = vcmp.ge.f32.partialorder %v4665_v47, 0.0  ;;  %v4729_v38 = vmul.f32 0.1, %v4665_v47  ;;  %v4668_v17 = vadd.f32 %v18528_v31, %v4629_v14  ;;  %22999 = vst [vmem:[#allocation155_spill] sm:$0xff] %v18755_v12  ;;  %v4108_v58 = vpop.f32.mrf.mxu1  ;;  %v4520_v57 = vpop.f32.mrf.mxu0  ;;  %v18759_v24 = vld [vmem:[#allocation3 + $0x7f] sm:$0xff] }
 0x27c   : > { %4794 = vst.msk [vmem:[#allocation3 + $0xb0] sm:$0xff] %vm598_vm1, %v4762_v19  ;;  %15419 = vmatprep.mubr.msk.f32.mxu0 %vm598_vm1, %v4851_v29  ;;  %v4172_v1 = vadd.f32 %v15289_v2, %v18539_v28  ;;  %v4592_v0 = vadd.f32 %v15336_v50, %v4170_v44  ;;  %15373 = vmatmul.mubr.msk.f32.gmra.mxu1 %vm598_vm1, %v18755_v12  ;;  %v23001_v19 = vld [vmem:[#allocation94_spill] sm:$0xff] }
 0x27d   : > { %v4761_v33 = vsel %vm4697_vm9, %v4665_v47, %v4729_v38  ;;  %15420 = vmatmul.mubr.msk.f32.gmra.mxu0 %vm598_vm1, %v4852_v3  ;;  %v4171_v30 = vadd.f32 %v4108_v58, %v18544_v13  ;;  %v4591_v14 = vadd.f32 %v4520_v57, %v4169_v32  ;;  %vm4700_vm10 = vcmp.ge.f32.partialorder %v4668_v17, 0.0  ;;  %v15292_v29 = vpop.f32.mrf.mxu1  ;;  %v15339_v2 = vpop.f32.mrf.mxu0  ;;  %v18768_v50 = vld [vmem:[#allocation3 + $0x88] sm:$0xff]  ;;  %v23002_v3 = vld [vmem:[#allocation93_spill] sm:$0xff]  ;;  %v18779_v57 = vld [vmem:[#allocation3 + $0x90] sm:$0xff] }
 0x27e   : > { %4793 = vst.msk [vmem:[#allocation3 + $0xa8] sm:$0xff] %vm598_vm1, %v4761_v33  ;;  %v4732_v28 = vmul.f32 0.1, %v4668_v17  ;;  %v4667_v44 = vadd.f32 %v18528_v31, %v4628_v16  ;;  %v4631_v11 = vmul.f32 %v18507_v20, %v4592_v0  ;;  %23000 = vst [vmem:[#allocation45_spill] sm:$0xff] %v18768_v50  ;;  %v4853_v38 = vmul.f32 %v18757_v41, %v23001_v19  ;;  %v18781_v12 = vld [vmem:[#allocation3 + $0x87] sm:$0xff] }
 0x27f   : > { %v4630_v47 = vmul.f32 %v18507_v20, %v4591_v14  ;;  %v4854_v13 = vmul.f32 %v18759_v24, %v23002_v3  ;;  %v4174_v32 = vadd.f32 %v15292_v29, %v18551_v43  ;;  %15375 = vmatprep.mubr.msk.f32.mxu1 %vm598_vm1, %v18768_v50  ;;  %23003 = vst [vmem:[#allocation172_spill] sm:$0xff] %v18779_v57  ;;  %v4118_v33 = vpop.f32.mrf.mxu1  ;;  %v4530_v14 = vpop.f32.mrf.mxu0 }
 0x280   : > { %v4764_v16 = vsel %vm4700_vm10, %v4668_v17, %v4732_v28  ;;  %vm4699_vm11 = vcmp.ge.f32.partialorder %v4667_v44, 0.0  ;;  %v4731_v0 = vmul.f32 0.1, %v4667_v44  ;;  %v4670_v58 = vadd.f32 %v18528_v31, %v4631_v11  ;;  %15422 = vmatprep.mubr.msk.f32.mxu0 %vm598_vm1, %v4853_v38  ;;  %15376 = vmatmul.mubr.msk.f32.gmra.mxu1 %vm598_vm1, %v18779_v57  ;;  %v18789_v28 = vld [vmem:[#allocation3 + $0x8f] sm:$0xff] }
 0x281   : > { %4796 = vst.msk [vmem:[#allocation3 + $0xc0] sm:$0xff] %vm598_vm1, %v4764_v16  ;;  %v4669_v52 = vadd.f32 %v18528_v31, %v4630_v47  ;;  %v4594_v43 = vadd.f32 %v15339_v2, %v4172_v1  ;;  %v4173_v17 = vadd.f32 %v4118_v33, %v18559_v37  ;;  %15423 = vmatmul.mubr.msk.f32.gmra.mxu0 %vm598_vm1, %v4854_v13  ;;  %v15295_v61 = vpop.f32.mrf.mxu1  ;;  %v15342_v16 = vpop.f32.mrf.mxu0  ;;  %v23005_v47 = vld [vmem:[#allocation100_spill] sm:$0xff]  ;;  %v23006_v13 = vld [vmem:[#allocation99_spill] sm:$0xff] }
 0x282   : > { %v4763_v11 = vsel %vm4699_vm11, %v4667_v44, %v4731_v0  ;;  %vm4702_vm12 = vcmp.ge.f32.partialorder %v4670_v58, 0.0  ;;  %v4734_v29 = vmul.f32 0.1, %v4670_v58  ;;  %v4593_v50 = vadd.f32 %v4530_v14, %v4171_v30  ;;  %v18792_v46 = vld [vmem:[#allocation3 + $0x98] sm:$0xff]  ;;  %v18806_v14 = vld [vmem:[#allocation3 + $0xa0] sm:$0xff] }
 0x283   : > { %23004 = vst [vmem:[#allocation49_spill] sm:$0xff] %v18792_v46  ;;  %4795 = vst.msk [vmem:[#allocation3 + $0xb8] sm:$0xff] %vm598_vm1, %v4763_v11  ;;  %vm4701_vm13 = vcmp.ge.f32.partialorder %v4669_v52, 0.0  ;;  %v4733_v1 = vmul.f32 0.1, %v4669_v52  ;;  %v4633_v2 = vmul.f32 %v18507_v20, %v4594_v43  ;;  %v4855_v37 = vmul.f32 %v18781_v12, %v23005_v47  ;;  %15378 = vmatprep.mubr.msk.f32.mxu1 %vm598_vm1, %v18792_v46  ;;  %v18800_v44 = vld [vmem:[#allocation3 + $0x97] sm:$0xff]  ;;  %v4128_v11 = vpop.f32.mrf.mxu1  ;;  %v4540_v43 = vpop.f32.mrf.mxu0 }
 0x284   : > { %v4766_v38 = vsel %vm4702_vm12, %v4670_v58, %v4734_v29  ;;  %v4632_v30 = vmul.f32 %v18507_v20, %v4593_v50  ;;  %v4856_v0 = vmul.f32 %v18789_v28, %v23006_v13  ;;  %v4176_v33 = vadd.f32 %v15295_v61, %v18566_v18  ;;  %23007 = vst [vmem:[#allocation46_spill] sm:$0xff] %v18806_v14  ;;  %v18808_v57 = vld [vmem:[#allocation3 + $0x9f] sm:$0xff] }
 0x285   : > { %4798 = vst.msk [vmem:[#allocation3 + $0xd0] sm:$0xff] %vm598_vm1, %v4766_v38  ;;  %v4765_v40 = vsel %vm4701_vm13, %v4669_v52, %v4733_v1  ;;  %v4672_v46 = vadd.f32 %v18528_v31, %v4633_v2  ;;  %15425 = vmatprep.mubr.msk.f32.mxu0 %vm598_vm1, %v4855_v37  ;;  %v4596_v58 = vadd.f32 %v15342_v16, %v4174_v32  ;;  %v18815_v50 = vld [vmem:[#allocation3 + $0xa8] sm:$0xff]  ;;  %v23009_v52 = vld [vmem:[#allocation106_spill] sm:$0xff]  ;;  %v15298_v2 = vpop.f32.mrf.mxu1  ;;  %v15345_v37 = vpop.f32.mrf.mxu0  ;;  %v23010_v38 = vld [vmem:[#allocation105_spill] sm:$0xff] }
 0x286   : > { %15379 = vmatmul.mubr.msk.f32.gmra.mxu1 %vm598_vm1, %v18806_v14  ;;  %23008 = vst [vmem:[#allocation48_spill] sm:$0xff] %v18815_v50  ;;  %4797 = vst.msk [vmem:[#allocation3 + $0xc8] sm:$0xff] %vm598_vm1, %v4765_v40  ;;  %v4671_v18 = vadd.f32 %v18528_v31, %v4632_v30  ;;  %15426 = vmatmul.mubr.msk.f32.gmra.mxu0 %vm598_vm1, %v4856_v0  ;;  %v4175_v61 = vadd.f32 %v4128_v11, %v18578_v55  ;;  %v18828_v40 = vld [vmem:[#allocation3 + $0xa7] sm:$0xff]  ;;  %v18833_v0 = vld [vmem:[#allocation3 + $0xb0] sm:$0xff] }
 0x287   : > { %v4595_v29 = vadd.f32 %v4540_v43, %v4173_v17  ;;  %v4857_v1 = vmul.f32 %v18800_v44, %v23009_v52  ;;  %vm4704_vm14 = vcmp.ge.f32.partialorder %v4672_v46, 0.0  ;;  %v4736_v32 = vmul.f32 0.1, %v4672_v46  ;;  %15381 = vmatprep.mubr.msk.f32.mxu1 %vm598_vm1, %v18815_v50  ;;  %23011 = vst [vmem:[#allocation178_spill] sm:$0xff] %v18833_v0  ;;  %v4138_v11 = vpop.f32.mrf.mxu1  ;;  %v4550_v43 = vpop.f32.mrf.mxu0 }
 0x288   : > { %v4635_v16 = vmul.f32 %v18507_v20, %v4596_v58  ;;  %v4858_v14 = vmul.f32 %v18808_v57, %v23010_v38  ;;  %vm4703_vm15 = vcmp.ge.f32.partialorder %v4671_v18, 0.0  ;;  %v4735_v55 = vmul.f32 0.1, %v4671_v18  ;;  %v18835_v58 = vld [vmem:[#allocation3 + $0xaf] sm:$0xff] }
 0x289   : > { %v4634_v17 = vmul.f32 %v18507_v20, %v4595_v29  ;;  %15428 = vmatprep.mubr.msk.f32.mxu0 %vm598_vm1, %v4857_v1  ;;  %v4178_v30 = vadd.f32 %v15298_v2, %v18585_v42  ;;  %v4768_v59 = vsel %vm4704_vm14, %v4672_v46, %v4736_v32  ;;  %v4598_v50 = vadd.f32 %v15345_v37, %v4176_v33  ;;  %v23012_v2 = vld [vmem:[#allocation112_spill] sm:$0xff]  ;;  %v15348_v46 = vpop.f32.mrf.mxu0 }
 0x28a   : > { %v4674_v7 = vadd.f32 %v18528_v31, %v4635_v16  ;;  %15382 = vmatmul.mubr.msk.f32.gmra.mxu1 %vm598_vm1, %v18833_v0  ;;  %v4177_v26 = vadd.f32 %v4138_v11, %v18591_v27  ;;  %4800 = vst.msk [vmem:[#allocation3 + $0xe0] sm:$0xff] %vm598_vm1, %v4768_v59  ;;  %v4767_v29 = vsel %vm4703_vm15, %v4671_v18, %v4735_v55  ;;  %v18846_v32 = vld [vmem:[#allocation3 + $0xb8] sm:$0xff]  ;;  %v23014_v18 = vld [vmem:[#allocation111_spill] sm:$0xff]  ;;  %v23016_v0 = vld [vmem:[#allocation122_spill] sm:$0xff] }
 0x28b   : > { %v4673_v42 = vadd.f32 %v18528_v31, %v4634_v17  ;;  %15429 = vmatmul.mubr.msk.f32.gmra.mxu0 %vm598_vm1, %v4858_v14  ;;  %v4597_v1 = vadd.f32 %v4550_v43, %v4175_v61  ;;  %v4859_v38 = vmul.f32 %v18828_v40, %v23012_v2  ;;  %23013 = vst [vmem:[#allocation180_spill] sm:$0xff] %v18846_v32  ;;  %v18848_v33 = vld [vmem:[#allocation3 + $0xb7] sm:$0xff]  ;;  %4799 = vst.msk [vmem:[#allocation3 + $0xd8] sm:$0xff] %vm598_vm1, %v4767_v29  ;;  %v18856_v14 = vld [vmem:[#allocation3 + $0xbf] sm:$0xff]  ;;  %v4560_v11 = vpop.f32.mrf.mxu0  ;;  %v15353_v43 = vpop.f32.mrf.mxu1 }
 0x28c   : > { %vm4706_vm3 = vcmp.ge.f32.partialorder %v4674_v7, 0.0  ;;  %v4738_v27 = vmul.f32 0.1, %v4674_v7  ;;  %v4637_v59 = vmul.f32 %v18507_v20, %v4598_v50  ;;  %v4860_v37 = vmul.f32 %v18835_v58, %v23014_v18  ;;  %15384 = vmatprep.mubr.msk.f32.mxu1 %vm598_vm1, %v18846_v32  ;;  %v18860_v17 = vld [vmem:[#allocation3 + $0xc0] sm:$0xff] }
 0x28d   : > { %vm4705_vm4 = vcmp.ge.f32.partialorder %v4673_v42, 0.0  ;;  %v4737_v61 = vmul.f32 0.1, %v4673_v42  ;;  %v4636_v16 = vmul.f32 %v18507_v20, %v4597_v1  ;;  %15431 = vmatprep.mubr.msk.f32.mxu0 %vm598_vm1, %v4859_v38  ;;  %v4600_v55 = vadd.f32 %v15348_v46, %v4178_v30  ;;  %23015 = vst [vmem:[#allocation36_spill] sm:$0xff] %v18860_v17  ;;  %v18867_v2 = vld [vmem:[#allocation3 + $0xc8] sm:$0xff]  ;;  %v23018_v46 = vld [vmem:[#allocation121_spill] sm:$0xff] }
 0x28e   : > { %v4770_v50 = vsel %vm4706_vm3, %v4674_v7, %v4738_v27  ;;  %v4676_v29 = vadd.f32 %v18528_v31, %v4637_v59  ;;  %15385 = vmatmul.mubr.msk.f32.gmra.mxu1 %vm598_vm1, %v18860_v17  ;;  %v4599_v32 = vadd.f32 %v4560_v11, %v4177_v26  ;;  %v4861_v18 = vmul.f32 %v18848_v33, %v23016_v0  ;;  %v18869_v1 = vld [vmem:[#allocation3 + $0xc7] sm:$0xff]  ;;  %v15403_v27 = vpop.f32.mrf.mxu0 }
 0x28f   : > { %23017 = vst [vmem:[#allocation114_spill] sm:$0xff] %v18867_v2  ;;  %4802 = vst.msk [vmem:[#allocation3 + $0xf0] sm:$0xff] %vm598_vm1, %v4770_v50  ;;  %v4769_v38 = vsel %vm4705_vm4, %v4673_v42, %v4737_v61  ;;  %v4675_v30 = vadd.f32 %v18528_v31, %v4636_v16  ;;  %15432 = vmatmul.mubr.msk.f32.gmra.mxu0 %vm598_vm1, %v4860_v37  ;;  %v4639_v7 = vmul.f32 %v18507_v20, %v4600_v55  ;;  %v18885_v37 = vld [vmem:[#allocation3 + $0xcf] sm:$0xff]  ;;  %v23021_v50 = vld [vmem:[#allocation133_spill] sm:$0xff] }
 0x290   : > { %v4862_v26 = vmul.f32 %v18856_v14, %v23018_v46  ;;  %4801 = vst.msk [vmem:[#allocation3 + $0xe8] sm:$0xff] %vm598_vm1, %v4769_v38  ;;  %vm4708_vm5 = vcmp.ge.f32.partialorder %v4676_v29, 0.0  ;;  %v4740_v59 = vmul.f32 0.1, %v4676_v29  ;;  %v4638_v11 = vmul.f32 %v18507_v20, %v4599_v32  ;;  %15434 = vmatprep.mubr.msk.f32.mxu0 %vm598_vm1, %v4861_v18  ;;  %15387 = vmatprep.mubr.msk.f32.mxu1 %vm598_vm1, %v18867_v2  ;;  %v18888_v55 = vld [vmem:[#allocation3 + $0xd0] sm:$0xff] }
 0x291   : > { %v18883_v42 = vadd.f32 %v15403_v27, %v15353_v43  ;;  %vm4707_vm6 = vcmp.ge.f32.partialorder %v4675_v30, 0.0  ;;  %v4739_v61 = vmul.f32 0.1, %v4675_v30  ;;  %v4678_v16 = vadd.f32 %v18528_v31, %v4639_v7  ;;  %23020 = vst [vmem:[#allocation41_spill] sm:$0xff] %v18888_v55  ;;  %v23022_v43 = vld [vmem:[#allocation132_spill] sm:$0xff] }
 0x292   : > { %v4863_v38 = vmul.f32 %v18869_v1, %v23021_v50  ;;  %v4772_v17 = vsel %vm4708_vm5, %v4676_v29, %v4740_v59  ;;  %v4677_v20 = vadd.f32 %v18528_v31, %v4638_v11  ;;  %15388 = vmatmul.mubr.msk.f32.gmra.mxu1 %vm598_vm1, %v18888_v55  ;;  %v4864_v7 = vmul.f32 %v18885_v37, %v23022_v43  ;;  %v18899_v27 = vld [vmem:[#allocation3 + $0xd8] sm:$0xff]  ;;  %v18911_v59 = vld [vmem:[#allocation3 + $0xe0] sm:$0xff] }
 0x293   : > { %23019 = vst [vmem:[#allocation38_spill] sm:$0xff] %v18883_v42  ;;  %4804 = vst.msk [vmem:[#allocation3 + $0x100] sm:$0xff] %vm598_vm1, %v4772_v17  ;;  %v4771_v32 = vsel %vm4707_vm6, %v4675_v30, %v4739_v61  ;;  %vm4710_vm7 = vcmp.ge.f32.partialorder %v4678_v16, 0.0  ;;  %v4742_v18 = vmul.f32 0.1, %v4678_v16  ;;  %15435 = vmatmul.mubr.msk.f32.gmra.mxu0 %vm598_vm1, %v4862_v26  ;;  %v18901_v42 = vld [vmem:[#allocation3 + $0xd7] sm:$0xff]  ;;  %15390 = vmatprep.mubr.msk.f32.mxu1 %vm598_vm1, %v18899_v27 }
 0x294   : > { %23023 = vst [vmem:[#allocation145_spill] sm:$0xff] %v18899_v27  ;;  %4803 = vst.msk [vmem:[#allocation3 + $0xf8] sm:$0xff] %vm598_vm1, %v4771_v32  ;;  %vm4709_vm8 = vcmp.ge.f32.partialorder %v4677_v20, 0.0  ;;  %v4741_v31 = vmul.f32 0.1, %v4677_v20  ;;  %15437 = vmatprep.mubr.msk.f32.mxu0 %vm598_vm1, %v4863_v38  ;;  %v23024_v17 = vld [vmem:[#allocation144_spill] sm:$0xff] }
 0x295   : > { %v4865_v29 = vmul.f32 %v18901_v42, %v23024_v17  ;;  %v18909_v30 = vld [vmem:[#allocation3 + $0xdf] sm:$0xff]  ;;  %v4774_v26 = vsel %vm4710_vm7, %v4678_v16, %v4742_v18  ;;  %23025 = vst [vmem:[#allocation85_spill] sm:$0xff] %v18911_v59  ;;  %v23026_v61 = vld [vmem:[#allocation143_spill] sm:$0xff] }
 0x296   : > { %4806 = vst.msk [vmem:[#allocation3 + $0x110] sm:$0xff] %vm598_vm1, %v4774_v26  ;;  %v4773_v11 = vsel %vm4709_vm8, %v4677_v20, %v4741_v31  ;;  %15391 = vmatmul.mubr.msk.f32.gmra.mxu1 %vm598_vm1, %v18911_v59  ;;  %v4866_v38 = vmul.f32 %v18909_v30, %v23026_v61  ;;  %v23028_v16 = vld [vmem:[#allocation154_spill] sm:$0xff]  ;;  %v18931_v31 = vld [vmem:[#allocation3 + $0xf0] sm:$0xff]  ;;  %v23031_v26 = vld [vmem:[#allocation153_spill] sm:$0xff] }
 0x297   : > { %4805 = vst.msk [vmem:[#allocation3 + $0x108] sm:$0xff] %vm598_vm1, %v4773_v11  ;;  %15438 = vmatmul.mubr.msk.f32.gmra.mxu0 %vm598_vm1, %v4864_v7  ;;  %v18920_v32 = vld [vmem:[#allocation3 + $0xe8] sm:$0xff]  ;;  %23030 = vst [vmem:[#allocation110_spill] sm:$0xff] %v18931_v31  ;;  %v5549_v61 = vld [vmem:[#allocation3 + $0x11] sm:$0xff] }
 0x298   : > { %23027 = vst [vmem:[#allocation125_spill] sm:$0xff] %v18920_v32  ;;  %v18922_v27 = vld [vmem:[#allocation3 + $0xe7] sm:$0xff]  ;;  %15440 = vmatprep.mubr.msk.f32.mxu0 %vm598_vm1, %v4865_v29  ;;  %15393 = vmatprep.mubr.msk.f32.mxu1 %vm598_vm1, %v18920_v32  ;;  %v18929_v18 = vld [vmem:[#allocation3 + $0xef] sm:$0xff] }
 0x299   : > { %v4867_v20 = vmul.f32 %v18922_v27, %v23028_v16  ;;  %23029 = vst [vmem:[#allocation103_spill] sm:$0xff] %v18929_v18  ;;  %v5548_v7 = vld [vmem:[#allocation3 + $0x9] sm:$0xff]  ;;  %v4868_v11 = vmul.f32 %v18929_v18, %v23031_v26  ;;  %v18958_v26 = vld [vmem:[#allocation3 + $0x19] sm:$0xff]  ;;  %v18962_v18 = vld [vmem:[#allocation3 + $0x21] sm:$0xff] }
 0x29a   : > { %15394 = vmatmul.mubr.msk.f32.gmra.mxu1 %vm598_vm1, %v18931_v31  ;;  %v23034_v32 = vld [vmem:[#allocation164_spill] sm:$0xff]  ;;  %v18949_v31 = vld [vmem:[#allocation3 + $0x100] sm:$0xff]  ;;  %23038 = vst [vmem:[#allocation61_spill] sm:$0xff] %v18958_v26 }
 0x29b   : > { %15441 = vmatmul.mubr.msk.f32.gmra.mxu0 %vm598_vm1, %v4866_v38  ;;  %v18938_v29 = vld [vmem:[#allocation3 + $0xf8] sm:$0xff]  ;;  %23035 = vst [vmem:[#allocation104_spill] sm:$0xff] %v18949_v31 }
 0x29c   : > { %23032 = vst [vmem:[#allocation92_spill] sm:$0xff] %v18938_v29  ;;  %v18940_v59 = vld [vmem:[#allocation3 + $0xf7] sm:$0xff]  ;;  %15443 = vmatprep.mubr.msk.f32.mxu0 %vm598_vm1, %v4867_v20  ;;  %15396 = vmatprep.mubr.msk.f32.mxu1 %vm598_vm1, %v18938_v29  ;;  %v18947_v2 = vld [vmem:[#allocation3 + $0xff] sm:$0xff]  ;;  %v23037_v20 = vld [vmem:[#allocation163_spill] sm:$0xff] }
 0x29d   : > { %23033 = vst [vmem:[#allocation98_spill] sm:$0xff] %v18940_v59  ;;  %v4869_v55 = vmul.f32 %v18940_v59, %v23034_v32  ;;  %v23036_v38 = vld [vmem:[#allocation53_spill] sm:$0xff]  ;;  %v4870_v29 = vmul.f32 %v18947_v2, %v23037_v20  ;;  %v23039_v32 = vld [vmem:[#allocation55_spill] sm:$0xff]  ;;  %v18974_v20 = vld [vmem:[%s22055_s4 + $0x30] sm:$0xff] }
 0x29e   : > { %v5580_v16 = vmul.f32 %v5548_v7, %v23036_v38  ;;  %15397 = vmatmul.mubr.msk.f32.gmra.mxu1 %vm598_vm1, %v18949_v31  ;;  %v5581_v59 = vmul.f32 %v5549_v61, %v23039_v32  ;;  %v23040_v7 = vld [vmem:[#allocation54_spill] sm:$0xff]  ;;  %v23041_v31 = vld [vmem:[#allocation60_spill] sm:$0xff] }
 0x29f   : > { %15444 = vmatmul.mubr.msk.f32.gmra.mxu0 %vm598_vm1, %v4868_v11  ;;  %v5999_v38 = vmul.f32 %v18606_v51, %v23040_v7  ;;  %v5582_v11 = vmul.f32 %v18958_v26, %v23041_v31  ;;  %v23042_v51 = vld [vmem:[#allocation59_spill] sm:$0xff]  ;;  %v23043_v61 = vld [vmem:[#allocation56_spill] sm:$0xff]  ;;  %v23044_v31 = vld [vmem:[#allocation66_spill] sm:$0xff] }
 0x2a0   : > { %15451 = vmatprep.mubr.msk.f32.mxu1 %vm598_vm1, %v5580_v16  ;;  %15446 = vmatprep.mubr.msk.f32.mxu0 %vm598_vm1, %v4869_v55  ;;  %v18969_v16 = vld [vmem:[#allocation3 + $0x29] sm:$0xff]  ;;  %v6000_v7 = vmul.f32 %v18608_v5, %v23043_v61  ;;  %v18988_v26 = vld [vmem:[#allocation3 + $0x31] sm:$0xff]  ;;  %v19011_v61 = vld [vmem:[#allocation3 + $0x41] sm:$0xff] }
 0x2a1   : > { %v16311_v55 = vld [vmem:[%s22055_s4 + $0x20] sm:$0xff]  ;;  %v5584_v32 = vmul.f32 %v18969_v16, %v23044_v31  ;;  %v23045_v5 = vld [vmem:[#allocation65_spill] sm:$0xff] }
 0x2a2   : > { %15452 = vmatmul.mubr.msk.f32.vlgmr.msra.gmra.mxu1 %vm598_vm1, %v5581_v59  ;;  %v5583_v59 = vmul.f32 %v18962_v18, %v23042_v51 }
 0x2a3   : > { %15447 = vmatmul.mubr.msk.f32.gmra.mxu0 %vm598_vm1, %v4870_v29  ;;  %15550 = vmatpush3.msra.mxu1 %v16311_v55  ;;  %v6001_v29 = vmul.f32 %v18630_v39, %v22978_v8  ;;  %v5585_v55 = vmul.f32 %v18988_v26, %v23045_v5  ;;  %v6002_v39 = vmul.f32 %v18632_v15, %v22979_v10  ;;  %v23048_v10 = vld [vmem:[#allocation78_spill] sm:$0xff] }
 0x2a4   : > { %15501 = vmatprep.mubr.msk.f32.mxu0 %vm598_vm1, %v5999_v38  ;;  %15454 = vmatprep.mubr.msk.f32.mxu1 %vm598_vm1, %v5582_v11  ;;  %v18994_v38 = vld [vmem:[#allocation3 + $0x39] sm:$0xff]  ;;  %v18999_v11 = vld [vmem:[%s22055_s4 + $0x38] sm:$0xff] }
 0x2a5   : > { %15649 = vmatprep.subr.mxu1 %v18974_v20 }
 0x2a6   : > { %15455 = vmatmul.mubr.msk.f32.gmra.mxu1 %vm598_vm1, %v5583_v59  ;;  %v23046_v59 = vld [vmem:[#allocation72_spill] sm:$0xff] }
 0x2a7   : > { %15502 = vmatmul.mubr.msk.f32.vlgmr.msra.gmra.mxu0 %vm598_vm1, %v6000_v7  ;;  %15457 = vmatprep.mubr.msk.f32.mxu1 %vm598_vm1, %v5584_v32  ;;  %v5586_v8 = vmul.f32 %v18994_v38, %v23046_v59  ;;  %v6003_v32 = vmul.f32 %v18648_v9, %v22981_v54  ;;  %v19017_v7 = vld [vmem:[#allocation3 + $0x49] sm:$0xff]  ;;  %v19028_v9 = vld [vmem:[#allocation3 + $0x51] sm:$0xff] }
 0x2a8   : > { %15504 = vmatprep.mubr.msk.f32.mxu0 %vm598_vm1, %v6001_v29  ;;  %15600 = vmatpush3.msra.mxu0 %v18599_v53  ;;  %v23047_v53 = vld [vmem:[#allocation71_spill] sm:$0xff]  ;;  %v6004_v29 = vmul.f32 %v18655_v6, %v22983_v56  ;;  %v5588_v59 = vmul.f32 %v19017_v7, %v23048_v10  ;;  %v23050_v56 = vld [vmem:[#allocation84_spill] sm:$0xff] }
 0x2a9   : > { %15699 = vmatprep.subr.mxu0 %v18999_v11  ;;  %v5587_v15 = vmul.f32 %v19011_v61, %v23047_v53 }
 0x2aa   : > { %15458 = vmatmul.mubr.msk.f32.gmra.mxu1 %vm598_vm1, %v5585_v55  ;;  %v6005_v55 = vmul.f32 %v18666_v63, %v22984_v35  ;;  %v19044_v63 = vld [vmem:[#allocation3 + $0x61] sm:$0xff] }
 0x2ab   : > { %15505 = vmatmul.mubr.msk.f32.gmra.mxu0 %vm598_vm1, %v6002_v39  ;;  %15460 = vmatprep.mubr.msk.f32.mxu1 %vm598_vm1, %v5586_v8  ;;  %v19033_v39 = vld [vmem:[#allocation3 + $0x59] sm:$0xff] }
 0x2ac   : > { %15507 = vmatprep.mubr.msk.f32.mxu0 %vm598_vm1, %v6003_v32  ;;  %v23049_v8 = vld [vmem:[#allocation77_spill] sm:$0xff]  ;;  %v6006_v32 = vmul.f32 %v18676_v60, %v22986_v36  ;;  %v5590_v54 = vmul.f32 %v19033_v39, %v23050_v56  ;;  %v23052_v36 = vld [vmem:[#allocation90_spill] sm:$0xff] }
 0x2ad   : > { %v5589_v6 = vmul.f32 %v19028_v9, %v23049_v8 }
 0x2ae   : > { %15461 = vmatmul.mubr.msk.f32.gmra.mxu1 %vm598_vm1, %v5587_v15  ;;  %v6007_v15 = vmul.f32 %v18697_v25, %v22988_v21  ;;  %v19060_v25 = vld [vmem:[#allocation3 + $0x71] sm:$0xff] }
 0x2af   : > { %15508 = vmatmul.mubr.msk.f32.gmra.mxu0 %vm598_vm1, %v6004_v29  ;;  %15463 = vmatprep.mubr.msk.f32.mxu1 %vm598_vm1, %v5588_v59  ;;  %v19049_v29 = vld [vmem:[#allocation3 + $0x69] sm:$0xff] }
 0x2b0   : > { %15510 = vmatprep.mubr.msk.f32.mxu0 %vm598_vm1, %v6005_v55  ;;  %v23051_v59 = vld [vmem:[#allocation83_spill] sm:$0xff]  ;;  %v6008_v55 = vmul.f32 %v18710_v23, %v22989_v49  ;;  %v5592_v35 = vmul.f32 %v19049_v29, %v23052_v36  ;;  %v23054_v49 = vld [vmem:[#allocation96_spill] sm:$0xff] }
 0x2b1   : > { %v5591_v60 = vmul.f32 %v19044_v63, %v23051_v59 }
 0x2b2   : > { %15464 = vmatmul.mubr.msk.f32.gmra.mxu1 %vm598_vm1, %v5589_v6  ;;  %v6009_v6 = vmul.f32 %v18728_v48, %v22991_v22  ;;  %v19076_v48 = vld [vmem:[#allocation3 + $0x81] sm:$0xff] }
 0x2b3   : > { %15511 = vmatmul.mubr.msk.f32.gmra.mxu0 %vm598_vm1, %v6006_v32  ;;  %15466 = vmatprep.mubr.msk.f32.mxu1 %vm598_vm1, %v5590_v54  ;;  %v19065_v32 = vld [vmem:[#allocation3 + $0x79] sm:$0xff] }
 0x2b4   : > { %15513 = vmatprep.mubr.msk.f32.mxu0 %vm598_vm1, %v6007_v15  ;;  %v23053_v54 = vld [vmem:[#allocation89_spill] sm:$0xff]  ;;  %v6010_v15 = vmul.f32 %v18732_v45, %v22994_v4  ;;  %v5594_v21 = vmul.f32 %v19065_v32, %v23054_v49  ;;  %v23056_v4 = vld [vmem:[#allocation102_spill] sm:$0xff] }
 0x2b5   : > { %v5593_v23 = vmul.f32 %v19060_v25, %v23053_v54 }
 0x2b6   : > { %15467 = vmatmul.mubr.msk.f32.gmra.mxu1 %vm598_vm1, %v5591_v60  ;;  %v6011_v60 = vmul.f32 %v18757_v41, %v22997_v34  ;;  %v19092_v41 = vld [vmem:[#allocation3 + $0x91] sm:$0xff] }
 0x2b7   : > { %15514 = vmatmul.mubr.msk.f32.gmra.mxu0 %vm598_vm1, %v6008_v55  ;;  %15469 = vmatprep.mubr.msk.f32.mxu1 %vm598_vm1, %v5592_v35  ;;  %v19081_v55 = vld [vmem:[#allocation3 + $0x89] sm:$0xff] }
 0x2b8   : > { %15516 = vmatprep.mubr.msk.f32.mxu0 %vm598_vm1, %v6009_v6  ;;  %v23055_v35 = vld [vmem:[#allocation95_spill] sm:$0xff]  ;;  %v6012_v6 = vmul.f32 %v18759_v24, %v22998_v62  ;;  %v5596_v22 = vmul.f32 %v19081_v55, %v23056_v4  ;;  %v23058_v62 = vld [vmem:[#allocation108_spill] sm:$0xff] }
 0x2b9   : > { %v5595_v45 = vmul.f32 %v19076_v48, %v23055_v35 }
 0x2ba   : > { %15470 = vmatmul.mubr.msk.f32.gmra.mxu1 %vm598_vm1, %v5593_v23  ;;  %v6013_v23 = vmul.f32 %v18781_v12, %v23001_v19  ;;  %v19108_v12 = vld [vmem:[#allocation3 + $0xa1] sm:$0xff] }
 0x2bb   : > { %15517 = vmatmul.mubr.msk.f32.gmra.mxu0 %vm598_vm1, %v6010_v15  ;;  %15472 = vmatprep.mubr.msk.f32.mxu1 %vm598_vm1, %v5594_v21  ;;  %v19097_v15 = vld [vmem:[#allocation3 + $0x99] sm:$0xff] }
 0x2bc   : > { %15519 = vmatprep.mubr.msk.f32.mxu0 %vm598_vm1, %v6011_v60  ;;  %v23057_v21 = vld [vmem:[#allocation101_spill] sm:$0xff]  ;;  %v6014_v60 = vmul.f32 %v18789_v28, %v23002_v3  ;;  %v5598_v34 = vmul.f32 %v19097_v15, %v23058_v62 }
 0x2bd   : > { %v5597_v24 = vmul.f32 %v19092_v41, %v23057_v21  ;;  %v23060_v3 = vld [vmem:[#allocation117_spill] sm:$0xff] }
 0x2be   : > { %15473 = vmatmul.mubr.msk.f32.gmra.mxu1 %vm598_vm1, %v5595_v45  ;;  %v6015_v45 = vmul.f32 %v18800_v44, %v23005_v47  ;;  %v19124_v44 = vld [vmem:[#allocation3 + $0xb1] sm:$0xff]  ;;  %v23063_v47 = vld [vmem:[#allocation127_spill] sm:$0xff] }
 0x2bf   : > { %15520 = vmatmul.mubr.msk.f32.gmra.mxu0 %vm598_vm1, %v6012_v6  ;;  %15475 = vmatprep.mubr.msk.f32.mxu1 %vm598_vm1, %v5596_v22  ;;  %v19113_v6 = vld [vmem:[#allocation3 + $0xa9] sm:$0xff] }
 0x2c0   : > { %15522 = vmatprep.mubr.msk.f32.mxu0 %vm598_vm1, %v6013_v23  ;;  %v23059_v22 = vld [vmem:[#allocation107_spill] sm:$0xff]  ;;  %v6016_v23 = vmul.f32 %v18808_v57, %v23006_v13  ;;  %v5600_v19 = vmul.f32 %v19113_v6, %v23060_v3 }
 0x2c1   : > { %v5599_v28 = vmul.f32 %v19108_v12, %v23059_v22 }
 0x2c2   : > { %15476 = vmatmul.mubr.msk.f32.gmra.mxu1 %vm598_vm1, %v5597_v24  ;;  %v6017_v24 = vmul.f32 %v18828_v40, %v23009_v52  ;;  %v19140_v40 = vld [vmem:[#allocation3 + $0xc1] sm:$0xff] }
 0x2c3   : > { %15523 = vmatmul.mubr.msk.f32.gmra.mxu0 %vm598_vm1, %v6014_v60  ;;  %15478 = vmatprep.mubr.msk.f32.mxu1 %vm598_vm1, %v5598_v34  ;;  %v19129_v60 = vld [vmem:[#allocation3 + $0xb9] sm:$0xff]  ;;  %v23061_v34 = vld [vmem:[#allocation116_spill] sm:$0xff] }
 0x2c4   : > { %15525 = vmatprep.mubr.msk.f32.mxu0 %vm598_vm1, %v6015_v45  ;;  %v5601_v57 = vmul.f32 %v19124_v44, %v23061_v34  ;;  %v23062_v45 = vld [vmem:[#allocation105_spill] sm:$0xff]  ;;  %v5602_v3 = vmul.f32 %v19129_v60, %v23063_v47  ;;  %v23067_v47 = vld [vmem:[#allocation139_spill] sm:$0xff] }
 0x2c5   : > { %v6018_v13 = vmul.f32 %v18835_v58, %v23062_v45 }
 0x2c6   : > { %15479 = vmatmul.mubr.msk.f32.gmra.mxu1 %vm598_vm1, %v5599_v28  ;;  %v23064_v28 = vld [vmem:[#allocation112_spill] sm:$0xff] }
 0x2c7   : > { %15526 = vmatmul.mubr.msk.f32.gmra.mxu0 %vm598_vm1, %v6016_v23  ;;  %15481 = vmatprep.mubr.msk.f32.mxu1 %vm598_vm1, %v5600_v19  ;;  %v6019_v52 = vmul.f32 %v18848_v33, %v23064_v28  ;;  %v19145_v23 = vld [vmem:[#allocation3 + $0xc9] sm:$0xff]  ;;  %v23065_v19 = vld [vmem:[#allocation126_spill] sm:$0xff]  ;;  %v19156_v33 = vld [vmem:[#allocation3 + $0xd1] sm:$0xff] }
 0x2c8   : > { %15528 = vmatprep.mubr.msk.f32.mxu0 %vm598_vm1, %v6017_v24  ;;  %v5603_v58 = vmul.f32 %v19140_v40, %v23065_v19  ;;  %v23066_v24 = vld [vmem:[#allocation111_spill] sm:$0xff]  ;;  %v5604_v34 = vmul.f32 %v19145_v23, %v23067_v47 }
 0x2c9   : > { %v6020_v45 = vmul.f32 %v18856_v14, %v23066_v24  ;;  %v6022_v14 = vmul.f32 %v18885_v37, %v23018_v46  ;;  %v23069_v24 = vld [vmem:[#allocation149_spill] sm:$0xff]  ;;  %v23072_v46 = vld [vmem:[#allocation159_spill] sm:$0xff] }
 0x2ca   : > { %15482 = vmatmul.mubr.msk.f32.gmra.mxu1 %vm598_vm1, %v5601_v57  ;;  %v6021_v57 = vmul.f32 %v18869_v1, %v23016_v0  ;;  %v19172_v1 = vld [vmem:[#allocation3 + $0xe1] sm:$0xff] }
 0x2cb   : > { %15529 = vmatmul.mubr.msk.f32.gmra.mxu0 %vm598_vm1, %v6018_v13  ;;  %15484 = vmatprep.mubr.msk.f32.mxu1 %vm598_vm1, %v5602_v3  ;;  %v19161_v13 = vld [vmem:[#allocation3 + $0xd9] sm:$0xff] }
 0x2cc   : > { %15531 = vmatprep.mubr.msk.f32.mxu0 %vm598_vm1, %v6019_v52  ;;  %v23068_v3 = vld [vmem:[#allocation138_spill] sm:$0xff]  ;;  %v5606_v28 = vmul.f32 %v19161_v13, %v23069_v24 }
 0x2cd   : > { %v5605_v52 = vmul.f32 %v19156_v33, %v23068_v3 }
 0x2ce   : > { %15485 = vmatmul.mubr.msk.f32.gmra.mxu1 %vm598_vm1, %v5603_v58  ;;  %v6023_v58 = vmul.f32 %v18901_v42, %v23021_v50  ;;  %v19188_v42 = vld [vmem:[#allocation3 + $0xf1] sm:$0xff] }
 0x2cf   : > { %15532 = vmatmul.mubr.msk.f32.gmra.mxu0 %vm598_vm1, %v6020_v45  ;;  %15487 = vmatprep.mubr.msk.f32.mxu1 %vm598_vm1, %v5604_v34  ;;  %v19177_v45 = vld [vmem:[#allocation3 + $0xe9] sm:$0xff] }
 0x2d0   : > { %15534 = vmatprep.mubr.msk.f32.mxu0 %vm598_vm1, %v6021_v57  ;;  %23070 = vst [vmem:[#allocation118_spill] sm:$0xff] %v19177_v45  ;;  %v23071_v34 = vld [vmem:[#allocation148_spill] sm:$0xff]  ;;  %v6024_v57 = vmul.f32 %v18909_v30, %v23022_v43  ;;  %v5608_v0 = vmul.f32 %v19177_v45, %v23072_v46  ;;  %v23075_v43 = vld [vmem:[#allocation103_spill] sm:$0xff]  ;;  %v23076_v46 = vld [vmem:[#allocation169_spill] sm:$0xff] }
 0x2d1   : > { %v5607_v37 = vmul.f32 %v19172_v1, %v23071_v34 }
 0x2d2   : > { %15488 = vmatmul.mubr.msk.f32.gmra.mxu1 %vm598_vm1, %v5605_v52  ;;  %v6025_v52 = vmul.f32 %v18922_v27, %v23024_v17  ;;  %v19204_v27 = vld [vmem:[#allocation3 + $0x101] sm:$0xff] }
 0x2d3   : > { %15535 = vmatmul.mubr.msk.f32.gmra.mxu0 %vm598_vm1, %v6022_v14  ;;  %15490 = vmatprep.mubr.msk.f32.mxu1 %vm598_vm1, %v5606_v28  ;;  %v19193_v14 = vld [vmem:[#allocation3 + $0xf9] sm:$0xff] }
 0x2d4   : > { %15537 = vmatprep.mubr.msk.f32.mxu0 %vm598_vm1, %v6023_v58  ;;  %v23073_v28 = vld [vmem:[#allocation158_spill] sm:$0xff]  ;;  %v23074_v58 = vld [vmem:[#allocation143_spill] sm:$0xff]  ;;  %v5610_v34 = vmul.f32 %v19193_v14, %v23076_v46  ;;  %v23081_v46 = vld [vmem:[#allocation164_spill] sm:$0xff] }
 0x2d5   : > { %v5609_v30 = vmul.f32 %v19188_v42, %v23073_v28  ;;  %v6026_v50 = vmul.f32 %v23075_v43, %v23074_v58  ;;  %v23078_v17 = vld [vmem:[#allocation98_spill] sm:$0xff] }
 0x2d6   : > { %15491 = vmatmul.mubr.msk.f32.gmra.mxu1 %vm598_vm1, %v5607_v37  ;;  %v23077_v37 = vld [vmem:[#allocation154_spill] sm:$0xff] }
 0x2d7   : > { %15538 = vmatmul.mubr.msk.f32.gmra.mxu0 %vm598_vm1, %v6024_v57  ;;  %15493 = vmatprep.mubr.msk.f32.mxu1 %vm598_vm1, %v5608_v0  ;;  %v6027_v45 = vmul.f32 %v23078_v17, %v23077_v37  ;;  %v19211_v0 = vld [vmem:[#allocation3 + $0x107] sm:$0xff]  ;;  %v23079_v57 = vld [vmem:[#allocation168_spill] sm:$0xff]  ;;  %v6386_v17 = vld [vmem:[#allocation3 + $0x18] sm:$0xff] }
 0x2d8   : > { %15540 = vmatprep.mubr.msk.f32.mxu0 %vm598_vm1, %v6025_v52  ;;  %v5611_v43 = vmul.f32 %v19204_v27, %v23079_v57  ;;  %v23080_v52 = vld [vmem:[#allocation153_spill] sm:$0xff]  ;;  %v6029_v28 = vmul.f32 %v19211_v0, %v23081_v46 }
 0x2d9   : > { %v6028_v58 = vmul.f32 %v18947_v2, %v23080_v52  ;;  %v23083_v37 = vld [vmem:[#allocation53_spill] sm:$0xff] }
 0x2da   : > { %15494 = vmatmul.mubr.msk.f32.gmra.mxu1 %vm598_vm1, %v5609_v30  ;;  %v19221_v30 = vld [vmem:[#allocation3 + $0x10f] sm:$0xff]  ;;  %v23084_v2 = vld [vmem:[#allocation61_spill] sm:$0xff] }
 0x2db   : > { %15541 = vmatmul.mubr.msk.f32.gmra.mxu0 %vm598_vm1, %v6026_v50  ;;  %15496 = vmatprep.mubr.msk.f32.mxu1 %vm598_vm1, %v5610_v34  ;;  %v23082_v50 = vld [vmem:[#allocation163_spill] sm:$0xff]  ;;  %v6387_v34 = vld [vmem:[#allocation3 + $0x20] sm:$0xff]  ;;  %v6805_v52 = vmul.f32 %v23084_v2, %v23083_v37  ;;  %v23086_v2 = vld [vmem:[#allocation60_spill] sm:$0xff] }
 0x2dc   : > { %15543 = vmatprep.mubr.msk.f32.mxu0 %vm598_vm1, %v6027_v45  ;;  %v6030_v45 = vmul.f32 %v19221_v30, %v23082_v50  ;;  %v6807_v37 = vmul.f32 %v18969_v16, %v23086_v2  ;;  %v6809_v16 = vmul.f32 %v18994_v38, %v23044_v31  ;;  %v23090_v38 = vld [vmem:[#allocation152_spill] sm:$0xff] }
 0x2de   : > { %15497 = vmatmul.mubr.msk.f32.gmra.mxu1 %vm598_vm1, %v5611_v43  ;;  %v19234_v43 = vld [vmem:[%s22055_s4 + $0x40] sm:$0xff] }
 0x2df   : > { %15544 = vmatmul.mubr.msk.f32.gmra.mxu0 %vm598_vm1, %v6028_v58  ;;  %15551 = vmatprep.mubr.msk.f32.mxu1 %vm598_vm1, %v6386_v17  ;;  %v19238_v58 = vld [vmem:[#allocation3 + $0x28] sm:$0xff] }
 0x2e0   : > { %15546 = vmatprep.mubr.msk.f32.mxu0 %vm598_vm1, %v6029_v28  ;;  %v23085_v28 = vld [vmem:[#allocation55_spill] sm:$0xff] }
 0x2e1   : > { %v6806_v17 = vmul.f32 %v18962_v18, %v23085_v28  ;;  %v6808_v18 = vmul.f32 %v18988_v26, %v23042_v51 }
 0x2e2   : > { %15552 = vmatmul.mubr.msk.f32.vlgmr.msra.gmra.mxu1 %vm598_vm1, %v6387_v34  ;;  %v19245_v34 = vld [vmem:[#allocation3 + $0x30] sm:$0xff] }
 0x2e3   : > { %15547 = vmatmul.mubr.msk.f32.gmra.mxu0 %vm598_vm1, %v6030_v45  ;;  %15650 = vmatpush3.msra.mxu1 %v18974_v20  ;;  %v19252_v20 = vld [vmem:[#allocation3 + $0x38] sm:$0xff]  ;;  %v23087_v45 = vld [vmem:[#allocation44_spill] sm:$0xff] }
 0x2e4   : > { %15601 = vmatprep.mubr.msk.f32.mxu0 %vm598_vm1, %v6805_v52  ;;  %15554 = vmatprep.mubr.msk.f32.mxu1 %vm598_vm1, %v19238_v58  ;;  %v19261_v52 = vld [vmem:[#allocation3 + $0x40] sm:$0xff] }
 0x2e5   : > { %15749 = vmatprep.subr.mxu1 %v19234_v43 }
 0x2e6   : > { %15555 = vmatmul.mubr.msk.f32.gmra.mxu1 %vm598_vm1, %v19245_v34 }
 0x2e7   : > { %15602 = vmatmul.mubr.msk.f32.vlgmr.msra.gmra.mxu0 %vm598_vm1, %v6806_v17  ;;  %15557 = vmatprep.mubr.msk.f32.mxu1 %vm598_vm1, %v19252_v20  ;;  %v23089_v17 = vld [vmem:[#allocation42_spill] sm:$0xff] }
 0x2e8   : > { %15604 = vmatprep.mubr.msk.f32.mxu0 %vm598_vm1, %v6807_v37  ;;  %15700 = vmatpush3.msra.mxu0 %v18999_v11  ;;  %v6810_v11 = vmul.f32 %v19011_v61, %v23045_v5  ;;  %v23088_v37 = vld [vmem:[#allocation72_spill] sm:$0xff] }
 0x2e9   : > { %v6811_v26 = vmul.f32 %v19017_v7, %v23088_v37  ;;  %v23091_v61 = vld [vmem:[#allocation156_spill] sm:$0xff]  ;;  %v23092_v7 = vld [vmem:[#allocation162_spill] sm:$0xff] }
 0x2ea   : > { %15558 = vmatmul.mubr.msk.f32.gmra.mxu1 %vm598_vm1, %v19261_v52 }
 0x2eb   : > { %15605 = vmatmul.mubr.msk.f32.gmra.mxu0 %vm598_vm1, %v6808_v18  ;;  %15560 = vmatprep.mubr.msk.f32.mxu1 %vm598_vm1, %v23087_v45  ;;  %v6812_v18 = vmul.f32 %v19028_v9, %v23047_v53  ;;  %v6814_v45 = vmul.f32 %v19044_v63, %v23049_v8  ;;  %v23093_v9 = vld [vmem:[#allocation47_spill] sm:$0xff] }
 0x2ec   : > { %15607 = vmatprep.mubr.msk.f32.mxu0 %vm598_vm1, %v6809_v16  ;;  %v6813_v16 = vmul.f32 %v19033_v39, %v23048_v10  ;;  %v23094_v39 = vld [vmem:[#allocation43_spill] sm:$0xff] }
 0x2ed   : > { %v23095_v63 = vld [vmem:[#allocation155_spill] sm:$0xff] }
 0x2ee   : > { %15561 = vmatmul.mubr.msk.f32.gmra.mxu1 %vm598_vm1, %v23089_v17  ;;  %v6817_v17 = vmul.f32 %v19065_v32, %v23052_v36  ;;  %v23098_v32 = vld [vmem:[#allocation49_spill] sm:$0xff] }
 0x2ef   : > { %15608 = vmatmul.mubr.msk.f32.gmra.mxu0 %vm598_vm1, %v6810_v11  ;;  %15563 = vmatprep.mubr.msk.f32.mxu1 %vm598_vm1, %v23090_v38  ;;  %v6815_v11 = vmul.f32 %v19049_v29, %v23050_v56  ;;  %v23096_v29 = vld [vmem:[#allocation45_spill] sm:$0xff]  ;;  %v6818_v38 = vmul.f32 %v19076_v48, %v23053_v54  ;;  %v23099_v48 = vld [vmem:[#allocation46_spill] sm:$0xff] }
 0x2f0   : > { %15610 = vmatprep.mubr.msk.f32.mxu0 %vm598_vm1, %v6811_v26  ;;  %v6816_v26 = vmul.f32 %v19060_v25, %v23051_v59  ;;  %v23097_v25 = vld [vmem:[#allocation172_spill] sm:$0xff] }
 0x2f2   : > { %15564 = vmatmul.mubr.msk.f32.gmra.mxu1 %vm598_vm1, %v23091_v61  ;;  %v6821_v61 = vmul.f32 %v19097_v15, %v23056_v4  ;;  %v23102_v15 = vld [vmem:[#allocation180_spill] sm:$0xff] }
 0x2f3   : > { %15611 = vmatmul.mubr.msk.f32.gmra.mxu0 %vm598_vm1, %v6812_v18  ;;  %15566 = vmatprep.mubr.msk.f32.mxu1 %vm598_vm1, %v23092_v7  ;;  %v6819_v18 = vmul.f32 %v19081_v55, %v23054_v49  ;;  %v23100_v55 = vld [vmem:[#allocation48_spill] sm:$0xff]  ;;  %v6822_v7 = vmul.f32 %v19108_v12, %v23057_v21 }
 0x2f4   : > { %15613 = vmatprep.mubr.msk.f32.mxu0 %vm598_vm1, %v6813_v16  ;;  %v6820_v16 = vmul.f32 %v19092_v41, %v23055_v35  ;;  %v23101_v41 = vld [vmem:[#allocation178_spill] sm:$0xff]  ;;  %v23104_v12 = vld [vmem:[#allocation36_spill] sm:$0xff] }
 0x2f6   : > { %15567 = vmatmul.mubr.msk.f32.gmra.mxu1 %vm598_vm1, %v23093_v9  ;;  %v23103_v9 = vld [vmem:[#allocation117_spill] sm:$0xff] }
 0x2f7   : > { %15614 = vmatmul.mubr.msk.f32.gmra.mxu0 %vm598_vm1, %v6814_v45  ;;  %15569 = vmatprep.mubr.msk.f32.mxu1 %vm598_vm1, %v23094_v39  ;;  %v6823_v45 = vmul.f32 %v19113_v6, %v23058_v62  ;;  %v6825_v39 = vmul.f32 %v19129_v60, %v23103_v9  ;;  %v23105_v6 = vld [vmem:[#allocation114_spill] sm:$0xff]  ;;  %v23109_v60 = vld [vmem:[#allocation145_spill] sm:$0xff] }
 0x2f8   : > { %15616 = vmatprep.mubr.msk.f32.mxu0 %vm598_vm1, %v6815_v11  ;;  %v6824_v11 = vmul.f32 %v19124_v44, %v23059_v22  ;;  %v23108_v44 = vld [vmem:[#allocation41_spill] sm:$0xff] }
 0x2fa   : > { %15570 = vmatmul.mubr.msk.f32.gmra.mxu1 %vm598_vm1, %v23095_v63  ;;  %v23107_v63 = vld [vmem:[#allocation127_spill] sm:$0xff] }
 0x2fb   : > { %15617 = vmatmul.mubr.msk.f32.gmra.mxu0 %vm598_vm1, %v6816_v26  ;;  %15572 = vmatprep.mubr.msk.f32.mxu1 %vm598_vm1, %v23096_v29  ;;  %v23106_v26 = vld [vmem:[#allocation116_spill] sm:$0xff]  ;;  %v6827_v29 = vmul.f32 %v19145_v23, %v23107_v63  ;;  %v23111_v23 = vld [vmem:[#allocation125_spill] sm:$0xff] }
 0x2fc   : > { %15619 = vmatprep.mubr.msk.f32.mxu0 %vm598_vm1, %v6817_v17  ;;  %v6826_v17 = vmul.f32 %v19140_v40, %v23106_v26  ;;  %v23110_v40 = vld [vmem:[#allocation85_spill] sm:$0xff] }
 0x2fe   : > { %15573 = vmatmul.mubr.msk.f32.gmra.mxu1 %vm598_vm1, %v23097_v25  ;;  %v6830_v25 = vmul.f32 %v19172_v1, %v23068_v3  ;;  %v23117_v1 = vld [vmem:[#allocation104_spill] sm:$0xff] }
 0x2ff   : > { %15620 = vmatmul.mubr.msk.f32.gmra.mxu0 %vm598_vm1, %v6818_v38  ;;  %15575 = vmatprep.mubr.msk.f32.mxu1 %vm598_vm1, %v23098_v32  ;;  %v6828_v38 = vmul.f32 %v19156_v33, %v23065_v19  ;;  %v23112_v32 = vld [vmem:[#allocation118_spill] sm:$0xff] }
 0x300   : > { %15622 = vmatprep.mubr.msk.f32.mxu0 %vm598_vm1, %v6819_v18  ;;  %v6829_v18 = vmul.f32 %v19161_v13, %v23067_v47  ;;  %v23113_v33 = vld [vmem:[#allocation110_spill] sm:$0xff]  ;;  %v23114_v13 = vld [vmem:[#allocation92_spill] sm:$0xff] }
 0x302   : > { %15576 = vmatmul.mubr.msk.f32.gmra.mxu1 %vm598_vm1, %v23099_v48 }
 0x303   : > { %15623 = vmatmul.mubr.msk.f32.gmra.mxu0 %vm598_vm1, %v6820_v16  ;;  %15578 = vmatprep.mubr.msk.f32.mxu1 %vm598_vm1, %v23100_v55  ;;  %v6831_v16 = vmul.f32 %v23112_v32, %v23069_v24  ;;  %v23116_v55 = vld [vmem:[#allocation159_spill] sm:$0xff] }
 0x304   : > { %15625 = vmatprep.mubr.msk.f32.mxu0 %vm598_vm1, %v6821_v61  ;;  %v23115_v61 = vld [vmem:[#allocation148_spill] sm:$0xff] }
 0x305   : > { %v6832_v48 = vmul.f32 %v19188_v42, %v23115_v61 }
 0x306   : > { %15579 = vmatmul.mubr.msk.f32.gmra.mxu1 %vm598_vm1, %v23101_v41  ;;  %v7192_v41 = vld [vmem:[#allocation3 + $0x27] sm:$0xff] }
 0x307   : > { %15626 = vmatmul.mubr.msk.f32.gmra.mxu0 %vm598_vm1, %v6822_v7  ;;  %15581 = vmatprep.mubr.msk.f32.mxu1 %vm598_vm1, %v23102_v15  ;;  %v6833_v7 = vmul.f32 %v19193_v14, %v23116_v55  ;;  %v19392_v15 = vld [vmem:[#allocation3 + $0x109] sm:$0xff]  ;;  %v23120_v14 = vld [vmem:[#allocation54_spill] sm:$0xff] }
 0x308   : > { %15628 = vmatprep.mubr.msk.f32.mxu0 %vm598_vm1, %v6823_v45  ;;  %v19387_v45 = vld [vmem:[#allocation3 + $0x108] sm:$0xff]  ;;  %23118 = vst [vmem:[#allocation137_spill] sm:$0xff] %v19392_v15 }
 0x30a   : > { %15582 = vmatmul.mubr.msk.f32.gmra.mxu1 %vm598_vm1, %v23104_v12  ;;  %v7224_v12 = vmul.f32 %v7192_v41, %v23120_v14  ;;  %v19430_v41 = vpop.f32.mrf.mxu0 }
 0x30b   : > { %15629 = vmatmul.mubr.msk.f32.gmra.mxu0 %vm598_vm1, %v6824_v11  ;;  %15584 = vmatprep.mubr.msk.f32.mxu1 %vm598_vm1, %v23105_v6  ;;  %v23119_v11 = vld [vmem:[#allocation158_spill] sm:$0xff]  ;;  %v7193_v6 = vld [vmem:[#allocation3 + $0x2f] sm:$0xff]  ;;  %23127 = vst [vmem:[#allocation50_spill] sm:$0xff] %v19430_v41 }
 0x30c   : > { %15631 = vmatprep.mubr.msk.f32.mxu0 %vm598_vm1, %v6825_v39  ;;  %v6834_v42 = vmul.f32 %v19204_v27, %v23119_v11  ;;  %v19397_v39 = vld [vmem:[#allocation3 + $0x110] sm:$0xff] }
 0x30d   : > { %v23123_v27 = vld [vmem:[#allocation56_spill] sm:$0xff] }
 0x30e   : > { %15585 = vmatmul.mubr.msk.f32.gmra.mxu1 %vm598_vm1, %v23108_v44  ;;  %v19404_v44 = vld [vmem:[#allocation3 + $0x111] sm:$0xff] }
 0x30f   : > { %15632 = vmatmul.mubr.msk.f32.gmra.mxu0 %vm598_vm1, %v6826_v17  ;;  %15587 = vmatprep.mubr.msk.f32.mxu1 %vm598_vm1, %v23109_v60  ;;  %v23121_v17 = vld [vmem:[#allocation169_spill] sm:$0xff]  ;;  %23122 = vst [vmem:[#allocation128_spill] sm:$0xff] %v19404_v44  ;;  %v7624_v11 = vld [vmem:[#allocation3 + $0x90] sm:$0xff] }
 0x310   : > { %15634 = vmatprep.mubr.msk.f32.mxu0 %vm598_vm1, %v6827_v29  ;;  %v6835_v29 = vmul.f32 %v19392_v15, %v23121_v17  ;;  %v7194_v60 = vld [vmem:[#allocation3 + $0x37] sm:$0xff]  ;;  %v7211_v15 = vld [vmem:[#allocation3 + $0xbf] sm:$0xff] }
 0x312   : > { %15588 = vmatmul.mubr.msk.f32.gmra.mxu1 %vm598_vm1, %v23110_v40  ;;  %v7195_v40 = vld [vmem:[#allocation3 + $0x3f] sm:$0xff] }
 0x313   : > { %15635 = vmatmul.mubr.msk.f32.gmra.mxu0 %vm598_vm1, %v6828_v38  ;;  %15590 = vmatprep.mubr.msk.f32.mxu1 %vm598_vm1, %v23111_v23  ;;  %v7225_v38 = vmul.f32 %v7193_v6, %v23123_v27  ;;  %v19412_v23 = vpop.f32.mrf.mxu1  ;;  %v7198_v6 = vld [vmem:[#allocation3 + $0x57] sm:$0xff] }
 0x314   : > { %15637 = vmatprep.mubr.msk.f32.mxu0 %vm598_vm1, %v6829_v18  ;;  %v6836_v18 = vmul.f32 %v19404_v44, %v23079_v57  ;;  %23124 = vst [vmem:[#allocation129_spill] sm:$0xff] %v19412_v23  ;;  %v7622_v57 = vld [vmem:[#allocation3 + $0x80] sm:$0xff]  ;;  %v7209_v44 = vld [vmem:[#allocation3 + $0xaf] sm:$0xff] }
 0x316   : > { %15591 = vmatmul.mubr.msk.f32.gmra.mxu1 %vm598_vm1, %v23113_v33 }
 0x317   : > { %15638 = vmatmul.mubr.msk.f32.gmra.mxu0 %vm598_vm1, %v6830_v25  ;;  %15593 = vmatprep.mubr.msk.f32.mxu1 %vm598_vm1, %v23114_v13  ;;  %v23125_v25 = vld [vmem:[#allocation58_spill] sm:$0xff]  ;;  %v23126_v13 = vld [vmem:[#allocation57_spill] sm:$0xff] }
 0x318   : > { %15640 = vmatprep.mubr.msk.f32.mxu0 %vm598_vm1, %v6831_v16  ;;  %v7226_v32 = vmul.f32 %v7194_v60, %v23125_v25  ;;  %v7196_v16 = vld [vmem:[#allocation3 + $0x47] sm:$0xff] }
 0x31a   : > { %15594 = vmatmul.mubr.msk.f32.gmra.mxu1 %vm598_vm1, %v23117_v1  ;;  %v19428_v1 = vld [vmem:[%s22058_s7] sm:$0xff] }
 0x31b   : > { %15641 = vmatmul.mubr.msk.f32.gmra.mxu0 %vm598_vm1, %v6832_v48  ;;  %15596 = vmatprep.mubr.msk.f32.mxu1 %vm598_vm1, %v19387_v45  ;;  %v7227_v48 = vmul.f32 %v7195_v40, %v23126_v13 }
 0x31c   : > { %15643 = vmatprep.mubr.msk.f32.mxu0 %vm598_vm1, %v6833_v7  ;;  %v13638_v7 = vld [vmem:[%s22058_s7 + $0x8] sm:$0xff] }
 0x31d   : > { %15799 = vmatprep.subr.mxu0 %v13638_v7 }
 0x31e   : > { %15597 = vmatmul.mubr.msk.f32.gmra.mxu1 %vm598_vm1, %v19397_v39 }
 0x31f   : > { %15644 = vmatmul.mubr.msk.f32.gmra.mxu0 %vm598_vm1, %v6834_v42  ;;  %15651 = vmatprep.mubr.msk.f32.mxu1 %vm598_vm1, %v7224_v12  ;;  %v7197_v12 = vld [vmem:[#allocation3 + $0x4f] sm:$0xff] }
 0x320   : > { %15646 = vmatprep.mubr.msk.f32.mxu0 %vm598_vm1, %v6835_v29 }
 0x321   : > { %v15356_v33 = vpop.f32.mrf.mxu1 }
 0x322   : > { %15652 = vmatmul.mubr.msk.f32.vlgmr.msra.gmra.mxu1 %vm598_vm1, %v7225_v38  ;;  %v23129_v38 = vld [vmem:[#allocation63_spill] sm:$0xff] }
 0x323   : > { %15647 = vmatmul.mubr.msk.f32.gmra.mxu0 %vm598_vm1, %v6836_v18  ;;  %15750 = vmatpush3.msra.mxu1 %v19234_v43  ;;  %v23128_v43 = vld [vmem:[#allocation64_spill] sm:$0xff]  ;;  %v7229_v18 = vmul.f32 %v7197_v12, %v23129_v38 }
 0x324   : > { %15701 = vmatprep.mubr.msk.f32.mxu0 %vm598_vm1, %v19238_v58  ;;  %15654 = vmatprep.mubr.msk.f32.mxu1 %vm598_vm1, %v7226_v32  ;;  %v7228_v42 = vmul.f32 %v7196_v16, %v23128_v43  ;;  %v5078_v58 = vpop.f32.mrf.mxu1  ;;  %v15406_v29 = vpop.f32.mrf.mxu0  ;;  %v23130_v16 = vld [vmem:[#allocation70_spill] sm:$0xff] }
 0x325   : > { %15849 = vmatprep.subr.mxu1 %v19428_v1  ;;  %v19440_v60 = vadd.f32 %v15406_v29, %v15356_v33  ;;  %v7199_v43 = vld [vmem:[#allocation3 + $0x5f] sm:$0xff] }
 0x326   : > { %15655 = vmatmul.mubr.msk.f32.gmra.mxu1 %vm598_vm1, %v7227_v48  ;;  %v15359_v40 = vpop.f32.mrf.mxu1  ;;  %v5399_v32 = vpop.f32.mrf.mxu0  ;;  %v7230_v48 = vmul.f32 %v7198_v6, %v23130_v16  ;;  %v23132_v6 = vld [vmem:[#allocation76_spill] sm:$0xff] }
 0x327   : > { %15702 = vmatmul.mubr.msk.f32.vlgmr.msra.gmra.mxu0 %vm598_vm1, %v19245_v34  ;;  %15657 = vmatprep.mubr.msk.f32.mxu1 %vm598_vm1, %v7228_v42  ;;  %v19444_v13 = vadd.f32 %v5399_v32, %v5078_v58  ;;  %v7200_v34 = vld [vmem:[#allocation3 + $0x67] sm:$0xff]  ;;  %v7201_v32 = vld [vmem:[#allocation3 + $0x6f] sm:$0xff] }
 0x328   : > { %15704 = vmatprep.mubr.msk.f32.mxu0 %vm598_vm1, %v19252_v20  ;;  %15800 = vmatpush3.msra.mxu0 %v13638_v7  ;;  %v7615_v42 = vld [vmem:[#allocation3 + $0x48] sm:$0xff]  ;;  %v5088_v20 = vpop.f32.mrf.mxu1  ;;  %v23131_v7 = vld [vmem:[#allocation69_spill] sm:$0xff]  ;;  %v7232_v58 = vmul.f32 %v7200_v34, %v23132_v6  ;;  %v7616_v16 = vld [vmem:[#allocation3 + $0x50] sm:$0xff] }
 0x329   : > { %v7231_v12 = vmul.f32 %v7199_v43, %v23131_v7  ;;  %v7203_v7 = vld [vmem:[#allocation3 + $0x7f] sm:$0xff] }
 0x32a   : > { %15658 = vmatmul.mubr.msk.f32.gmra.mxu1 %vm598_vm1, %v7229_v18  ;;  %v15409_v33 = vpop.f32.mrf.mxu0 }
 0x32b   : > { %15705 = vmatmul.mubr.msk.f32.gmra.mxu0 %vm598_vm1, %v19261_v52  ;;  %15660 = vmatprep.mubr.msk.f32.mxu1 %vm598_vm1, %v7230_v48  ;;  %v19452_v29 = vadd.f32 %v15409_v33, %v15359_v40  ;;  %v15362_v18 = vpop.f32.mrf.mxu1  ;;  %v7202_v52 = vld [vmem:[#allocation3 + $0x77] sm:$0xff]  ;;  %v23133_v40 = vld [vmem:[#allocation75_spill] sm:$0xff]  ;;  %v23134_v33 = vld [vmem:[#allocation82_spill] sm:$0xff] }
 0x32c   : > { %15707 = vmatprep.mubr.msk.f32.mxu0 %vm598_vm1, %v7615_v42  ;;  %v5409_v38 = vpop.f32.mrf.mxu0  ;;  %v7617_v48 = vld [vmem:[#allocation3 + $0x58] sm:$0xff]  ;;  %v7233_v42 = vmul.f32 %v7201_v32, %v23133_v40  ;;  %v7234_v6 = vmul.f32 %v7202_v52, %v23134_v33  ;;  %v7205_v40 = vld [vmem:[#allocation3 + $0x8f] sm:$0xff] }
 0x32d   : > { %v19457_v25 = vadd.f32 %v5409_v38, %v5088_v20  ;;  %v5098_v43 = vpop.f32.mrf.mxu1  ;;  %v7619_v38 = vld [vmem:[#allocation3 + $0x68] sm:$0xff]  ;;  %v23135_v52 = vld [vmem:[#allocation81_spill] sm:$0xff] }
 0x32e   : > { %15661 = vmatmul.mubr.msk.f32.gmra.mxu1 %vm598_vm1, %v7231_v12  ;;  %v7618_v12 = vld [vmem:[#allocation3 + $0x60] sm:$0xff] }
 0x32f   : > { %15708 = vmatmul.mubr.msk.f32.gmra.mxu0 %vm598_vm1, %v7616_v16  ;;  %15663 = vmatprep.mubr.msk.f32.mxu1 %vm598_vm1, %v7232_v58  ;;  %v15412_v34 = vpop.f32.mrf.mxu0  ;;  %v7204_v16 = vld [vmem:[#allocation3 + $0x87] sm:$0xff] }
 0x330   : > { %15710 = vmatprep.mubr.msk.f32.mxu0 %vm598_vm1, %v7617_v48  ;;  %v19463_v41 = vadd.f32 %v15412_v34, %v15362_v18  ;;  %v15365_v23 = vpop.f32.mrf.mxu1  ;;  %v7235_v48 = vmul.f32 %v7203_v7, %v23135_v52  ;;  %v23136_v34 = vld [vmem:[#allocation88_spill] sm:$0xff] }
 0x331   : > { %v5419_v20 = vpop.f32.mrf.mxu0  ;;  %v7236_v33 = vmul.f32 %v7204_v16, %v23136_v34  ;;  %v23137_v16 = vld [vmem:[#allocation87_spill] sm:$0xff]  ;;  %v7207_v34 = vld [vmem:[#allocation3 + $0x9f] sm:$0xff] }
 0x332   : > { %15664 = vmatmul.mubr.msk.f32.gmra.mxu1 %vm598_vm1, %v7233_v42  ;;  %v19469_v58 = vadd.f32 %v5419_v20, %v5098_v43  ;;  %v5108_v32 = vpop.f32.mrf.mxu1  ;;  %v7620_v42 = vld [vmem:[#allocation3 + $0x70] sm:$0xff]  ;;  %v7237_v20 = vmul.f32 %v7205_v40, %v23137_v16 }
 0x333   : > { %15711 = vmatmul.mubr.msk.f32.gmra.mxu0 %vm598_vm1, %v7618_v12  ;;  %15666 = vmatprep.mubr.msk.f32.mxu1 %vm598_vm1, %v7234_v6  ;;  %v7206_v12 = vld [vmem:[#allocation3 + $0x97] sm:$0xff] }
 0x334   : > { %15713 = vmatprep.mubr.msk.f32.mxu0 %vm598_vm1, %v7619_v38  ;;  %v15415_v18 = vpop.f32.mrf.mxu0  ;;  %v15368_v14 = vpop.f32.mrf.mxu1  ;;  %v7621_v6 = vld [vmem:[#allocation3 + $0x78] sm:$0xff] }
 0x335   : > { %v19473_v27 = vadd.f32 %v15415_v18, %v15365_v23  ;;  %v23138_v23 = vld [vmem:[#allocation94_spill] sm:$0xff] }
 0x336   : > { %15667 = vmatmul.mubr.msk.f32.gmra.mxu1 %vm598_vm1, %v7235_v48  ;;  %v5429_v38 = vpop.f32.mrf.mxu0  ;;  %v5118_v43 = vpop.f32.mrf.mxu1  ;;  %v7238_v18 = vmul.f32 %v7206_v12, %v23138_v23  ;;  %v23140_v23 = vld [vmem:[#allocation100_spill] sm:$0xff] }
 0x337   : > { %15714 = vmatmul.mubr.msk.f32.gmra.mxu0 %vm598_vm1, %v7620_v42  ;;  %15669 = vmatprep.mubr.msk.f32.mxu1 %vm598_vm1, %v7236_v33  ;;  %v19479_v7 = vadd.f32 %v5429_v38, %v5108_v32  ;;  %v7208_v42 = vld [vmem:[#allocation3 + $0xa7] sm:$0xff] }
 0x338   : > { %15716 = vmatprep.mubr.msk.f32.mxu0 %vm598_vm1, %v7621_v6  ;;  %v15418_v52 = vpop.f32.mrf.mxu0  ;;  %v15371_v48 = vpop.f32.mrf.mxu1  ;;  %v7623_v33 = vld [vmem:[#allocation3 + $0x88] sm:$0xff]  ;;  %v23139_v6 = vld [vmem:[#allocation93_spill] sm:$0xff]  ;;  %v7240_v16 = vmul.f32 %v7208_v42, %v23140_v23  ;;  %v23142_v23 = vld [vmem:[#allocation106_spill] sm:$0xff] }
 0x339   : > { %v19484_v17 = vadd.f32 %v15418_v52, %v15368_v14  ;;  %v7239_v12 = vmul.f32 %v7207_v34, %v23139_v6 }
 0x33a   : > { %15670 = vmatmul.mubr.msk.f32.gmra.mxu1 %vm598_vm1, %v7237_v20  ;;  %v5439_v32 = vpop.f32.mrf.mxu0  ;;  %v5128_v40 = vpop.f32.mrf.mxu1 }
 0x33b   : > { %15717 = vmatmul.mubr.msk.f32.gmra.mxu0 %vm598_vm1, %v7622_v57  ;;  %15672 = vmatprep.mubr.msk.f32.mxu1 %vm598_vm1, %v7238_v18  ;;  %v19490_v38 = vadd.f32 %v5439_v32, %v5118_v43  ;;  %v7210_v57 = vld [vmem:[#allocation3 + $0xb7] sm:$0xff] }
 0x33c   : > { %15719 = vmatprep.mubr.msk.f32.mxu0 %vm598_vm1, %v7623_v33  ;;  %v15374_v14 = vpop.f32.mrf.mxu1  ;;  %v7625_v18 = vld [vmem:[#allocation3 + $0x98] sm:$0xff]  ;;  %v23141_v33 = vld [vmem:[#allocation99_spill] sm:$0xff]  ;;  %v7242_v6 = vmul.f32 %v7210_v57, %v23142_v23 }
 0x33d   : > { %v15421_v20 = vpop.f32.mrf.mxu0  ;;  %v7241_v42 = vmul.f32 %v7209_v44, %v23141_v33  ;;  %v7213_v33 = vld [vmem:[#allocation3 + $0xcf] sm:$0xff] }
 0x33e   : > { %15673 = vmatmul.mubr.msk.f32.gmra.mxu1 %vm598_vm1, %v7239_v12  ;;  %v19494_v52 = vadd.f32 %v15421_v20, %v15371_v48  ;;  %v5138_v43 = vpop.f32.mrf.mxu1  ;;  %v7626_v12 = vld [vmem:[#allocation3 + $0xa0] sm:$0xff] }
 0x33f   : > { %15720 = vmatmul.mubr.msk.f32.gmra.mxu0 %vm598_vm1, %v7624_v11  ;;  %15675 = vmatprep.mubr.msk.f32.mxu1 %vm598_vm1, %v7240_v16  ;;  %v5449_v34 = vpop.f32.mrf.mxu0  ;;  %v7212_v48 = vld [vmem:[#allocation3 + $0xc7] sm:$0xff] }
 0x340   : > { %15722 = vmatprep.mubr.msk.f32.mxu0 %vm598_vm1, %v7625_v18  ;;  %v19500_v32 = vadd.f32 %v5449_v34, %v5128_v40  ;;  %v15377_v55 = vpop.f32.mrf.mxu1  ;;  %v7627_v16 = vld [vmem:[#allocation3 + $0xa8] sm:$0xff]  ;;  %v23143_v40 = vld [vmem:[#allocation105_spill] sm:$0xff]  ;;  %v23144_v34 = vld [vmem:[#allocation112_spill] sm:$0xff] }
 0x341   : > { %v15424_v11 = vpop.f32.mrf.mxu0  ;;  %v7243_v18 = vmul.f32 %v7211_v15, %v23143_v40  ;;  %v7244_v23 = vmul.f32 %v7212_v48, %v23144_v34  ;;  %v23146_v48 = vld [vmem:[#allocation111_spill] sm:$0xff]  ;;  %v7215_v34 = vld [vmem:[#allocation3 + $0xdf] sm:$0xff] }
 0x342   : > { %15676 = vmatmul.mubr.msk.f32.gmra.mxu1 %vm598_vm1, %v7241_v42  ;;  %v19506_v20 = vadd.f32 %v15424_v11, %v15374_v14  ;;  %v5148_v44 = vpop.f32.mrf.mxu1  ;;  %v7628_v42 = vld [vmem:[#allocation3 + $0xb0] sm:$0xff]  ;;  %v7630_v40 = vld [vmem:[#allocation3 + $0xc0] sm:$0xff] }
 0x343   : > { %15723 = vmatmul.mubr.msk.f32.gmra.mxu0 %vm598_vm1, %v7626_v12  ;;  %15678 = vmatprep.mubr.msk.f32.mxu1 %vm598_vm1, %v7242_v6  ;;  %v5459_v57 = vpop.f32.mrf.mxu0  ;;  %v7214_v12 = vld [vmem:[#allocation3 + $0xd7] sm:$0xff] }
 0x344   : > { %15725 = vmatprep.mubr.msk.f32.mxu0 %vm598_vm1, %v7627_v16  ;;  %v19511_v61 = vadd.f32 %v5459_v57, %v5138_v43  ;;  %v7629_v6 = vld [vmem:[#allocation3 + $0xb8] sm:$0xff]  ;;  %v7245_v43 = vmul.f32 %v7213_v33, %v23146_v48  ;;  %v23147_v16 = vld [vmem:[#allocation122_spill] sm:$0xff]  ;;  %v7632_v48 = vld [vmem:[#allocation3 + $0xd0] sm:$0xff] }
 0x345   : > { %v7246_v57 = vmul.f32 %v7214_v12, %v23147_v16  ;;  %v23149_v12 = vld [vmem:[#allocation121_spill] sm:$0xff] }
 0x346   : > { %v15380_v24 = vpop.f32.mrf.mxu1  ;;  %15679 = vmatmul.mubr.msk.f32.gmra.mxu1 %vm598_vm1, %v7243_v18  ;;  %v15427_v3 = vpop.f32.mrf.mxu0 }
 0x347   : > { %15726 = vmatmul.mubr.msk.f32.gmra.mxu0 %vm598_vm1, %v7628_v42  ;;  %15681 = vmatprep.mubr.msk.f32.mxu1 %vm598_vm1, %v7244_v23  ;;  %v19516_v14 = vadd.f32 %v15427_v3, %v15377_v55  ;;  %v7216_v42 = vld [vmem:[#allocation3 + $0xe7] sm:$0xff] }
 0x348   : > { %15728 = vmatprep.mubr.msk.f32.mxu0 %vm598_vm1, %v7629_v6  ;;  %v19519_v15 = vpop.f32.mrf.mxu1  ;;  %v5469_v11 = vpop.f32.mrf.mxu0  ;;  %v7631_v3 = vld [vmem:[#allocation3 + $0xc8] sm:$0xff] }
 0x349   : > { %23145 = vst [vmem:[#allocation147_spill] sm:$0xff] %v19519_v15  ;;  %v19523_v18 = vadd.f32 %v5469_v11, %v5148_v44  ;;  %v7247_v44 = vmul.f32 %v7215_v34, %v23149_v12  ;;  %v23151_v11 = vld [vmem:[#allocation133_spill] sm:$0xff] }
 0x34a   : > { %v15383_v47 = vpop.f32.mrf.mxu1  ;;  %15682 = vmatmul.mubr.msk.f32.gmra.mxu1 %vm598_vm1, %v7245_v43  ;;  %v7248_v16 = vmul.f32 %v7216_v42, %v23151_v11  ;;  %v7217_v43 = vld [vmem:[#allocation3 + $0xef] sm:$0xff] }
 0x34b   : > { %v15430_v23 = vpop.f32.mrf.mxu0  ;;  %15729 = vmatmul.mubr.msk.f32.gmra.mxu0 %vm598_vm1, %v7630_v40  ;;  %15684 = vmatprep.mubr.msk.f32.mxu1 %vm598_vm1, %v7246_v57  ;;  %v7218_v40 = vld [vmem:[#allocation3 + $0xf7] sm:$0xff] }
 0x34c   : > { %v19528_v55 = vadd.f32 %v15430_v23, %v15380_v24  ;;  %15731 = vmatprep.mubr.msk.f32.mxu0 %vm598_vm1, %v7631_v3  ;;  %v19531_v33 = vpop.f32.mrf.mxu1  ;;  %v7633_v24 = vld [vmem:[#allocation3 + $0xd8] sm:$0xff]  ;;  %v23153_v23 = vld [vmem:[#allocation132_spill] sm:$0xff] }
 0x34d   : > { %23148 = vst [vmem:[#allocation140_spill] sm:$0xff] %v19531_v33  ;;  %v19534_v6 = vpop.f32.mrf.mxu0  ;;  %v7249_v42 = vmul.f32 %v7217_v43, %v23153_v23  ;;  %v23155_v11 = vld [vmem:[#allocation144_spill] sm:$0xff]  ;;  %v7634_v33 = vld [vmem:[#allocation3 + $0xe0] sm:$0xff]  ;;  %v23157_v43 = vld [vmem:[#allocation143_spill] sm:$0xff] }
 0x34e   : > { %23150 = vst [vmem:[#allocation141_spill] sm:$0xff] %v19534_v6  ;;  %v15386_v15 = vpop.f32.mrf.mxu1  ;;  %15685 = vmatmul.mubr.msk.f32.gmra.mxu1 %vm598_vm1, %v7247_v44  ;;  %v7250_v12 = vmul.f32 %v7218_v40, %v23155_v11  ;;  %v7219_v44 = vld [vmem:[#allocation3 + $0xff] sm:$0xff] }
 0x34f   : > { %v15433_v19 = vpop.f32.mrf.mxu0  ;;  %15732 = vmatmul.mubr.msk.f32.gmra.mxu0 %vm598_vm1, %v7632_v48  ;;  %15687 = vmatprep.mubr.msk.f32.mxu1 %vm598_vm1, %v7248_v16  ;;  %v23158_v11 = vld [vmem:[#allocation154_spill] sm:$0xff] }
 0x350   : > { %v19540_v57 = vadd.f32 %v15433_v19, %v15383_v47  ;;  %15734 = vmatprep.mubr.msk.f32.mxu0 %vm598_vm1, %v7633_v24  ;;  %v19543_v34 = vpop.f32.mrf.mxu1  ;;  %v7635_v47 = vld [vmem:[#allocation3 + $0xe8] sm:$0xff]  ;;  %v7251_v24 = vmul.f32 %v7219_v44, %v23157_v43  ;;  %v7252_v23 = vmul.f32 %v19211_v0, %v23158_v11  ;;  %v7223_v11 = vld [vmem:[#allocation3 + $0x11f] sm:$0xff] }
 0x351   : > { %23152 = vst [vmem:[#allocation62_spill] sm:$0xff] %v19543_v34  ;;  %v19546_v3 = vpop.f32.mrf.mxu0  ;;  %v7638_v43 = vld [vmem:[#allocation3 + $0x100] sm:$0xff] }
 0x352   : > { %23154 = vst [vmem:[#allocation151_spill] sm:$0xff] %v19546_v3  ;;  %v15389_v6 = vpop.f32.mrf.mxu1  ;;  %15688 = vmatmul.mubr.msk.f32.gmra.mxu1 %vm598_vm1, %v7249_v42  ;;  %v7636_v42 = vld [vmem:[#allocation3 + $0xf0] sm:$0xff] }
 0x353   : > { %v15436_v48 = vpop.f32.mrf.mxu0  ;;  %15735 = vmatmul.mubr.msk.f32.gmra.mxu0 %vm598_vm1, %v7634_v33  ;;  %15690 = vmatprep.mubr.msk.f32.mxu1 %vm598_vm1, %v7250_v12  ;;  %v7222_v33 = vld [vmem:[#allocation3 + $0x117] sm:$0xff] }
 0x354   : > { %v19552_v19 = vadd.f32 %v15436_v48, %v15386_v15  ;;  %15737 = vmatprep.mubr.msk.f32.mxu0 %vm598_vm1, %v7635_v47  ;;  %v19555_v16 = vpop.f32.mrf.mxu1  ;;  %v7637_v15 = vld [vmem:[#allocation3 + $0xf8] sm:$0xff] }
 0x355   : > { %23156 = vst [vmem:[#allocation160_spill] sm:$0xff] %v19555_v16  ;;  %v19558_v40 = vpop.f32.mrf.mxu0  ;;  %v23160_v48 = vld [vmem:[#allocation153_spill] sm:$0xff] }
 0x356   : > { %v15392_v34 = vpop.f32.mrf.mxu1  ;;  %15691 = vmatmul.mubr.msk.f32.gmra.mxu1 %vm598_vm1, %v7251_v24  ;;  %v7253_v0 = vmul.f32 %v19221_v30, %v23160_v48  ;;  %v7254_v24 = vmul.f32 %v7222_v33, %v23081_v46  ;;  %v23162_v46 = vld [vmem:[#allocation53_spill] sm:$0xff] }
 0x357   : > { %v15439_v3 = vpop.f32.mrf.mxu0  ;;  %15738 = vmatmul.mubr.msk.f32.gmra.mxu0 %vm598_vm1, %v7636_v42  ;;  %15693 = vmatprep.mubr.msk.f32.mxu1 %vm598_vm1, %v7252_v23  ;;  %v7998_v42 = vld [vmem:[#allocation3 + $0x29] sm:$0xff]  ;;  %v7999_v48 = vld [vmem:[#allocation3 + $0x31] sm:$0xff] }
 0x358   : > { %v19565_v12 = vadd.f32 %v15439_v3, %v15389_v6  ;;  %15740 = vmatprep.mubr.msk.f32.mxu0 %vm598_vm1, %v7637_v15  ;;  %v19568_v44 = vpop.f32.mrf.mxu1  ;;  %v7255_v3 = vmul.f32 %v7223_v11, %v23082_v50  ;;  %v7641_v15 = vld [vmem:[#allocation3 + $0x118] sm:$0xff]  ;;  %v8001_v50 = vld [vmem:[#allocation3 + $0x41] sm:$0xff] }
 0x359   : > { %23159 = vst [vmem:[#allocation150_spill] sm:$0xff] %v19568_v44  ;;  %v19572_v47 = vpop.f32.mrf.mxu0 }
 0x35a   : > { %v15395_v16 = vpop.f32.mrf.mxu1  ;;  %15694 = vmatmul.mubr.msk.f32.gmra.mxu1 %vm598_vm1, %v7253_v0  ;;  %v8030_v0 = vmul.f32 %v7998_v42, %v23162_v46  ;;  %v8031_v42 = vmul.f32 %v7999_v48, %v23085_v28  ;;  %v8688_v46 = vld [vmem:[#allocation4 + $0x8] sm:$0xff]  ;;  %v8033_v28 = vmul.f32 %v8001_v50, %v23042_v51 }
 0x35b   : > { %v15442_v23 = vpop.f32.mrf.mxu0  ;;  %15741 = vmatmul.mubr.msk.f32.gmra.mxu0 %vm598_vm1, %v7638_v43  ;;  %15696 = vmatprep.mubr.msk.f32.mxu1 %vm598_vm1, %v7254_v24  ;;  %v8000_v43 = vld [vmem:[#allocation3 + $0x39] sm:$0xff] }
 0x35c   : > { %v19578_v6 = vadd.f32 %v15442_v23, %v15392_v34  ;;  %15743 = vmatprep.mubr.msk.f32.mxu0 %vm598_vm1, %v19387_v45  ;;  %v19582_v30 = vpop.f32.mrf.mxu1  ;;  %v7642_v34 = vld [vmem:[#allocation3 + $0x120] sm:$0xff] }
 0x35d   : > { %23161 = vst [vmem:[#allocation157_spill] sm:$0xff] %v19582_v30  ;;  %v19585_v33 = vpop.f32.mrf.mxu0 }
 0x35e   : > { %v15398_v44 = vpop.f32.mrf.mxu1  ;;  %15697 = vmatmul.mubr.msk.f32.gmra.mxu1 %vm598_vm1, %v7255_v3  ;;  %v8032_v3 = vmul.f32 %v8000_v43, %v23086_v2  ;;  %v8689_v43 = vld [vmem:[#allocation4 + $0x10] sm:$0xff] }
 0x35f   : > { %v15445_v24 = vpop.f32.mrf.mxu0  ;;  %15744 = vmatmul.mubr.msk.f32.gmra.mxu0 %vm598_vm1, %v19397_v39  ;;  %15751 = vmatprep.mubr.msk.f32.mxu1 %vm598_vm1, %v8030_v0  ;;  %v8002_v39 = vld [vmem:[#allocation3 + $0x49] sm:$0xff] }
 0x360   : > { %v19592_v45 = vadd.f32 %v15445_v24, %v15395_v16  ;;  %15746 = vmatprep.mubr.msk.f32.mxu0 %vm598_vm1, %v7641_v15  ;;  %v19595_v11 = vpop.f32.mrf.mxu1  ;;  %v23164_v16 = vld [vmem:[#allocation38_spill] sm:$0xff]  ;;  %v8034_v2 = vmul.f32 %v8002_v39, %v23044_v31 }
 0x361   : > { %23163 = vst [vmem:[#allocation67_spill] sm:$0xff] %v19595_v11  ;;  %v19598_v23 = vpop.f32.mrf.mxu0 }
 0x362   : > { %v15453_v30 = vpop.f32.mrf.mxu1  ;;  %15752 = vmatmul.mubr.msk.f32.vlgmr.msra.gmra.mxu1 %vm598_vm1, %v8031_v42 }
 0x363   : > { %v15448_v0 = vpop.f32.mrf.mxu0  ;;  %15747 = vmatmul.mubr.msk.f32.gmra.mxu0 %vm598_vm1, %v7642_v34  ;;  %v5936_v15 = vadd.f32 %v15453_v30, %v23164_v16  ;;  %15754 = vmatprep.mubr.msk.f32.mxu1 %vm598_vm1, %v8032_v3  ;;  %v8003_v34 = vld [vmem:[#allocation3 + $0x51] sm:$0xff]  ;;  %v8004_v30 = vld [vmem:[#allocation3 + $0x59] sm:$0xff]  ;;  %v8005_v16 = vld [vmem:[#allocation3 + $0x61] sm:$0xff] }
 0x364   : > { %v19605_v24 = vadd.f32 %v15448_v0, %v15398_v44  ;;  %v19607_v48 = vpop.f32.mrf.mxu1  ;;  %15801 = vmatprep.mubr.msk.f32.mxu0 %vm598_vm1, %v8688_v46  ;;  %15850 = vmatpush3.msra.mxu1 %v19428_v1  ;;  %v8035_v1 = vmul.f32 %v8003_v34, %v23045_v5  ;;  %v8037_v34 = vmul.f32 %v8005_v16, %v23047_v53 }
 0x365   : > { %v19612_v42 = vpop.f32.mrf.mxu0 }
 0x366   : > { %v15456_v11 = vpop.f32.mrf.mxu1  ;;  %15755 = vmatmul.mubr.msk.f32.gmra.mxu1 %vm598_vm1, %v8033_v28  ;;  %v8036_v28 = vmul.f32 %v8004_v30, %v23088_v37  ;;  %v8008_v37 = vld [vmem:[#allocation3 + $0x79] sm:$0xff] }
 0x367   : > { %v15503_v44 = vpop.f32.mrf.mxu0  ;;  %v5938_v3 = vadd.f32 %v15456_v11, %v19440_v60  ;;  %15757 = vmatprep.mubr.msk.f32.mxu1 %vm598_vm1, %v8034_v2  ;;  %15802 = vmatmul.mubr.msk.f32.vlgmr.msra.gmra.mxu0 %vm598_vm1, %v8689_v43  ;;  %v8006_v60 = vld [vmem:[#allocation3 + $0x69] sm:$0xff] }
 0x368   : > { %v19619_v46 = vadd.f32 %v15503_v44, %v5936_v15  ;;  %v5786_v50 = vpop.f32.mrf.mxu1  ;;  %v8038_v30 = vmul.f32 %v8006_v60, %v23048_v10  ;;  %v8040_v60 = vmul.f32 %v8008_v37, %v23050_v56  ;;  %v8010_v10 = vld [vmem:[#allocation3 + $0x89] sm:$0xff]  ;;  %v8012_v56 = vld [vmem:[#allocation3 + $0x99] sm:$0xff] }
 0x369   : > { %v19622_v0 = vpop.f32.mrf.mxu0  ;;  %v19625_v39 = vadd.f32 %v5786_v50, %v19444_v13  ;;  %v8007_v50 = vld [vmem:[#allocation3 + $0x71] sm:$0xff]  ;;  %v8042_v37 = vmul.f32 %v8010_v10, %v23052_v36  ;;  %v8044_v10 = vmul.f32 %v8012_v56, %v23054_v49  ;;  %v8014_v36 = vld [vmem:[#allocation3 + $0xa9] sm:$0xff]  ;;  %v8016_v49 = vld [vmem:[#allocation3 + $0xb9] sm:$0xff] }
 0x36a   : > { %v15459_v31 = vpop.f32.mrf.mxu1  ;;  %15758 = vmatmul.mubr.msk.f32.gmra.mxu1 %vm598_vm1, %v8035_v1  ;;  %v8039_v16 = vmul.f32 %v8007_v50, %v23049_v8  ;;  %v8046_v56 = vmul.f32 %v8014_v36, %v23056_v4  ;;  %v8048_v36 = vmul.f32 %v8016_v49, %v23058_v62  ;;  %v8018_v4 = vld [vmem:[#allocation3 + $0xc9] sm:$0xff]  ;;  %v8020_v62 = vld [vmem:[#allocation3 + $0xd9] sm:$0xff] }
 0x36b   : > { %v15506_v2 = vpop.f32.mrf.mxu0  ;;  %v5940_v11 = vadd.f32 %v15459_v31, %v19452_v29  ;;  %15760 = vmatprep.mubr.msk.f32.mxu1 %vm598_vm1, %v8036_v28  ;;  %v8050_v49 = vmul.f32 %v8018_v4, %v23103_v9  ;;  %v8052_v4 = vmul.f32 %v8020_v62, %v23107_v63  ;;  %v8023_v63 = vld [vmem:[#allocation3 + $0xf1] sm:$0xff] }
 0x36c   : > { %v19631_v15 = vadd.f32 %v15506_v2, %v5938_v3  ;;  %v5796_v43 = vpop.f32.mrf.mxu1  ;;  %v23175_v8 = vld [vmem:[#allocation169_spill] sm:$0xff] }
 0x36d   : > { %v19634_v44 = vpop.f32.mrf.mxu0  ;;  %v19637_v13 = vadd.f32 %v5796_v43, %v19457_v25  ;;  %v8009_v43 = vld [vmem:[#allocation3 + $0x81] sm:$0xff] }
 0x36e   : > { %v15462_v1 = vpop.f32.mrf.mxu1  ;;  %15761 = vmatmul.mubr.msk.f32.gmra.mxu1 %vm598_vm1, %v8037_v34 }
 0x36f   : > { %v15509_v31 = vpop.f32.mrf.mxu0  ;;  %v5942_v29 = vadd.f32 %v15462_v1, %v19463_v41  ;;  %15763 = vmatprep.mubr.msk.f32.mxu1 %vm598_vm1, %v8038_v30  ;;  %v8041_v1 = vmul.f32 %v8009_v43, %v23051_v59 }
 0x370   : > { %v19643_v3 = vadd.f32 %v15509_v31, %v5940_v11  ;;  %v5806_v28 = vpop.f32.mrf.mxu1 }
 0x371   : > { %v19646_v2 = vpop.f32.mrf.mxu0  ;;  %v19649_v25 = vadd.f32 %v5806_v28, %v19469_v58  ;;  %v8011_v28 = vld [vmem:[#allocation3 + $0x91] sm:$0xff] }
 0x372   : > { %v15465_v34 = vpop.f32.mrf.mxu1  ;;  %15764 = vmatmul.mubr.msk.f32.gmra.mxu1 %vm598_vm1, %v8039_v16 }
 0x373   : > { %v15512_v41 = vpop.f32.mrf.mxu0  ;;  %v5944_v30 = vadd.f32 %v15465_v34, %v19473_v27  ;;  %15766 = vmatprep.mubr.msk.f32.mxu1 %vm598_vm1, %v8040_v60  ;;  %v8043_v34 = vmul.f32 %v8011_v28, %v23053_v54 }
 0x374   : > { %v19655_v11 = vadd.f32 %v15512_v41, %v5942_v29  ;;  %v5816_v50 = vpop.f32.mrf.mxu1 }
 0x375   : > { %v19658_v31 = vpop.f32.mrf.mxu0  ;;  %v19661_v58 = vadd.f32 %v5816_v50, %v19479_v7  ;;  %v8013_v50 = vld [vmem:[#allocation3 + $0xa1] sm:$0xff] }
 0x376   : > { %v15468_v16 = vpop.f32.mrf.mxu1  ;;  %15767 = vmatmul.mubr.msk.f32.gmra.mxu1 %vm598_vm1, %v8041_v1 }
 0x377   : > { %v15515_v27 = vpop.f32.mrf.mxu0  ;;  %v5946_v60 = vadd.f32 %v15468_v16, %v19484_v17  ;;  %15769 = vmatprep.mubr.msk.f32.mxu1 %vm598_vm1, %v8042_v37  ;;  %v8045_v16 = vmul.f32 %v8013_v50, %v23055_v35 }
 0x378   : > { %v19667_v29 = vadd.f32 %v15515_v27, %v5944_v30  ;;  %v5826_v43 = vpop.f32.mrf.mxu1 }
 0x379   : > { %v19670_v41 = vpop.f32.mrf.mxu0  ;;  %v19673_v7 = vadd.f32 %v5826_v43, %v19490_v38  ;;  %v8015_v43 = vld [vmem:[#allocation3 + $0xb1] sm:$0xff] }
 0x37a   : > { %v15471_v1 = vpop.f32.mrf.mxu1  ;;  %15770 = vmatmul.mubr.msk.f32.gmra.mxu1 %vm598_vm1, %v8043_v34 }
 0x37b   : > { %v15518_v17 = vpop.f32.mrf.mxu0  ;;  %v5948_v37 = vadd.f32 %v15471_v1, %v19494_v52  ;;  %15772 = vmatprep.mubr.msk.f32.mxu1 %vm598_vm1, %v8044_v10  ;;  %v8047_v1 = vmul.f32 %v8015_v43, %v23057_v21 }
 0x37c   : > { %v19679_v30 = vadd.f32 %v15518_v17, %v5946_v60  ;;  %v5836_v28 = vpop.f32.mrf.mxu1 }
 0x37d   : > { %v19682_v27 = vpop.f32.mrf.mxu0  ;;  %v19685_v38 = vadd.f32 %v5836_v28, %v19500_v32  ;;  %v8017_v28 = vld [vmem:[#allocation3 + $0xc1] sm:$0xff] }
 0x37e   : > { %v15474_v34 = vpop.f32.mrf.mxu1  ;;  %15773 = vmatmul.mubr.msk.f32.gmra.mxu1 %vm598_vm1, %v8045_v16 }
 0x37f   : > { %v15521_v52 = vpop.f32.mrf.mxu0  ;;  %v5950_v10 = vadd.f32 %v15474_v34, %v19506_v20  ;;  %15775 = vmatprep.mubr.msk.f32.mxu1 %vm598_vm1, %v8046_v56  ;;  %v8049_v34 = vmul.f32 %v8017_v28, %v23059_v22 }
 0x380   : > { %v19691_v60 = vadd.f32 %v15521_v52, %v5948_v37  ;;  %v5846_v50 = vpop.f32.mrf.mxu1 }
 0x381   : > { %v19694_v17 = vpop.f32.mrf.mxu0  ;;  %v19697_v32 = vadd.f32 %v5846_v50, %v19511_v61  ;;  %v8019_v50 = vld [vmem:[#allocation3 + $0xd1] sm:$0xff] }
 0x382   : > { %v15477_v16 = vpop.f32.mrf.mxu1  ;;  %15776 = vmatmul.mubr.msk.f32.gmra.mxu1 %vm598_vm1, %v8047_v1 }
 0x383   : > { %v15524_v20 = vpop.f32.mrf.mxu0  ;;  %v5952_v56 = vadd.f32 %v15477_v16, %v19516_v14  ;;  %15778 = vmatprep.mubr.msk.f32.mxu1 %vm598_vm1, %v8048_v36  ;;  %v8051_v16 = vmul.f32 %v8019_v50, %v23106_v26  ;;  %v23166_v26 = vld [vmem:[#allocation139_spill] sm:$0xff] }
 0x384   : > { %v19703_v37 = vadd.f32 %v15524_v20, %v5950_v10  ;;  %v5856_v43 = vpop.f32.mrf.mxu1  ;;  %v8021_v20 = vld [vmem:[#allocation3 + $0xe1] sm:$0xff] }
 0x385   : > { %v19706_v52 = vpop.f32.mrf.mxu0  ;;  %v19709_v61 = vadd.f32 %v5856_v43, %v19523_v18 }
 0x386   : > { %v15480_v1 = vpop.f32.mrf.mxu1  ;;  %15779 = vmatmul.mubr.msk.f32.gmra.mxu1 %vm598_vm1, %v8049_v34  ;;  %v8022_v34 = vld [vmem:[#allocation3 + $0xe9] sm:$0xff] }
 0x387   : > { %v15527_v14 = vpop.f32.mrf.mxu0  ;;  %v5954_v36 = vadd.f32 %v15480_v1, %v19528_v55  ;;  %15781 = vmatprep.mubr.msk.f32.mxu1 %vm598_vm1, %v8050_v49  ;;  %v23165_v1 = vld [vmem:[#allocation126_spill] sm:$0xff]  ;;  %v8054_v62 = vmul.f32 %v8022_v34, %v23166_v26 }
 0x388   : > { %v19715_v10 = vadd.f32 %v15527_v14, %v5952_v56  ;;  %v19717_v28 = vpop.f32.mrf.mxu1  ;;  %v8053_v50 = vmul.f32 %v8021_v20, %v23165_v1  ;;  %v23168_v1 = vld [vmem:[#allocation149_spill] sm:$0xff]  ;;  %v8025_v26 = vld [vmem:[#allocation3 + $0x101] sm:$0xff] }
 0x389   : > { %v19720_v18 = vpop.f32.mrf.mxu0 }
 0x38a   : > { %v15483_v43 = vpop.f32.mrf.mxu1  ;;  %15782 = vmatmul.mubr.msk.f32.gmra.mxu1 %vm598_vm1, %v8051_v16  ;;  %v8024_v16 = vld [vmem:[#allocation3 + $0xf9] sm:$0xff] }
 0x38b   : > { %v15530_v9 = vpop.f32.mrf.mxu0  ;;  %v5956_v55 = vadd.f32 %v15483_v43, %v19540_v57  ;;  %15784 = vmatprep.mubr.msk.f32.mxu1 %vm598_vm1, %v8052_v4  ;;  %v23167_v4 = vld [vmem:[#allocation138_spill] sm:$0xff]  ;;  %v8056_v34 = vmul.f32 %v8024_v16, %v23168_v1 }
 0x38c   : > { %v19726_v56 = vadd.f32 %v15530_v9, %v5954_v36  ;;  %v19728_v49 = vpop.f32.mrf.mxu1  ;;  %v8055_v20 = vmul.f32 %v8023_v63, %v23167_v4  ;;  %v23171_v4 = vld [vmem:[#allocation137_spill] sm:$0xff] }
 0x38d   : > { %v19731_v14 = vpop.f32.mrf.mxu0 }
 0x38e   : > { %v15486_v22 = vpop.f32.mrf.mxu1  ;;  %15785 = vmatmul.mubr.msk.f32.gmra.mxu1 %vm598_vm1, %v8053_v50 }
 0x38f   : > { %v15533_v21 = vpop.f32.mrf.mxu0  ;;  %v5958_v57 = vadd.f32 %v15486_v22, %v19552_v19  ;;  %15787 = vmatprep.mubr.msk.f32.mxu1 %vm598_vm1, %v8054_v62  ;;  %v23169_v19 = vld [vmem:[#allocation148_spill] sm:$0xff]  ;;  %v23170_v62 = vld [vmem:[#allocation159_spill] sm:$0xff] }
 0x390   : > { %v19737_v9 = vadd.f32 %v15533_v21, %v5956_v55  ;;  %v19739_v36 = vpop.f32.mrf.mxu1  ;;  %v8057_v55 = vmul.f32 %v8025_v26, %v23169_v19  ;;  %v8058_v16 = vmul.f32 %v23171_v4, %v23170_v62  ;;  %v23173_v26 = vld [vmem:[#allocation128_spill] sm:$0xff]  ;;  %v8029_v62 = vld [vmem:[#allocation3 + $0x121] sm:$0xff] }
 0x391   : > { %v19742_v43 = vpop.f32.mrf.mxu0 }
 0x392   : > { %v15489_v35 = vpop.f32.mrf.mxu1  ;;  %15788 = vmatmul.mubr.msk.f32.gmra.mxu1 %vm598_vm1, %v8055_v20  ;;  %v8028_v20 = vld [vmem:[#allocation3 + $0x119] sm:$0xff] }
 0x393   : > { %v15536_v50 = vpop.f32.mrf.mxu0  ;;  %v5960_v54 = vadd.f32 %v15489_v35, %v19565_v12  ;;  %15790 = vmatprep.mubr.msk.f32.mxu1 %vm598_vm1, %v8056_v34  ;;  %v23172_v34 = vld [vmem:[#allocation158_spill] sm:$0xff]  ;;  %v8060_v4 = vmul.f32 %v8028_v20, %v23175_v8 }
 0x394   : > { %v19748_v22 = vadd.f32 %v15536_v50, %v5958_v57  ;;  %v19750_v21 = vpop.f32.mrf.mxu1  ;;  %v8059_v50 = vmul.f32 %v23173_v26, %v23172_v34  ;;  %v23177_v34 = vld [vmem:[#allocation54_spill] sm:$0xff] }
 0x395   : > { %v19753_v63 = vpop.f32.mrf.mxu0  ;;  %v8624_v8 = vld [vmem:[#allocation4 + $0xf] sm:$0xff] }
 0x396   : > { %v15492_v1 = vpop.f32.mrf.mxu1  ;;  %15791 = vmatmul.mubr.msk.f32.gmra.mxu1 %vm598_vm1, %v8057_v55  ;;  %v8623_v55 = vld [vmem:[#allocation4 + $0x7] sm:$0xff] }
 0x397   : > { %v15539_v59 = vpop.f32.mrf.mxu0  ;;  %v5962_v35 = vadd.f32 %v15492_v1, %v19578_v6  ;;  %15793 = vmatprep.mubr.msk.f32.mxu1 %vm598_vm1, %v8058_v16  ;;  %v23176_v1 = vld [vmem:[#allocation168_spill] sm:$0xff]  ;;  %v8655_v20 = vmul.f32 %v8623_v55, %v23177_v34 }
 0x398   : > { %v19760_v12 = vadd.f32 %v15539_v59, %v5960_v54  ;;  %v19762_v57 = vpop.f32.mrf.mxu1  ;;  %v8061_v16 = vmul.f32 %v8029_v62, %v23176_v1 }
 0x399   : > { %v19766_v19 = vpop.f32.mrf.mxu0 }
 0x39a   : > { %23174 = vst [vmem:[#allocation170_spill] sm:$0xff] %v19766_v19  ;;  %v15495_v53 = vpop.f32.mrf.mxu1  ;;  %15794 = vmatmul.mubr.msk.f32.gmra.mxu1 %vm598_vm1, %v8059_v50 }
 0x39b   : > { %v15542_v5 = vpop.f32.mrf.mxu0  ;;  %v5964_v6 = vadd.f32 %v15495_v53, %v19592_v45  ;;  %15796 = vmatprep.mubr.msk.f32.mxu1 %vm598_vm1, %v8060_v4  ;;  %v23178_v45 = vld [vmem:[#allocation56_spill] sm:$0xff] }
 0x39c   : > { %v19772_v59 = vadd.f32 %v15542_v5, %v5962_v35  ;;  %v19774_v54 = vpop.f32.mrf.mxu1  ;;  %v8656_v35 = vmul.f32 %v8624_v8, %v23178_v45 }
 0x39d   : > { %v19777_v26 = vpop.f32.mrf.mxu0 }
 0x39e   : > { %v15498_v51 = vpop.f32.mrf.mxu1  ;;  %15797 = vmatmul.mubr.msk.f32.gmra.mxu1 %vm598_vm1, %v8061_v16 }
 0x39f   : > { %v15545_v50 = vpop.f32.mrf.mxu0  ;;  %v5966_v19 = vadd.f32 %v15498_v51, %v19605_v24  ;;  %15851 = vmatprep.mubr.msk.f32.mxu1 %vm598_vm1, %v8655_v20 }
 0x3a0   : > { %v19783_v53 = vadd.f32 %v15545_v50, %v5964_v6  ;;  %v19785_v5 = vpop.f32.mrf.mxu1 }
 0x3a1   : > { %v19788_v62 = vpop.f32.mrf.mxu0 }
 0x3a2   : > { %v15553_v4 = vpop.f32.mrf.mxu1  ;;  %15852 = vmatmul.mubr.msk.f32.vlgmr.msra.gmra.mxu1 %vm598_vm1, %v8656_v35 }
 0x3a3   : > { %v15548_v55 = vpop.f32.mrf.mxu0  ;;  %v19792_v1 = vadd.f32 %v15553_v4, %v19619_v46 }
 0x3a4   : > { %v19794_v16 = vadd.f32 %v15548_v55, %v5966_v19  ;;  %v19796_v51 = vpop.f32.mrf.mxu1 }
 0x3a5   : > { %23179 = vst [vmem:[#allocation171_spill] sm:$0xff] %v19792_v1  ;;  %v19798_v24 = vpop.f32.mrf.mxu0 }
 0x3a6   : > { %v15556_v6 = vpop.f32.mrf.mxu1 }
 0x3a7   : > { %v19800_v20 = vpop.f32.mrf.mxu0  ;;  %v19803_v8 = vadd.f32 %v15556_v6, %v19631_v15 }
 0x3a8   : > { %23180 = vst [vmem:[#allocation161_spill] sm:$0xff] %v19800_v20  ;;  %v19805_v50 = vpop.f32.mrf.mxu1 }
 0x3a9   : > { %23181 = vst [vmem:[#allocation165_spill] sm:$0xff] %v19803_v8  ;;  %v19807_v45 = vpop.f32.mrf.mxu0 }
 0x3aa   : > { %23182 = vst [vmem:[#allocation166_spill] sm:$0xff] %v19807_v45  ;;  %v15559_v35 = vpop.f32.mrf.mxu1 }
 0x3ab   : > { %v19809_v34 = vpop.f32.mrf.mxu0  ;;  %v19812_v46 = vadd.f32 %v15559_v35, %v19643_v3 }
 0x3ac   : > { %23183 = vst [vmem:[#allocation68_spill] sm:$0xff] %v19809_v34  ;;  %v19814_v19 = vpop.f32.mrf.mxu1 }
 0x3ad   : > { %23184 = vst [vmem:[#allocation167_spill] sm:$0xff] %v19812_v46  ;;  %v19816_v4 = vpop.f32.mrf.mxu0 }
 0x3ae   : > { %23185 = vst [vmem:[#allocation39_spill] sm:$0xff] %v19816_v4  ;;  %v15562_v55 = vpop.f32.mrf.mxu1 }
 0x3af   : > { %v19818_v1 = vpop.f32.mrf.mxu0  ;;  %v19821_v15 = vadd.f32 %v15562_v55, %v19655_v11 }
 0x3b0   : > { %23186 = vst [vmem:[#allocation124_spill] sm:$0xff] %v19818_v1  ;;  %v19823_v6 = vpop.f32.mrf.mxu1 }
 0x3b1   : > { %23187 = vst [vmem:[#allocation173_spill] sm:$0xff] %v19821_v15  ;;  %v19825_v8 = vpop.f32.mrf.mxu0 }
 0x3b2   : > { %23188 = vst [vmem:[#allocation73_spill] sm:$0xff] %v19825_v8  ;;  %v15565_v45 = vpop.f32.mrf.mxu1 }
 0x3b3   : > { %v19827_v20 = vpop.f32.mrf.mxu0  ;;  %v19830_v3 = vadd.f32 %v15565_v45, %v19667_v29 }
 0x3b4   : > { %23189 = vst [vmem:[#allocation174_spill] sm:$0xff] %v19827_v20  ;;  %v19832_v35 = vpop.f32.mrf.mxu1 }
 0x3b5   : > { %23190 = vst [vmem:[#allocation175_spill] sm:$0xff] %v19830_v3  ;;  %v19834_v46 = vpop.f32.mrf.mxu0 }
 0x3b6   : > { %23191 = vst [vmem:[#allocation176_spill] sm:$0xff] %v19834_v46  ;;  %v15568_v4 = vpop.f32.mrf.mxu1 }
 0x3b7   : > { %v19836_v34 = vpop.f32.mrf.mxu0  ;;  %v19839_v11 = vadd.f32 %v15568_v4, %v19679_v30 }
 0x3b8   : > { %23192 = vst [vmem:[#allocation74_spill] sm:$0xff] %v19836_v34  ;;  %v19841_v55 = vpop.f32.mrf.mxu1  ;;  %v13703_v34 = vld [vmem:[%s22058_s7 + $0x10] sm:$0xff] }
 0x3b9   : > { %23193 = vst [vmem:[#allocation179_spill] sm:$0xff] %v19839_v11  ;;  %v19843_v15 = vpop.f32.mrf.mxu0  ;;  %15899 = vmatprep.subr.mxu0 %v13703_v34 }
 0x3ba   : > { %23194 = vst [vmem:[#allocation37_spill] sm:$0xff] %v19843_v15  ;;  %v15571_v8 = vpop.f32.mrf.mxu1  ;;  %15900 = vmatpush3.msra.mxu0 %v13703_v34 }
 0x3bb   : > { %v19845_v1 = vpop.f32.mrf.mxu0  ;;  %v19848_v29 = vadd.f32 %v15571_v8, %v19691_v60  ;;  %v13736_v60 = vld [vmem:[%s22058_s7 + $0x18] sm:$0xff] }
 0x3bc   : > { %23195 = vst [vmem:[#allocation177_spill] sm:$0xff] %v19845_v1  ;;  %v19850_v45 = vpop.f32.mrf.mxu1  ;;  %15949 = vmatprep.subr.mxu1 %v13736_v60 }
 0x3bd   : > { %23196 = vst [vmem:[#allocation113_spill] sm:$0xff] %v19848_v29  ;;  %v19852_v3 = vpop.f32.mrf.mxu0  ;;  %15950 = vmatpush3.msra.mxu1 %v13736_v60 }
 0x3be   : > { %23197 = vst [vmem:[#allocation79_spill] sm:$0xff] %v19852_v3  ;;  %v15574_v30 = vpop.f32.mrf.mxu1 }
 0x3bf   : > { %v19857_v4 = vpop.f32.mrf.mxu0  ;;  %v19860_v11 = vadd.f32 %v15574_v30, %v19703_v37 }
 0x3c0   : > { %23198 = vst [vmem:[#allocation134_spill] sm:$0xff] %v19857_v4  ;;  %v19865_v8 = vpop.f32.mrf.mxu1 }
 0x3c1   : > { %23199 = vst [vmem:[#allocation135_spill] sm:$0xff] %v19860_v11  ;;  %v19867_v29 = vpop.f32.mrf.mxu0 }
 0x3c2   : > { %23200 = vst [vmem:[#allocation123_spill] sm:$0xff] %v19867_v29  ;;  %v15577_v3 = vpop.f32.mrf.mxu1 }
 0x3c3   : > { %v19869_v1 = vpop.f32.mrf.mxu0  ;;  %v19872_v15 = vadd.f32 %v15577_v3, %v19715_v10 }
 0x3c4   : > { %23201 = vst [vmem:[#allocation40_spill] sm:$0xff] %v19869_v1  ;;  %v19874_v4 = vpop.f32.mrf.mxu1 }
 0x3c5   : > { %23202 = vst [vmem:[#allocation181_spill] sm:$0xff] %v19872_v15  ;;  %v19876_v37 = vpop.f32.mrf.mxu0 }
 0x3c6   : > { %23203 = vst [vmem:[#allocation115_spill] sm:$0xff] %v19876_v37  ;;  %v15580_v34 = vpop.f32.mrf.mxu1 }
 0x3c7   : > { %v19878_v30 = vpop.f32.mrf.mxu0  ;;  %v19881_v11 = vadd.f32 %v15580_v34, %v19726_v56 }
 0x3c8   : > { %23204 = vst [vmem:[#allocation182_spill] sm:$0xff] %v19878_v30  ;;  %v19883_v46 = vpop.f32.mrf.mxu1 }
 0x3c9   : > { %23205 = vst [vmem:[#allocation183_spill] sm:$0xff] %v19881_v11  ;;  %v19885_v29 = vpop.f32.mrf.mxu0 }
 0x3ca   : > { %23206 = vst [vmem:[#allocation184_spill] sm:$0xff] %v19885_v29  ;;  %v15583_v60 = vpop.f32.mrf.mxu1 }
 0x3cb   : > { %v19887_v20 = vpop.f32.mrf.mxu0  ;;  %v19890_v10 = vadd.f32 %v15583_v60, %v19737_v9 }
 0x3cc   : > { %23207 = vst [vmem:[#allocation185_spill] sm:$0xff] %v19887_v20  ;;  %v19892_v3 = vpop.f32.mrf.mxu1 }
 0x3cd   : > { %23208 = vst [vmem:[#allocation80_spill] sm:$0xff] %v19890_v10  ;;  %v19894_v15 = vpop.f32.mrf.mxu0 }
 0x3ce   : > { %23209 = vst [vmem:[#allocation186_spill] sm:$0xff] %v19894_v15  ;;  %v15586_v37 = vpop.f32.mrf.mxu1 }
 0x3cf   : > { %v19896_v1 = vpop.f32.mrf.mxu0  ;;  %v19899_v56 = vadd.f32 %v15586_v37, %v19748_v22 }
 0x3d0   : > { %23210 = vst [vmem:[#allocation187_spill] sm:$0xff] %v19896_v1  ;;  %v19901_v34 = vpop.f32.mrf.mxu1 }
 0x3d1   : > { %23211 = vst [vmem:[#allocation188_spill] sm:$0xff] %v19899_v56  ;;  %v19903_v11 = vpop.f32.mrf.mxu0 }
 0x3d2   : > { %23212 = vst [vmem:[#allocation86_spill] sm:$0xff] %v19903_v11  ;;  %v15589_v29 = vpop.f32.mrf.mxu1 }
 0x3d3   : > { %v19905_v30 = vpop.f32.mrf.mxu0  ;;  %v19908_v9 = vadd.f32 %v15589_v29, %v19760_v12 }
 0x3d4   : > { %23213 = vst [vmem:[#allocation120_spill] sm:$0xff] %v19905_v30  ;;  %v19910_v60 = vpop.f32.mrf.mxu1 }
 0x3d5   : > { %23214 = vst [vmem:[#allocation189_spill] sm:$0xff] %v19908_v9  ;;  %23215 = vst [vmem:[#allocation190_spill] sm:$0xff] %v19910_v60  ;;  %v19912_v10 = vpop.f32.mrf.mxu0  ;;  %v23273_v60 = vld [vmem:[#allocation160_spill] sm:$0xff] }
 0x3d6   : > { %23216 = vst [vmem:[#allocation191_spill] sm:$0xff] %v19912_v10  ;;  %v15592_v15 = vpop.f32.mrf.mxu1 }
 0x3d7   : > { %v19914_v20 = vpop.f32.mrf.mxu0  ;;  %v19917_v22 = vadd.f32 %v15592_v15, %v19772_v59 }
 0x3d8   : > { %23217 = vst [vmem:[#allocation91_spill] sm:$0xff] %v19914_v20  ;;  %v19919_v37 = vpop.f32.mrf.mxu1  ;;  %v23269_v20 = vld [vmem:[#allocation141_spill] sm:$0xff] }
 0x3d9   : > { %23218 = vst [vmem:[#allocation130_spill] sm:$0xff] %v19917_v22  ;;  %23219 = vst [vmem:[#allocation192_spill] sm:$0xff] %v19919_v37  ;;  %v19921_v56 = vpop.f32.mrf.mxu0 }
 0x3da   : > { %23220 = vst [vmem:[#allocation136_spill] sm:$0xff] %v19921_v56  ;;  %v15595_v11 = vpop.f32.mrf.mxu1 }
 0x3db   : > { %v19923_v1 = vpop.f32.mrf.mxu0  ;;  %v19926_v12 = vadd.f32 %v15595_v11, %v19783_v53 }
 0x3dc   : > { %23221 = vst [vmem:[#allocation97_spill] sm:$0xff] %v19923_v1  ;;  %v19928_v29 = vpop.f32.mrf.mxu1 }
 0x3dd   : > { %23222 = vst [vmem:[#allocation131_spill] sm:$0xff] %v19926_v12  ;;  %23223 = vst [vmem:[#allocation109_spill] sm:$0xff] %v19928_v29  ;;  %v19930_v9 = vpop.f32.mrf.mxu0  ;;  %v23270_v29 = vld [vmem:[#allocation140_spill] sm:$0xff] }
 0x3de   : > { %23224 = vst [vmem:[#allocation119_spill] sm:$0xff] %v19930_v9  ;;  %v15598_v10 = vpop.f32.mrf.mxu1 }
 0x3df   : > { %v19932_v30 = vpop.f32.mrf.mxu0  ;;  %v19935_v59 = vadd.f32 %v15598_v10, %v19794_v16 }
 0x3e0   : > { %23225 = vst [vmem:[#allocation146_spill] sm:$0xff] %v19932_v30  ;;  %v19937_v15 = vpop.f32.mrf.mxu1 }
 0x3e1   : > { %23226 = vst [vmem:[#allocation142_spill] sm:$0xff] %v19935_v59  ;;  %23227 = vst [vmem:[#allocation103_spill] sm:$0xff] %v19937_v15  ;;  %v19939_v22 = vpop.f32.mrf.mxu0 }
 0x3e2   : > { %23228 = vst [vmem:[#allocation98_spill] sm:$0xff] %v19939_v22  ;;  %v19941_v56 = vpop.f32.mrf.mxu1 }
 0x3e3   : > { %23229 = vst [vmem:[#allocation61_spill] sm:$0xff] %v19941_v56  ;;  %v19943_v1 = vpop.f32.mrf.mxu0 }
 0x3e4   : > { %23230 = vst [vmem:[#allocation44_spill] sm:$0xff] %v19943_v1  ;;  %v19945_v53 = vpop.f32.mrf.mxu1 }
 0x3e5   : > { %23231 = vst [vmem:[#allocation42_spill] sm:$0xff] %v19945_v53  ;;  %v19947_v11 = vpop.f32.mrf.mxu0 }
 0x3e6   : > { %23232 = vst [vmem:[#allocation152_spill] sm:$0xff] %v19947_v11  ;;  %v19949_v12 = vpop.f32.mrf.mxu1 }
 0x3e7   : > { %23233 = vst [vmem:[#allocation156_spill] sm:$0xff] %v19949_v12  ;;  %v19951_v9 = vpop.f32.mrf.mxu0 }
 0x3e8   : > { %23234 = vst [vmem:[#allocation162_spill] sm:$0xff] %v19951_v9  ;;  %v19953_v30 = vpop.f32.mrf.mxu1 }
 0x3e9   : > { %23235 = vst [vmem:[#allocation47_spill] sm:$0xff] %v19953_v30  ;;  %v19955_v16 = vpop.f32.mrf.mxu0 }
 0x3ea   : > { %23236 = vst [vmem:[#allocation43_spill] sm:$0xff] %v19955_v16  ;;  %v19957_v10 = vpop.f32.mrf.mxu1 }
 0x3eb   : > { %23237 = vst [vmem:[#allocation155_spill] sm:$0xff] %v19957_v10  ;;  %v19959_v59 = vpop.f32.mrf.mxu0 }
 0x3ec   : > { %23238 = vst [vmem:[#allocation45_spill] sm:$0xff] %v19959_v59  ;;  %v19961_v22 = vpop.f32.mrf.mxu1 }
 0x3ed   : > { %23239 = vst [vmem:[#allocation172_spill] sm:$0xff] %v19961_v22  ;;  %v19963_v56 = vpop.f32.mrf.mxu0 }
 0x3ee   : > { %23240 = vst [vmem:[#allocation49_spill] sm:$0xff] %v19963_v56  ;;  %v19965_v1 = vpop.f32.mrf.mxu1  ;;  %v13769_v56 = vld [vmem:[%s22058_s7 + $0x20] sm:$0xff] }
 0x3ef   : > { %23241 = vst [vmem:[#allocation46_spill] sm:$0xff] %v19965_v1  ;;  %v19967_v53 = vpop.f32.mrf.mxu0  ;;  %15999 = vmatprep.subr.mxu0 %v13769_v56 }
 0x3f0   : > { %23242 = vst [vmem:[#allocation48_spill] sm:$0xff] %v19967_v53  ;;  %v19969_v11 = vpop.f32.mrf.mxu1  ;;  %v13802_v53 = vld [vmem:[%s22058_s7 + $0x28] sm:$0xff] }
 0x3f1   : > { %23243 = vst [vmem:[#allocation178_spill] sm:$0xff] %v19969_v11  ;;  %v19971_v12 = vpop.f32.mrf.mxu0  ;;  %16049 = vmatprep.subr.mxu1 %v13802_v53 }
 0x3f2   : > { %23244 = vst [vmem:[#allocation180_spill] sm:$0xff] %v19971_v12  ;;  %v19973_v9 = vpop.f32.mrf.mxu1 }
 0x3f3   : > { %23245 = vst [vmem:[#allocation36_spill] sm:$0xff] %v19973_v9  ;;  %v19975_v30 = vpop.f32.mrf.mxu0 }
 0x3f4   : > { %23246 = vst [vmem:[#allocation114_spill] sm:$0xff] %v19975_v30  ;;  %v19977_v16 = vpop.f32.mrf.mxu1 }
 0x3f5   : > { %23247 = vst [vmem:[#allocation41_spill] sm:$0xff] %v19977_v16  ;;  %v19979_v10 = vpop.f32.mrf.mxu0 }
 0x3f6   : > { %23248 = vst [vmem:[#allocation145_spill] sm:$0xff] %v19979_v10  ;;  %v19984_v59 = vpop.f32.mrf.mxu1 }
 0x3f7   : > { %23249 = vst [vmem:[#allocation85_spill] sm:$0xff] %v19984_v59  ;;  %v19989_v12 = vpop.f32.mrf.mxu0 }
 0x3f8   : > { %23250 = vst [vmem:[#allocation125_spill] sm:$0xff] %v19989_v12  ;;  %v19991_v9 = vpop.f32.mrf.mxu1 }
 0x3f9   : > { %23251 = vst [vmem:[#allocation118_spill] sm:$0xff] %v19991_v9  ;;  %v19993_v30 = vpop.f32.mrf.mxu0 }
 0x3fa   : > { %23252 = vst [vmem:[#allocation110_spill] sm:$0xff] %v19993_v30  ;;  %v19995_v16 = vpop.f32.mrf.mxu1  ;;  %v23263_v30 = vld [vmem:[#allocation129_spill] sm:$0xff] }
 0x3fb   : > { %23253 = vst [vmem:[#allocation92_spill] sm:$0xff] %v19995_v16  ;;  %v19997_v10 = vpop.f32.mrf.mxu0  ;;  %v23264_v16 = vld [vmem:[#allocation50_spill] sm:$0xff] }
 0x3fc   : > { %23254 = vst [vmem:[#allocation104_spill] sm:$0xff] %v19997_v10  ;;  %v19999_v11 = vpop.f32.mrf.mxu1  ;;  %v5390_v15 = vadd.f32 %v23264_v16, %v23263_v30  ;;  %v5510_v30 = vadd.f32 %v19572_v47, %v23273_v60  ;;  %v6358_v47 = vadd.f32 %v19646_v2, %v19637_v13 }
 0x3fd   : > { %23255 = vst [vmem:[#allocation38_spill] sm:$0xff] %v19999_v11  ;;  %v20001_v1 = vpop.f32.mrf.mxu0 }
 0x3fe   : > { %23256 = vst [vmem:[#allocation137_spill] sm:$0xff] %v20001_v1  ;;  %v20003_v56 = vpop.f32.mrf.mxu1  ;;  %v5935_v1 = vadd.f32 %v19607_v48, %v5390_v15  ;;  %v23275_v15 = vld [vmem:[#allocation157_spill] sm:$0xff] }
 0x3ff   : > { %23257 = vst [vmem:[#allocation128_spill] sm:$0xff] %v20003_v56  ;;  %v20005_v59 = vpop.f32.mrf.mxu0 }
 0x400   : > { %23258 = vst [vmem:[#allocation193_spill] sm:$0xff] %v20005_v59  ;;  %v20007_v22 = vpop.f32.mrf.mxu1  ;;  %v23268_v59 = vld [vmem:[#allocation147_spill] sm:$0xff] }
 0x401   : > { %23259 = vst [vmem:[#allocation194_spill] sm:$0xff] %v20007_v22  ;;  %v20009_v12 = vpop.f32.mrf.mxu0  ;;  %v5480_v22 = vadd.f32 %v23269_v20, %v23268_v59  ;;  %v23276_v20 = vld [vmem:[#allocation67_spill] sm:$0xff] }
 0x402   : > { %23260 = vst [vmem:[#allocation195_spill] sm:$0xff] %v20009_v12  ;;  %v20011_v53 = vpop.f32.mrf.mxu1  ;;  %v23271_v12 = vld [vmem:[#allocation151_spill] sm:$0xff]  ;;  %v5540_v59 = vadd.f32 %v19612_v42, %v23276_v20  ;;  %v5959_v42 = vadd.f32 %v19750_v21, %v5510_v30  ;;  %v6745_v21 = vadd.f32 %v19814_v19, %v6358_v47  ;;  %v23289_v47 = vld [vmem:[#allocation176_spill] sm:$0xff] }
 0x403   : > { %23261 = vst [vmem:[#allocation196_spill] sm:$0xff] %v20011_v53  ;;  %v20017_v10 = vpop.f32.mrf.mxu0  ;;  %v5490_v37 = vadd.f32 %v23271_v12, %v23270_v29  ;;  %v23272_v53 = vld [vmem:[#allocation62_spill] sm:$0xff]  ;;  %v6354_v12 = vadd.f32 %v19622_v0, %v5935_v1  ;;  %v5953_v60 = vadd.f32 %v19717_v28, %v5480_v22  ;;  %v23282_v22 = vld [vmem:[#allocation68_spill] sm:$0xff] }
 0x404   : > { %v20013_v9 = vpop.f32.mrf.mxu1  ;;  %23265 = vst [vmem:[#allocation129_spill] sm:$0xff] %v20017_v10  ;;  %v5965_v2 = vadd.f32 %v19785_v5, %v5540_v59  ;;  %v23287_v59 = vld [vmem:[#allocation173_spill] sm:$0xff] }
 0x405   : > { %23262 = vst [vmem:[#allocation197_spill] sm:$0xff] %v20013_v9  ;;  %v5500_v9 = vadd.f32 %v19558_v40, %v23272_v53  ;;  %v20032_v16 = vpop.f32.mrf.mxu0  ;;  %v6356_v40 = vadd.f32 %v19634_v44, %v19625_v39  ;;  %v5955_v29 = vadd.f32 %v19728_v49, %v5490_v37  ;;  %v6362_v39 = vadd.f32 %v19670_v41, %v19661_v58  ;;  %v23283_v37 = vld [vmem:[#allocation39_spill] sm:$0xff] }
 0x406   : > { %v20019_v11 = vpop.f32.mrf.mxu1  ;;  %v6364_v44 = vadd.f32 %v19682_v27, %v19673_v7  ;;  %v6370_v58 = vadd.f32 %v19720_v18, %v19709_v61  ;;  %v6741_v41 = vadd.f32 %v19796_v51, %v6354_v12  ;;  %v6372_v7 = vadd.f32 %v19731_v14, %v5953_v60  ;;  %v23278_v14 = vld [vmem:[#allocation171_spill] sm:$0xff]  ;;  %v23288_v12 = vld [vmem:[#allocation174_spill] sm:$0xff] }
 0x407   : > { %23266 = vst [vmem:[#allocation50_spill] sm:$0xff] %v20019_v11  ;;  %v23274_v11 = vld [vmem:[#allocation150_spill] sm:$0xff]  ;;  %v20062_v28 = vpop.f32.mrf.mxu0  ;;  %v6374_v27 = vadd.f32 %v19742_v43, %v5955_v29  ;;  %v6384_v18 = vadd.f32 %v19798_v24, %v5965_v2  ;;  %v23279_v43 = vld [vmem:[#allocation161_spill] sm:$0xff]  ;;  %v6749_v5 = vadd.f32 %v19832_v35, %v6362_v39  ;;  %v23290_v29 = vld [vmem:[#allocation175_spill] sm:$0xff] }
 0x408   : > { %v20022_v56 = vpop.f32.mrf.mxu1  ;;  %v5520_v48 = vadd.f32 %v19585_v33, %v23274_v11  ;;  %v6360_v33 = vadd.f32 %v19658_v31, %v19649_v25  ;;  %v6366_v25 = vadd.f32 %v19694_v17, %v19685_v38  ;;  %v6368_v31 = vadd.f32 %v19706_v52, %v19697_v32  ;;  %v23277_v17 = vld [vmem:[#allocation170_spill] sm:$0xff]  ;;  %v23284_v11 = vld [vmem:[#allocation167_spill] sm:$0xff] }
 0x409   : > { %23267 = vst [vmem:[#allocation198_spill] sm:$0xff] %v20022_v56  ;;  %v5530_v56 = vadd.f32 %v19598_v23, %v23275_v15  ;;  %v5957_v23 = vadd.f32 %v19739_v36, %v5500_v9  ;;  %v6743_v36 = vadd.f32 %v19805_v50, %v6356_v40  ;;  %v7161_v1 = vadd.f32 %v23279_v43, %v23278_v14  ;;  %v20088_v51 = vpop.f32.mrf.mxu0  ;;  %v23281_v9 = vld [vmem:[#allocation165_spill] sm:$0xff]  ;;  %v23293_v39 = vld [vmem:[#allocation179_spill] sm:$0xff] }
 0x40a   : > { %v20034_v10 = vpop.f32.mrf.mxu1  ;;  %v5961_v0 = vadd.f32 %v19762_v57, %v5520_v48  ;;  %v6747_v52 = vadd.f32 %v19823_v6, %v6360_v33  ;;  %v6751_v6 = vadd.f32 %v19841_v55, %v6364_v44  ;;  %v23286_v48 = vld [vmem:[#allocation73_spill] sm:$0xff]  ;;  %v6755_v15 = vadd.f32 %v19865_v8, %v6368_v31  ;;  %v23291_v33 = vld [vmem:[#allocation74_spill] sm:$0xff]  ;;  %v23295_v31 = vld [vmem:[#allocation79_spill] sm:$0xff] }
 0x40b   : > { %v5963_v13 = vadd.f32 %v19774_v54, %v5530_v56  ;;  %v6376_v38 = vadd.f32 %v19753_v63, %v5957_v23  ;;  %v6378_v54 = vadd.f32 %v23277_v17, %v5959_v42  ;;  %v23280_v63 = vld [vmem:[#allocation166_spill] sm:$0xff]  ;;  %v7162_v24 = vadd.f32 %v23283_v37, %v6743_v36  ;;  %v23285_v56 = vld [vmem:[#allocation124_spill] sm:$0xff]  ;;  %v23292_v42 = vld [vmem:[#allocation37_spill] sm:$0xff]  ;;  %v20115_v2 = vpop.f32.mrf.mxu0 }
 0x40c   : > { %v20049_v53 = vpop.f32.mrf.mxu1  ;;  %v6380_v32 = vadd.f32 %v19777_v26, %v5961_v0  ;;  %v7160_v19 = vadd.f32 %v23280_v63, %v6741_v41  ;;  %v7163_v26 = vadd.f32 %v23282_v22, %v23281_v9  ;;  %v7165_v30 = vadd.f32 %v23285_v56, %v23284_v11  ;;  %v23294_v44 = vld [vmem:[#allocation177_spill] sm:$0xff]  ;;  %v23299_v17 = vld [vmem:[#allocation135_spill] sm:$0xff]  ;;  %v23304_v9 = vld [vmem:[#allocation190_spill] sm:$0xff] }
 0x40d   : > { %v6382_v61 = vadd.f32 %v19788_v62, %v5963_v13  ;;  %v6753_v62 = vadd.f32 %v19850_v45, %v6366_v25  ;;  %v7164_v35 = vadd.f32 %v23286_v48, %v6745_v21  ;;  %v7167_v40 = vadd.f32 %v23288_v12, %v23287_v59  ;;  %v23296_v36 = vld [vmem:[#allocation113_spill] sm:$0xff]  ;;  %v23301_v43 = vld [vmem:[#allocation115_spill] sm:$0xff] }
 0x40e   : > { %v20064_v49 = vpop.f32.mrf.mxu1  ;;  %v7166_v60 = vadd.f32 %v23289_v47, %v6747_v52  ;;  %v6757_v55 = vadd.f32 %v19874_v4, %v6370_v58  ;;  %v6759_v45 = vadd.f32 %v19883_v46, %v6372_v7  ;;  %v7169_v23 = vadd.f32 %v23291_v33, %v23290_v29  ;;  %v23297_v4 = vld [vmem:[#allocation134_spill] sm:$0xff]  ;;  %v23298_v46 = vld [vmem:[#allocation123_spill] sm:$0xff]  ;;  %v23300_v52 = vld [vmem:[#allocation40_spill] sm:$0xff] }
 0x40f   : > { %v7168_v0 = vadd.f32 %v23292_v42, %v6749_v5  ;;  %v7171_v13 = vadd.f32 %v23294_v44, %v23293_v39  ;;  %v6761_v8 = vadd.f32 %v19892_v3, %v6374_v27  ;;  %v7170_v41 = vadd.f32 %v23295_v31, %v6751_v6  ;;  %v23302_v63 = vld [vmem:[#allocation181_spill] sm:$0xff]  ;;  %v23303_v3 = vld [vmem:[#allocation182_spill] sm:$0xff]  ;;  %v23305_v6 = vld [vmem:[#allocation184_spill] sm:$0xff] }
 0x410   : > { %v20077_v57 = vpop.f32.mrf.mxu1  ;;  %v7173_v58 = vadd.f32 %v23297_v4, %v23296_v36  ;;  %v7172_v7 = vadd.f32 %v23298_v46, %v6753_v62  ;;  %v6763_v21 = vadd.f32 %v19901_v34, %v6376_v38  ;;  %v7175_v14 = vadd.f32 %v23300_v52, %v23299_v17  ;;  %v23306_v56 = vld [vmem:[#allocation183_spill] sm:$0xff]  ;;  %v23307_v48 = vld [vmem:[#allocation185_spill] sm:$0xff]  ;;  %v23308_v62 = vld [vmem:[#allocation186_spill] sm:$0xff]  ;;  %v20151_v36 = vpop.f32.mrf.mxu0 }
 0x411   : > { %v7174_v5 = vadd.f32 %v23301_v43, %v6755_v15  ;;  %v7177_v27 = vadd.f32 %v23303_v3, %v23302_v63  ;;  %v6765_v22 = vadd.f32 %v23304_v9, %v6378_v54  ;;  %v7176_v11 = vadd.f32 %v23305_v6, %v6757_v55  ;;  %v23309_v34 = vld [vmem:[#allocation192_spill] sm:$0xff]  ;;  %v23311_v29 = vld [vmem:[#allocation187_spill] sm:$0xff]  ;;  %v23312_v33 = vld [vmem:[#allocation86_spill] sm:$0xff] }
 0x412   : > { %v20090_v50 = vpop.f32.mrf.mxu1  ;;  %v7179_v59 = vadd.f32 %v23307_v48, %v23306_v56  ;;  %v20136_v12 = vadd.f32 %v23308_v62, %v6759_v45  ;;  %v6767_v38 = vadd.f32 %v23309_v34, %v6380_v32  ;;  %v23310_v47 = vld [vmem:[#allocation80_spill] sm:$0xff]  ;;  %v20144_v42 = vadd.f32 %v23312_v33, %v6761_v8  ;;  %v23315_v55 = vld [vmem:[#allocation109_spill] sm:$0xff]  ;;  %v23316_v45 = vld [vmem:[#allocation191_spill] sm:$0xff] }
 0x413   : > { %v20141_v15 = vadd.f32 %v23311_v29, %v23310_v47  ;;  %v23313_v54 = vld [vmem:[#allocation188_spill] sm:$0xff]  ;;  %v6769_v31 = vadd.f32 %v23315_v55, %v6382_v61  ;;  %v20156_v46 = vadd.f32 %v23316_v45, %v6763_v21  ;;  %v23317_v32 = vld [vmem:[#allocation189_spill] sm:$0xff]  ;;  %v23318_v17 = vld [vmem:[#allocation91_spill] sm:$0xff] }
 0x414   : > { %v20102_v20 = vpop.f32.mrf.mxu1  ;;  %v23314_v39 = vld [vmem:[#allocation120_spill] sm:$0xff]  ;;  %v20160_v52 = vadd.f32 %v23318_v17, %v23317_v32  ;;  %v23319_v43 = vld [vmem:[#allocation103_spill] sm:$0xff]  ;;  %v23320_v63 = vld [vmem:[#allocation61_spill] sm:$0xff] }
 0x415   : > { %v20148_v44 = vadd.f32 %v23314_v39, %v23313_v54  ;;  %v6771_v8 = vadd.f32 %v23319_v43, %v6384_v18  ;;  %v7580_v3 = vadd.f32 %v23320_v63, %v7161_v1  ;;  %v23321_v9 = vld [vmem:[#allocation136_spill] sm:$0xff]  ;;  %v23322_v56 = vld [vmem:[#allocation42_spill] sm:$0xff]  ;;  %v23324_v34 = vld [vmem:[#allocation47_spill] sm:$0xff] }
 0x416   : > { %v20117_v25 = vpop.f32.mrf.mxu1  ;;  %v20165_v6 = vadd.f32 %v23321_v9, %v6765_v22  ;;  %v7579_v61 = vadd.f32 %v23322_v56, %v7160_v19  ;;  %v23323_v48 = vld [vmem:[#allocation156_spill] sm:$0xff]  ;;  %v7581_v47 = vadd.f32 %v23324_v34, %v7162_v24  ;;  %v23326_v21 = vld [vmem:[#allocation130_spill] sm:$0xff]  ;;  %v23327_v33 = vld [vmem:[#allocation97_spill] sm:$0xff]  ;;  %v20193_v34 = vpop.f32.mrf.mxu0 }
 0x417   : > { %v7582_v62 = vadd.f32 %v23323_v48, %v7163_v26  ;;  %v20174_v54 = vadd.f32 %v23327_v33, %v23326_v21  ;;  %v23328_v39 = vld [vmem:[#allocation119_spill] sm:$0xff]  ;;  %v23330_v45 = vld [vmem:[#allocation172_spill] sm:$0xff]  ;;  %v23332_v17 = vld [vmem:[#allocation146_spill] sm:$0xff] }
 0x418   : > { %v20130_v37 = vpop.f32.mrf.mxu1  ;;  %v20177_v55 = vadd.f32 %v23328_v39, %v6767_v38  ;;  %v23329_v18 = vld [vmem:[#allocation155_spill] sm:$0xff]  ;;  %v7583_v22 = vadd.f32 %v23330_v45, %v7164_v35  ;;  %v23333_v26 = vld [vmem:[#allocation98_spill] sm:$0xff]  ;;  %v23336_v63 = vld [vmem:[#allocation44_spill] sm:$0xff] }
 0x419   : > { %v7584_v1 = vadd.f32 %v23329_v18, %v7165_v30  ;;  %v23331_v32 = vld [vmem:[#allocation131_spill] sm:$0xff]  ;;  %v20186_v43 = vadd.f32 %v23333_v26, %v6769_v31  ;;  %v23335_v24 = vld [vmem:[#allocation142_spill] sm:$0xff]  ;;  %v23340_v30 = vld [vmem:[#allocation152_spill] sm:$0xff] }
 0x41a   : > { %v20153_v4 = vpop.f32.mrf.mxu1  ;;  %v20183_v19 = vadd.f32 %v23332_v17, %v23331_v32  ;;  %v20190_v9 = vadd.f32 %v23336_v63, %v23335_v24  ;;  %v23338_v56 = vld [vmem:[#allocation46_spill] sm:$0xff]  ;;  %v20198_v21 = vadd.f32 %v23340_v30, %v6771_v8  ;;  %v23344_v45 = vld [vmem:[#allocation36_spill] sm:$0xff]  ;;  %v23345_v32 = vld [vmem:[#allocation43_spill] sm:$0xff] }
 0x41b   : > { %23334 = vst [vmem:[#allocation141_spill] sm:$0xff] %v20186_v43  ;;  %v7586_v48 = vadd.f32 %v23338_v56, %v7167_v40  ;;  %v23342_v35 = vld [vmem:[#allocation162_spill] sm:$0xff]  ;;  %v7588_v31 = vadd.f32 %v23344_v45, %v7169_v23  ;;  %v7966_v17 = vadd.f32 %v23345_v32, %v7579_v61  ;;  %v23346_v26 = vld [vmem:[#allocation45_spill] sm:$0xff]  ;;  %v23350_v8 = vld [vmem:[#allocation180_spill] sm:$0xff] }
 0x41c   : > { %v20170_v29 = vpop.f32.mrf.mxu1  ;;  %23337 = vst [vmem:[#allocation140_spill] sm:$0xff] %v20190_v9  ;;  %23341 = vst [vmem:[#allocation62_spill] sm:$0xff] %v20198_v21  ;;  %v7967_v33 = vadd.f32 %v23342_v35, %v7580_v3  ;;  %v23343_v39 = vld [vmem:[#allocation178_spill] sm:$0xff]  ;;  %v7969_v24 = vadd.f32 %v23346_v26, %v7582_v62  ;;  %v23347_v63 = vld [vmem:[#allocation49_spill] sm:$0xff]  ;;  %v7970_v30 = vadd.f32 %v23350_v8, %v7583_v22 }
 0x41d   : > { %23325 = vst [vmem:[#allocation147_spill] sm:$0xff] %v20170_v29  ;;  %v7585_v18 = vadd.f32 %v23343_v39, %v7166_v60  ;;  %v7968_v9 = vadd.f32 %v23347_v63, %v7581_v47  ;;  %v23348_v40 = vld [vmem:[#allocation41_spill] sm:$0xff]  ;;  %v23352_v35 = vld [vmem:[#allocation118_spill] sm:$0xff]  ;;  %v23354_v61 = vld [vmem:[#allocation92_spill] sm:$0xff] }
 0x41e   : > { %v20195_v38 = vpop.f32.mrf.mxu1  ;;  %v7587_v56 = vadd.f32 %v23348_v40, %v7168_v0  ;;  %v23351_v21 = vld [vmem:[#allocation85_spill] sm:$0xff]  ;;  %v7589_v60 = vadd.f32 %v23352_v35, %v7170_v41  ;;  %v23353_v39 = vld [vmem:[#allocation114_spill] sm:$0xff]  ;;  %v7592_v45 = vadd.f32 %v23354_v61, %v7173_v58  ;;  %v23356_v47 = vld [vmem:[#allocation128_spill] sm:$0xff]  ;;  %v7907_v0 = vpop.f32.mrf.mxu0 }
 0x41f   : > { %23339 = vst [vmem:[#allocation151_spill] sm:$0xff] %v20195_v38  ;;  %v23349_v38 = vld [vmem:[#allocation48_spill] sm:$0xff]  ;;  %v7590_v3 = vadd.f32 %v23351_v21, %v7171_v13  ;;  %v20214_v23 = vadd.f32 %v23353_v39, %v7586_v48  ;;  %v23355_v62 = vld [vmem:[#allocation38_spill] sm:$0xff]  ;;  %v7594_v26 = vadd.f32 %v23356_v47, %v7175_v14  ;;  %v23357_v22 = vld [vmem:[#allocation145_spill] sm:$0xff] }
 0x420   : > { %v20207_v29 = vpop.f32.mrf.mxu1  ;;  %v7971_v43 = vadd.f32 %v23349_v38, %v7584_v1  ;;  %v7591_v32 = vadd.f32 %v23355_v62, %v7172_v7  ;;  %v20222_v1 = vld [vmem:[%s22056_s5] ss:$0 sm:$0xff]  ;;  %v20225_v13 = vadd.f32 %v23357_v22, %v7585_v18  ;;  %v23358_v41 = vld [vmem:[#allocation125_spill] sm:$0xff]  ;;  %v23359_v48 = vld [vmem:[#allocation194_spill] sm:$0xff] }
 0x421   : > { %v20228_v38 = vadd.f32 %v23358_v41, %v7588_v31  ;;  %v7593_v21 = vadd.f32 %v23359_v48, %v7174_v5  ;;  %v23360_v40 = vld [vmem:[#allocation110_spill] sm:$0xff]  ;;  %v23361_v14 = vld [vmem:[#allocation196_spill] sm:$0xff]  ;;  %v23362_v35 = vld [vmem:[#allocation197_spill] sm:$0xff] }
 0x422   : > { %v15753_v63 = vpop.f32.mrf.mxu1  ;;  %v20232_v7 = vadd.f32 %v23360_v40, %v7587_v56  ;;  %v7596_v8 = vadd.f32 %v23361_v14, %v7177_v27  ;;  %v7595_v39 = vadd.f32 %v23362_v35, %v7176_v11  ;;  %v23363_v61 = vld [vmem:[#allocation50_spill] sm:$0xff]  ;;  %v20240_v18 = vld [vmem:[%s22057_s6] ss:$0 sm:$0xff]  ;;  %v23365_v5 = vld [vmem:[#allocation137_spill] sm:$0xff] }
 0x423   : > { %v8386_v58 = vadd.f32 %v15753_v63, %v7967_v33  ;;  %v7598_v62 = vadd.f32 %v23363_v61, %v7179_v59  ;;  %v23364_v31 = vld [vmem:[#allocation104_spill] sm:$0xff]  ;;  %v20246_v33 = vadd.f32 %v23365_v5, %v7589_v60  ;;  %v23366_v27 = vld [vmem:[#allocation193_spill] sm:$0xff]  ;;  %v23367_v11 = vld [vmem:[#allocation195_spill] sm:$0xff]  ;;  %v20261_v60 = vadd.f32 %v20032_v16, %v7593_v21 }
 0x424   : > { %v8226_v47 = vpop.f32.mrf.mxu1  ;;  %v20243_v22 = vadd.f32 %v23364_v31, %v7590_v3  ;;  %v20250_v41 = vadd.f32 %v23366_v27, %v7592_v45  ;;  %v20253_v59 = vadd.f32 %v23367_v11, %v7591_v32  ;;  %v23368_v48 = vld [vmem:[#allocation129_spill] sm:$0xff]  ;;  %v23369_v14 = vld [vmem:[#allocation198_spill] sm:$0xff]  ;;  %v15736_v3 = vpop.f32.mrf.mxu0  ;;  %v20269_v32 = vadd.f32 %v20088_v51, %v7595_v39 }
 0x425   : > { %v8425_v56 = vmul.f32 %v20222_v1, %v8386_v58  ;;  %v8385_v63 = vadd.f32 %v8226_v47, %v7966_v17  ;;  %v20256_v40 = vadd.f32 %v23368_v48, %v7594_v26  ;;  %v7597_v35 = vadd.f32 %v23369_v14, %v20136_v12 }
 0x426   : > { %v15756_v61 = vpop.f32.mrf.mxu1  ;;  %v20266_v47 = vadd.f32 %v20062_v28, %v7596_v8  ;;  %v20272_v26 = vadd.f32 %v20115_v2, %v7598_v62  ;;  %v7600_v12 = vadd.f32 %v20034_v10, %v20141_v15  ;;  %v7599_v28 = vadd.f32 %v20049_v53, %v20144_v42  ;;  %v7917_v2 = vpop.f32.mrf.mxu0 }
 0x427   : > { %v8464_v58 = vadd.f32 %v20240_v18, %v8425_v56  ;;  %v8424_v17 = vmul.f32 %v20222_v1, %v8385_v63  ;;  %v8388_v45 = vadd.f32 %v15756_v61, %v7969_v24  ;;  %v20279_v24 = vadd.f32 %v20151_v36, %v7597_v35 }
 0x428   : > { %v8236_v31 = vpop.f32.mrf.mxu1  ;;  %v7602_v51 = vadd.f32 %v20064_v49, %v20148_v44  ;;  %v20287_v56 = vadd.f32 %v20193_v34, %v7600_v12  ;;  %v7601_v36 = vadd.f32 %v20077_v57, %v20156_v46  ;;  %v20293_v27 = vadd.f32 %v7907_v0, %v7599_v28  ;;  %v15739_v34 = vpop.f32.mrf.mxu0 }
 0x429   : > { %vm8496_vm9 = vcmp.ge.f32.partialorder %v8464_v58, 0.0  ;;  %v8528_v16 = vmul.f32 0.1, %v8464_v58  ;;  %v8463_v21 = vadd.f32 %v20240_v18, %v8424_v17  ;;  %v8427_v5 = vmul.f32 %v20222_v1, %v8388_v45 }
 0x42a   : > { %v8387_v8 = vadd.f32 %v8236_v31, %v7968_v9  ;;  %v15759_v39 = vpop.f32.mrf.mxu1  ;;  %v7604_v11 = vadd.f32 %v20090_v50, %v20160_v52  ;;  %v20300_v14 = vadd.f32 %v15736_v3, %v7602_v51  ;;  %v7603_v0 = vadd.f32 %v20102_v20, %v20165_v6  ;;  %v7927_v12 = vpop.f32.mrf.mxu0 }
 0x42b   : > { %v8560_v10 = vsel %vm8496_vm9, %v8464_v58, %v8528_v16  ;;  %vm8495_vm10 = vcmp.ge.f32.partialorder %v8463_v21, 0.0  ;;  %v8527_v15 = vmul.f32 0.1, %v8463_v21  ;;  %v8466_v62 = vadd.f32 %v20240_v18, %v8427_v5 }
 0x42c   : > { %8592 = vst.msk [vmem:[#allocation4 + $0x20] sm:$0xff] %vm598_vm1, %v8560_v10  ;;  %v8426_v53 = vmul.f32 %v20222_v1, %v8387_v8  ;;  %v8390_v42 = vadd.f32 %v15759_v39, %v7971_v43  ;;  %v8246_v49 = vpop.f32.mrf.mxu1  ;;  %v20308_v58 = vadd.f32 %v7917_v2, %v7601_v36  ;;  %v20318_v28 = vadd.f32 %v15739_v34, %v7604_v11  ;;  %v15742_v36 = vpop.f32.mrf.mxu0 }
 0x42d   : > { %v8559_v44 = vsel %vm8495_vm10, %v8463_v21, %v8527_v15  ;;  %vm8498_vm11 = vcmp.ge.f32.partialorder %v8466_v62, 0.0  ;;  %v8530_v9 = vmul.f32 0.1, %v8466_v62  ;;  %v8389_v63 = vadd.f32 %v8246_v49, %v7970_v30 }
 0x42e   : > { %8591 = vst.msk [vmem:[#allocation4 + $0x18] sm:$0xff] %vm598_vm1, %v8559_v44  ;;  %v8465_v57 = vadd.f32 %v20240_v18, %v8426_v53  ;;  %v8429_v46 = vmul.f32 %v20222_v1, %v8390_v42  ;;  %v15762_v48 = vpop.f32.mrf.mxu1  ;;  %v23370_v42 = vld [vmem:[#allocation58_spill] sm:$0xff]  ;;  %v23371_v44 = vld [vmem:[#allocation57_spill] sm:$0xff] }
 0x42f   : > { %v8562_v43 = vsel %vm8498_vm11, %v8466_v62, %v8530_v9  ;;  %v8428_v35 = vmul.f32 %v20222_v1, %v8389_v63  ;;  %v8392_v30 = vadd.f32 %v15762_v48, %v20214_v23  ;;  %v7606_v23 = vadd.f32 %v20117_v25, %v20174_v54 }
 0x430   : > { %8594 = vst.msk [vmem:[#allocation4 + $0x30] sm:$0xff] %vm598_vm1, %v8562_v43  ;;  %vm8497_vm12 = vcmp.ge.f32.partialorder %v8465_v57, 0.0  ;;  %v8529_v50 = vmul.f32 0.1, %v8465_v57  ;;  %v8468_v52 = vadd.f32 %v20240_v18, %v8429_v46  ;;  %v8256_v61 = vpop.f32.mrf.mxu1 }
 0x431   : > { %v8467_v3 = vadd.f32 %v20240_v18, %v8428_v35  ;;  %v8431_v17 = vmul.f32 %v20222_v1, %v8392_v30  ;;  %v8391_v45 = vadd.f32 %v8256_v61, %v20225_v13  ;;  %v20322_v13 = vadd.f32 %v20130_v37, %v20177_v55 }
 0x432   : > { %v8561_v20 = vsel %vm8497_vm12, %v8465_v57, %v8529_v50  ;;  %vm8500_vm13 = vcmp.ge.f32.partialorder %v8468_v52, 0.0  ;;  %v8532_v6 = vmul.f32 0.1, %v8468_v52  ;;  %v15765_v31 = vpop.f32.mrf.mxu1  ;;  %v20341_v57 = vadd.f32 %v7927_v12, %v7603_v0 }
 0x433   : > { %8593 = vst.msk [vmem:[#allocation4 + $0x28] sm:$0xff] %vm598_vm1, %v8561_v20  ;;  %vm8499_vm14 = vcmp.ge.f32.partialorder %v8467_v3, 0.0  ;;  %v8531_v16 = vmul.f32 0.1, %v8467_v3  ;;  %v8470_v21 = vadd.f32 %v20240_v18, %v8431_v17  ;;  %v8430_v5 = vmul.f32 %v20222_v1, %v8391_v45  ;;  %v8691_v53 = vld [vmem:[#allocation4 + $0x20] sm:$0xff] }
 0x434   : > { %v8564_v25 = vsel %vm8500_vm13, %v8468_v52, %v8532_v6  ;;  %v8394_v54 = vadd.f32 %v15765_v31, %v20228_v38  ;;  %v8266_v51 = vpop.f32.mrf.mxu1  ;;  %v20351_v35 = vadd.f32 %v15742_v36, %v7606_v23  ;;  %v23375_v31 = vld [vmem:[#allocation64_spill] sm:$0xff] }
 0x435   : > { %8596 = vst.msk [vmem:[#allocation4 + $0x40] sm:$0xff] %vm598_vm1, %v8564_v25  ;;  %v8563_v2 = vsel %vm8499_vm14, %v8467_v3, %v8531_v16  ;;  %vm8502_vm15 = vcmp.ge.f32.partialorder %v8470_v21, 0.0  ;;  %v8534_v8 = vmul.f32 0.1, %v8470_v21  ;;  %v8469_v39 = vadd.f32 %v20240_v18, %v8430_v5  ;;  %v8690_v10 = vld [vmem:[#allocation4 + $0x18] sm:$0xff] }
 0x436   : > { %v20327_v15 = vld [vmem:[#allocation4 + $0x17] sm:$0xff]  ;;  %v20329_v62 = vld [vmem:[#allocation4 + $0x1f] sm:$0xff]  ;;  %8595 = vst.msk [vmem:[#allocation4 + $0x38] sm:$0xff] %vm598_vm1, %v8563_v2  ;;  %v8433_v37 = vmul.f32 %v20222_v1, %v8394_v54  ;;  %v8393_v55 = vadd.f32 %v8266_v51, %v20232_v7  ;;  %v15768_v38 = vpop.f32.mrf.mxu1  ;;  %15804 = vmatprep.mubr.msk.f32.mxu0 %vm598_vm1, %v8690_v10  ;;  %v20345_v7 = vadd.f32 %v20153_v4, %v20183_v19  ;;  %v23372_v4 = vld [vmem:[#allocation141_spill] sm:$0xff] }
 0x437   : > { %v8657_v49 = vmul.f32 %v20327_v15, %v23370_v42  ;;  %v8658_v9 = vmul.f32 %v20329_v62, %v23371_v44  ;;  %v8566_v63 = vsel %vm8502_vm15, %v8470_v21, %v8534_v8  ;;  %vm8501_vm3 = vcmp.ge.f32.partialorder %v8469_v39, 0.0  ;;  %15805 = vmatmul.mubr.msk.f32.gmra.mxu0 %vm598_vm1, %v8691_v53  ;;  %v23373_v19 = vld [vmem:[#allocation147_spill] sm:$0xff]  ;;  %v8693_v6 = vld [vmem:[#allocation4 + $0x30] sm:$0xff] }
 0x438   : > { %v8533_v11 = vmul.f32 0.1, %v8469_v39  ;;  %v8396_v34 = vadd.f32 %v15768_v38, %v20243_v22  ;;  %8598 = vst.msk [vmem:[#allocation4 + $0x50] sm:$0xff] %vm598_vm1, %v8566_v63  ;;  %v8472_v46 = vadd.f32 %v20240_v18, %v8433_v37  ;;  %v8432_v48 = vmul.f32 %v20222_v1, %v8393_v55  ;;  %v8276_v43 = vpop.f32.mrf.mxu1  ;;  %v23376_v54 = vld [vmem:[#allocation63_spill] sm:$0xff]  ;;  %v23378_v53 = vld [vmem:[#allocation70_spill] sm:$0xff] }
 0x439   : > { %15854 = vmatprep.mubr.msk.f32.mxu1 %vm598_vm1, %v8657_v49  ;;  %v8395_v0 = vadd.f32 %v8276_v43, %v20246_v33  ;;  %v20358_v50 = vadd.f32 %v23373_v19, %v23372_v4 }
 0x43a   : > { %v8565_v22 = vsel %vm8501_vm3, %v8469_v39, %v8533_v11  ;;  %v8435_v30 = vmul.f32 %v20222_v1, %v8396_v34  ;;  %15855 = vmatmul.mubr.msk.f32.gmra.mxu1 %vm598_vm1, %v8658_v9  ;;  %vm8504_vm4 = vcmp.ge.f32.partialorder %v8472_v46, 0.0  ;;  %v8536_v52 = vmul.f32 0.1, %v8472_v46  ;;  %v15771_v3 = vpop.f32.mrf.mxu1  ;;  %v20362_v17 = vld [vmem:[#allocation4 + $0x28] sm:$0xff]  ;;  %v7937_v9 = vpop.f32.mrf.mxu0 }
 0x43b   : > { %8597 = vst.msk [vmem:[#allocation4 + $0x48] sm:$0xff] %vm598_vm1, %v8565_v22  ;;  %v8471_v61 = vadd.f32 %v20240_v18, %v8432_v48  ;;  %23374 = vst [vmem:[#allocation160_spill] sm:$0xff] %v20362_v17  ;;  %v20364_v45 = vld [vmem:[#allocation4 + $0x27] sm:$0xff]  ;;  %v20366_v23 = vld [vmem:[#allocation4 + $0x2f] sm:$0xff]  ;;  %v8434_v12 = vmul.f32 %v20222_v1, %v8395_v0  ;;  %v8398_v20 = vadd.f32 %v15771_v3, %v20250_v41  ;;  %15807 = vmatprep.mubr.msk.f32.mxu0 %vm598_vm1, %v20362_v17 }
 0x43c   : > { %v8474_v33 = vadd.f32 %v20240_v18, %v8435_v30  ;;  %v8659_v16 = vmul.f32 %v20364_v45, %v23375_v31  ;;  %v8568_v21 = vsel %vm8504_vm4, %v8472_v46, %v8536_v52  ;;  %15808 = vmatmul.mubr.msk.f32.gmra.mxu0 %vm598_vm1, %v8693_v6  ;;  %v8286_v25 = vpop.f32.mrf.mxu1  ;;  %v8660_v51 = vmul.f32 %v20366_v23, %v23376_v54  ;;  %v20397_v46 = vld [vmem:[#allocation4 + $0x40] sm:$0xff]  ;;  %v23380_v22 = vld [vmem:[#allocation69_spill] sm:$0xff]  ;;  %v15745_v6 = vpop.f32.mrf.mxu0 }
 0x43d   : > { %vm8503_vm5 = vcmp.ge.f32.partialorder %v8471_v61, 0.0  ;;  %v8535_v5 = vmul.f32 0.1, %v8471_v61  ;;  %8600 = vst.msk [vmem:[#allocation4 + $0x60] sm:$0xff] %vm598_vm1, %v8568_v21  ;;  %v8473_v2 = vadd.f32 %v20240_v18, %v8434_v12  ;;  %v8437_v8 = vmul.f32 %v20222_v1, %v8398_v20  ;;  %v20382_v39 = vld [vmem:[#allocation4 + $0x38] sm:$0xff]  ;;  %23379 = vst [vmem:[#allocation157_spill] sm:$0xff] %v20397_v46 }
 0x43e   : > { %vm8506_vm6 = vcmp.ge.f32.partialorder %v8474_v33, 0.0  ;;  %v8538_v41 = vmul.f32 0.1, %v8474_v33  ;;  %15857 = vmatprep.mubr.msk.f32.mxu1 %vm598_vm1, %v8659_v16  ;;  %23377 = vst [vmem:[#allocation150_spill] sm:$0xff] %v20382_v39  ;;  %v20384_v10 = vld [vmem:[#allocation4 + $0x37] sm:$0xff]  ;;  %v20386_v36 = vld [vmem:[#allocation4 + $0x3f] sm:$0xff]  ;;  %v8397_v55 = vadd.f32 %v8286_v25, %v20253_v59  ;;  %v15774_v38 = vpop.f32.mrf.mxu1  ;;  %15810 = vmatprep.mubr.msk.f32.mxu0 %vm598_vm1, %v20382_v39 }
 0x43f   : > { %v8567_v37 = vsel %vm8503_vm5, %v8471_v61, %v8535_v5  ;;  %15858 = vmatmul.mubr.msk.f32.gmra.mxu1 %vm598_vm1, %v8660_v51  ;;  %v8661_v49 = vmul.f32 %v20384_v10, %v23378_v53  ;;  %vm8505_vm7 = vcmp.ge.f32.partialorder %v8473_v2, 0.0  ;;  %v8537_v11 = vmul.f32 0.1, %v8473_v2  ;;  %v23382_v20 = vld [vmem:[#allocation76_spill] sm:$0xff]  ;;  %v20424_v25 = vld [vmem:[#allocation4 + $0x50] sm:$0xff]  ;;  %v23384_v51 = vld [vmem:[#allocation75_spill] sm:$0xff] }
 0x440   : > { %8599 = vst.msk [vmem:[#allocation4 + $0x58] sm:$0xff] %vm598_vm1, %v8567_v37  ;;  %v8570_v63 = vsel %vm8506_vm6, %v8474_v33, %v8538_v41  ;;  %v8476_v34 = vadd.f32 %v20240_v18, %v8437_v8  ;;  %v8436_v59 = vmul.f32 %v20222_v1, %v8397_v55  ;;  %v8400_v48 = vadd.f32 %v15774_v38, %v20256_v40  ;;  %v8296_v43 = vpop.f32.mrf.mxu1  ;;  %v23386_v38 = vld [vmem:[#allocation151_spill] sm:$0xff] }
 0x441   : > { %8602 = vst.msk [vmem:[#allocation4 + $0x70] sm:$0xff] %vm598_vm1, %v8570_v63  ;;  %15811 = vmatmul.mubr.msk.f32.gmra.mxu0 %vm598_vm1, %v20397_v46  ;;  %15860 = vmatprep.mubr.msk.f32.mxu1 %vm598_vm1, %v8661_v49  ;;  %v8662_v30 = vmul.f32 %v20386_v36, %v23380_v22  ;;  %v8569_v0 = vsel %vm8505_vm7, %v8473_v2, %v8537_v11  ;;  %23383 = vst [vmem:[#allocation170_spill] sm:$0xff] %v20424_v25 }
 0x442   : > { %vm8508_vm8 = vcmp.ge.f32.partialorder %v8476_v34, 0.0  ;;  %v8540_v4 = vmul.f32 0.1, %v8476_v34  ;;  %v8399_v19 = vadd.f32 %v8296_v43, %v20261_v60  ;;  %v20408_v52 = vld [vmem:[#allocation4 + $0x48] sm:$0xff]  ;;  %8601 = vst.msk [vmem:[#allocation4 + $0x68] sm:$0xff] %vm598_vm1, %v8569_v0  ;;  %v8475_v40 = vadd.f32 %v20240_v18, %v8436_v59  ;;  %v15777_v12 = vpop.f32.mrf.mxu1 }
 0x443   : > { %23381 = vst [vmem:[#allocation67_spill] sm:$0xff] %v20408_v52  ;;  %v20410_v61 = vld [vmem:[#allocation4 + $0x47] sm:$0xff]  ;;  %v20412_v3 = vld [vmem:[#allocation4 + $0x4f] sm:$0xff]  ;;  %v8439_v33 = vmul.f32 %v20222_v1, %v8400_v48  ;;  %15861 = vmatmul.mubr.msk.f32.gmra.mxu1 %vm598_vm1, %v8662_v30  ;;  %15813 = vmatprep.mubr.msk.f32.mxu0 %vm598_vm1, %v20408_v52  ;;  %v8402_v5 = vadd.f32 %v15777_v12, %v20266_v47 }
 0x444   : > { %v8663_v60 = vmul.f32 %v20410_v61, %v23382_v20  ;;  %v8572_v16 = vsel %vm8508_vm8, %v8476_v34, %v8540_v4  ;;  %v8438_v21 = vmul.f32 %v20222_v1, %v8399_v19  ;;  %v8664_v41 = vmul.f32 %v20412_v3, %v23384_v51  ;;  %v8306_v55 = vpop.f32.mrf.mxu1  ;;  %v23385_v47 = vld [vmem:[#allocation140_spill] sm:$0xff] }
 0x445   : > { %v20429_v2 = vadd.f32 %v7937_v9, %v20322_v13  ;;  %8604 = vst.msk [vmem:[#allocation4 + $0x80] sm:$0xff] %vm598_vm1, %v8572_v16  ;;  %vm8507_vm9 = vcmp.ge.f32.partialorder %v8475_v40, 0.0  ;;  %v8539_v8 = vmul.f32 0.1, %v8475_v40  ;;  %v8478_v37 = vadd.f32 %v20240_v18, %v8439_v33  ;;  %15814 = vmatmul.mubr.msk.f32.gmra.mxu0 %vm598_vm1, %v20424_v25  ;;  %v20458_v19 = vld [vmem:[#allocation4 + $0x60] sm:$0xff]  ;;  %v23390_v16 = vld [vmem:[#allocation81_spill] sm:$0xff] }
 0x446   : > { %15863 = vmatprep.mubr.msk.f32.mxu1 %vm598_vm1, %v8663_v60  ;;  %v20438_v49 = vadd.f32 %v23386_v38, %v23385_v47  ;;  %v8477_v63 = vadd.f32 %v20240_v18, %v8438_v21  ;;  %v8441_v13 = vmul.f32 %v20222_v1, %v8402_v5  ;;  %v8401_v9 = vadd.f32 %v8306_v55, %v20269_v32  ;;  %v15780_v48 = vpop.f32.mrf.mxu1  ;;  %v23389_v60 = vld [vmem:[#allocation82_spill] sm:$0xff] }
 0x447   : > { %v20444_v11 = vadd.f32 %v15745_v6, %v20345_v7  ;;  %v8571_v34 = vsel %vm8507_vm9, %v8475_v40, %v8539_v8  ;;  %vm8510_vm10 = vcmp.ge.f32.partialorder %v8478_v37, 0.0  ;;  %v8542_v59 = vmul.f32 0.1, %v8478_v37  ;;  %15864 = vmatmul.mubr.msk.f32.gmra.mxu1 %vm598_vm1, %v8664_v41  ;;  %v20447_v43 = vld [vmem:[#allocation4 + $0x58] sm:$0xff]  ;;  %23388 = vst [vmem:[#allocation161_spill] sm:$0xff] %v20458_v19 }
 0x448   : > { %23387 = vst [vmem:[#allocation171_spill] sm:$0xff] %v20447_v43  ;;  %v20449_v30 = vld [vmem:[#allocation4 + $0x57] sm:$0xff]  ;;  %v20451_v0 = vld [vmem:[#allocation4 + $0x5f] sm:$0xff]  ;;  %8603 = vst.msk [vmem:[#allocation4 + $0x78] sm:$0xff] %vm598_vm1, %v8571_v34  ;;  %vm8509_vm11 = vcmp.ge.f32.partialorder %v8477_v63, 0.0  ;;  %v8480_v32 = vadd.f32 %v20240_v18, %v8441_v13  ;;  %v8440_v7 = vmul.f32 %v20222_v1, %v8401_v9  ;;  %15816 = vmatprep.mubr.msk.f32.mxu0 %vm598_vm1, %v20447_v43  ;;  %v8316_v12 = vpop.f32.mrf.mxu1  ;;  %v7947_v34 = vpop.f32.mrf.mxu0 }
 0x449   : > { %v8541_v4 = vmul.f32 0.1, %v8477_v63  ;;  %v8574_v40 = vsel %vm8510_vm10, %v8478_v37, %v8542_v59  ;;  %v8404_v33 = vadd.f32 %v15780_v48, %v20272_v26  ;;  %15817 = vmatmul.mubr.msk.f32.gmra.mxu0 %vm598_vm1, %v20458_v19  ;;  %v8665_v6 = vmul.f32 %v20449_v30, %v23389_v60  ;;  %v20469_v37 = vld [vmem:[#allocation4 + $0x68] sm:$0xff] }
 0x44a   : > { %v8666_v21 = vmul.f32 %v20451_v0, %v23390_v16  ;;  %8606 = vst.msk [vmem:[#allocation4 + $0x90] sm:$0xff] %vm598_vm1, %v8574_v40  ;;  %vm8512_vm12 = vcmp.ge.f32.partialorder %v8480_v32, 0.0  ;;  %v8544_v41 = vmul.f32 0.1, %v8480_v32  ;;  %v8479_v8 = vadd.f32 %v20240_v18, %v8440_v7  ;;  %23391 = vst [vmem:[#allocation166_spill] sm:$0xff] %v20469_v37  ;;  %v20471_v26 = vld [vmem:[#allocation4 + $0x67] sm:$0xff]  ;;  %v15783_v13 = vpop.f32.mrf.mxu1  ;;  %15819 = vmatprep.mubr.msk.f32.mxu0 %vm598_vm1, %v20469_v37 }
 0x44b   : > { %v8573_v5 = vsel %vm8509_vm11, %v8477_v63, %v8541_v4  ;;  %v20473_v55 = vld [vmem:[#allocation4 + $0x6f] sm:$0xff]  ;;  %v8443_v47 = vmul.f32 %v20222_v1, %v8404_v33  ;;  %v8403_v38 = vadd.f32 %v8316_v12, %v20279_v24  ;;  %15866 = vmatprep.mubr.msk.f32.mxu1 %vm598_vm1, %v8665_v6  ;;  %v23392_v63 = vld [vmem:[#allocation88_spill] sm:$0xff]  ;;  %v8406_v4 = vadd.f32 %v15783_v13, %v20287_v56 }
 0x44c   : > { %8605 = vst.msk [vmem:[#allocation4 + $0x88] sm:$0xff] %vm598_vm1, %v8573_v5  ;;  %v8667_v9 = vmul.f32 %v20471_v26, %v23392_v63  ;;  %v8576_v59 = vsel %vm8512_vm12, %v8480_v32, %v8544_v41  ;;  %vm8511_vm13 = vcmp.ge.f32.partialorder %v8479_v8, 0.0  ;;  %v8543_v48 = vmul.f32 0.1, %v8479_v8  ;;  %15867 = vmatmul.mubr.msk.f32.gmra.mxu1 %vm598_vm1, %v8666_v21  ;;  %v20485_v7 = vld [vmem:[#allocation4 + $0x70] sm:$0xff]  ;;  %v8326_v33 = vpop.f32.mrf.mxu1  ;;  %v23394_v32 = vld [vmem:[#allocation87_spill] sm:$0xff] }
 0x44d   : > { %23393 = vst [vmem:[#allocation165_spill] sm:$0xff] %v20485_v7  ;;  %8608 = vst.msk [vmem:[#allocation4 + $0xa0] sm:$0xff] %vm598_vm1, %v8576_v59  ;;  %v8482_v24 = vadd.f32 %v20240_v18, %v8443_v47  ;;  %v8442_v40 = vmul.f32 %v20222_v1, %v8403_v38  ;;  %15820 = vmatmul.mubr.msk.f32.gmra.mxu0 %vm598_vm1, %v20485_v7  ;;  %v8668_v12 = vmul.f32 %v20473_v55, %v23394_v32  ;;  %v23395_v6 = vld [vmem:[#allocation62_spill] sm:$0xff] }
 0x44e   : > { %15869 = vmatprep.mubr.msk.f32.mxu1 %vm598_vm1, %v8667_v9  ;;  %v20497_v56 = vadd.f32 %v20207_v29, %v23395_v6  ;;  %v8575_v21 = vsel %vm8511_vm13, %v8479_v8, %v8543_v48  ;;  %v8445_v5 = vmul.f32 %v20222_v1, %v8406_v4  ;;  %v8405_v41 = vadd.f32 %v8326_v33, %v20293_v27  ;;  %v15786_v9 = vpop.f32.mrf.mxu1  ;;  %v23398_v33 = vld [vmem:[#allocation94_spill] sm:$0xff] }
 0x44f   : > { %v20502_v47 = vadd.f32 %v7947_v34, %v20358_v50  ;;  %8607 = vst.msk [vmem:[#allocation4 + $0x98] sm:$0xff] %vm598_vm1, %v8575_v21  ;;  %vm8514_vm14 = vcmp.ge.f32.partialorder %v8482_v24, 0.0  ;;  %v8546_v38 = vmul.f32 0.1, %v8482_v24  ;;  %v8481_v13 = vadd.f32 %v20240_v18, %v8442_v40  ;;  %v20506_v59 = vld [vmem:[#allocation4 + $0x78] sm:$0xff]  ;;  %v20516_v50 = vld [vmem:[#allocation4 + $0x80] sm:$0xff] }
 0x450   : > { %23396 = vst [vmem:[#allocation68_spill] sm:$0xff] %v20506_v59  ;;  %v20508_v7 = vld [vmem:[#allocation4 + $0x77] sm:$0xff]  ;;  %v8484_v29 = vadd.f32 %v20240_v18, %v8445_v5  ;;  %v8444_v8 = vmul.f32 %v20222_v1, %v8405_v41  ;;  %15870 = vmatmul.mubr.msk.f32.gmra.mxu1 %vm598_vm1, %v8668_v12  ;;  %v8408_v27 = vadd.f32 %v15786_v9, %v20300_v14  ;;  %23397 = vst [vmem:[#allocation39_spill] sm:$0xff] %v20516_v50  ;;  %v20518_v34 = vld [vmem:[#allocation4 + $0x7f] sm:$0xff]  ;;  %v8336_v40 = vpop.f32.mrf.mxu1 }
 0x451   : > { %15822 = vmatprep.mubr.msk.f32.mxu0 %vm598_vm1, %v20506_v59  ;;  %v8578_v48 = vsel %vm8514_vm14, %v8482_v24, %v8546_v38  ;;  %vm8513_vm15 = vcmp.ge.f32.partialorder %v8481_v13, 0.0  ;;  %v8545_v4 = vmul.f32 0.1, %v8481_v13  ;;  %v8669_v6 = vmul.f32 %v20508_v7, %v23398_v33  ;;  %v23400_v9 = vld [vmem:[#allocation93_spill] sm:$0xff] }
 0x452   : > { %15823 = vmatmul.mubr.msk.f32.gmra.mxu0 %vm598_vm1, %v20516_v50  ;;  %8610 = vst.msk [vmem:[#allocation4 + $0xb0] sm:$0xff] %vm598_vm1, %v8578_v48  ;;  %vm8516_vm3 = vcmp.ge.f32.partialorder %v8484_v29, 0.0  ;;  %v8548_v14 = vmul.f32 0.1, %v8484_v29  ;;  %v8483_v12 = vadd.f32 %v20240_v18, %v8444_v8  ;;  %v8447_v21 = vmul.f32 %v20222_v1, %v8408_v27  ;;  %v15789_v59 = vpop.f32.mrf.mxu1  ;;  %v15748_v48 = vpop.f32.mrf.mxu0 }
 0x453   : > { %v20527_v5 = vld [vmem:[#allocation4 + $0x88] sm:$0xff]  ;;  %v8577_v41 = vsel %vm8513_vm15, %v8481_v13, %v8545_v4  ;;  %v8407_v38 = vadd.f32 %v8336_v40, %v20308_v58  ;;  %15872 = vmatprep.mubr.msk.f32.mxu1 %vm598_vm1, %v8669_v6  ;;  %v8670_v50 = vmul.f32 %v20518_v34, %v23400_v9  ;;  %v20539_v13 = vld [vmem:[#allocation4 + $0x90] sm:$0xff]  ;;  %v8410_v40 = vadd.f32 %v15789_v59, %v20318_v28  ;;  %v23402_v6 = vld [vmem:[#allocation100_spill] sm:$0xff] }
 0x454   : > { %23399 = vst [vmem:[#allocation167_spill] sm:$0xff] %v20527_v5  ;;  %v20529_v24 = vld [vmem:[#allocation4 + $0x87] sm:$0xff]  ;;  %15825 = vmatprep.mubr.msk.f32.mxu0 %vm598_vm1, %v20527_v5  ;;  %8609 = vst.msk [vmem:[#allocation4 + $0xa8] sm:$0xff] %vm598_vm1, %v8577_v41  ;;  %v8580_v8 = vsel %vm8516_vm3, %v8484_v29, %v8548_v14  ;;  %vm8515_vm4 = vcmp.ge.f32.partialorder %v8483_v12, 0.0  ;;  %v8547_v27 = vmul.f32 0.1, %v8483_v12  ;;  %v8486_v37 = vadd.f32 %v20240_v18, %v8447_v21  ;;  %v8346_v29 = vpop.f32.mrf.mxu1 }
 0x455   : > { %23401 = vst [vmem:[#allocation124_spill] sm:$0xff] %v20539_v13  ;;  %v20541_v58 = vld [vmem:[#allocation4 + $0x8f] sm:$0xff]  ;;  %8612 = vst.msk [vmem:[#allocation4 + $0xc0] sm:$0xff] %vm598_vm1, %v8580_v8  ;;  %v8446_v4 = vmul.f32 %v20222_v1, %v8407_v38  ;;  %15873 = vmatmul.mubr.msk.f32.gmra.mxu1 %vm598_vm1, %v8670_v50  ;;  %v8671_v14 = vmul.f32 %v20529_v24, %v23402_v6  ;;  %v8409_v5 = vadd.f32 %v8346_v29, %v20341_v57  ;;  %v23404_v50 = vld [vmem:[#allocation99_spill] sm:$0xff]  ;;  %v7957_v57 = vpop.f32.mrf.mxu0 }
 0x456   : > { %15826 = vmatmul.mubr.msk.f32.gmra.mxu0 %vm598_vm1, %v20539_v13  ;;  %v8579_v21 = vsel %vm8515_vm4, %v8483_v12, %v8547_v27  ;;  %vm8518_vm5 = vcmp.ge.f32.partialorder %v8486_v37, 0.0  ;;  %v8550_v41 = vmul.f32 0.1, %v8486_v37  ;;  %v20552_v19 = vld [vmem:[#allocation4 + $0x98] sm:$0xff]  ;;  %v8449_v59 = vmul.f32 %v20222_v1, %v8410_v40  ;;  %v15792_v27 = vpop.f32.mrf.mxu1 }
 0x457   : > { %23403 = vst [vmem:[#allocation73_spill] sm:$0xff] %v20552_v19  ;;  %v20554_v8 = vld [vmem:[#allocation4 + $0x97] sm:$0xff]  ;;  %v20556_v38 = vld [vmem:[#allocation4 + $0x9f] sm:$0xff]  ;;  %8611 = vst.msk [vmem:[#allocation4 + $0xb8] sm:$0xff] %vm598_vm1, %v8579_v21  ;;  %v8485_v28 = vadd.f32 %v20240_v18, %v8446_v4  ;;  %15875 = vmatprep.mubr.msk.f32.mxu1 %vm598_vm1, %v8671_v14  ;;  %v8672_v12 = vmul.f32 %v20541_v58, %v23404_v50  ;;  %15828 = vmatprep.mubr.msk.f32.mxu0 %vm598_vm1, %v20552_v19 }
 0x458   : > { %v8582_v29 = vsel %vm8518_vm5, %v8486_v37, %v8550_v41  ;;  %v8448_v13 = vmul.f32 %v20222_v1, %v8409_v5  ;;  %v8412_v43 = vadd.f32 %v15792_v27, %v20351_v35  ;;  %v20568_v21 = vld [vmem:[#allocation4 + $0xa0] sm:$0xff]  ;;  %v23406_v4 = vld [vmem:[#allocation106_spill] sm:$0xff]  ;;  %v8488_v25 = vadd.f32 %v20240_v18, %v8449_v59  ;;  %v8356_v37 = vpop.f32.mrf.mxu1  ;;  %v23407_v5 = vld [vmem:[#allocation105_spill] sm:$0xff] }
 0x459   : > { %23405 = vst [vmem:[#allocation173_spill] sm:$0xff] %v20568_v21  ;;  %v8673_v40 = vmul.f32 %v20554_v8, %v23406_v4  ;;  %8614 = vst.msk [vmem:[#allocation4 + $0xd0] sm:$0xff] %vm598_vm1, %v8582_v29  ;;  %vm8517_vm6 = vcmp.ge.f32.partialorder %v8485_v28, 0.0  ;;  %v8549_v14 = vmul.f32 0.1, %v8485_v28  ;;  %15876 = vmatmul.mubr.msk.f32.gmra.mxu1 %vm598_vm1, %v8672_v12  ;;  %v8674_v35 = vmul.f32 %v20556_v38, %v23407_v5 }
 0x45a   : > { %15829 = vmatmul.mubr.msk.f32.gmra.mxu0 %vm598_vm1, %v20568_v21  ;;  %v7997_v41 = vadd.f32 %v15748_v48, %v20438_v49  ;;  %v8487_v27 = vadd.f32 %v20240_v18, %v8448_v13  ;;  %v8451_v19 = vmul.f32 %v20222_v1, %v8412_v43  ;;  %v8411_v29 = vadd.f32 %v8356_v37, %v20429_v2  ;;  %v15795_v21 = vpop.f32.mrf.mxu1 }
 0x45b   : > { %15878 = vmatprep.mubr.msk.f32.mxu1 %vm598_vm1, %v8673_v40  ;;  %v7996_v59 = vadd.f32 %v7957_v57, %v20497_v56  ;;  %v8581_v12 = vsel %vm8517_vm6, %v8485_v28, %v8549_v14  ;;  %vm8520_vm7 = vcmp.ge.f32.partialorder %v8488_v25, 0.0  ;;  %v8552_v52 = vmul.f32 0.1, %v8488_v25  ;;  %v20585_v46 = vld [vmem:[#allocation4 + $0xa8] sm:$0xff]  ;;  %v20594_v56 = vld [vmem:[#allocation4 + $0xb0] sm:$0xff]  ;;  %v23410_v40 = vld [vmem:[#allocation112_spill] sm:$0xff] }
 0x45c   : > { %23408 = vst [vmem:[#allocation174_spill] sm:$0xff] %v20585_v46  ;;  %v20587_v39 = vld [vmem:[#allocation4 + $0xa7] sm:$0xff]  ;;  %8613 = vst.msk [vmem:[#allocation4 + $0xc8] sm:$0xff] %vm598_vm1, %v8581_v12  ;;  %vm8519_vm8 = vcmp.ge.f32.partialorder %v8487_v27, 0.0  ;;  %v8551_v49 = vmul.f32 0.1, %v8487_v27  ;;  %v8490_v43 = vadd.f32 %v20240_v18, %v8451_v19  ;;  %v8450_v2 = vmul.f32 %v20222_v1, %v8411_v29  ;;  %15831 = vmatprep.mubr.msk.f32.mxu0 %vm598_vm1, %v20585_v46  ;;  %v8366_v57 = vpop.f32.mrf.mxu1 }
 0x45d   : > { %23409 = vst [vmem:[#allocation176_spill] sm:$0xff] %v20594_v56  ;;  %v20596_v48 = vld [vmem:[#allocation4 + $0xaf] sm:$0xff]  ;;  %v8584_v13 = vsel %vm8520_vm7, %v8488_v25, %v8552_v52  ;;  %15879 = vmatmul.mubr.msk.f32.gmra.mxu1 %vm598_vm1, %v8674_v35  ;;  %v8414_v28 = vadd.f32 %v15795_v21, %v20444_v11  ;;  %v8675_v19 = vmul.f32 %v20587_v39, %v23410_v40  ;;  %v23412_v21 = vld [vmem:[#allocation111_spill] sm:$0xff] }
 0x45e   : > { %15832 = vmatmul.mubr.msk.f32.gmra.mxu0 %vm598_vm1, %v20594_v56  ;;  %8616 = vst.msk [vmem:[#allocation4 + $0xe0] sm:$0xff] %vm598_vm1, %v8584_v13  ;;  %v8583_v14 = vsel %vm8519_vm8, %v8487_v27, %v8551_v49  ;;  %vm8522_vm9 = vcmp.ge.f32.partialorder %v8490_v43, 0.0  ;;  %v8554_v37 = vmul.f32 0.1, %v8490_v43  ;;  %v8489_v29 = vadd.f32 %v20240_v18, %v8450_v2  ;;  %v20606_v12 = vld [vmem:[#allocation4 + $0xb8] sm:$0xff]  ;;  %v15798_v27 = vpop.f32.mrf.mxu1  ;;  %v23415_v46 = vld [vmem:[#allocation121_spill] sm:$0xff] }
 0x45f   : > { %23411 = vst [vmem:[#allocation175_spill] sm:$0xff] %v20606_v12  ;;  %v20608_v52 = vld [vmem:[#allocation4 + $0xb7] sm:$0xff]  ;;  %8615 = vst.msk [vmem:[#allocation4 + $0xd8] sm:$0xff] %vm598_vm1, %v8583_v14  ;;  %v8453_v25 = vmul.f32 %v20222_v1, %v8414_v28  ;;  %v8413_v11 = vadd.f32 %v8366_v57, %v20502_v47  ;;  %15881 = vmatprep.mubr.msk.f32.mxu1 %vm598_vm1, %v8675_v19  ;;  %v8676_v35 = vmul.f32 %v20596_v48, %v23412_v21  ;;  %v20618_v49 = vld [vmem:[#allocation4 + $0xbf] sm:$0xff] }
 0x460   : > { %15834 = vmatprep.mubr.msk.f32.mxu0 %vm598_vm1, %v20606_v12  ;;  %v8586_v2 = vsel %vm8522_vm9, %v8490_v43, %v8554_v37  ;;  %vm8521_vm10 = vcmp.ge.f32.partialorder %v8489_v29, 0.0  ;;  %v8553_v13 = vmul.f32 0.1, %v8489_v29  ;;  %v8416_v56 = vadd.f32 %v15798_v27, %v7997_v41  ;;  %v20620_v14 = vld [vmem:[#allocation4 + $0xc0] sm:$0xff]  ;;  %v8376_v57 = vpop.f32.mrf.mxu1  ;;  %v23414_v19 = vld [vmem:[#allocation122_spill] sm:$0xff]  ;;  %v15803_v37 = vpop.f32.mrf.mxu0 }
 0x461   : > { %23413 = vst [vmem:[#allocation74_spill] sm:$0xff] %v20620_v14  ;;  %8618 = vst.msk [vmem:[#allocation4 + $0xf0] sm:$0xff] %vm598_vm1, %v8586_v2  ;;  %v8492_v47 = vadd.f32 %v20240_v18, %v8453_v25  ;;  %v8452_v28 = vmul.f32 %v20222_v1, %v8413_v11  ;;  %15882 = vmatmul.mubr.msk.f32.gmra.mxu1 %vm598_vm1, %v8676_v35  ;;  %v8677_v43 = vmul.f32 %v20608_v52, %v23414_v19 }
 0x462   : > { %15835 = vmatmul.mubr.msk.f32.gmra.mxu0 %vm598_vm1, %v20620_v14  ;;  %v8585_v12 = vsel %vm8521_vm10, %v8489_v29, %v8553_v13  ;;  %v8455_v41 = vmul.f32 %v20222_v1, %v8416_v56  ;;  %v8415_v27 = vadd.f32 %v8376_v57, %v7996_v59  ;;  %v8678_v2 = vmul.f32 %v20618_v49, %v23415_v46  ;;  %v15853_v14 = vpop.f32.mrf.mxu1  ;;  %v20648_v13 = vld [vmem:[#allocation4 + $0xd0] sm:$0xff] }
 0x463   : > { %8617 = vst.msk [vmem:[#allocation4 + $0xe8] sm:$0xff] %vm598_vm1, %v8585_v12  ;;  %vm8524_vm11 = vcmp.ge.f32.partialorder %v8492_v47, 0.0  ;;  %v8556_v25 = vmul.f32 0.1, %v8492_v47  ;;  %v8491_v11 = vadd.f32 %v20240_v18, %v8452_v28  ;;  %15884 = vmatprep.mubr.msk.f32.mxu1 %vm598_vm1, %v8677_v43  ;;  %v20636_v35 = vld [vmem:[#allocation4 + $0xc8] sm:$0xff]  ;;  %v20646_v12 = vadd.f32 %v15853_v14, %v15803_v37  ;;  %23418 = vst [vmem:[#allocation177_spill] sm:$0xff] %v20648_v13 }
 0x464   : > { %23416 = vst [vmem:[#allocation37_spill] sm:$0xff] %v20636_v35  ;;  %v20638_v17 = vld [vmem:[#allocation4 + $0xc7] sm:$0xff]  ;;  %v20640_v29 = vld [vmem:[#allocation4 + $0xcf] sm:$0xff]  ;;  %v8494_v59 = vadd.f32 %v20240_v18, %v8455_v41  ;;  %v8454_v56 = vmul.f32 %v20222_v1, %v8415_v27  ;;  %15837 = vmatprep.mubr.msk.f32.mxu0 %vm598_vm1, %v20636_v35 }
 0x465   : > { %23417 = vst [vmem:[#allocation179_spill] sm:$0xff] %v20646_v12  ;;  %v23419_v28 = vld [vmem:[#allocation133_spill] sm:$0xff]  ;;  %v8588_v43 = vsel %vm8524_vm11, %v8492_v47, %v8556_v25  ;;  %vm8523_vm12 = vcmp.ge.f32.partialorder %v8491_v11, 0.0  ;;  %v8555_v46 = vmul.f32 0.1, %v8491_v11  ;;  %15885 = vmatmul.mubr.msk.f32.gmra.mxu1 %vm598_vm1, %v8678_v2  ;;  %v23420_v41 = vld [vmem:[#allocation132_spill] sm:$0xff] }
 0x466   : > { %v8679_v57 = vmul.f32 %v20638_v17, %v23419_v28  ;;  %15838 = vmatmul.mubr.msk.f32.gmra.mxu0 %vm598_vm1, %v20648_v13  ;;  %v8680_v1 = vmul.f32 %v20640_v29, %v23420_v41  ;;  %8620 = vst.msk [vmem:[#allocation4 + $0x100] sm:$0xff] %vm598_vm1, %v8588_v43  ;;  %vm8526_vm13 = vcmp.ge.f32.partialorder %v8494_v59, 0.0  ;;  %v8558_v14 = vmul.f32 0.1, %v8494_v59  ;;  %v20660_v27 = vld [vmem:[#allocation4 + $0xd8] sm:$0xff]  ;;  %v23422_v12 = vld [vmem:[#allocation144_spill] sm:$0xff] }
 0x467   : > { %v8493_v37 = vadd.f32 %v20240_v18, %v8454_v56  ;;  %23421 = vst [vmem:[#allocation79_spill] sm:$0xff] %v20660_v27  ;;  %v20662_v47 = vld [vmem:[#allocation4 + $0xd7] sm:$0xff]  ;;  %v20664_v25 = vld [vmem:[#allocation4 + $0xdf] sm:$0xff]  ;;  %v8587_v2 = vsel %vm8523_vm12, %v8491_v11, %v8555_v46  ;;  %15840 = vmatprep.mubr.msk.f32.mxu0 %vm598_vm1, %v20660_v27 }
 0x468   : > { %15887 = vmatprep.mubr.msk.f32.mxu1 %vm598_vm1, %v8679_v57  ;;  %v8681_v13 = vmul.f32 %v20662_v47, %v23422_v12  ;;  %8619 = vst.msk [vmem:[#allocation4 + $0xf8] sm:$0xff] %vm598_vm1, %v8587_v2  ;;  %v8590_v43 = vsel %vm8526_vm13, %v8494_v59, %v8558_v14  ;;  %v20671_v56 = vld [vmem:[#allocation4 + $0xe0] sm:$0xff]  ;;  %v23424_v46 = vld [vmem:[#allocation143_spill] sm:$0xff] }
 0x469   : > { %vm8525_vm14 = vcmp.ge.f32.partialorder %v8493_v37, 0.0  ;;  %v8557_v18 = vmul.f32 0.1, %v8493_v37  ;;  %23423 = vst [vmem:[#allocation113_spill] sm:$0xff] %v20671_v56  ;;  %8622 = vst.msk [vmem:[#allocation4 + $0x110] sm:$0xff] %vm598_vm1, %v8590_v43  ;;  %15888 = vmatmul.mubr.msk.f32.gmra.mxu1 %vm598_vm1, %v8680_v1  ;;  %v8682_v11 = vmul.f32 %v20664_v25, %v23424_v46  ;;  %v23428_v1 = vld [vmem:[#allocation154_spill] sm:$0xff] }
 0x46a   : > { %15841 = vmatmul.mubr.msk.f32.gmra.mxu0 %vm598_vm1, %v20671_v56  ;;  %15890 = vmatprep.mubr.msk.f32.mxu1 %vm598_vm1, %v8681_v13  ;;  %v20680_v27 = vld [vmem:[#allocation4 + $0xe8] sm:$0xff]  ;;  %v20691_v43 = vld [vmem:[#allocation4 + $0xf0] sm:$0xff] }
 0x46b   : > { %v8589_v57 = vsel %vm8525_vm14, %v8493_v37, %v8557_v18  ;;  %23425 = vst [vmem:[#allocation134_spill] sm:$0xff] %v20680_v27  ;;  %v20682_v59 = vld [vmem:[#allocation4 + $0xe7] sm:$0xff]  ;;  %v20684_v14 = vld [vmem:[#allocation4 + $0xef] sm:$0xff]  ;;  %15843 = vmatprep.mubr.msk.f32.mxu0 %vm598_vm1, %v20680_v27  ;;  %23429 = vst [vmem:[#allocation40_spill] sm:$0xff] %v20691_v43 }
 0x46c   : > { %23426 = vst [vmem:[#allocation123_spill] sm:$0xff] %v20682_v59  ;;  %23427 = vst [vmem:[#allocation135_spill] sm:$0xff] %v20684_v14  ;;  %v8683_v2 = vmul.f32 %v20682_v59, %v23428_v1  ;;  %v23430_v13 = vld [vmem:[#allocation153_spill] sm:$0xff]  ;;  %v23436_v59 = vld [vmem:[#allocation55_spill] sm:$0xff] }
 0x46d   : > { %8621 = vst.msk [vmem:[#allocation4 + $0x108] sm:$0xff] %vm598_vm1, %v8589_v57  ;;  %15891 = vmatmul.mubr.msk.f32.gmra.mxu1 %vm598_vm1, %v8682_v11  ;;  %v8684_v37 = vmul.f32 %v20684_v14, %v23430_v13  ;;  %v9364_v18 = vld [vmem:[#allocation4 + $0x9] sm:$0xff]  ;;  %v20707_v35 = vld [vmem:[#allocation4 + $0x100] sm:$0xff]  ;;  %v9365_v13 = vld [vmem:[#allocation4 + $0x11] sm:$0xff] }
 0x46e   : > { %15844 = vmatmul.mubr.msk.f32.gmra.mxu0 %vm598_vm1, %v20691_v43  ;;  %15893 = vmatprep.mubr.msk.f32.mxu1 %vm598_vm1, %v8683_v2  ;;  %23432 = vst [vmem:[#allocation181_spill] sm:$0xff] %v20707_v35  ;;  %v23433_v11 = vld [vmem:[#allocation164_spill] sm:$0xff]  ;;  %v23434_v1 = vld [vmem:[#allocation53_spill] sm:$0xff]  ;;  %v23435_v2 = vld [vmem:[#allocation163_spill] sm:$0xff]  ;;  %v9397_v12 = vmul.f32 %v9365_v13, %v23436_v59 }
 0x46f   : > { %v20699_v57 = vld [vmem:[#allocation4 + $0xf8] sm:$0xff]  ;;  %v9396_v46 = vmul.f32 %v9364_v18, %v23434_v1  ;;  %v20724_v1 = vld [vmem:[#allocation4 + $0x21] sm:$0xff] }
 0x470   : > { %23431 = vst [vmem:[#allocation115_spill] sm:$0xff] %v20699_v57  ;;  %v20701_v56 = vld [vmem:[#allocation4 + $0xf7] sm:$0xff]  ;;  %v20703_v27 = vld [vmem:[#allocation4 + $0xff] sm:$0xff]  ;;  %15846 = vmatprep.mubr.msk.f32.mxu0 %vm598_vm1, %v20699_v57 }
 0x471   : > { %v8685_v43 = vmul.f32 %v20701_v56, %v23433_v11  ;;  %15894 = vmatmul.mubr.msk.f32.gmra.mxu1 %vm598_vm1, %v8684_v37  ;;  %v8686_v14 = vmul.f32 %v20703_v27, %v23435_v2  ;;  %v20719_v57 = vld [vmem:[#allocation4 + $0x19] sm:$0xff]  ;;  %v23437_v11 = vld [vmem:[#allocation54_spill] sm:$0xff] }
 0x472   : > { %15847 = vmatmul.mubr.msk.f32.gmra.mxu0 %vm598_vm1, %v20707_v35  ;;  %v9815_v18 = vmul.f32 %v20327_v15, %v23437_v11  ;;  %v23438_v37 = vld [vmem:[#allocation60_spill] sm:$0xff]  ;;  %v23441_v13 = vld [vmem:[#allocation59_spill] sm:$0xff] }
 0x473   : > { %15896 = vmatprep.mubr.msk.f32.mxu1 %vm598_vm1, %v8685_v43  ;;  %15901 = vmatprep.mubr.msk.f32.mxu0 %vm598_vm1, %v9396_v46  ;;  %v9398_v35 = vmul.f32 %v20719_v57, %v23438_v37  ;;  %v20733_v46 = vld [vmem:[%s22058_s7 + $0x30] sm:$0xff]  ;;  %v16312_v15 = vld [vmem:[%s22058_s7 + $0x20] sm:$0xff]  ;;  %v9399_v11 = vmul.f32 %v20724_v1, %v23441_v13  ;;  %v9817_v37 = vmul.f32 %v20364_v45, %v23370_v42  ;;  %v16313_v45 = vld [vmem:[%s22058_s7 + $0x28] sm:$0xff] }
 0x474   : > { %v20739_v43 = vld [vmem:[#allocation4 + $0x29] sm:$0xff]  ;;  %v20748_v59 = vld [vmem:[#allocation4 + $0x31] sm:$0xff]  ;;  %v9818_v42 = vmul.f32 %v20366_v23, %v23371_v44  ;;  %v9820_v23 = vmul.f32 %v20386_v36, %v23376_v54  ;;  %v9822_v36 = vmul.f32 %v20412_v3, %v23380_v22  ;;  %v20808_v54 = vld [vmem:[#allocation4 + $0x61] sm:$0xff]  ;;  %v9824_v3 = vmul.f32 %v20451_v0, %v23384_v51 }
 0x475   : > { %15897 = vmatmul.mubr.msk.f32.gmra.mxu1 %vm598_vm1, %v8686_v14  ;;  %23439 = vst [vmem:[#allocation182_spill] sm:$0xff] %v20739_v43  ;;  %v20792_v44 = vld [vmem:[#allocation4 + $0x51] sm:$0xff]  ;;  %v9826_v0 = vmul.f32 %v20473_v55, %v23390_v16  ;;  %v20840_v51 = vld [vmem:[#allocation4 + $0x81] sm:$0xff]  ;;  %v9828_v55 = vmul.f32 %v20518_v34, %v23394_v32  ;;  %v9830_v34 = vmul.f32 %v20541_v58, %v23400_v9 }
 0x476   : > { %15902 = vmatmul.mubr.msk.f32.vlgmr.msra.gmra.mxu0 %vm598_vm1, %v9397_v12  ;;  %15951 = vmatprep.mubr.msk.f32.mxu1 %vm598_vm1, %v9815_v18  ;;  %v23440_v12 = vld [vmem:[#allocation56_spill] sm:$0xff]  ;;  %v20754_v18 = vld [vmem:[%s22058_s7 + $0x38] sm:$0xff]  ;;  %v9832_v58 = vmul.f32 %v20556_v38, %v23404_v50  ;;  %v9834_v38 = vmul.f32 %v20596_v48, %v23407_v5  ;;  %v9836_v48 = vmul.f32 %v20618_v49, %v23412_v21  ;;  %v23463_v49 = vld [vmem:[#allocation121_spill] sm:$0xff] }
 0x477   : > { %16000 = vmatpush3.msra.mxu0 %v16312_v15  ;;  %15904 = vmatprep.mubr.msk.f32.mxu0 %vm598_vm1, %v9398_v35  ;;  %v9816_v14 = vmul.f32 %v20329_v62, %v23440_v12  ;;  %v23442_v62 = vld [vmem:[#allocation66_spill] sm:$0xff]  ;;  %v20760_v15 = vld [vmem:[#allocation4 + $0x39] sm:$0xff]  ;;  %v9819_v12 = vmul.f32 %v20384_v10, %v23375_v31  ;;  %v20872_v32 = vld [vmem:[#allocation4 + $0xa1] sm:$0xff] }
 0x478   : > { %16099 = vmatprep.subr.mxu0 %v20733_v46  ;;  %v9400_v35 = vmul.f32 %v20739_v43, %v23442_v62  ;;  %v23444_v62 = vld [vmem:[#allocation72_spill] sm:$0xff]  ;;  %v23446_v31 = vld [vmem:[#allocation78_spill] sm:$0xff]  ;;  %v23465_v21 = vld [vmem:[#allocation149_spill] sm:$0xff] }
 0x479   : > { %15952 = vmatmul.mubr.msk.f32.vlgmr.msra.gmra.mxu1 %vm598_vm1, %v9816_v14  ;;  %v23443_v14 = vld [vmem:[#allocation65_spill] sm:$0xff]  ;;  %v9402_v13 = vmul.f32 %v20760_v15, %v23444_v62  ;;  %v20824_v22 = vld [vmem:[#allocation4 + $0x71] sm:$0xff] }
 0x47a   : > { %15905 = vmatmul.mubr.msk.f32.gmra.mxu0 %vm598_vm1, %v9399_v11  ;;  %16050 = vmatpush3.msra.mxu1 %v16313_v45  ;;  %v9401_v11 = vmul.f32 %v20748_v59, %v23443_v14  ;;  %v20776_v43 = vld [vmem:[#allocation4 + $0x41] sm:$0xff]  ;;  %v9821_v45 = vmul.f32 %v20410_v61, %v23378_v53  ;;  %v20856_v16 = vld [vmem:[#allocation4 + $0x91] sm:$0xff] }
 0x47b   : > { %15954 = vmatprep.mubr.msk.f32.mxu1 %vm598_vm1, %v9817_v37  ;;  %15907 = vmatprep.mubr.msk.f32.mxu0 %vm598_vm1, %v9400_v35  ;;  %v20780_v37 = vld [vmem:[#allocation4 + $0x49] sm:$0xff]  ;;  %v23445_v35 = vld [vmem:[#allocation71_spill] sm:$0xff]  ;;  %v23448_v53 = vld [vmem:[#allocation84_spill] sm:$0xff] }
 0x47c   : > { %16149 = vmatprep.subr.mxu1 %v20754_v18  ;;  %v9403_v10 = vmul.f32 %v20776_v43, %v23445_v35  ;;  %v20888_v9 = vld [vmem:[#allocation4 + $0xb1] sm:$0xff]  ;;  %v20904_v50 = vld [vmem:[#allocation4 + $0xc1] sm:$0xff] }
 0x47d   : > { %15955 = vmatmul.mubr.msk.f32.gmra.mxu1 %vm598_vm1, %v9818_v42  ;;  %v9404_v42 = vmul.f32 %v20780_v37, %v23446_v31  ;;  %v20920_v5 = vld [vmem:[#allocation4 + $0xd1] sm:$0xff] }
 0x47e   : > { %15908 = vmatmul.mubr.msk.f32.gmra.mxu0 %vm598_vm1, %v9401_v11  ;;  %15957 = vmatprep.mubr.msk.f32.mxu1 %vm598_vm1, %v9819_v12  ;;  %v20796_v12 = vld [vmem:[#allocation4 + $0x59] sm:$0xff]  ;;  %v9823_v11 = vmul.f32 %v20449_v30, %v23382_v20  ;;  %v23450_v20 = vld [vmem:[#allocation90_spill] sm:$0xff] }
 0x47f   : > { %15910 = vmatprep.mubr.msk.f32.mxu0 %vm598_vm1, %v9402_v13  ;;  %v23447_v13 = vld [vmem:[#allocation77_spill] sm:$0xff] }
 0x480   : > { %v9405_v61 = vmul.f32 %v20792_v44, %v23447_v13 }
 0x481   : > { %15958 = vmatmul.mubr.msk.f32.gmra.mxu1 %vm598_vm1, %v9820_v23  ;;  %v9406_v23 = vmul.f32 %v20796_v12, %v23448_v53 }
 0x482   : > { %15911 = vmatmul.mubr.msk.f32.gmra.mxu0 %vm598_vm1, %v9403_v10  ;;  %15960 = vmatprep.mubr.msk.f32.mxu1 %vm598_vm1, %v9821_v45  ;;  %v20812_v10 = vld [vmem:[#allocation4 + $0x69] sm:$0xff]  ;;  %v23449_v45 = vld [vmem:[#allocation83_spill] sm:$0xff] }
 0x483   : > { %15913 = vmatprep.mubr.msk.f32.mxu0 %vm598_vm1, %v9404_v42  ;;  %v9407_v30 = vmul.f32 %v20808_v54, %v23449_v45  ;;  %v9825_v42 = vmul.f32 %v20471_v26, %v23389_v60  ;;  %v23452_v60 = vld [vmem:[#allocation96_spill] sm:$0xff] }
 0x485   : > { %15961 = vmatmul.mubr.msk.f32.gmra.mxu1 %vm598_vm1, %v9822_v36  ;;  %v9408_v36 = vmul.f32 %v20812_v10, %v23450_v20 }
 0x486   : > { %15914 = vmatmul.mubr.msk.f32.gmra.mxu0 %vm598_vm1, %v9405_v61  ;;  %15963 = vmatprep.mubr.msk.f32.mxu1 %vm598_vm1, %v9823_v11  ;;  %v20828_v61 = vld [vmem:[#allocation4 + $0x79] sm:$0xff]  ;;  %v23451_v11 = vld [vmem:[#allocation89_spill] sm:$0xff] }
 0x487   : > { %15916 = vmatprep.mubr.msk.f32.mxu0 %vm598_vm1, %v9406_v23  ;;  %v9409_v26 = vmul.f32 %v20824_v22, %v23451_v11  ;;  %v9827_v23 = vmul.f32 %v20508_v7, %v23392_v63  ;;  %v23454_v63 = vld [vmem:[#allocation102_spill] sm:$0xff] }
 0x489   : > { %15964 = vmatmul.mubr.msk.f32.gmra.mxu1 %vm598_vm1, %v9824_v3  ;;  %v9410_v3 = vmul.f32 %v20828_v61, %v23452_v60 }
 0x48a   : > { %15917 = vmatmul.mubr.msk.f32.gmra.mxu0 %vm598_vm1, %v9407_v30  ;;  %15966 = vmatprep.mubr.msk.f32.mxu1 %vm598_vm1, %v9825_v42  ;;  %v20844_v30 = vld [vmem:[#allocation4 + $0x89] sm:$0xff]  ;;  %v23453_v42 = vld [vmem:[#allocation95_spill] sm:$0xff] }
 0x48b   : > { %15919 = vmatprep.mubr.msk.f32.mxu0 %vm598_vm1, %v9408_v36  ;;  %v9411_v7 = vmul.f32 %v20840_v51, %v23453_v42  ;;  %v9829_v36 = vmul.f32 %v20529_v24, %v23398_v33  ;;  %v23456_v33 = vld [vmem:[#allocation108_spill] sm:$0xff] }
 0x48d   : > { %15967 = vmatmul.mubr.msk.f32.gmra.mxu1 %vm598_vm1, %v9826_v0  ;;  %v9412_v0 = vmul.f32 %v20844_v30, %v23454_v63 }
 0x48e   : > { %15920 = vmatmul.mubr.msk.f32.gmra.mxu0 %vm598_vm1, %v9409_v26  ;;  %15969 = vmatprep.mubr.msk.f32.mxu1 %vm598_vm1, %v9827_v23  ;;  %v20860_v26 = vld [vmem:[#allocation4 + $0x99] sm:$0xff]  ;;  %v23455_v23 = vld [vmem:[#allocation101_spill] sm:$0xff] }
 0x48f   : > { %15922 = vmatprep.mubr.msk.f32.mxu0 %vm598_vm1, %v9410_v3  ;;  %v9413_v24 = vmul.f32 %v20856_v16, %v23455_v23  ;;  %v9831_v3 = vmul.f32 %v20554_v8, %v23402_v6  ;;  %v23458_v6 = vld [vmem:[#allocation117_spill] sm:$0xff] }
 0x491   : > { %15970 = vmatmul.mubr.msk.f32.gmra.mxu1 %vm598_vm1, %v9828_v55  ;;  %v9414_v55 = vmul.f32 %v20860_v26, %v23456_v33 }
 0x492   : > { %15923 = vmatmul.mubr.msk.f32.gmra.mxu0 %vm598_vm1, %v9411_v7  ;;  %15972 = vmatprep.mubr.msk.f32.mxu1 %vm598_vm1, %v9829_v36  ;;  %v20876_v7 = vld [vmem:[#allocation4 + $0xa9] sm:$0xff]  ;;  %v23457_v36 = vld [vmem:[#allocation107_spill] sm:$0xff] }
 0x493   : > { %15925 = vmatprep.mubr.msk.f32.mxu0 %vm598_vm1, %v9412_v0  ;;  %v9415_v8 = vmul.f32 %v20872_v32, %v23457_v36  ;;  %v9833_v0 = vmul.f32 %v20587_v39, %v23406_v4  ;;  %v23460_v4 = vld [vmem:[#allocation127_spill] sm:$0xff] }
 0x495   : > { %15973 = vmatmul.mubr.msk.f32.gmra.mxu1 %vm598_vm1, %v9830_v34  ;;  %v9416_v34 = vmul.f32 %v20876_v7, %v23458_v6 }
 0x496   : > { %15926 = vmatmul.mubr.msk.f32.gmra.mxu0 %vm598_vm1, %v9413_v24  ;;  %15975 = vmatprep.mubr.msk.f32.mxu1 %vm598_vm1, %v9831_v3  ;;  %v20892_v24 = vld [vmem:[#allocation4 + $0xb9] sm:$0xff] }
 0x497   : > { %15928 = vmatprep.mubr.msk.f32.mxu0 %vm598_vm1, %v9414_v55  ;;  %v23459_v3 = vld [vmem:[#allocation116_spill] sm:$0xff]  ;;  %v9835_v55 = vmul.f32 %v20608_v52, %v23410_v40  ;;  %v23462_v40 = vld [vmem:[#allocation139_spill] sm:$0xff] }
 0x498   : > { %v9417_v39 = vmul.f32 %v20888_v9, %v23459_v3 }
 0x499   : > { %15976 = vmatmul.mubr.msk.f32.gmra.mxu1 %vm598_vm1, %v9832_v58  ;;  %v9418_v58 = vmul.f32 %v20892_v24, %v23460_v4 }
 0x49a   : > { %15929 = vmatmul.mubr.msk.f32.gmra.mxu0 %vm598_vm1, %v9415_v8  ;;  %15978 = vmatprep.mubr.msk.f32.mxu1 %vm598_vm1, %v9833_v0  ;;  %v20908_v8 = vld [vmem:[#allocation4 + $0xc9] sm:$0xff] }
 0x49b   : > { %15931 = vmatprep.mubr.msk.f32.mxu0 %vm598_vm1, %v9416_v34  ;;  %v23461_v0 = vld [vmem:[#allocation126_spill] sm:$0xff]  ;;  %v9837_v34 = vmul.f32 %v20638_v17, %v23414_v19  ;;  %v9839_v19 = vmul.f32 %v20662_v47, %v23419_v28  ;;  %v23469_v28 = vld [vmem:[#allocation123_spill] sm:$0xff] }
 0x49c   : > { %v9419_v52 = vmul.f32 %v20904_v50, %v23461_v0 }
 0x49d   : > { %15979 = vmatmul.mubr.msk.f32.gmra.mxu1 %vm598_vm1, %v9834_v38  ;;  %v9420_v38 = vmul.f32 %v20908_v8, %v23462_v40  ;;  %v20936_v40 = vld [vmem:[#allocation4 + $0xe1] sm:$0xff] }
 0x49e   : > { %15932 = vmatmul.mubr.msk.f32.gmra.mxu0 %vm598_vm1, %v9417_v39  ;;  %15981 = vmatprep.mubr.msk.f32.mxu1 %vm598_vm1, %v9835_v55  ;;  %v20924_v39 = vld [vmem:[#allocation4 + $0xd9] sm:$0xff]  ;;  %v9838_v55 = vmul.f32 %v20640_v29, %v23463_v49  ;;  %v9840_v29 = vmul.f32 %v20664_v25, %v23420_v41  ;;  %v23473_v41 = vld [vmem:[#allocation158_spill] sm:$0xff] }
 0x49f   : > { %15934 = vmatprep.mubr.msk.f32.mxu0 %vm598_vm1, %v9418_v58  ;;  %v23464_v58 = vld [vmem:[#allocation138_spill] sm:$0xff]  ;;  %v23471_v25 = vld [vmem:[#allocation143_spill] sm:$0xff] }
 0x4a0   : > { %v9421_v17 = vmul.f32 %v20920_v5, %v23464_v58  ;;  %v20952_v58 = vld [vmem:[#allocation4 + $0xf1] sm:$0xff] }
 0x4a1   : > { %15982 = vmatmul.mubr.msk.f32.gmra.mxu1 %vm598_vm1, %v9836_v48  ;;  %v9422_v48 = vmul.f32 %v20924_v39, %v23465_v21  ;;  %v23470_v21 = vld [vmem:[#allocation159_spill] sm:$0xff] }
 0x4a2   : > { %15935 = vmatmul.mubr.msk.f32.gmra.mxu0 %vm598_vm1, %v9419_v52  ;;  %15984 = vmatprep.mubr.msk.f32.mxu1 %vm598_vm1, %v9837_v34  ;;  %v20940_v52 = vld [vmem:[#allocation4 + $0xe9] sm:$0xff]  ;;  %v23467_v34 = vld [vmem:[#allocation148_spill] sm:$0xff] }
 0x4a3   : > { %15937 = vmatprep.mubr.msk.f32.mxu0 %vm598_vm1, %v9420_v38  ;;  %23466 = vst [vmem:[#allocation190_spill] sm:$0xff] %v20940_v52  ;;  %v9423_v47 = vmul.f32 %v20936_v40, %v23467_v34  ;;  %v23468_v38 = vld [vmem:[#allocation144_spill] sm:$0xff]  ;;  %v23475_v34 = vld [vmem:[#allocation169_spill] sm:$0xff] }
 0x4a4   : > { %v9841_v49 = vmul.f32 %v23469_v28, %v23468_v38  ;;  %v9425_v28 = vmul.f32 %v20952_v58, %v23473_v41  ;;  %v23474_v38 = vld [vmem:[#allocation154_spill] sm:$0xff] }
 0x4a5   : > { %15985 = vmatmul.mubr.msk.f32.gmra.mxu1 %vm598_vm1, %v9838_v55  ;;  %v9424_v55 = vmul.f32 %v20940_v52, %v23470_v21  ;;  %v9843_v21 = vmul.f32 %v20701_v56, %v23474_v38  ;;  %v20968_v52 = vld [vmem:[#allocation4 + $0x101] sm:$0xff] }
 0x4a6   : > { %15938 = vmatmul.mubr.msk.f32.gmra.mxu0 %vm598_vm1, %v9421_v17  ;;  %15987 = vmatprep.mubr.msk.f32.mxu1 %vm598_vm1, %v9839_v19  ;;  %v20956_v19 = vld [vmem:[#allocation4 + $0xf9] sm:$0xff] }
 0x4a7   : > { %15940 = vmatprep.mubr.msk.f32.mxu0 %vm598_vm1, %v9422_v48  ;;  %v23472_v17 = vld [vmem:[#allocation135_spill] sm:$0xff]  ;;  %v23478_v38 = vld [vmem:[#allocation164_spill] sm:$0xff] }
 0x4a8   : > { %v9842_v48 = vmul.f32 %v23472_v17, %v23471_v25  ;;  %v23477_v17 = vld [vmem:[#allocation168_spill] sm:$0xff] }
 0x4a9   : > { %15988 = vmatmul.mubr.msk.f32.gmra.mxu1 %vm598_vm1, %v9840_v29  ;;  %v9426_v29 = vmul.f32 %v20956_v19, %v23475_v34  ;;  %v9427_v56 = vmul.f32 %v20968_v52, %v23477_v17  ;;  %v20982_v34 = vld [vmem:[#allocation4 + $0x10f] sm:$0xff] }
 0x4aa   : > { %15941 = vmatmul.mubr.msk.f32.gmra.mxu0 %vm598_vm1, %v9423_v47  ;;  %15990 = vmatprep.mubr.msk.f32.mxu1 %vm598_vm1, %v9841_v49  ;;  %v20972_v49 = vld [vmem:[#allocation4 + $0x107] sm:$0xff] }
 0x4ab   : > { %15943 = vmatprep.mubr.msk.f32.mxu0 %vm598_vm1, %v9424_v55  ;;  %v23476_v47 = vld [vmem:[#allocation153_spill] sm:$0xff]  ;;  %v9845_v25 = vmul.f32 %v20972_v49, %v23478_v38  ;;  %v20995_v38 = vld [vmem:[%s22058_s7 + $0x40] sm:$0xff] }
 0x4ac   : > { %v9844_v55 = vmul.f32 %v20703_v27, %v23476_v47  ;;  %v23479_v27 = vld [vmem:[#allocation53_spill] sm:$0xff] }
 0x4ad   : > { %15991 = vmatmul.mubr.msk.f32.gmra.mxu1 %vm598_vm1, %v9842_v48  ;;  %v10202_v48 = vld [vmem:[#allocation4 + $0x18] sm:$0xff] }
 0x4ae   : > { %15944 = vmatmul.mubr.msk.f32.gmra.mxu0 %vm598_vm1, %v9425_v28  ;;  %15993 = vmatprep.mubr.msk.f32.mxu1 %vm598_vm1, %v9843_v21  ;;  %v9846_v21 = vmul.f32 %v20982_v34, %v23435_v2  ;;  %v10621_v28 = vmul.f32 %v20719_v57, %v23479_v27  ;;  %v21008_v2 = vld [vmem:[#allocation4 + $0x30] sm:$0xff] }
 0x4af   : > { %15946 = vmatprep.mubr.msk.f32.mxu0 %vm598_vm1, %v9426_v29  ;;  %v10203_v29 = vld [vmem:[#allocation4 + $0x20] sm:$0xff] }
 0x4b1   : > { %15994 = vmatmul.mubr.msk.f32.gmra.mxu1 %vm598_vm1, %v9844_v55  ;;  %v23481_v55 = vld [vmem:[#allocation55_spill] sm:$0xff] }
 0x4b2   : > { %15947 = vmatmul.mubr.msk.f32.gmra.mxu0 %vm598_vm1, %v9427_v56  ;;  %15996 = vmatprep.mubr.msk.f32.mxu1 %vm598_vm1, %v9845_v25  ;;  %v23480_v25 = vld [vmem:[#allocation160_spill] sm:$0xff]  ;;  %v10622_v57 = vmul.f32 %v20724_v1, %v23481_v55  ;;  %v23484_v1 = vld [vmem:[#allocation150_spill] sm:$0xff] }
 0x4b3   : > { %16001 = vmatprep.mubr.msk.f32.mxu0 %vm598_vm1, %v10202_v48  ;;  %v23482_v56 = vld [vmem:[#allocation60_spill] sm:$0xff]  ;;  %v23483_v48 = vld [vmem:[#allocation182_spill] sm:$0xff] }
 0x4b4   : > { %v10623_v27 = vmul.f32 %v23483_v48, %v23482_v56  ;;  %v23489_v48 = vld [vmem:[#allocation170_spill] sm:$0xff] }
 0x4b5   : > { %15997 = vmatmul.mubr.msk.f32.gmra.mxu1 %vm598_vm1, %v9846_v21  ;;  %v21013_v21 = vld [vmem:[%s22061_s10] sm:$0xf] }
 0x4b6   : > { %16002 = vmatmul.mubr.msk.f32.vlgmr.msra.gmra.mxu0 %vm598_vm1, %v10203_v29  ;;  %16051 = vmatprep.mubr.msk.f32.mxu1 %vm598_vm1, %v10621_v28  ;;  %v23486_v29 = vld [vmem:[#allocation66_spill] sm:$0xff] }
 0x4b7   : > { %16100 = vmatpush3.msra.mxu0 %v20733_v46  ;;  %16004 = vmatprep.mubr.msk.f32.mxu0 %vm598_vm1, %v23480_v25  ;;  %v23485_v46 = vld [vmem:[#allocation59_spill] sm:$0xff]  ;;  %v10625_v25 = vmul.f32 %v20760_v15, %v23486_v29 }
 0x4b8   : > { %16199 = vmatprep.subr.mxu0 %v20995_v38  ;;  %v10624_v28 = vmul.f32 %v20748_v59, %v23485_v46  ;;  %v10627_v59 = vmul.f32 %v20780_v37, %v23444_v62  ;;  %v23490_v15 = vld [vmem:[#allocation171_spill] sm:$0xff]  ;;  %v23492_v37 = vld [vmem:[#allocation166_spill] sm:$0xff] }
 0x4b9   : > { %16052 = vmatmul.mubr.msk.f32.vlgmr.msra.gmra.mxu1 %vm598_vm1, %v10622_v57  ;;  %v23487_v57 = vld [vmem:[#allocation157_spill] sm:$0xff] }
 0x4ba   : > { %16005 = vmatmul.mubr.msk.f32.gmra.mxu0 %vm598_vm1, %v21008_v2  ;;  %16150 = vmatpush3.msra.mxu1 %v20754_v18  ;;  %v23488_v18 = vld [vmem:[#allocation67_spill] sm:$0xff] }
 0x4bb   : > { %16054 = vmatprep.mubr.msk.f32.mxu1 %vm598_vm1, %v10623_v27  ;;  %16007 = vmatprep.mubr.msk.f32.mxu0 %vm598_vm1, %v23484_v1  ;;  %v10626_v27 = vmul.f32 %v20776_v43, %v23443_v14  ;;  %v10628_v1 = vmul.f32 %v20792_v44, %v23445_v35  ;;  %v23491_v43 = vld [vmem:[#allocation161_spill] sm:$0xff] }
 0x4bc   : > { %16249 = vmatprep.subr.msk.mxu1 %vm998_vm2, %v21013_v21  ;;  %v23493_v44 = vld [vmem:[#allocation165_spill] sm:$0xff] }
 0x4bd   : > { %16055 = vmatmul.mubr.msk.f32.gmra.mxu1 %vm598_vm1, %v10624_v28  ;;  %v10629_v28 = vmul.f32 %v20796_v12, %v23446_v31  ;;  %v23494_v12 = vld [vmem:[#allocation68_spill] sm:$0xff] }
 0x4be   : > { %16008 = vmatmul.mubr.msk.f32.gmra.mxu0 %vm598_vm1, %v23487_v57  ;;  %16057 = vmatprep.mubr.msk.f32.mxu1 %vm598_vm1, %v10625_v25  ;;  %v10630_v25 = vmul.f32 %v20808_v54, %v23447_v13  ;;  %v10631_v57 = vmul.f32 %v20812_v10, %v23448_v53  ;;  %v23495_v54 = vld [vmem:[#allocation39_spill] sm:$0xff] }
 0x4bf   : > { %16010 = vmatprep.mubr.msk.f32.mxu0 %vm598_vm1, %v23488_v18  ;;  %v10632_v18 = vmul.f32 %v20824_v22, %v23449_v45  ;;  %v23496_v10 = vld [vmem:[#allocation167_spill] sm:$0xff]  ;;  %v23497_v22 = vld [vmem:[#allocation124_spill] sm:$0xff] }
 0x4c1   : > { %16058 = vmatmul.mubr.msk.f32.gmra.mxu1 %vm598_vm1, %v10626_v27  ;;  %v10633_v27 = vmul.f32 %v20828_v61, %v23450_v20  ;;  %v23498_v61 = vld [vmem:[#allocation73_spill] sm:$0xff] }
 0x4c2   : > { %16011 = vmatmul.mubr.msk.f32.gmra.mxu0 %vm598_vm1, %v23489_v48  ;;  %16060 = vmatprep.mubr.msk.f32.mxu1 %vm598_vm1, %v10627_v59  ;;  %v10634_v59 = vmul.f32 %v20840_v51, %v23451_v11  ;;  %v10635_v48 = vmul.f32 %v20844_v30, %v23452_v60  ;;  %v23499_v51 = vld [vmem:[#allocation173_spill] sm:$0xff]  ;;  %v23500_v30 = vld [vmem:[#allocation174_spill] sm:$0xff] }
 0x4c3   : > { %16013 = vmatprep.mubr.msk.f32.mxu0 %vm598_vm1, %v23490_v15  ;;  %v10636_v15 = vmul.f32 %v20856_v16, %v23453_v42  ;;  %v23501_v16 = vld [vmem:[#allocation176_spill] sm:$0xff] }
 0x4c5   : > { %16061 = vmatmul.mubr.msk.f32.gmra.mxu1 %vm598_vm1, %v10628_v1  ;;  %v10637_v1 = vmul.f32 %v20860_v26, %v23454_v63  ;;  %v23502_v26 = vld [vmem:[#allocation175_spill] sm:$0xff] }
 0x4c6   : > { %16014 = vmatmul.mubr.msk.f32.gmra.mxu0 %vm598_vm1, %v23491_v43  ;;  %16063 = vmatprep.mubr.msk.f32.mxu1 %vm598_vm1, %v10629_v28  ;;  %v10638_v28 = vmul.f32 %v20872_v32, %v23455_v23  ;;  %v10639_v43 = vmul.f32 %v20876_v7, %v23456_v33  ;;  %v23503_v32 = vld [vmem:[#allocation74_spill] sm:$0xff]  ;;  %v23504_v7 = vld [vmem:[#allocation37_spill] sm:$0xff] }
 0x4c7   : > { %16016 = vmatprep.mubr.msk.f32.mxu0 %vm598_vm1, %v23492_v37  ;;  %v10640_v37 = vmul.f32 %v20888_v9, %v23457_v36  ;;  %v23505_v9 = vld [vmem:[#allocation177_spill] sm:$0xff] }
 0x4c9   : > { %16064 = vmatmul.mubr.msk.f32.gmra.mxu1 %vm598_vm1, %v10630_v25  ;;  %v10641_v25 = vmul.f32 %v20892_v24, %v23458_v6  ;;  %v23506_v24 = vld [vmem:[#allocation79_spill] sm:$0xff] }
 0x4ca   : > { %16017 = vmatmul.mubr.msk.f32.gmra.mxu0 %vm598_vm1, %v23493_v44  ;;  %16066 = vmatprep.mubr.msk.f32.mxu1 %vm598_vm1, %v10631_v57  ;;  %v10642_v57 = vmul.f32 %v20904_v50, %v23459_v3  ;;  %v10643_v44 = vmul.f32 %v20908_v8, %v23460_v4  ;;  %v23508_v50 = vld [vmem:[#allocation113_spill] sm:$0xff]  ;;  %v23509_v8 = vld [vmem:[#allocation134_spill] sm:$0xff] }
 0x4cb   : > { %16019 = vmatprep.mubr.msk.f32.mxu0 %vm598_vm1, %v23494_v12  ;;  %v10644_v12 = vmul.f32 %v20920_v5, %v23461_v0  ;;  %v23513_v5 = vld [vmem:[#allocation40_spill] sm:$0xff]  ;;  %v11033_v0 = vld [vmem:[#allocation4 + $0xef] sm:$0xff] }
 0x4cd   : > { %16067 = vmatmul.mubr.msk.f32.gmra.mxu1 %vm598_vm1, %v10632_v18  ;;  %v23507_v18 = vld [vmem:[#allocation139_spill] sm:$0xff] }
 0x4ce   : > { %16020 = vmatmul.mubr.msk.f32.gmra.mxu0 %vm598_vm1, %v23495_v54  ;;  %16069 = vmatprep.mubr.msk.f32.mxu1 %vm598_vm1, %v10633_v27  ;;  %v10645_v27 = vmul.f32 %v20924_v39, %v23507_v18  ;;  %v23510_v54 = vld [vmem:[#allocation138_spill] sm:$0xff]  ;;  %v23514_v39 = vld [vmem:[#allocation115_spill] sm:$0xff] }
 0x4cf   : > { %16022 = vmatprep.mubr.msk.f32.mxu0 %vm598_vm1, %v23496_v10  ;;  %v10646_v10 = vmul.f32 %v20936_v40, %v23510_v54  ;;  %v23517_v40 = vld [vmem:[#allocation181_spill] sm:$0xff]  ;;  %v11031_v54 = vld [vmem:[#allocation4 + $0xdf] sm:$0xff] }
 0x4d1   : > { %16070 = vmatmul.mubr.msk.f32.gmra.mxu1 %vm598_vm1, %v10634_v59  ;;  %v23511_v59 = vld [vmem:[#allocation149_spill] sm:$0xff] }
 0x4d2   : > { %16023 = vmatmul.mubr.msk.f32.gmra.mxu0 %vm598_vm1, %v23497_v22  ;;  %16072 = vmatprep.mubr.msk.f32.mxu1 %vm598_vm1, %v10635_v48  ;;  %v23512_v48 = vld [vmem:[#allocation190_spill] sm:$0xff] }
 0x4d3   : > { %16025 = vmatprep.mubr.msk.f32.mxu0 %vm598_vm1, %v23498_v61  ;;  %v10647_v22 = vmul.f32 %v23512_v48, %v23511_v59  ;;  %v23515_v61 = vld [vmem:[#allocation148_spill] sm:$0xff]  ;;  %v23524_v48 = vld [vmem:[#allocation57_spill] sm:$0xff] }
 0x4d5   : > { %16073 = vmatmul.mubr.msk.f32.gmra.mxu1 %vm598_vm1, %v10636_v15  ;;  %v10648_v15 = vmul.f32 %v20952_v58, %v23515_v61  ;;  %v10650_v58 = vmul.f32 %v20968_v52, %v23473_v41  ;;  %v11010_v52 = vld [vmem:[#allocation4 + $0x37] sm:$0xff]  ;;  %v11029_v61 = vld [vmem:[#allocation4 + $0xcf] sm:$0xff] }
 0x4d6   : > { %16026 = vmatmul.mubr.msk.f32.gmra.mxu0 %vm598_vm1, %v23499_v51  ;;  %16075 = vmatprep.mubr.msk.f32.mxu1 %vm598_vm1, %v10637_v1  ;;  %v23516_v1 = vld [vmem:[#allocation159_spill] sm:$0xff] }
 0x4d7   : > { %16028 = vmatprep.mubr.msk.f32.mxu0 %vm598_vm1, %v23500_v30  ;;  %v10649_v51 = vmul.f32 %v20956_v19, %v23516_v1  ;;  %v21151_v30 = vld [vmem:[#allocation4 + $0x108] sm:$0xff] }
 0x4d9   : > { %16076 = vmatmul.mubr.msk.f32.gmra.mxu1 %vm598_vm1, %v10638_v28  ;;  %v21153_v28 = vld [vmem:[#allocation4 + $0x109] sm:$0xff] }
 0x4da   : > { %16029 = vmatmul.mubr.msk.f32.gmra.mxu0 %vm598_vm1, %v23501_v16  ;;  %16078 = vmatprep.mubr.msk.f32.mxu1 %vm598_vm1, %v10639_v43  ;;  %23518 = vst [vmem:[#allocation184_spill] sm:$0xff] %v21153_v28  ;;  %v11008_v43 = vld [vmem:[#allocation4 + $0x27] sm:$0xff] }
 0x4db   : > { %16031 = vmatprep.mubr.msk.f32.mxu0 %vm598_vm1, %v23502_v26  ;;  %v23519_v16 = vld [vmem:[#allocation169_spill] sm:$0xff]  ;;  %v21162_v26 = vld [vmem:[#allocation4 + $0x110] sm:$0xff] }
 0x4dc   : > { %v10651_v19 = vmul.f32 %v21153_v28, %v23519_v16  ;;  %v11443_v28 = vld [vmem:[#allocation4 + $0xa8] sm:$0xff] }
 0x4dd   : > { %16079 = vmatmul.mubr.msk.f32.gmra.mxu1 %vm598_vm1, %v10640_v37  ;;  %v23520_v37 = vld [vmem:[#allocation54_spill] sm:$0xff] }
 0x4de   : > { %16032 = vmatmul.mubr.msk.f32.gmra.mxu0 %vm598_vm1, %v23503_v32  ;;  %16081 = vmatprep.mubr.msk.f32.mxu1 %vm598_vm1, %v10641_v25  ;;  %v11040_v25 = vmul.f32 %v11008_v43, %v23520_v37  ;;  %v21165_v32 = vld [vmem:[#allocation4 + $0x111] sm:$0xff] }
 0x4df   : > { %16034 = vmatprep.mubr.msk.f32.mxu0 %vm598_vm1, %v23504_v7  ;;  %23521 = vst [vmem:[#allocation183_spill] sm:$0xff] %v21165_v32  ;;  %v11009_v7 = vld [vmem:[#allocation4 + $0x2f] sm:$0xff] }
 0x4e1   : > { %16082 = vmatmul.mubr.msk.f32.gmra.mxu1 %vm598_vm1, %v10642_v57  ;;  %v10652_v57 = vmul.f32 %v21165_v32, %v23477_v17 }
 0x4e2   : > { %16035 = vmatmul.mubr.msk.f32.gmra.mxu0 %vm598_vm1, %v23505_v9  ;;  %16084 = vmatprep.mubr.msk.f32.mxu1 %vm598_vm1, %v10643_v44  ;;  %v23522_v44 = vld [vmem:[#allocation56_spill] sm:$0xff] }
 0x4e3   : > { %16037 = vmatprep.mubr.msk.f32.mxu0 %vm598_vm1, %v23506_v24  ;;  %v11041_v9 = vmul.f32 %v11009_v7, %v23522_v44  ;;  %v11011_v24 = vld [vmem:[#allocation4 + $0x3f] sm:$0xff] }
 0x4e5   : > { %16085 = vmatmul.mubr.msk.f32.gmra.mxu1 %vm598_vm1, %v10644_v12  ;;  %v11427_v12 = vld [vmem:[#allocation4 + $0x28] sm:$0xff] }
 0x4e6   : > { %16038 = vmatmul.mubr.msk.f32.gmra.mxu0 %vm598_vm1, %v23508_v50  ;;  %16087 = vmatprep.mubr.msk.f32.mxu1 %vm598_vm1, %v10645_v27  ;;  %v23523_v27 = vld [vmem:[#allocation58_spill] sm:$0xff] }
 0x4e7   : > { %16040 = vmatprep.mubr.msk.f32.mxu0 %vm598_vm1, %v23509_v8  ;;  %v11042_v50 = vmul.f32 %v11010_v52, %v23523_v27  ;;  %v21178_v8 = vpop.f32.mrf.mxu0  ;;  %v11016_v27 = vld [vmem:[#allocation4 + $0x67] sm:$0xff] }
 0x4e9   : > { %16088 = vmatmul.mubr.msk.f32.gmra.mxu1 %vm598_vm1, %v10646_v10  ;;  %v11012_v10 = vld [vmem:[#allocation4 + $0x47] sm:$0xff] }
 0x4ea   : > { %16041 = vmatmul.mubr.msk.f32.gmra.mxu0 %vm598_vm1, %v23513_v5  ;;  %16090 = vmatprep.mubr.msk.f32.mxu1 %vm598_vm1, %v10647_v22  ;;  %v11043_v22 = vmul.f32 %v11011_v24, %v23524_v48  ;;  %v21184_v5 = vpop.f32.mrf.mxu1  ;;  %v11431_v24 = vld [vmem:[#allocation4 + $0x48] sm:$0xff] }
 0x4eb   : > { %16043 = vmatprep.mubr.msk.f32.mxu0 %vm598_vm1, %v23514_v39  ;;  %v23528_v48 = vld [vmem:[#allocation69_spill] sm:$0xff] }
 0x4ed   : > { %16091 = vmatmul.mubr.msk.f32.gmra.mxu1 %vm598_vm1, %v10648_v15  ;;  %v11013_v15 = vld [vmem:[#allocation4 + $0x4f] sm:$0xff] }
 0x4ee   : > { %16044 = vmatmul.mubr.msk.f32.gmra.mxu0 %vm598_vm1, %v23517_v40  ;;  %16093 = vmatprep.mubr.msk.f32.mxu1 %vm598_vm1, %v10649_v51  ;;  %v11429_v51 = vld [vmem:[#allocation4 + $0x38] sm:$0xff]  ;;  %v23525_v40 = vld [vmem:[#allocation64_spill] sm:$0xff] }
 0x4ef   : > { %16046 = vmatprep.mubr.msk.f32.mxu0 %vm598_vm1, %v21151_v30  ;;  %v11044_v43 = vmul.f32 %v11012_v10, %v23525_v40 }
 0x4f1   : > { %16094 = vmatmul.mubr.msk.f32.gmra.mxu1 %vm598_vm1, %v10650_v58  ;;  %v11014_v58 = vld [vmem:[#allocation4 + $0x57] sm:$0xff] }
 0x4f2   : > { %16047 = vmatmul.mubr.msk.f32.gmra.mxu0 %vm598_vm1, %v21162_v26  ;;  %16096 = vmatprep.mubr.msk.f32.mxu1 %vm598_vm1, %v10651_v19 }
 0x4f3   : > { %16101 = vmatprep.mubr.msk.f32.mxu0 %vm598_vm1, %v11040_v25  ;;  %v23526_v25 = vld [vmem:[#allocation63_spill] sm:$0xff] }
 0x4f4   : > { %v11045_v7 = vmul.f32 %v11013_v15, %v23526_v25  ;;  %v11432_v15 = vld [vmem:[#allocation4 + $0x50] sm:$0xff] }
 0x4f5   : > { %16097 = vmatmul.mubr.msk.f32.gmra.mxu1 %vm598_vm1, %v10652_v57  ;;  %v23527_v57 = vld [vmem:[#allocation70_spill] sm:$0xff] }
 0x4f6   : > { %16102 = vmatmul.mubr.msk.f32.vlgmr.msra.gmra.mxu0 %vm598_vm1, %v11041_v9  ;;  %16151 = vmatprep.mubr.msk.f32.mxu1 %vm598_vm1, %v11427_v12  ;;  %v11046_v44 = vmul.f32 %v11014_v58, %v23527_v57  ;;  %v11015_v9 = vld [vmem:[#allocation4 + $0x5f] sm:$0xff]  ;;  %v11018_v25 = vld [vmem:[#allocation4 + $0x77] sm:$0xff] }
 0x4f7   : > { %16200 = vmatpush3.msra.mxu0 %v20995_v38  ;;  %16104 = vmatprep.mubr.msk.f32.mxu0 %vm598_vm1, %v11042_v50  ;;  %v15806_v39 = vpop.f32.mrf.mxu0  ;;  %v11433_v58 = vld [vmem:[#allocation4 + $0x58] sm:$0xff] }
 0x4f8   : > { %v23530_v57 = vld [vmem:[#allocation75_spill] sm:$0xff] }
 0x4f9   : > { %16152 = vmatmul.mubr.msk.f32.vlgmr.msra.gmra.mxu1 %vm598_vm1, %v21008_v2  ;;  %v8894_v38 = vpop.f32.mrf.mxu0  ;;  %v11430_v2 = vld [vmem:[#allocation4 + $0x40] sm:$0xff] }
 0x4fa   : > { %16105 = vmatmul.mubr.msk.f32.gmra.mxu0 %vm598_vm1, %v11043_v22  ;;  %16250 = vmatpush3.msk.msra.mxu1 %vm998_vm2, %v21013_v21  ;;  %v15856_v19 = vpop.f32.mrf.mxu1  ;;  %v11047_v22 = vmul.f32 %v11015_v9, %v23528_v48  ;;  %v11435_v48 = vld [vmem:[#allocation4 + $0x68] sm:$0xff] }
 0x4fb   : > { %16154 = vmatprep.mubr.msk.f32.mxu1 %vm598_vm1, %v11429_v51  ;;  %16107 = vmatprep.mubr.msk.f32.mxu0 %vm598_vm1, %v11044_v43  ;;  %v21194_v37 = vadd.f32 %v15856_v19, %v15806_v39  ;;  %v23529_v51 = vld [vmem:[#allocation76_spill] sm:$0xff]  ;;  %v11017_v43 = vld [vmem:[#allocation4 + $0x6f] sm:$0xff] }
 0x4fc   : > { %v9215_v52 = vpop.f32.mrf.mxu1  ;;  %v15809_v12 = vpop.f32.mrf.mxu0  ;;  %v11048_v40 = vmul.f32 %v11016_v27, %v23529_v51 }
 0x4fd   : > { %16155 = vmatmul.mubr.msk.f32.gmra.mxu1 %vm598_vm1, %v11430_v2  ;;  %v21199_v21 = vadd.f32 %v9215_v52, %v8894_v38 }
 0x4fe   : > { %16108 = vmatmul.mubr.msk.f32.gmra.mxu0 %vm598_vm1, %v11045_v7  ;;  %16157 = vmatprep.mubr.msk.f32.mxu1 %vm598_vm1, %v11431_v24  ;;  %v8904_v50 = vpop.f32.mrf.mxu0  ;;  %v11434_v24 = vld [vmem:[#allocation4 + $0x60] sm:$0xff] }
 0x4ff   : > { %16110 = vmatprep.mubr.msk.f32.mxu0 %vm598_vm1, %v11046_v44  ;;  %v15859_v10 = vpop.f32.mrf.mxu1  ;;  %v11049_v44 = vmul.f32 %v11017_v43, %v23530_v57 }
 0x500   : > { %v21205_v39 = vadd.f32 %v15859_v10, %v15809_v12  ;;  %v23531_v12 = vld [vmem:[#allocation82_spill] sm:$0xff]  ;;  %v11019_v10 = vld [vmem:[#allocation4 + $0x7f] sm:$0xff] }
 0x501   : > { %16158 = vmatmul.mubr.msk.f32.gmra.mxu1 %vm598_vm1, %v11432_v15  ;;  %v15812_v38 = vpop.f32.mrf.mxu0  ;;  %v9225_v19 = vpop.f32.mrf.mxu1  ;;  %v11050_v27 = vmul.f32 %v11018_v25, %v23531_v12  ;;  %v11436_v25 = vld [vmem:[#allocation4 + $0x70] sm:$0xff] }
 0x502   : > { %16111 = vmatmul.mubr.msk.f32.gmra.mxu0 %vm598_vm1, %v11047_v22  ;;  %16160 = vmatprep.mubr.msk.f32.mxu1 %vm598_vm1, %v11433_v58  ;;  %v21211_v7 = vadd.f32 %v9225_v19, %v8904_v50  ;;  %v11020_v50 = vld [vmem:[#allocation4 + $0x87] sm:$0xff] }
 0x503   : > { %16113 = vmatprep.mubr.msk.f32.mxu0 %vm598_vm1, %v11048_v40  ;;  %v8914_v2 = vpop.f32.mrf.mxu0  ;;  %v15862_v52 = vpop.f32.mrf.mxu1  ;;  %v23532_v58 = vld [vmem:[#allocation81_spill] sm:$0xff] }
 0x504   : > { %v21215_v9 = vadd.f32 %v15862_v52, %v15812_v38  ;;  %v11051_v38 = vmul.f32 %v11019_v10, %v23532_v58  ;;  %v23533_v52 = vld [vmem:[#allocation88_spill] sm:$0xff] }
 0x505   : > { %16161 = vmatmul.mubr.msk.f32.gmra.mxu1 %vm598_vm1, %v11434_v24  ;;  %v15815_v22 = vpop.f32.mrf.mxu0  ;;  %v9235_v15 = vpop.f32.mrf.mxu1  ;;  %v11052_v57 = vmul.f32 %v11020_v50, %v23533_v52  ;;  %v11021_v24 = vld [vmem:[#allocation4 + $0x8f] sm:$0xff]  ;;  %v11438_v50 = vld [vmem:[#allocation4 + $0x80] sm:$0xff] }
 0x506   : > { %16114 = vmatmul.mubr.msk.f32.gmra.mxu0 %vm598_vm1, %v11049_v44  ;;  %16163 = vmatprep.mubr.msk.f32.mxu1 %vm598_vm1, %v11435_v48  ;;  %v21221_v51 = vadd.f32 %v9235_v15, %v8914_v2  ;;  %v11437_v44 = vld [vmem:[#allocation4 + $0x78] sm:$0xff] }
 0x507   : > { %16116 = vmatprep.mubr.msk.f32.mxu0 %vm598_vm1, %v11050_v27  ;;  %v8924_v40 = vpop.f32.mrf.mxu0  ;;  %v15865_v43 = vpop.f32.mrf.mxu1  ;;  %v11022_v2 = vld [vmem:[#allocation4 + $0x97] sm:$0xff] }
 0x508   : > { %v21225_v19 = vadd.f32 %v15865_v43, %v15815_v22  ;;  %v23534_v48 = vld [vmem:[#allocation87_spill] sm:$0xff]  ;;  %v23535_v43 = vld [vmem:[#allocation94_spill] sm:$0xff] }
 0x509   : > { %16164 = vmatmul.mubr.msk.f32.gmra.mxu1 %vm598_vm1, %v11436_v25  ;;  %v15818_v12 = vpop.f32.mrf.mxu0  ;;  %v9245_v17 = vpop.f32.mrf.mxu1  ;;  %v11053_v22 = vmul.f32 %v11021_v24, %v23534_v48  ;;  %v11054_v58 = vmul.f32 %v11022_v2, %v23535_v43  ;;  %v11023_v25 = vld [vmem:[#allocation4 + $0x9f] sm:$0xff] }
 0x50a   : > { %16117 = vmatmul.mubr.msk.f32.gmra.mxu0 %vm598_vm1, %v11051_v38  ;;  %16166 = vmatprep.mubr.msk.f32.mxu1 %vm598_vm1, %v11437_v44  ;;  %v21231_v27 = vadd.f32 %v9245_v17, %v8924_v40  ;;  %v11439_v38 = vld [vmem:[#allocation4 + $0x88] sm:$0xff] }
 0x50b   : > { %16119 = vmatprep.mubr.msk.f32.mxu0 %vm598_vm1, %v11052_v57  ;;  %v8934_v10 = vpop.f32.mrf.mxu0  ;;  %v11024_v17 = vld [vmem:[#allocation4 + $0xa7] sm:$0xff] }
 0x50c   : > { %v15868_v15 = vpop.f32.mrf.mxu1  ;;  %v23536_v44 = vld [vmem:[#allocation93_spill] sm:$0xff] }
 0x50d   : > { %v21236_v52 = vadd.f32 %v15868_v15, %v15818_v12  ;;  %16167 = vmatmul.mubr.msk.f32.gmra.mxu1 %vm598_vm1, %v11438_v50  ;;  %v15821_v16 = vpop.f32.mrf.mxu0  ;;  %v11055_v2 = vmul.f32 %v11023_v25, %v23536_v44  ;;  %v11440_v12 = vld [vmem:[#allocation4 + $0x90] sm:$0xff]  ;;  %v23537_v15 = vld [vmem:[#allocation100_spill] sm:$0xff] }
 0x50e   : > { %16120 = vmatmul.mubr.msk.f32.gmra.mxu0 %vm598_vm1, %v11053_v22  ;;  %16169 = vmatprep.mubr.msk.f32.mxu1 %vm598_vm1, %v11439_v38  ;;  %v9255_v40 = vpop.f32.mrf.mxu1  ;;  %v11056_v43 = vmul.f32 %v11024_v17, %v23537_v15  ;;  %v11025_v50 = vld [vmem:[#allocation4 + $0xaf] sm:$0xff]  ;;  %v11441_v22 = vld [vmem:[#allocation4 + $0x98] sm:$0xff]  ;;  %v11442_v44 = vld [vmem:[#allocation4 + $0xa0] sm:$0xff] }
 0x50f   : > { %16122 = vmatprep.mubr.msk.f32.mxu0 %vm598_vm1, %v11054_v58  ;;  %v21242_v57 = vadd.f32 %v9255_v40, %v8934_v10  ;;  %v8944_v24 = vpop.f32.mrf.mxu0  ;;  %v11026_v38 = vld [vmem:[#allocation4 + $0xb7] sm:$0xff]  ;;  %v11027_v15 = vld [vmem:[#allocation4 + $0xbf] sm:$0xff] }
 0x510   : > { %v15871_v48 = vpop.f32.mrf.mxu1  ;;  %v23538_v40 = vld [vmem:[#allocation99_spill] sm:$0xff] }
 0x511   : > { %v21246_v32 = vadd.f32 %v15871_v48, %v15821_v16  ;;  %16170 = vmatmul.mubr.msk.f32.gmra.mxu1 %vm598_vm1, %v11440_v12  ;;  %v11057_v17 = vmul.f32 %v11025_v50, %v23538_v40  ;;  %v23539_v16 = vld [vmem:[#allocation106_spill] sm:$0xff]  ;;  %v23540_v50 = vld [vmem:[#allocation105_spill] sm:$0xff] }
 0x512   : > { %v15824_v41 = vpop.f32.mrf.mxu0  ;;  %16123 = vmatmul.mubr.msk.f32.gmra.mxu0 %vm598_vm1, %v11055_v2  ;;  %16172 = vmatprep.mubr.msk.f32.mxu1 %vm598_vm1, %v11441_v22  ;;  %v9265_v10 = vpop.f32.mrf.mxu1  ;;  %v11058_v48 = vmul.f32 %v11026_v38, %v23539_v16  ;;  %v11028_v22 = vld [vmem:[#allocation4 + $0xc7] sm:$0xff]  ;;  %v11444_v40 = vld [vmem:[#allocation4 + $0xb0] sm:$0xff] }
 0x513   : > { %16125 = vmatprep.mubr.msk.f32.mxu0 %vm598_vm1, %v11056_v43  ;;  %v21252_v58 = vadd.f32 %v9265_v10, %v8944_v24  ;;  %v11059_v10 = vmul.f32 %v11027_v15, %v23540_v50  ;;  %v23541_v16 = vld [vmem:[#allocation112_spill] sm:$0xff]  ;;  %v23542_v15 = vld [vmem:[#allocation111_spill] sm:$0xff] }
 0x514   : > { %v8954_v25 = vpop.f32.mrf.mxu0  ;;  %v11446_v50 = vld [vmem:[#allocation4 + $0xc0] sm:$0xff] }
 0x515   : > { %v15874_v12 = vpop.f32.mrf.mxu1  ;;  %16173 = vmatmul.mubr.msk.f32.gmra.mxu1 %vm598_vm1, %v11442_v44  ;;  %v11060_v44 = vmul.f32 %v11028_v22, %v23541_v16  ;;  %v23543_v16 = vld [vmem:[#allocation122_spill] sm:$0xff] }
 0x516   : > { %v15827_v2 = vpop.f32.mrf.mxu0  ;;  %16126 = vmatmul.mubr.msk.f32.gmra.mxu0 %vm598_vm1, %v11057_v17  ;;  %v21258_v1 = vadd.f32 %v15874_v12, %v15824_v41  ;;  %16175 = vmatprep.mubr.msk.f32.mxu1 %vm598_vm1, %v11443_v28  ;;  %v11445_v17 = vld [vmem:[#allocation4 + $0xb8] sm:$0xff] }
 0x517   : > { %16128 = vmatprep.mubr.msk.f32.mxu0 %vm598_vm1, %v11058_v48  ;;  %v9275_v24 = vpop.f32.mrf.mxu1  ;;  %v11030_v28 = vld [vmem:[#allocation4 + $0xd7] sm:$0xff] }
 0x518   : > { %v8964_v43 = vpop.f32.mrf.mxu0  ;;  %v21263_v38 = vadd.f32 %v9275_v24, %v8954_v25  ;;  %v11061_v24 = vmul.f32 %v11029_v61, %v23542_v15  ;;  %v11448_v15 = vld [vmem:[#allocation4 + $0xd0] sm:$0xff] }
 0x519   : > { %v15877_v59 = vpop.f32.mrf.mxu1  ;;  %16176 = vmatmul.mubr.msk.f32.gmra.mxu1 %vm598_vm1, %v11444_v40  ;;  %v11062_v40 = vmul.f32 %v11030_v28, %v23543_v16  ;;  %v23546_v16 = vld [vmem:[#allocation133_spill] sm:$0xff] }
 0x51a   : > { %v15830_v41 = vpop.f32.mrf.mxu0  ;;  %16129 = vmatmul.mubr.msk.f32.gmra.mxu0 %vm598_vm1, %v11059_v10  ;;  %v21268_v12 = vadd.f32 %v15877_v59, %v15827_v2  ;;  %16178 = vmatprep.mubr.msk.f32.mxu1 %vm598_vm1, %v11445_v17  ;;  %v11447_v10 = vld [vmem:[#allocation4 + $0xc8] sm:$0xff] }
 0x51b   : > { %16131 = vmatprep.mubr.msk.f32.mxu0 %vm598_vm1, %v11060_v44  ;;  %v9285_v25 = vpop.f32.mrf.mxu1  ;;  %v11032_v2 = vld [vmem:[#allocation4 + $0xe7] sm:$0xff] }
 0x51c   : > { %v8974_v48 = vpop.f32.mrf.mxu0  ;;  %v21273_v22 = vadd.f32 %v9285_v25, %v8964_v43  ;;  %v23544_v44 = vld [vmem:[#allocation121_spill] sm:$0xff] }
 0x51d   : > { %v15880_v18 = vpop.f32.mrf.mxu1  ;;  %16179 = vmatmul.mubr.msk.f32.gmra.mxu1 %vm598_vm1, %v11446_v50  ;;  %v11063_v25 = vmul.f32 %v11031_v54, %v23544_v44  ;;  %v11064_v50 = vmul.f32 %v11032_v2, %v23546_v16  ;;  %v11450_v44 = vld [vmem:[#allocation4 + $0xe0] sm:$0xff] }
 0x51e   : > { %v15833_v59 = vpop.f32.mrf.mxu0  ;;  %16132 = vmatmul.mubr.msk.f32.gmra.mxu0 %vm598_vm1, %v11061_v24  ;;  %v21278_v17 = vadd.f32 %v15880_v18, %v15830_v41  ;;  %16181 = vmatprep.mubr.msk.f32.mxu1 %vm598_vm1, %v11447_v10  ;;  %v11449_v24 = vld [vmem:[#allocation4 + $0xd8] sm:$0xff]  ;;  %v23548_v16 = vld [vmem:[#allocation144_spill] sm:$0xff] }
 0x51f   : > { %16134 = vmatprep.mubr.msk.f32.mxu0 %vm598_vm1, %v11062_v40  ;;  %v9295_v61 = vpop.f32.mrf.mxu1  ;;  %v11034_v41 = vld [vmem:[#allocation4 + $0xf7] sm:$0xff]  ;;  %v23547_v40 = vld [vmem:[#allocation132_spill] sm:$0xff] }
 0x520   : > { %v8984_v43 = vpop.f32.mrf.mxu0  ;;  %v21283_v28 = vadd.f32 %v9295_v61, %v8974_v48  ;;  %v11065_v61 = vmul.f32 %v11033_v0, %v23547_v40  ;;  %v23551_v40 = vld [vmem:[#allocation154_spill] sm:$0xff] }
 0x521   : > { %v15883_v4 = vpop.f32.mrf.mxu1  ;;  %16182 = vmatmul.mubr.msk.f32.gmra.mxu1 %vm598_vm1, %v11448_v15  ;;  %v11066_v15 = vmul.f32 %v11034_v41, %v23548_v16  ;;  %v11452_v41 = vld [vmem:[#allocation4 + $0xf0] sm:$0xff] }
 0x522   : > { %23545 = vst [vmem:[#allocation185_spill] sm:$0xff] %v21283_v28  ;;  %v15836_v18 = vpop.f32.mrf.mxu0  ;;  %16135 = vmatmul.mubr.msk.f32.gmra.mxu0 %vm598_vm1, %v11063_v25  ;;  %v21288_v10 = vadd.f32 %v15883_v4, %v15833_v59  ;;  %16184 = vmatprep.mubr.msk.f32.mxu1 %vm598_vm1, %v11449_v24  ;;  %v11035_v28 = vld [vmem:[#allocation4 + $0xff] sm:$0xff]  ;;  %v11451_v25 = vld [vmem:[#allocation4 + $0xe8] sm:$0xff] }
 0x523   : > { %16137 = vmatprep.mubr.msk.f32.mxu0 %vm598_vm1, %v11064_v50  ;;  %v9305_v54 = vpop.f32.mrf.mxu1  ;;  %v23549_v50 = vld [vmem:[#allocation143_spill] sm:$0xff] }
 0x524   : > { %v8994_v48 = vpop.f32.mrf.mxu0  ;;  %v21293_v2 = vadd.f32 %v9305_v54, %v8984_v43  ;;  %v11067_v24 = vmul.f32 %v11035_v28, %v23549_v50  ;;  %v23553_v50 = vld [vmem:[#allocation164_spill] sm:$0xff] }
 0x525   : > { %v15886_v3 = vpop.f32.mrf.mxu1  ;;  %16185 = vmatmul.mubr.msk.f32.gmra.mxu1 %vm598_vm1, %v11450_v44  ;;  %v11068_v44 = vmul.f32 %v20972_v49, %v23551_v40  ;;  %v11039_v40 = vld [vmem:[#allocation4 + $0x11f] sm:$0xff] }
 0x526   : > { %v15839_v4 = vpop.f32.mrf.mxu0  ;;  %16138 = vmatmul.mubr.msk.f32.gmra.mxu0 %vm598_vm1, %v11065_v61  ;;  %v21298_v59 = vadd.f32 %v15886_v3, %v15836_v18  ;;  %16187 = vmatprep.mubr.msk.f32.mxu1 %vm598_vm1, %v11451_v25  ;;  %v11453_v61 = vld [vmem:[#allocation4 + $0xf8] sm:$0xff] }
 0x527   : > { %16140 = vmatprep.mubr.msk.f32.mxu0 %vm598_vm1, %v11066_v15  ;;  %v9315_v0 = vpop.f32.mrf.mxu1  ;;  %v11038_v18 = vld [vmem:[#allocation4 + $0x117] sm:$0xff]  ;;  %v11069_v15 = vmul.f32 %v20982_v34, %v23476_v47 }
 0x528   : > { %v9004_v43 = vpop.f32.mrf.mxu0  ;;  %v21303_v54 = vadd.f32 %v9315_v0, %v8994_v48  ;;  %v11454_v0 = vld [vmem:[#allocation4 + $0x100] sm:$0xff] }
 0x529   : > { %v15889_v16 = vpop.f32.mrf.mxu1  ;;  %16188 = vmatmul.mubr.msk.f32.gmra.mxu1 %vm598_vm1, %v11452_v41  ;;  %v11070_v41 = vmul.f32 %v11038_v18, %v23553_v50  ;;  %v11815_v50 = vld [vmem:[#allocation4 + $0x31] sm:$0xff] }
 0x52a   : > { %23550 = vst [vmem:[#allocation186_spill] sm:$0xff] %v21303_v54  ;;  %v15842_v3 = vpop.f32.mrf.mxu0  ;;  %16141 = vmatmul.mubr.msk.f32.gmra.mxu0 %vm598_vm1, %v11067_v24  ;;  %v21309_v25 = vadd.f32 %v15889_v16, %v15839_v4  ;;  %16190 = vmatprep.mubr.msk.f32.mxu1 %vm598_vm1, %v11453_v61  ;;  %v11814_v24 = vld [vmem:[#allocation4 + $0x29] sm:$0xff]  ;;  %v11457_v61 = vld [vmem:[#allocation4 + $0x118] sm:$0xff] }
 0x52b   : > { %16143 = vmatprep.mubr.msk.f32.mxu0 %vm598_vm1, %v11068_v44  ;;  %v9325_v28 = vpop.f32.mrf.mxu1 }
 0x52c   : > { %v9014_v48 = vpop.f32.mrf.mxu0  ;;  %v21315_v49 = vadd.f32 %v9325_v28, %v9004_v43  ;;  %v23554_v43 = vld [vmem:[#allocation163_spill] sm:$0xff]  ;;  %v23555_v28 = vld [vmem:[#allocation53_spill] sm:$0xff] }
 0x52d   : > { %v15892_v54 = vpop.f32.mrf.mxu1  ;;  %16191 = vmatmul.mubr.msk.f32.gmra.mxu1 %vm598_vm1, %v11454_v0  ;;  %v11071_v44 = vmul.f32 %v11039_v40, %v23554_v43  ;;  %v11846_v0 = vmul.f32 %v11814_v24, %v23555_v28  ;;  %v11847_v40 = vmul.f32 %v11815_v50, %v23481_v55  ;;  %v23556_v28 = vld [vmem:[#allocation179_spill] sm:$0xff]  ;;  %v23557_v55 = vld [vmem:[#allocation6_spill] sm:$0xff] }
 0x52e   : > { %23552 = vst [vmem:[#allocation192_spill] sm:$0xff] %v21315_v49  ;;  %v15845_v4 = vpop.f32.mrf.mxu0  ;;  %16144 = vmatmul.mubr.msk.f32.gmra.mxu0 %vm598_vm1, %v11069_v15  ;;  %v21320_v16 = vadd.f32 %v15892_v54, %v15842_v3  ;;  %16193 = vmatprep.mubr.msk.f32.mxu1 %vm598_vm1, %v21151_v30  ;;  %v11816_v30 = vld [vmem:[#allocation4 + $0x39] sm:$0xff] }
 0x52f   : > { %16146 = vmatprep.mubr.msk.f32.mxu0 %vm598_vm1, %v11070_v41  ;;  %v9335_v34 = vpop.f32.mrf.mxu1  ;;  %v11458_v15 = vld [vmem:[#allocation4 + $0x120] sm:$0xff] }
 0x530   : > { %v9024_v47 = vpop.f32.mrf.mxu0  ;;  %v21326_v18 = vadd.f32 %v9335_v34, %v9014_v48  ;;  %v11848_v34 = vmul.f32 %v11816_v30, %v23482_v56 }
 0x531   : > { %v15895_v49 = vpop.f32.mrf.mxu1  ;;  %16194 = vmatmul.mubr.msk.f32.gmra.mxu1 %vm598_vm1, %v21162_v26  ;;  %v11817_v26 = vld [vmem:[#allocation4 + $0x41] sm:$0xff] }
 0x532   : > { %v15848_v54 = vpop.f32.mrf.mxu0  ;;  %16147 = vmatmul.mubr.msk.f32.gmra.mxu0 %vm598_vm1, %v11071_v44  ;;  %v21332_v3 = vadd.f32 %v15895_v49, %v15845_v4  ;;  %16196 = vmatprep.mubr.msk.f32.mxu1 %vm598_vm1, %v11457_v61  ;;  %v11818_v49 = vld [vmem:[#allocation4 + $0x49] sm:$0xff]  ;;  %v9206_v4 = vadd.f32 %v21184_v5, %v21178_v8  ;;  %v11849_v50 = vmul.f32 %v11817_v26, %v23485_v46  ;;  %v23558_v5 = vld [vmem:[#allocation7_spill] sm:$0xff]  ;;  %v23559_v46 = vld [vmem:[#allocation8_spill] sm:$0xff] }
 0x533   : > { %16201 = vmatprep.mubr.msk.f32.mxu0 %vm598_vm1, %v11846_v0  ;;  %v9345_v48 = vpop.f32.mrf.mxu1 }
 0x534   : > { %v9034_v41 = vpop.f32.mrf.mxu0  ;;  %v21337_v24 = vadd.f32 %v9345_v48, %v9024_v47  ;;  %v11850_v48 = vmul.f32 %v11818_v49, %v23486_v29 }
 0x535   : > { %v15898_v43 = vpop.f32.mrf.mxu1  ;;  %16197 = vmatmul.mubr.msk.f32.gmra.mxu1 %vm598_vm1, %v11458_v15 }
 0x536   : > { %v15903_v44 = vpop.f32.mrf.mxu0  ;;  %16202 = vmatmul.mubr.msk.f32.vlgmr.msra.gmra.mxu0 %vm598_vm1, %v11847_v40  ;;  %v21344_v61 = vadd.f32 %v15898_v43, %v15848_v54  ;;  %16251 = vmatprep.mubr.msk.f32.mxu1 %vm591_vm0, %v23557_v55  ;;  %v11819_v40 = vld [vmem:[#allocation4 + $0x51] sm:$0xff]  ;;  %v11821_v55 = vld [vmem:[#allocation4 + $0x61] sm:$0xff] }
 0x537   : > { %v9752_v0 = vadd.f32 %v15903_v44, %v23556_v28  ;;  %16204 = vmatprep.mubr.msk.f32.mxu0 %vm598_vm1, %v11848_v34  ;;  %v9355_v56 = vpop.f32.mrf.mxu1  ;;  %v11820_v34 = vld [vmem:[#allocation4 + $0x59] sm:$0xff]  ;;  %v11851_v26 = vmul.f32 %v11819_v40, %v23443_v14  ;;  %v23561_v14 = vld [vmem:[#allocation10_spill] sm:$0xff] }
 0x538   : > { %v9592_v47 = vpop.f32.mrf.mxu0  ;;  %v21351_v30 = vadd.f32 %v9355_v56, %v9034_v41  ;;  %v11852_v28 = vmul.f32 %v11820_v34, %v23444_v62  ;;  %v23560_v56 = vld [vmem:[#allocation9_spill] sm:$0xff] }
 0x539   : > { %v9751_v15 = vadd.f32 %v9592_v47, %v9206_v4  ;;  %v15953_v8 = vpop.f32.mrf.mxu1  ;;  %16252 = vmatmul.mubr.msk.f32.vlgmr.msra.gmra.mxu1 %vm591_vm0, %v23558_v5  ;;  %v11822_v47 = vld [vmem:[#allocation4 + $0x69] sm:$0xff] }
 0x53a   : > { %v15906_v54 = vpop.f32.mrf.mxu0  ;;  %16205 = vmatmul.mubr.msk.f32.gmra.mxu0 %vm598_vm1, %v11849_v50  ;;  %v21357_v43 = vadd.f32 %v15953_v8, %v9752_v0  ;;  %16254 = vmatprep.mubr.msk.f32.mxu1 %vm591_vm0, %v23559_v46  ;;  %v11854_v5 = vmul.f32 %v11822_v47, %v23446_v31  ;;  %v11824_v46 = vld [vmem:[#allocation4 + $0x79] sm:$0xff]  ;;  %v11826_v47 = vld [vmem:[#allocation4 + $0x89] sm:$0xff] }
 0x53b   : > { %v9754_v44 = vadd.f32 %v15906_v54, %v21194_v37  ;;  %16207 = vmatprep.mubr.msk.f32.mxu0 %vm598_vm1, %v11850_v48  ;;  %v10011_v41 = vpop.f32.mrf.mxu1  ;;  %v11823_v54 = vld [vmem:[#allocation4 + $0x71] sm:$0xff] }
 0x53c   : > { %v9602_v29 = vpop.f32.mrf.mxu0  ;;  %v21364_v49 = vadd.f32 %v10011_v41, %v9751_v15  ;;  %v11853_v15 = vmul.f32 %v11821_v55, %v23445_v35  ;;  %v23563_v35 = vld [vmem:[#allocation12_spill] sm:$0xff]  ;;  %v11856_v55 = vmul.f32 %v11824_v46, %v23448_v53 }
 0x53d   : > { %v9753_v4 = vadd.f32 %v9602_v29, %v21199_v21  ;;  %v15956_v0 = vpop.f32.mrf.mxu1  ;;  %16255 = vmatmul.mubr.msk.f32.gmra.mxu1 %vm591_vm0, %v23560_v56 }
 0x53e   : > { %v15909_v37 = vpop.f32.mrf.mxu0  ;;  %16208 = vmatmul.mubr.msk.f32.gmra.mxu0 %vm598_vm1, %v11851_v26  ;;  %v21371_v50 = vadd.f32 %v15956_v0, %v9754_v44  ;;  %16257 = vmatprep.mubr.msk.f32.mxu1 %vm591_vm0, %v23561_v14  ;;  %v23562_v44 = vld [vmem:[#allocation11_spill] sm:$0xff]  ;;  %v11855_v26 = vmul.f32 %v11823_v54, %v23447_v13  ;;  %v11825_v0 = vld [vmem:[#allocation4 + $0x81] sm:$0xff]  ;;  %v23565_v13 = vld [vmem:[#allocation14_spill] sm:$0xff] }
 0x53f   : > { %v9756_v48 = vadd.f32 %v15909_v37, %v21205_v39  ;;  %16210 = vmatprep.mubr.msk.f32.mxu0 %vm598_vm1, %v11852_v28  ;;  %v10021_v21 = vpop.f32.mrf.mxu1  ;;  %v23564_v37 = vld [vmem:[#allocation13_spill] sm:$0xff] }
 0x540   : > { %v9612_v62 = vpop.f32.mrf.mxu0  ;;  %v21378_v40 = vadd.f32 %v10021_v21, %v9753_v4  ;;  %v11857_v21 = vmul.f32 %v11825_v0, %v23449_v45  ;;  %v23567_v45 = vld [vmem:[#allocation16_spill] sm:$0xff]  ;;  %v11830_v0 = vld [vmem:[#allocation4 + $0xa9] sm:$0xff] }
 0x541   : > { %v9755_v8 = vadd.f32 %v9612_v62, %v21211_v7  ;;  %v15959_v34 = vpop.f32.mrf.mxu1  ;;  %16258 = vmatmul.mubr.msk.f32.gmra.mxu1 %vm591_vm0, %v23562_v44  ;;  %v11828_v44 = vld [vmem:[#allocation4 + $0x99] sm:$0xff] }
 0x542   : > { %v15912_v39 = vpop.f32.mrf.mxu0  ;;  %16211 = vmatmul.mubr.msk.f32.gmra.mxu0 %vm598_vm1, %v11853_v15  ;;  %v21385_v41 = vadd.f32 %v15959_v34, %v9756_v48  ;;  %16260 = vmatprep.mubr.msk.f32.mxu1 %vm591_vm0, %v23563_v35  ;;  %v23566_v34 = vld [vmem:[#allocation15_spill] sm:$0xff] }
 0x543   : > { %v9758_v29 = vadd.f32 %v15912_v39, %v21215_v9  ;;  %16213 = vmatprep.mubr.msk.f32.mxu0 %vm598_vm1, %v11854_v5  ;;  %v10031_v7 = vpop.f32.mrf.mxu1  ;;  %v11827_v5 = vld [vmem:[#allocation4 + $0x91] sm:$0xff] }
 0x544   : > { %v9622_v31 = vpop.f32.mrf.mxu0  ;;  %v21392_v4 = vadd.f32 %v10031_v7, %v9755_v8  ;;  %v11858_v8 = vmul.f32 %v11826_v47, %v23450_v20 }
 0x545   : > { %v9757_v28 = vadd.f32 %v9622_v31, %v21221_v51  ;;  %v15962_v56 = vpop.f32.mrf.mxu1  ;;  %16261 = vmatmul.mubr.msk.f32.gmra.mxu1 %vm591_vm0, %v23564_v37  ;;  %v11860_v31 = vmul.f32 %v11828_v44, %v23452_v60 }
 0x546   : > { %v15915_v9 = vpop.f32.mrf.mxu0  ;;  %16214 = vmatmul.mubr.msk.f32.gmra.mxu0 %vm598_vm1, %v11855_v26  ;;  %v21399_v48 = vadd.f32 %v15962_v56, %v9758_v29  ;;  %16263 = vmatprep.mubr.msk.f32.mxu1 %vm591_vm0, %v23565_v13  ;;  %v11859_v29 = vmul.f32 %v11827_v5, %v23451_v11  ;;  %v11829_v26 = vld [vmem:[#allocation4 + $0xa1] sm:$0xff]  ;;  %v23569_v11 = vld [vmem:[#allocation18_spill] sm:$0xff]  ;;  %v11862_v13 = vmul.f32 %v11830_v0, %v23454_v63 }
 0x547   : > { %v9760_v14 = vadd.f32 %v15915_v9, %v21225_v19  ;;  %16216 = vmatprep.mubr.msk.f32.mxu0 %vm598_vm1, %v11856_v55  ;;  %v10041_v51 = vpop.f32.mrf.mxu1  ;;  %v23568_v55 = vld [vmem:[#allocation17_spill] sm:$0xff]  ;;  %v11861_v9 = vmul.f32 %v11829_v26, %v23453_v42  ;;  %v23571_v42 = vld [vmem:[#allocation20_spill] sm:$0xff] }
 0x548   : > { %v9632_v53 = vpop.f32.mrf.mxu0  ;;  %v21406_v62 = vadd.f32 %v10041_v51, %v9757_v28  ;;  %v11831_v51 = vld [vmem:[#allocation4 + $0xb1] sm:$0xff] }
 0x549   : > { %v9759_v15 = vadd.f32 %v9632_v53, %v21231_v27  ;;  %v15965_v54 = vpop.f32.mrf.mxu1  ;;  %16264 = vmatmul.mubr.msk.f32.gmra.mxu1 %vm591_vm0, %v23566_v34 }
 0x54a   : > { %v15918_v19 = vpop.f32.mrf.mxu0  ;;  %16217 = vmatmul.mubr.msk.f32.gmra.mxu0 %vm598_vm1, %v11857_v21  ;;  %v21413_v39 = vadd.f32 %v15965_v54, %v9760_v14  ;;  %16266 = vmatprep.mubr.msk.f32.mxu1 %vm591_vm0, %v23567_v45  ;;  %v23570_v21 = vld [vmem:[#allocation19_spill] sm:$0xff]  ;;  %v11863_v54 = vmul.f32 %v11831_v51, %v23455_v23  ;;  %v23573_v23 = vld [vmem:[#allocation22_spill] sm:$0xff]  ;;  %v23577_v51 = vld [vmem:[#allocation185_spill] sm:$0xff] }
 0x54b   : > { %v9762_v46 = vadd.f32 %v15918_v19, %v21236_v52  ;;  %16219 = vmatprep.mubr.msk.f32.mxu0 %vm598_vm1, %v11858_v8  ;;  %v10051_v27 = vpop.f32.mrf.mxu1 }
 0x54c   : > { %v9642_v20 = vpop.f32.mrf.mxu0  ;;  %v21420_v35 = vadd.f32 %v10051_v27, %v9759_v15  ;;  %v11832_v15 = vld [vmem:[#allocation4 + $0xb9] sm:$0xff]  ;;  %v23572_v27 = vld [vmem:[#allocation21_spill] sm:$0xff] }
 0x54d   : > { %v9761_v7 = vadd.f32 %v9642_v20, %v21242_v57  ;;  %v15968_v28 = vpop.f32.mrf.mxu1  ;;  %16267 = vmatmul.mubr.msk.f32.gmra.mxu1 %vm591_vm0, %v23568_v55  ;;  %v11864_v44 = vmul.f32 %v11832_v15, %v23456_v33  ;;  %v11834_v20 = vld [vmem:[#allocation4 + $0xc9] sm:$0xff]  ;;  %v11837_v15 = vld [vmem:[#allocation4 + $0xe1] sm:$0xff] }
 0x54e   : > { %v15921_v52 = vpop.f32.mrf.mxu0  ;;  %16220 = vmatmul.mubr.msk.f32.gmra.mxu0 %vm598_vm1, %v11859_v29  ;;  %v21427_v56 = vadd.f32 %v15968_v28, %v9762_v46  ;;  %16269 = vmatprep.mubr.msk.f32.mxu1 %vm591_vm0, %v23569_v11  ;;  %v11833_v46 = vld [vmem:[#allocation4 + $0xc1] sm:$0xff]  ;;  %v11866_v55 = vmul.f32 %v11834_v20, %v23458_v6  ;;  %v11836_v11 = vld [vmem:[#allocation4 + $0xd9] sm:$0xff] }
 0x54f   : > { %v9764_v37 = vadd.f32 %v15921_v52, %v21246_v32  ;;  %16222 = vmatprep.mubr.msk.f32.mxu0 %vm598_vm1, %v11860_v31  ;;  %v10061_v57 = vpop.f32.mrf.mxu1  ;;  %v11865_v31 = vmul.f32 %v11833_v46, %v23457_v36  ;;  %v11835_v52 = vld [vmem:[#allocation4 + $0xd1] sm:$0xff]  ;;  %v23575_v36 = vld [vmem:[#allocation24_spill] sm:$0xff] }
 0x550   : > { %v9652_v60 = vpop.f32.mrf.mxu0  ;;  %v21434_v47 = vadd.f32 %v10061_v57, %v9761_v7 }
 0x551   : > { %v9763_v14 = vadd.f32 %v9652_v60, %v21252_v58  ;;  %v15971_v53 = vpop.f32.mrf.mxu1  ;;  %16270 = vmatmul.mubr.msk.f32.gmra.mxu1 %vm591_vm0, %v23570_v21  ;;  %v23578_v21 = vld [vmem:[#allocation127_spill] sm:$0xff] }
 0x552   : > { %v15924_v32 = vpop.f32.mrf.mxu0  ;;  %16223 = vmatmul.mubr.msk.f32.gmra.mxu0 %vm598_vm1, %v11861_v9  ;;  %v21441_v8 = vadd.f32 %v15971_v53, %v9764_v37  ;;  %16272 = vmatprep.mubr.msk.f32.mxu1 %vm591_vm0, %v23571_v42  ;;  %v23574_v37 = vld [vmem:[#allocation23_spill] sm:$0xff]  ;;  %v23576_v9 = vld [vmem:[#allocation116_spill] sm:$0xff]  ;;  %v23579_v42 = vld [vmem:[#allocation25_spill] sm:$0xff] }
 0x553   : > { %v9766_v5 = vadd.f32 %v15924_v32, %v21258_v1  ;;  %16225 = vmatprep.mubr.msk.f32.mxu0 %vm598_vm1, %v11862_v13  ;;  %v10071_v58 = vpop.f32.mrf.mxu1  ;;  %v11868_v32 = vmul.f32 %v11836_v11, %v23578_v21 }
 0x554   : > { %v9662_v63 = vpop.f32.mrf.mxu0  ;;  %v21448_v34 = vadd.f32 %v10071_v58, %v9763_v14  ;;  %v11867_v14 = vmul.f32 %v11835_v52, %v23576_v9  ;;  %v11838_v58 = vld [vmem:[#allocation4 + $0xe9] sm:$0xff] }
 0x555   : > { %v9765_v19 = vadd.f32 %v9662_v63, %v21263_v38  ;;  %v15974_v45 = vpop.f32.mrf.mxu1  ;;  %16273 = vmatmul.mubr.msk.f32.gmra.mxu1 %vm591_vm0, %v23572_v27 }
 0x556   : > { %v15927_v1 = vpop.f32.mrf.mxu0  ;;  %16226 = vmatmul.mubr.msk.f32.gmra.mxu0 %vm598_vm1, %v11863_v54  ;;  %v21455_v29 = vadd.f32 %v15974_v45, %v9766_v5  ;;  %16275 = vmatprep.mubr.msk.f32.mxu1 %vm591_vm0, %v23573_v23  ;;  %v23581_v45 = vld [vmem:[#allocation126_spill] sm:$0xff] }
 0x557   : > { %v9768_v7 = vadd.f32 %v15927_v1, %v21268_v12  ;;  %16228 = vmatprep.mubr.msk.f32.mxu0 %vm598_vm1, %v11864_v44  ;;  %v10081_v38 = vpop.f32.mrf.mxu1  ;;  %v11869_v27 = vmul.f32 %v11837_v15, %v23581_v45  ;;  %v23589_v15 = vld [vmem:[#allocation30_spill] sm:$0xff]  ;;  %v23593_v45 = vld [vmem:[#allocation184_spill] sm:$0xff] }
 0x558   : > { %v9672_v33 = vpop.f32.mrf.mxu0  ;;  %v21462_v26 = vadd.f32 %v10081_v38, %v9765_v19  ;;  %v23580_v19 = vld [vmem:[#allocation26_spill] sm:$0xff] }
 0x559   : > { %v9767_v28 = vadd.f32 %v9672_v33, %v21273_v22  ;;  %v15977_v0 = vpop.f32.mrf.mxu1  ;;  %16276 = vmatmul.mubr.msk.f32.gmra.mxu1 %vm591_vm0, %v23574_v37  ;;  %v11839_v38 = vld [vmem:[#allocation4 + $0xf1] sm:$0xff] }
 0x55a   : > { %v15930_v12 = vpop.f32.mrf.mxu0  ;;  %16229 = vmatmul.mubr.msk.f32.gmra.mxu0 %vm598_vm1, %v11865_v31  ;;  %v21469_v57 = vadd.f32 %v15977_v0, %v9768_v7  ;;  %16278 = vmatprep.mubr.msk.f32.mxu1 %vm591_vm0, %v23575_v36  ;;  %v23582_v7 = vld [vmem:[#allocation139_spill] sm:$0xff]  ;;  %v23584_v0 = vld [vmem:[#allocation28_spill] sm:$0xff]  ;;  %v23586_v36 = vld [vmem:[#allocation186_spill] sm:$0xff] }
 0x55b   : > { %v9770_v60 = vadd.f32 %v15930_v12, %v21278_v17  ;;  %16231 = vmatprep.mubr.msk.f32.mxu0 %vm598_vm1, %v11866_v55  ;;  %v10091_v22 = vpop.f32.mrf.mxu1  ;;  %v11870_v23 = vmul.f32 %v11838_v58, %v23582_v7  ;;  %v23583_v31 = vld [vmem:[#allocation27_spill] sm:$0xff]  ;;  %v23585_v12 = vld [vmem:[#allocation138_spill] sm:$0xff] }
 0x55c   : > { %v9682_v6 = vpop.f32.mrf.mxu0  ;;  %v21476_v13 = vadd.f32 %v10091_v22, %v9767_v28  ;;  %v11840_v28 = vld [vmem:[#allocation4 + $0xf9] sm:$0xff]  ;;  %v11871_v11 = vmul.f32 %v11839_v38, %v23585_v12 }
 0x55d   : > { %v9769_v53 = vadd.f32 %v9682_v6, %v23577_v51  ;;  %v15980_v5 = vpop.f32.mrf.mxu1  ;;  %16279 = vmatmul.mubr.msk.f32.gmra.mxu1 %vm591_vm0, %v23579_v42  ;;  %v23587_v6 = vld [vmem:[#allocation149_spill] sm:$0xff]  ;;  %v23594_v7 = vld [vmem:[#allocation31_spill] sm:$0xff] }
 0x55e   : > { %v15933_v17 = vpop.f32.mrf.mxu0  ;;  %16232 = vmatmul.mubr.msk.f32.gmra.mxu0 %vm598_vm1, %v11867_v14  ;;  %v21483_v63 = vadd.f32 %v15980_v5, %v9770_v60  ;;  %16281 = vmatprep.mubr.msk.f32.mxu1 %vm591_vm0, %v23580_v19  ;;  %v11872_v9 = vmul.f32 %v11840_v28, %v23587_v6  ;;  %v11841_v14 = vld [vmem:[#allocation4 + $0x101] sm:$0xff] }
 0x55f   : > { %v9772_v54 = vadd.f32 %v15933_v17, %v21288_v10  ;;  %16234 = vmatprep.mubr.msk.f32.mxu0 %vm598_vm1, %v11868_v32  ;;  %v10101_v44 = vpop.f32.mrf.mxu1  ;;  %v23590_v17 = vld [vmem:[#allocation148_spill] sm:$0xff] }
 0x560   : > { %v9692_v46 = vpop.f32.mrf.mxu0  ;;  %v21490_v1 = vadd.f32 %v10101_v44, %v9769_v53  ;;  %v23588_v53 = vld [vmem:[#allocation29_spill] sm:$0xff]  ;;  %v11873_v58 = vmul.f32 %v11841_v14, %v23590_v17  ;;  %v23591_v19 = vld [vmem:[#allocation192_spill] sm:$0xff] }
 0x561   : > { %v9771_v20 = vadd.f32 %v9692_v46, %v21293_v2  ;;  %v15983_v33 = vpop.f32.mrf.mxu1  ;;  %16282 = vmatmul.mubr.msk.f32.gmra.mxu1 %vm591_vm0, %v23583_v31  ;;  %v23592_v46 = vld [vmem:[#allocation159_spill] sm:$0xff]  ;;  %v23595_v31 = vld [vmem:[#allocation32_spill] sm:$0xff] }
 0x562   : > { %v15936_v10 = vpop.f32.mrf.mxu0  ;;  %16235 = vmatmul.mubr.msk.f32.gmra.mxu0 %vm598_vm1, %v11869_v27  ;;  %v21497_v55 = vadd.f32 %v15983_v33, %v9772_v54  ;;  %16284 = vmatprep.mubr.msk.f32.mxu1 %vm591_vm0, %v23584_v0  ;;  %v11874_v27 = vmul.f32 %v23593_v45, %v23592_v46  ;;  %v23597_v0 = vld [vmem:[#allocation183_spill] sm:$0xff] }
 0x563   : > { %v9774_v52 = vadd.f32 %v15936_v10, %v21298_v59  ;;  %16237 = vmatprep.mubr.msk.f32.mxu0 %vm598_vm1, %v11870_v23  ;;  %v10111_v2 = vpop.f32.mrf.mxu1  ;;  %v11844_v23 = vld [vmem:[#allocation4 + $0x119] sm:$0xff] }
 0x564   : > { %v9702_v37 = vpop.f32.mrf.mxu0  ;;  %v21504_v60 = vadd.f32 %v10111_v2, %v9771_v20  ;;  %v23603_v46 = vld [vmem:[#allocation51_spill] sm:$0xff] }
 0x565   : > { %v9773_v22 = vadd.f32 %v9702_v37, %v23586_v36  ;;  %v15986_v51 = vpop.f32.mrf.mxu1  ;;  %16285 = vmatmul.mubr.msk.f32.gmra.mxu1 %vm591_vm0, %v23588_v53  ;;  %v23600_v53 = vld [vmem:[#allocation34_spill] sm:$0xff] }
 0x566   : > { %v15939_v59 = vpop.f32.mrf.mxu0  ;;  %16238 = vmatmul.mubr.msk.f32.gmra.mxu0 %vm598_vm1, %v11871_v11  ;;  %v21511_v21 = vadd.f32 %v15986_v51, %v9774_v52  ;;  %16287 = vmatprep.mubr.msk.f32.mxu1 %vm591_vm0, %v23589_v15  ;;  %v23596_v52 = vld [vmem:[#allocation158_spill] sm:$0xff]  ;;  %v23598_v11 = vld [vmem:[#allocation169_spill] sm:$0xff] }
 0x567   : > { %v9776_v32 = vadd.f32 %v15939_v59, %v21309_v25  ;;  %16240 = vmatprep.mubr.msk.f32.mxu0 %vm598_vm1, %v11872_v9  ;;  %v10121_v5 = vpop.f32.mrf.mxu1  ;;  %v11875_v2 = vmul.f32 %v23597_v0, %v23596_v52  ;;  %v11876_v36 = vmul.f32 %v11844_v23, %v23598_v11  ;;  %v23599_v9 = vld [vmem:[#allocation33_spill] sm:$0xff] }
 0x568   : > { %v9712_v42 = vpop.f32.mrf.mxu0  ;;  %v21518_v54 = vadd.f32 %v10121_v5, %v9773_v22  ;;  %v11845_v22 = vld [vmem:[#allocation4 + $0x121] sm:$0xff] }
 0x569   : > { %v9775_v44 = vadd.f32 %v9712_v42, %v23591_v19  ;;  %v15989_v20 = vpop.f32.mrf.mxu1  ;;  %16288 = vmatmul.mubr.msk.f32.gmra.mxu1 %vm591_vm0, %v23594_v7 }
 0x56a   : > { %v15942_v25 = vpop.f32.mrf.mxu0  ;;  %16241 = vmatmul.mubr.msk.f32.gmra.mxu0 %vm598_vm1, %v11873_v58  ;;  %v21526_v38 = vadd.f32 %v15989_v20, %v9776_v32  ;;  %16290 = vmatprep.mubr.msk.f32.mxu1 %vm591_vm0, %v23595_v31  ;;  %v23601_v32 = vld [vmem:[#allocation168_spill] sm:$0xff]  ;;  %v23602_v58 = vld [vmem:[#allocation35_spill] sm:$0xff] }
 0x56b   : > { %v9778_v33 = vadd.f32 %v15942_v25, %v21320_v16  ;;  %16243 = vmatprep.mubr.msk.f32.mxu0 %vm598_vm1, %v11874_v27  ;;  %v10131_v10 = vpop.f32.mrf.mxu1  ;;  %v11877_v15 = vmul.f32 %v11845_v22, %v23601_v32  ;;  %v23604_v25 = vld [vmem:[#allocation52_spill] sm:$0xff] }
 0x56c   : > { %v9722_v28 = vpop.f32.mrf.mxu0  ;;  %v21534_v37 = vadd.f32 %v10131_v10, %v9775_v44 }
 0x56d   : > { %v9777_v12 = vadd.f32 %v9722_v28, %v21326_v18  ;;  %v15992_v6 = vpop.f32.mrf.mxu1  ;;  %16291 = vmatmul.mubr.msk.f32.gmra.mxu1 %vm591_vm0, %v23599_v9 }
 0x56e   : > { %v15945_v16 = vpop.f32.mrf.mxu0  ;;  %16244 = vmatmul.mubr.msk.f32.gmra.mxu0 %vm598_vm1, %v11875_v2  ;;  %v21541_v14 = vadd.f32 %v15992_v6, %v9778_v33  ;;  %16293 = vmatprep.mubr.msk.f32.mxu1 %vm591_vm0, %v23600_v53 }
 0x56f   : > { %v9780_v51 = vadd.f32 %v15945_v16, %v21332_v3  ;;  %16246 = vmatprep.mubr.msk.f32.mxu0 %vm598_vm1, %v11876_v36  ;;  %v10141_v18 = vpop.f32.mrf.mxu1 }
 0x570   : > { %v9732_v59 = vpop.f32.mrf.mxu0  ;;  %v21548_v5 = vadd.f32 %v10141_v18, %v9777_v12 }
 0x571   : > { %v9779_v42 = vadd.f32 %v9732_v59, %v21337_v24  ;;  %v15995_v17 = vpop.f32.mrf.mxu1  ;;  %16294 = vmatmul.mubr.msk.f32.gmra.mxu1 %vm591_vm0, %v23602_v58 }
 0x572   : > { %v15948_v19 = vpop.f32.mrf.mxu0  ;;  %16247 = vmatmul.mubr.msk.f32.gmra.mxu0 %vm598_vm1, %v11877_v15  ;;  %v21554_v3 = vadd.f32 %v15995_v17, %v9780_v51  ;;  %16296 = vmatprep.mubr.msk.f32.mxu1 %vm591_vm0, %v23603_v46 }
 0x573   : > { %v9782_v44 = vadd.f32 %v15948_v19, %v21344_v61  ;;  %v10151_v45 = vpop.f32.mrf.mxu1 }
 0x574   : > { %v9742_v27 = vpop.f32.mrf.mxu0  ;;  %v21559_v20 = vadd.f32 %v10151_v45, %v9779_v42 }
 0x575   : > { %v9781_v24 = vadd.f32 %v9742_v27, %v21351_v30  ;;  %v15998_v7 = vpop.f32.mrf.mxu1  ;;  %16297 = vmatmul.mubr.msk.f32.gmra.mxu1 %vm591_vm0, %v23604_v25 }
 0x576   : > { %v16003_v23 = vpop.f32.mrf.mxu0  ;;  %v21564_v33 = vadd.f32 %v15998_v7, %v9782_v44 }
 0x577   : > { %v10558_v31 = vadd.f32 %v16003_v23, %v21357_v43  ;;  %v10161_v10 = vpop.f32.mrf.mxu1 }
 0x578   : > { %v10398_v61 = vpop.f32.mrf.mxu0  ;;  %v21567_v28 = vadd.f32 %v10161_v10, %v9781_v24 }
 0x579   : > { %v10557_v52 = vadd.f32 %v10398_v61, %v21364_v49  ;;  %v16053_v0 = vpop.f32.mrf.mxu1 }
 0x57a   : > { %v16006_v2 = vpop.f32.mrf.mxu0  ;;  %v21570_v12 = vadd.f32 %v16053_v0, %v10558_v31 }
 0x57b   : > { %v10560_v30 = vadd.f32 %v16006_v2, %v21371_v50  ;;  %v10817_v11 = vpop.f32.mrf.mxu1 }
 0x57c   : > { %v10408_v36 = vpop.f32.mrf.mxu0  ;;  %v21573_v22 = vadd.f32 %v10817_v11, %v10557_v52 }
 0x57d   : > { %v10559_v6 = vadd.f32 %v10408_v36, %v21378_v40  ;;  %v16056_v9 = vpop.f32.mrf.mxu1 }
 0x57e   : > { %v16009_v43 = vpop.f32.mrf.mxu0  ;;  %v21576_v16 = vadd.f32 %v16056_v9, %v10560_v30 }
 0x57f   : > { %v10562_v51 = vadd.f32 %v16009_v43, %v21385_v41  ;;  %v10827_v53 = vpop.f32.mrf.mxu1 }
 0x580   : > { %v10418_v49 = vpop.f32.mrf.mxu0  ;;  %v21579_v18 = vadd.f32 %v10827_v53, %v10559_v6 }
 0x581   : > { %v10561_v59 = vadd.f32 %v10418_v49, %v21392_v4  ;;  %v16059_v32 = vpop.f32.mrf.mxu1 }
 0x582   : > { %v16012_v50 = vpop.f32.mrf.mxu0  ;;  %v21582_v15 = vadd.f32 %v16059_v32, %v10562_v51 }
 0x583   : > { %v10564_v42 = vadd.f32 %v16012_v50, %v21399_v48  ;;  %v10837_v17 = vpop.f32.mrf.mxu1 }
 0x584   : > { %v10428_v40 = vpop.f32.mrf.mxu0  ;;  %v21585_v58 = vadd.f32 %v10837_v17, %v10561_v59 }
 0x585   : > { %v10563_v19 = vadd.f32 %v10428_v40, %v21406_v62  ;;  %v16062_v44 = vpop.f32.mrf.mxu1 }
 0x586   : > { %v16015_v41 = vpop.f32.mrf.mxu0  ;;  %v21588_v46 = vadd.f32 %v16062_v44, %v10564_v42 }
 0x587   : > { %v10566_v45 = vadd.f32 %v16015_v41, %v21413_v39  ;;  %v10847_v27 = vpop.f32.mrf.mxu1 }
 0x588   : > { %v10438_v4 = vpop.f32.mrf.mxu0  ;;  %v21591_v24 = vadd.f32 %v10847_v27, %v10563_v19 }
 0x589   : > { %v10565_v7 = vadd.f32 %v10438_v4, %v21420_v35  ;;  %v16065_v25 = vpop.f32.mrf.mxu1 }
 0x58a   : > { %v16018_v48 = vpop.f32.mrf.mxu0  ;;  %v21594_v23 = vadd.f32 %v16065_v25, %v10566_v45 }
 0x58b   : > { %v10568_v31 = vadd.f32 %v16018_v48, %v21427_v56  ;;  %v10857_v10 = vpop.f32.mrf.mxu1 }
 0x58c   : > { %v10448_v62 = vpop.f32.mrf.mxu0  ;;  %v21597_v61 = vadd.f32 %v10857_v10, %v10565_v7 }
 0x58d   : > { %v10567_v52 = vadd.f32 %v10448_v62, %v21434_v47  ;;  %v16068_v0 = vpop.f32.mrf.mxu1 }
 0x58e   : > { %v16021_v39 = vpop.f32.mrf.mxu0  ;;  %v21600_v2 = vadd.f32 %v16068_v0, %v10568_v31 }
 0x58f   : > { %v10570_v30 = vadd.f32 %v16021_v39, %v21441_v8  ;;  %v10867_v11 = vpop.f32.mrf.mxu1 }
 0x590   : > { %v10458_v35 = vpop.f32.mrf.mxu0  ;;  %v21603_v36 = vadd.f32 %v10867_v11, %v10567_v52 }
 0x591   : > { %v10569_v6 = vadd.f32 %v10458_v35, %v21448_v34  ;;  %v16071_v9 = vpop.f32.mrf.mxu1 }
 0x592   : > { %v16024_v56 = vpop.f32.mrf.mxu0  ;;  %v21606_v43 = vadd.f32 %v16071_v9, %v10570_v30 }
 0x593   : > { %v10572_v51 = vadd.f32 %v16024_v56, %v21455_v29  ;;  %v10877_v53 = vpop.f32.mrf.mxu1 }
 0x594   : > { %v10468_v47 = vpop.f32.mrf.mxu0  ;;  %v21609_v49 = vadd.f32 %v10877_v53, %v10569_v6 }
 0x595   : > { %v10571_v59 = vadd.f32 %v10468_v47, %v21462_v26  ;;  %v16074_v32 = vpop.f32.mrf.mxu1 }
 0x596   : > { %v16027_v8 = vpop.f32.mrf.mxu0  ;;  %v21612_v50 = vadd.f32 %v16074_v32, %v10572_v51 }
 0x597   : > { %v10574_v42 = vadd.f32 %v16027_v8, %v21469_v57  ;;  %v10887_v17 = vpop.f32.mrf.mxu1 }
 0x598   : > { %v10478_v34 = vpop.f32.mrf.mxu0  ;;  %v21615_v40 = vadd.f32 %v10887_v17, %v10571_v59 }
 0x599   : > { %v10573_v19 = vadd.f32 %v10478_v34, %v21476_v13  ;;  %v16077_v44 = vpop.f32.mrf.mxu1 }
 0x59a   : > { %v16030_v29 = vpop.f32.mrf.mxu0  ;;  %v21618_v41 = vadd.f32 %v16077_v44, %v10574_v42 }
 0x59b   : > { %v10576_v45 = vadd.f32 %v16030_v29, %v21483_v63  ;;  %v10897_v27 = vpop.f32.mrf.mxu1 }
 0x59c   : > { %v10488_v26 = vpop.f32.mrf.mxu0  ;;  %v21621_v4 = vadd.f32 %v10897_v27, %v10573_v19 }
 0x59d   : > { %v10575_v7 = vadd.f32 %v10488_v26, %v21490_v1  ;;  %v16080_v25 = vpop.f32.mrf.mxu1 }
 0x59e   : > { %v16033_v57 = vpop.f32.mrf.mxu0  ;;  %v21624_v48 = vadd.f32 %v16080_v25, %v10576_v45 }
 0x59f   : > { %v10578_v31 = vadd.f32 %v16033_v57, %v21497_v55  ;;  %v10907_v10 = vpop.f32.mrf.mxu1 }
 0x5a0   : > { %v10498_v13 = vpop.f32.mrf.mxu0  ;;  %v21627_v62 = vadd.f32 %v10907_v10, %v10575_v7 }
 0x5a1   : > { %v10577_v52 = vadd.f32 %v10498_v13, %v21504_v60  ;;  %v16083_v0 = vpop.f32.mrf.mxu1 }
 0x5a2   : > { %v16036_v63 = vpop.f32.mrf.mxu0  ;;  %v21630_v39 = vadd.f32 %v16083_v0, %v10578_v31 }
 0x5a3   : > { %v10580_v30 = vadd.f32 %v16036_v63, %v21511_v21  ;;  %v10917_v11 = vpop.f32.mrf.mxu1 }
 0x5a4   : > { %v10508_v1 = vpop.f32.mrf.mxu0  ;;  %v21633_v35 = vadd.f32 %v10917_v11, %v10577_v52 }
 0x5a5   : > { %v10579_v6 = vadd.f32 %v10508_v1, %v21518_v54  ;;  %v16086_v9 = vpop.f32.mrf.mxu1 }
 0x5a6   : > { %v16039_v55 = vpop.f32.mrf.mxu0  ;;  %v21636_v56 = vadd.f32 %v16086_v9, %v10580_v30 }
 0x5a7   : > { %v10582_v51 = vadd.f32 %v16039_v55, %v21526_v38  ;;  %v10927_v53 = vpop.f32.mrf.mxu1 }
 0x5a8   : > { %v10518_v60 = vpop.f32.mrf.mxu0  ;;  %v21639_v47 = vadd.f32 %v10927_v53, %v10579_v6 }
 0x5a9   : > { %v10581_v59 = vadd.f32 %v10518_v60, %v21534_v37  ;;  %v16089_v32 = vpop.f32.mrf.mxu1 }
 0x5aa   : > { %v16042_v21 = vpop.f32.mrf.mxu0  ;;  %v21642_v8 = vadd.f32 %v16089_v32, %v10582_v51 }
 0x5ab   : > { %v10584_v42 = vadd.f32 %v16042_v21, %v21541_v14  ;;  %v10937_v17 = vpop.f32.mrf.mxu1 }
 0x5ac   : > { %v10528_v54 = vpop.f32.mrf.mxu0  ;;  %v21645_v34 = vadd.f32 %v10937_v17, %v10581_v59 }
 0x5ad   : > { %v10583_v19 = vadd.f32 %v10528_v54, %v21548_v5  ;;  %v16092_v44 = vpop.f32.mrf.mxu1 }
 0x5ae   : > { %v16045_v38 = vpop.f32.mrf.mxu0  ;;  %v21648_v29 = vadd.f32 %v16092_v44, %v10584_v42 }
 0x5af   : > { %v10586_v45 = vadd.f32 %v16045_v38, %v21554_v3  ;;  %v10947_v27 = vpop.f32.mrf.mxu1 }
 0x5b0   : > { %v10538_v37 = vpop.f32.mrf.mxu0  ;;  %v21651_v26 = vadd.f32 %v10947_v27, %v10583_v19 }
 0x5b1   : > { %v10585_v7 = vadd.f32 %v10538_v37, %v21559_v20  ;;  %v16095_v25 = vpop.f32.mrf.mxu1 }
 0x5b2   : > { %v16048_v14 = vpop.f32.mrf.mxu0  ;;  %v21654_v57 = vadd.f32 %v16095_v25, %v10586_v45 }
 0x5b3   : > { %v10588_v31 = vadd.f32 %v16048_v14, %v21564_v33  ;;  %v10957_v10 = vpop.f32.mrf.mxu1 }
 0x5b4   : > { %v10548_v5 = vpop.f32.mrf.mxu0  ;;  %v21657_v13 = vadd.f32 %v10957_v10, %v10585_v7 }
 0x5b5   : > { %v10587_v52 = vadd.f32 %v10548_v5, %v21567_v28  ;;  %v16098_v0 = vpop.f32.mrf.mxu1 }
 0x5b6   : > { %v21660_v3 = vpop.f32.mrf.mxu0  ;;  %v21662_v63 = vadd.f32 %v16098_v0, %v10588_v31 }
 0x5b7   : > { %v10967_v30 = vpop.f32.mrf.mxu1 }
 0x5b8   : > { %v21664_v11 = vpop.f32.mrf.mxu0  ;;  %v21666_v20 = vadd.f32 %v10967_v30, %v10587_v52 }
 0x5b9   : > { %v21668_v1 = vpop.f32.mrf.mxu1 }
 0x5ba   : > { %v21670_v6 = vpop.f32.mrf.mxu0 }
 0x5bb   : > { %v21672_v33 = vpop.f32.mrf.mxu1 }
 0x5bc   : > { %v21674_v9 = vpop.f32.mrf.mxu0 }
 0x5bd   : > { %v21676_v55 = vpop.f32.mrf.mxu1 }
 0x5be   : > { %v21678_v28 = vpop.f32.mrf.mxu0 }
 0x5bf   : > { %v21680_v51 = vpop.f32.mrf.mxu1 }
 0x5c0   : > { %v21682_v53 = vpop.f32.mrf.mxu0 }
 0x5c1   : > { %v21684_v60 = vpop.f32.mrf.mxu1 }
 0x5c2   : > { %v21686_v59 = vpop.f32.mrf.mxu0 }
 0x5c3   : > { %v21688_v32 = vpop.f32.mrf.mxu1 }
 0x5c4   : > { %v21690_v21 = vpop.f32.mrf.mxu0 }
 0x5c5   : > { %v21692_v42 = vpop.f32.mrf.mxu1 }
 0x5c6   : > { %v21694_v17 = vpop.f32.mrf.mxu0 }
 0x5c7   : > { %v21696_v54 = vpop.f32.mrf.mxu1 }
 0x5c8   : > { %v11276_v19 = vpop.f32.mrf.mxu0 }
 0x5c9   : > { %v11403_v44 = vadd.f32 %v11276_v19, %v21597_v61  ;;  %v21699_v38 = vpop.f32.mrf.mxu1 }
 0x5ca   : > { %23605 = vst [vmem:[#allocation80_spill] sm:$0xff] %v21699_v38  ;;  %v21701_v45 = vpop.f32.mrf.mxu0 }
 0x5cb   : > { %v11663_v27 = vpop.f32.mrf.mxu1 }
 0x5cc   : > { %v11286_v37 = vpop.f32.mrf.mxu0  ;;  %v21703_v7 = vadd.f32 %v11663_v27, %v11403_v44 }
 0x5cd   : > { %v11405_v25 = vadd.f32 %v11286_v37, %v21603_v36  ;;  %v21706_v14 = vpop.f32.mrf.mxu1 }
 0x5ce   : > { %23606 = vst [vmem:[#allocation187_spill] sm:$0xff] %v21703_v7  ;;  %23607 = vst [vmem:[#allocation86_spill] sm:$0xff] %v21706_v14  ;;  %v21708_v31 = vpop.f32.mrf.mxu0 }
 0x5cf   : > { %v11673_v10 = vpop.f32.mrf.mxu1 }
 0x5d0   : > { %v11296_v5 = vpop.f32.mrf.mxu0  ;;  %v21710_v52 = vadd.f32 %v11673_v10, %v11405_v25 }
 0x5d1   : > { %v11407_v61 = vadd.f32 %v11296_v5, %v21609_v49  ;;  %v21713_v0 = vpop.f32.mrf.mxu1 }
 0x5d2   : > { %23608 = vst [vmem:[#allocation188_spill] sm:$0xff] %v21710_v52  ;;  %23609 = vst [vmem:[#allocation120_spill] sm:$0xff] %v21713_v0  ;;  %v16124_v30 = vpop.f32.mrf.mxu0 }
 0x5d3   : > { %v11410_v19 = vadd.f32 %v16124_v30, %v21612_v50  ;;  %v11683_v38 = vpop.f32.mrf.mxu1 }
 0x5d4   : > { %v11306_v44 = vpop.f32.mrf.mxu0  ;;  %v21716_v27 = vadd.f32 %v11683_v38, %v11407_v61 }
 0x5d5   : > { %v11409_v36 = vadd.f32 %v11306_v44, %v21615_v40  ;;  %v16174_v37 = vpop.f32.mrf.mxu1 }
 0x5d6   : > { %v16127_v7 = vpop.f32.mrf.mxu0  ;;  %v21719_v14 = vadd.f32 %v16174_v37, %v11410_v19 }
 0x5d7   : > { %v11412_v25 = vadd.f32 %v16127_v7, %v21618_v41  ;;  %v11693_v10 = vpop.f32.mrf.mxu1 }
 0x5d8   : > { %v11316_v52 = vpop.f32.mrf.mxu0  ;;  %v21722_v49 = vadd.f32 %v11693_v10, %v11409_v36 }
 0x5d9   : > { %v11411_v5 = vadd.f32 %v11316_v52, %v21621_v4  ;;  %v16177_v0 = vpop.f32.mrf.mxu1 }
 0x5da   : > { %v16130_v50 = vpop.f32.mrf.mxu0  ;;  %v21725_v30 = vadd.f32 %v16177_v0, %v11412_v25 }
 0x5db   : > { %v11414_v38 = vadd.f32 %v16130_v50, %v21624_v48  ;;  %v11703_v61 = vpop.f32.mrf.mxu1 }
 0x5dc   : > { %v11326_v40 = vpop.f32.mrf.mxu0  ;;  %v21728_v44 = vadd.f32 %v11703_v61, %v11411_v5 }
 0x5dd   : > { %v11413_v19 = vadd.f32 %v11326_v40, %v21627_v62  ;;  %v16180_v37 = vpop.f32.mrf.mxu1 }
 0x5de   : > { %v16133_v41 = vpop.f32.mrf.mxu0  ;;  %v21731_v7 = vadd.f32 %v16180_v37, %v11414_v38 }
 0x5df   : > { %v11416_v36 = vadd.f32 %v16133_v41, %v21630_v39  ;;  %v11713_v10 = vpop.f32.mrf.mxu1 }
 0x5e0   : > { %v11336_v4 = vpop.f32.mrf.mxu0  ;;  %v21734_v52 = vadd.f32 %v11713_v10, %v11413_v19 }
 0x5e1   : > { %v11415_v0 = vadd.f32 %v11336_v4, %v21633_v35  ;;  %v16183_v25 = vpop.f32.mrf.mxu1 }
 0x5e2   : > { %v16136_v48 = vpop.f32.mrf.mxu0  ;;  %v21737_v50 = vadd.f32 %v16183_v25, %v11416_v36 }
 0x5e3   : > { %v11418_v5 = vadd.f32 %v16136_v48, %v21636_v56  ;;  %v11723_v61 = vpop.f32.mrf.mxu1 }
 0x5e4   : > { %v11346_v62 = vpop.f32.mrf.mxu0  ;;  %v21740_v40 = vadd.f32 %v11723_v61, %v11415_v0 }
 0x5e5   : > { %v11417_v38 = vadd.f32 %v11346_v62, %v21639_v47  ;;  %v16186_v37 = vpop.f32.mrf.mxu1 }
 0x5e6   : > { %v16139_v39 = vpop.f32.mrf.mxu0  ;;  %v21743_v41 = vadd.f32 %v16186_v37, %v11418_v5 }
 0x5e7   : > { %v11420_v19 = vadd.f32 %v16139_v39, %v21642_v8  ;;  %v11733_v10 = vpop.f32.mrf.mxu1 }
 0x5e8   : > { %v11356_v35 = vpop.f32.mrf.mxu0  ;;  %v21746_v4 = vadd.f32 %v11733_v10, %v11417_v38 }
 0x5e9   : > { %v11419_v36 = vadd.f32 %v11356_v35, %v21645_v34  ;;  %v16189_v25 = vpop.f32.mrf.mxu1 }
 0x5ea   : > { %v16142_v56 = vpop.f32.mrf.mxu0  ;;  %v21749_v48 = vadd.f32 %v16189_v25, %v11420_v19  ;;  %v11396_v19 = vadd.f32 %v21660_v3, %v21570_v12  ;;  %v11398_v12 = vadd.f32 %v21670_v6, %v21576_v16  ;;  %v11400_v16 = vadd.f32 %v21678_v28, %v21582_v15 }
 0x5eb   : > { %v11422_v0 = vadd.f32 %v16142_v56, %v21648_v29  ;;  %v11743_v61 = vpop.f32.mrf.mxu1 }
 0x5ec   : > { %v11366_v47 = vpop.f32.mrf.mxu0  ;;  %v21752_v62 = vadd.f32 %v11743_v61, %v11419_v36 }
 0x5ed   : > { %v11421_v5 = vadd.f32 %v11366_v47, %v21651_v26  ;;  %v16192_v37 = vpop.f32.mrf.mxu1  ;;  %v11395_v26 = vadd.f32 %v21664_v11, %v21573_v22  ;;  %v11783_v47 = vadd.f32 %v21668_v1, %v11396_v19  ;;  %v11404_v19 = vadd.f32 %v21694_v17, %v21594_v23 }
 0x5ee   : > { %v16145_v8 = vpop.f32.mrf.mxu0  ;;  %v21755_v39 = vadd.f32 %v16192_v37, %v11422_v0  ;;  %v11406_v23 = vadd.f32 %v21701_v45, %v21600_v2 }
 0x5ef   : > { %v11424_v38 = vadd.f32 %v16145_v8, %v21654_v57  ;;  %v11753_v10 = vpop.f32.mrf.mxu1  ;;  %v11782_v11 = vadd.f32 %v21672_v33, %v11395_v26  ;;  %v21796_v33 = vld [vmem:[%s22062_s11] ss:$0 sm:$0xff] }
 0x5f0   : > { %v11376_v34 = vpop.f32.mrf.mxu0  ;;  %v21760_v35 = vadd.f32 %v11753_v10, %v11421_v5  ;;  %v11397_v5 = vadd.f32 %v21674_v9, %v21579_v18  ;;  %v21791_v18 = vld [vmem:[%s22060_s9] ss:$0 sm:$0xff] }
 0x5f1   : > { %v11423_v29 = vadd.f32 %v11376_v34, %v21657_v13  ;;  %v16195_v25 = vpop.f32.mrf.mxu1  ;;  %v11401_v34 = vadd.f32 %v21690_v21, %v21591_v24  ;;  %v11408_v21 = vadd.f32 %v21708_v31, %v21606_v43 }
 0x5f2   : > { %v16148_v36 = vpop.f32.mrf.mxu0  ;;  %v21765_v56 = vadd.f32 %v16195_v25, %v11424_v38  ;;  %v11785_v38 = vadd.f32 %v21676_v55, %v11398_v12  ;;  %v21812_v55 = vld [vmem:[%s22063_s12] ss:$0 sm:$0xff] }
 0x5f3   : > { %v11426_v0 = vadd.f32 %v16148_v36, %v21662_v63  ;;  %v11763_v61 = vpop.f32.mrf.mxu1  ;;  %v21779_v63 = vld [vmem:[%s22059_s8] ss:$0 sm:$0xff] }
 0x5f4   : > { %v11386_v57 = vpop.f32.mrf.mxu0  ;;  %v21771_v3 = vadd.f32 %v11763_v61, %v11423_v29 }
 0x5f5   : > { %v11425_v13 = vadd.f32 %v11386_v57, %v21666_v20  ;;  %v16198_v37 = vpop.f32.mrf.mxu1  ;;  %v11399_v20 = vadd.f32 %v21682_v53, %v21585_v58  ;;  %v11784_v58 = vadd.f32 %v21680_v51, %v11397_v5  ;;  %v11402_v53 = vadd.f32 %v21686_v59, %v21588_v46 }
 0x5f6   : > { %v16203_v22 = vpop.f32.mrf.mxu0  ;;  %v21782_v1 = vadd.f32 %v16198_v37, %v11426_v0  ;;  %v11787_v59 = vadd.f32 %v21684_v60, %v11400_v16 }
 0x5f7   : > { %v12202_v8 = vadd.f32 %v16203_v22, %v11783_v47  ;;  %v11773_v6 = vpop.f32.mrf.mxu1  ;;  %v11786_v24 = vadd.f32 %v21688_v32, %v11399_v20  ;;  %v11789_v60 = vadd.f32 %v21692_v42, %v11402_v53  ;;  %v11788_v32 = vadd.f32 %v21696_v54, %v11401_v34  ;;  %v23612_v20 = vld [vmem:[#allocation120_spill] sm:$0xff] }
 0x5f8   : > { %v12042_v9 = vpop.f32.mrf.mxu0  ;;  %v21799_v10 = vadd.f32 %v11773_v6, %v11425_v13  ;;  %v23610_v13 = vld [vmem:[#allocation80_spill] sm:$0xff]  ;;  %v21837_v6 = vadd.f32 %v23612_v20, %v11408_v21 }
 0x5f9   : > { %v12241_v15 = vmul.f32 %v21779_v63, %v12202_v8  ;;  %v12201_v28 = vadd.f32 %v12042_v9, %v11782_v11  ;;  %v16253_v29 = vpop.f32.mrf.mxu1  ;;  %v11791_v5 = vadd.f32 %v23610_v13, %v11404_v19  ;;  %v23611_v8 = vld [vmem:[#allocation86_spill] sm:$0xff] }
 0x5fa   : > { %v16206_v25 = vpop.f32.mrf.mxu0  ;;  %v12644_v26 = vmul.f32 %v16253_v29, %v21796_v33  ;;  %v21834_v16 = vadd.f32 %v23611_v8, %v11406_v23 }
 0x5fb   : > { %v12280_v36 = vadd.f32 %v21791_v18, %v12241_v15  ;;  %v12240_v51 = vmul.f32 %v21779_v63, %v12201_v28  ;;  %v12204_v46 = vadd.f32 %v16206_v25, %v11785_v38  ;;  %v12477_v17 = vpop.f32.mrf.mxu1 }
 0x5fc   : > { %v12052_v0 = vpop.f32.mrf.mxu0  ;;  %v12683_v57 = vadd.f32 %v21812_v55, %v12644_v26  ;;  %v12643_v12 = vmul.f32 %v21796_v33, %v12477_v17 }
 0x5fd   : > { %v12279_v61 = vadd.f32 %v21791_v18, %v12240_v51  ;;  %v12243_v47 = vmul.f32 %v21779_v63, %v12204_v46  ;;  %v12203_v2 = vadd.f32 %v12052_v0, %v11784_v58  ;;  %v16256_v45 = vpop.f32.mrf.mxu1 }
 0x5fe   : > { %v16209_v37 = vpop.f32.mrf.mxu0  ;;  %v12715_v43 = vadd.f32 %v12683_v57, %v12280_v36  ;;  %v12682_v22 = vadd.f32 %v21812_v55, %v12643_v12  ;;  %v12646_v11 = vmul.f32 %v16256_v45, %v21796_v33 }
 0x5ff   : > { %v12282_v31 = vadd.f32 %v21791_v18, %v12243_v47  ;;  %v12242_v42 = vmul.f32 %v21779_v63, %v12203_v2  ;;  %v12206_v54 = vadd.f32 %v16209_v37, %v11787_v59  ;;  %v12487_v9 = vpop.f32.mrf.mxu1 }
 0x600   : > { %v12062_v38 = vpop.f32.mrf.mxu0  ;;  %vm12747_vm0 = vcmp.ge.f32.partialorder %v12715_v43, 0.0  ;;  %v12779_v15 = vmul.f32 0.1, %v12715_v43  ;;  %v12714_v28 = vadd.f32 %v12682_v22, %v12279_v61  ;;  %v12685_v58 = vadd.f32 %v21812_v55, %v12646_v11 }
 0x601   : > { %v12281_v53 = vadd.f32 %v21791_v18, %v12242_v42  ;;  %v12245_v34 = vmul.f32 %v21779_v63, %v12206_v54  ;;  %v12645_v19 = vmul.f32 %v21796_v33, %v12487_v9  ;;  %v12205_v29 = vadd.f32 %v12062_v38, %v11786_v24  ;;  %v16259_v25 = vpop.f32.mrf.mxu1 }
 0x602   : > { %v16212_v36 = vpop.f32.mrf.mxu0  ;;  %v12811_v51 = vsel %vm12747_vm0, %v12715_v43, %v12779_v15  ;;  %vm12746_vm2 = vcmp.ge.f32.partialorder %v12714_v28, 0.0  ;;  %v12778_v26 = vmul.f32 0.1, %v12714_v28  ;;  %v12717_v46 = vadd.f32 %v12685_v58, %v12282_v31 }
 0x603   : > { %12843 = vst.msk [vmem:[#allocation5 + $0x8] sm:$0xff] %vm598_vm1, %v12811_v51  ;;  %v12284_v59 = vadd.f32 %v21791_v18, %v12245_v34  ;;  %v12684_v23 = vadd.f32 %v21812_v55, %v12645_v19  ;;  %v12244_v21 = vmul.f32 %v21779_v63, %v12205_v29  ;;  %v12648_v17 = vmul.f32 %v16259_v25, %v21796_v33  ;;  %v12497_v0 = vpop.f32.mrf.mxu1 }
 0x604   : > { %v12072_v61 = vpop.f32.mrf.mxu0  ;;  %v12810_v57 = vsel %vm12746_vm2, %v12714_v28, %v12778_v26  ;;  %vm12749_vm15 = vcmp.ge.f32.partialorder %v12717_v46, 0.0  ;;  %v12781_v24 = vmul.f32 0.1, %v12717_v46  ;;  %v12208_v47 = vadd.f32 %v16212_v36, %v11789_v60 }
 0x605   : > { %12842 = vst.msk [vmem:[#allocation5] sm:$0xff] %vm598_vm1, %v12810_v57  ;;  %v12716_v12 = vadd.f32 %v12684_v23, %v12281_v53  ;;  %v12283_v13 = vadd.f32 %v21791_v18, %v12244_v21  ;;  %v12687_v2 = vadd.f32 %v21812_v55, %v12648_v17  ;;  %v12647_v45 = vmul.f32 %v21796_v33, %v12497_v0  ;;  %v16262_v37 = vpop.f32.mrf.mxu1  ;;  %v23613_v23 = vld [vmem:[#allocation187_spill] sm:$0xff] }
 0x606   : > { %v16215_v43 = vpop.f32.mrf.mxu0  ;;  %v12813_v31 = vsel %vm12749_vm15, %v12717_v46, %v12781_v24  ;;  %v12247_v22 = vmul.f32 %v21779_v63, %v12208_v47  ;;  %v12207_v11 = vadd.f32 %v12072_v61, %v11788_v32  ;;  %v12650_v8 = vmul.f32 %v16262_v37, %v21796_v33 }
 0x607   : > { %12845 = vst.msk [vmem:[#allocation5 + $0x18] sm:$0xff] %vm598_vm1, %v12813_v31  ;;  %vm12748_vm3 = vcmp.ge.f32.partialorder %v12716_v12, 0.0  ;;  %v12780_v60 = vmul.f32 0.1, %v12716_v12  ;;  %v12719_v20 = vadd.f32 %v12687_v2, %v12284_v59  ;;  %v12686_v42 = vadd.f32 %v21812_v55, %v12647_v45  ;;  %v12507_v54 = vpop.f32.mrf.mxu1 }
 0x608   : > { %v12082_v9 = vpop.f32.mrf.mxu0  ;;  %v12286_v38 = vadd.f32 %v21791_v18, %v12247_v22  ;;  %v12246_v15 = vmul.f32 %v21779_v63, %v12207_v11  ;;  %v12689_v28 = vadd.f32 %v21812_v55, %v12650_v8  ;;  %v12210_v58 = vadd.f32 %v16215_v43, %v11791_v5 }
 0x609   : > { %v12812_v53 = vsel %vm12748_vm3, %v12716_v12, %v12780_v60  ;;  %vm12751_vm4 = vcmp.ge.f32.partialorder %v12719_v20, 0.0  ;;  %v12783_v32 = vmul.f32 0.1, %v12719_v20  ;;  %v12718_v34 = vadd.f32 %v12686_v42, %v12283_v13  ;;  %v16265_v19 = vpop.f32.mrf.mxu1  ;;  %v23614_v42 = vld [vmem:[#allocation188_spill] sm:$0xff] }
 0x60a   : > { %v16218_v29 = vpop.f32.mrf.mxu0  ;;  %12844 = vst.msk [vmem:[#allocation5 + $0x10] sm:$0xff] %vm598_vm1, %v12812_v53  ;;  %v12285_v25 = vadd.f32 %v21791_v18, %v12246_v15  ;;  %v12721_v36 = vadd.f32 %v12689_v28, %v12286_v38  ;;  %v12249_v51 = vmul.f32 %v21779_v63, %v12210_v58  ;;  %v12649_v26 = vmul.f32 %v21796_v33, %v12507_v54 }
 0x60b   : > { %v12815_v46 = vsel %vm12751_vm4, %v12719_v20, %v12783_v32  ;;  %vm12750_vm5 = vcmp.ge.f32.partialorder %v12718_v34, 0.0  ;;  %v12782_v59 = vmul.f32 0.1, %v12718_v34  ;;  %v12209_v5 = vadd.f32 %v12082_v9, %v23613_v23  ;;  %v12517_v21 = vpop.f32.mrf.mxu1 }
 0x60c   : > { %v12092_v17 = vpop.f32.mrf.mxu0  ;;  %v12874_v0 = vld [vmem:[#allocation5] ss:$2 sm:$0xff]  ;;  %v12906_v61 = vld [vmem:[#allocation5 + $0x1] ss:$2 sm:$0xff]  ;;  %12847 = vst.msk [vmem:[#allocation5 + $0x28] sm:$0xff] %vm598_vm1, %v12815_v46  ;;  %vm12753_vm6 = vcmp.ge.f32.partialorder %v12721_v36, 0.0  ;;  %v12288_v57 = vadd.f32 %v21791_v18, %v12249_v51  ;;  %v12688_v24 = vadd.f32 %v21812_v55, %v12649_v26  ;;  %v12652_v47 = vmul.f32 %v16265_v19, %v21796_v33 }
 0x60d   : > { %v12937_v12 = vmax.f32 %v12874_v0, %v12906_v61  ;;  %v12814_v13 = vsel %vm12750_vm5, %v12718_v34, %v12782_v59  ;;  %v12785_v2 = vmul.f32 0.1, %v12721_v36  ;;  %v12248_v45 = vmul.f32 %v21779_v63, %v12209_v5  ;;  %v16268_v37 = vpop.f32.mrf.mxu1 }
 0x60e   : > { %v16221_v43 = vpop.f32.mrf.mxu0  ;;  %12846 = vst.msk [vmem:[#allocation5 + $0x20] sm:$0xff] %vm598_vm1, %v12814_v13  ;;  %v12720_v31 = vadd.f32 %v12688_v24, %v12285_v25  ;;  %v12691_v22 = vadd.f32 %v21812_v55, %v12652_v47  ;;  %v12212_v11 = vadd.f32 %v16218_v29, %v21834_v16  ;;  %v12651_v8 = vmul.f32 %v21796_v33, %v12517_v21 }
 0x60f   : > { %v12817_v60 = vsel %vm12753_vm6, %v12721_v36, %v12785_v2  ;;  %v12287_v20 = vadd.f32 %v21791_v18, %v12248_v45  ;;  %v12211_v54 = vadd.f32 %v12092_v17, %v23614_v42  ;;  %v12654_v9 = vmul.f32 %v16268_v37, %v21796_v33  ;;  %v12527_v38 = vpop.f32.mrf.mxu1 }
 0x610   : > { %v12102_v15 = vpop.f32.mrf.mxu0  ;;  %12849 = vst.msk [vmem:[#allocation5 + $0x38] sm:$0xff] %vm598_vm1, %v12817_v60  ;;  %vm12752_vm7 = vcmp.ge.f32.partialorder %v12720_v31, 0.0  ;;  %v12784_v28 = vmul.f32 0.1, %v12720_v31  ;;  %v12723_v58 = vadd.f32 %v12691_v22, %v12288_v57  ;;  %v12251_v53 = vmul.f32 %v21779_v63, %v12212_v11 }
 0x611   : > { %v12876_v16 = vld [vmem:[#allocation5 + $0x10] ss:$2 sm:$0xff]  ;;  %v12908_v32 = vld [vmem:[#allocation5 + $0x11] ss:$2 sm:$0xff]  ;;  %v12690_v34 = vadd.f32 %v21812_v55, %v12651_v8  ;;  %v12250_v19 = vmul.f32 %v21779_v63, %v12211_v54  ;;  %v12693_v29 = vadd.f32 %v21812_v55, %v12654_v9  ;;  %v12214_v25 = vadd.f32 %v16221_v43, %v21837_v6  ;;  %v16271_v36 = vpop.f32.mrf.mxu1 }
 0x612   : > { %v16224_v51 = vpop.f32.mrf.mxu0  ;;  %v12938_v26 = vmax.f32 %v12876_v16, %v12908_v32  ;;  %v12816_v46 = vsel %vm12752_vm7, %v12720_v31, %v12784_v28  ;;  %vm12755_vm8 = vcmp.ge.f32.partialorder %v12723_v58, 0.0  ;;  %v12787_v59 = vmul.f32 0.1, %v12723_v58 }
 0x613   : > { %12848 = vst.msk [vmem:[#allocation5 + $0x30] sm:$0xff] %vm598_vm1, %v12816_v46  ;;  %v12290_v23 = vadd.f32 %v21791_v18, %v12251_v53  ;;  %v12722_v5 = vadd.f32 %v12690_v34, %v12287_v20  ;;  %v12289_v21 = vadd.f32 %v21791_v18, %v12250_v19  ;;  %v12253_v6 = vmul.f32 %v21779_v63, %v12214_v25  ;;  %v12537_v17 = vpop.f32.mrf.mxu1 }
 0x614   : > { %v12112_v0 = vpop.f32.mrf.mxu0  ;;  %v12953_v61 = vmax.f32 %v12937_v12, %v12938_v26  ;;  %v12819_v57 = vsel %vm12755_vm8, %v12723_v58, %v12787_v59  ;;  %v12653_v24 = vmul.f32 %v21796_v33, %v12527_v38  ;;  %v12213_v47 = vadd.f32 %v12102_v15, %v21716_v27 }
 0x615   : > { %v12878_v13 = vld [vmem:[#allocation5 + $0x20] ss:$2 sm:$0xff]  ;;  %v12910_v2 = vld [vmem:[#allocation5 + $0x21] ss:$2 sm:$0xff]  ;;  %12851 = vst.msk [vmem:[#allocation5 + $0x48] sm:$0xff] %vm598_vm1, %v12819_v57  ;;  %vm12754_vm9 = vcmp.ge.f32.partialorder %v12722_v5, 0.0  ;;  %v12725_v45 = vadd.f32 %v12693_v29, %v12290_v23  ;;  %v12292_v37 = vadd.f32 %v21791_v18, %v12253_v6  ;;  %v12656_v43 = vmul.f32 %v16271_v36, %v21796_v33  ;;  %v16274_v31 = vpop.f32.mrf.mxu1 }
 0x616   : > { %v16227_v22 = vpop.f32.mrf.mxu0  ;;  %12961 = vst.msk [vmem:[%s21887_s20] sm:$0xff] %vm598_vm1, %v12953_v61  ;;  %v12939_v12 = vmax.f32 %v12878_v13, %v12910_v2  ;;  %v12786_v11 = vmul.f32 0.1, %v12722_v5  ;;  %v12692_v8 = vadd.f32 %v21812_v55, %v12653_v24  ;;  %v12252_v27 = vmul.f32 %v21779_v63, %v12213_v47 }
 0x617   : > { %vm12757_vm10 = vcmp.ge.f32.partialorder %v12725_v45, 0.0  ;;  %v12789_v60 = vmul.f32 0.1, %v12725_v45  ;;  %v12695_v20 = vadd.f32 %v21812_v55, %v12656_v43  ;;  %v12216_v42 = vadd.f32 %v16224_v51, %v21719_v14  ;;  %v12547_v54 = vpop.f32.mrf.mxu1 }
 0x618   : > { %v12122_v9 = vpop.f32.mrf.mxu0  ;;  %v12818_v38 = vsel %vm12754_vm9, %v12722_v5, %v12786_v11  ;;  %v12724_v15 = vadd.f32 %v12692_v8, %v12289_v21  ;;  %v12291_v28 = vadd.f32 %v21791_v18, %v12252_v27  ;;  %v12655_v58 = vmul.f32 %v21796_v33, %v12537_v17 }
 0x619   : > { %12850 = vst.msk [vmem:[#allocation5 + $0x40] sm:$0xff] %vm598_vm1, %v12818_v38  ;;  %v12821_v53 = vsel %vm12757_vm10, %v12725_v45, %v12789_v60  ;;  %v12727_v16 = vadd.f32 %v12695_v20, %v12292_v37  ;;  %v12255_v32 = vmul.f32 %v21779_v63, %v12216_v42  ;;  %v12215_v34 = vadd.f32 %v12112_v0, %v21722_v49  ;;  %v16277_v19 = vpop.f32.mrf.mxu1 }
 0x61a   : > { %v16230_v29 = vpop.f32.mrf.mxu0  ;;  %v12880_v14 = vld [vmem:[#allocation5 + $0x30] ss:$2 sm:$0xff]  ;;  %v12912_v25 = vld [vmem:[#allocation5 + $0x31] ss:$2 sm:$0xff]  ;;  %12853 = vst.msk [vmem:[#allocation5 + $0x58] sm:$0xff] %vm598_vm1, %v12821_v53  ;;  %vm12756_vm11 = vcmp.ge.f32.partialorder %v12724_v15, 0.0  ;;  %v12694_v36 = vadd.f32 %v21812_v55, %v12655_v58  ;;  %v12658_v51 = vmul.f32 %v16274_v31, %v21796_v33  ;;  %v12218_v26 = vadd.f32 %v16227_v22, %v21725_v30 }
 0x61b   : > { %v12940_v46 = vmax.f32 %v12880_v14, %v12912_v25  ;;  %v12788_v59 = vmul.f32 0.1, %v12724_v15  ;;  %vm12759_vm12 = vcmp.ge.f32.partialorder %v12727_v16, 0.0  ;;  %v12791_v23 = vmul.f32 0.1, %v12727_v16  ;;  %v12557_v5 = vpop.f32.mrf.mxu1 }
 0x61c   : > { %v12132_v21 = vpop.f32.mrf.mxu0  ;;  %v12294_v49 = vadd.f32 %v21791_v18, %v12255_v32  ;;  %v12726_v6 = vadd.f32 %v12694_v36, %v12291_v28  ;;  %v12254_v17 = vmul.f32 %v21779_v63, %v12215_v34  ;;  %v12697_v0 = vadd.f32 %v21812_v55, %v12658_v51 }
 0x61d   : > { %v12954_v61 = vmax.f32 %v12939_v12, %v12940_v46  ;;  %v12820_v57 = vsel %vm12756_vm11, %v12724_v15, %v12788_v59  ;;  %v12823_v24 = vsel %vm12759_vm12, %v12727_v16, %v12791_v23  ;;  %v12257_v47 = vmul.f32 %v21779_v63, %v12218_v26  ;;  %v16280_v30 = vpop.f32.mrf.mxu1 }
 0x61e   : > { %v16233_v13 = vpop.f32.mrf.mxu0  ;;  %12852 = vst.msk [vmem:[#allocation5 + $0x50] sm:$0xff] %vm598_vm1, %v12820_v57  ;;  %12855 = vst.msk [vmem:[#allocation5 + $0x68] sm:$0xff] %vm598_vm1, %v12823_v24  ;;  %vm12758_vm13 = vcmp.ge.f32.partialorder %v12726_v6, 0.0  ;;  %v12790_v2 = vmul.f32 0.1, %v12726_v6  ;;  %v12293_v45 = vadd.f32 %v21791_v18, %v12254_v17  ;;  %v12729_v37 = vadd.f32 %v12697_v0, %v12294_v49 }
 0x61f   : > { %12962 = vst.msk [vmem:[%s21887_s20 + $0x8] sm:$0xff] %vm598_vm1, %v12954_v61  ;;  %v12296_v43 = vadd.f32 %v21791_v18, %v12257_v47  ;;  %v12657_v31 = vmul.f32 %v21796_v33, %v12547_v54  ;;  %v12217_v22 = vadd.f32 %v12122_v9, %v21728_v44  ;;  %v12660_v12 = vmul.f32 %v16277_v19, %v21796_v33  ;;  %v12567_v11 = vpop.f32.mrf.mxu1 }
 0x620   : > { %v21927_v8 = vpop.f32.mrf.mxu0  ;;  %v12882_v27 = vld [vmem:[#allocation5 + $0x40] ss:$2 sm:$0xff]  ;;  %v12914_v60 = vld [vmem:[#allocation5 + $0x41] ss:$2 sm:$0xff]  ;;  %v12822_v20 = vsel %vm12758_vm13, %v12726_v6, %v12790_v2  ;;  %vm12761_vm14 = vcmp.ge.f32.partialorder %v12729_v37, 0.0  ;;  %v12220_v42 = vadd.f32 %v16230_v29, %v21731_v7  ;;  %v12659_v38 = vmul.f32 %v21796_v33, %v12557_v5 }
 0x621   : > { %v12941_v15 = vmax.f32 %v12882_v27, %v12914_v60  ;;  %12854 = vst.msk [vmem:[#allocation5 + $0x60] sm:$0xff] %vm598_vm1, %v12822_v20  ;;  %v12793_v28 = vmul.f32 0.1, %v12729_v37  ;;  %v12696_v54 = vadd.f32 %v21812_v55, %v12657_v31  ;;  %v12256_v44 = vmul.f32 %v21779_v63, %v12217_v22  ;;  %v16283_v9 = vpop.f32.mrf.mxu1 }
 0x622   : > { %v16236_v58 = vpop.f32.mrf.mxu0  ;;  %v12699_v53 = vadd.f32 %v21812_v55, %v12660_v12  ;;  %v12259_v16 = vmul.f32 %v21779_v63, %v12220_v42  ;;  %v12698_v32 = vadd.f32 %v21812_v55, %v12659_v38  ;;  %v12219_v7 = vadd.f32 %v12132_v21, %v21734_v52 }
 0x623   : > { %v12825_v34 = vsel %vm12761_vm14, %v12729_v37, %v12793_v28  ;;  %v12728_v19 = vadd.f32 %v12696_v54, %v12293_v45  ;;  %v12295_v29 = vadd.f32 %v21791_v18, %v12256_v44  ;;  %v12662_v14 = vmul.f32 %v16280_v30, %v21796_v33  ;;  %v12577_v25 = vpop.f32.mrf.mxu1 }
 0x624   : > { %v12152_v36 = vpop.f32.mrf.mxu0  ;;  %12857 = vst.msk [vmem:[#allocation5 + $0x78] sm:$0xff] %vm598_vm1, %v12825_v34  ;;  %v12731_v51 = vadd.f32 %v12699_v53, %v12296_v43  ;;  %v12298_v26 = vadd.f32 %v21791_v18, %v12259_v16  ;;  %v12258_v46 = vmul.f32 %v21779_v63, %v12219_v7  ;;  %v12222_v59 = vadd.f32 %v16233_v13, %v21737_v50 }
 0x625   : > { %v12884_v23 = vld [vmem:[#allocation5 + $0x50] ss:$2 sm:$0xff]  ;;  %v12916_v5 = vld [vmem:[#allocation5 + $0x51] ss:$2 sm:$0xff]  ;;  %vm12760_vm0 = vcmp.ge.f32.partialorder %v12728_v19, 0.0  ;;  %v12730_v52 = vadd.f32 %v12698_v32, %v12295_v29  ;;  %v12701_v21 = vadd.f32 %v21812_v55, %v12662_v14  ;;  %v12661_v49 = vmul.f32 %v21796_v33, %v12567_v11  ;;  %v16286_v6 = vpop.f32.mrf.mxu1 }
 0x626   : > { %v16239_v17 = vpop.f32.mrf.mxu0  ;;  %v12942_v0 = vmax.f32 %v12884_v23, %v12916_v5  ;;  %v12792_v61 = vmul.f32 0.1, %v12728_v19  ;;  %vm12763_vm2 = vcmp.ge.f32.partialorder %v12731_v51, 0.0  ;;  %v12795_v57 = vmul.f32 0.1, %v12731_v51 }
 0x627   : > { %vm12762_vm15 = vcmp.ge.f32.partialorder %v12730_v52, 0.0  ;;  %v12794_v24 = vmul.f32 0.1, %v12730_v52  ;;  %v12297_v47 = vadd.f32 %v21791_v18, %v12258_v46  ;;  %v12733_v30 = vadd.f32 %v12701_v21, %v12298_v26  ;;  %v12587_v50 = vpop.f32.mrf.mxu1 }
 0x628   : > { %v21947_v13 = vpop.f32.mrf.mxu0  ;;  %v12955_v2 = vmax.f32 %v12941_v15, %v12942_v0  ;;  %v21949_v45 = vld [vmem:[#allocation5 + $0x60] ss:$2 sm:$0xff]  ;;  %v12918_v37 = vld [vmem:[#allocation5 + $0x61] ss:$2 sm:$0xff]  ;;  %v12824_v43 = vsel %vm12760_vm0, %v12728_v19, %v12792_v61  ;;  %v12827_v31 = vsel %vm12763_vm2, %v12731_v51, %v12795_v57  ;;  %v12261_v22 = vmul.f32 %v21779_v63, %v12222_v59 }
 0x629   : > { %v12943_v12 = vmax.f32 %v21949_v45, %v12918_v37  ;;  %12856 = vst.msk [vmem:[#allocation5 + $0x70] sm:$0xff] %vm598_vm1, %v12824_v43  ;;  %12859 = vst.msk [vmem:[#allocation5 + $0x88] sm:$0xff] %vm598_vm1, %v12827_v31  ;;  %v12826_v11 = vsel %vm12762_vm15, %v12730_v52, %v12794_v24  ;;  %vm12765_vm3 = vcmp.ge.f32.partialorder %v12733_v30, 0.0  ;;  %v12797_v27 = vmul.f32 0.1, %v12733_v30  ;;  %v16289_v60 = vpop.f32.mrf.mxu1 }
 0x62a   : > { %v21956_v20 = vpop.f32.mrf.mxu0  ;;  %12963 = vst.msk [vmem:[%s21887_s20 + $0x10] sm:$0xff] %vm598_vm1, %v12955_v2  ;;  %12858 = vst.msk [vmem:[#allocation5 + $0x80] sm:$0xff] %vm598_vm1, %v12826_v11  ;;  %v12300_v42 = vadd.f32 %v21791_v18, %v12261_v22  ;;  %v12700_v38 = vadd.f32 %v21812_v55, %v12661_v49  ;;  %v12221_v15 = vadd.f32 %v21927_v8, %v21740_v40 }
 0x62b   : > { %v12664_v28 = vmul.f32 %v16283_v9, %v21796_v33  ;;  %v12829_v54 = vsel %vm12765_vm3, %v12733_v30, %v12797_v27  ;;  %v12224_v44 = vadd.f32 %v16236_v58, %v21743_v41  ;;  %v12663_v53 = vmul.f32 %v21796_v33, %v12577_v25  ;;  %v12597_v32 = vpop.f32.mrf.mxu1 }
 0x62c   : > { %v12223_v16 = vadd.f32 %v12152_v36, %v21746_v4  ;;  %12861 = vst.msk [vmem:[#allocation5 + $0x98] sm:$0xff] %vm598_vm1, %v12829_v54  ;;  %v12732_v7 = vadd.f32 %v12700_v38, %v12297_v47  ;;  %v12260_v34 = vmul.f32 %v21779_v63, %v12221_v15  ;;  %v12666_v29 = vmul.f32 %v16286_v6, %v21796_v33  ;;  %v12172_v40 = vpop.f32.mrf.mxu0 }
 0x62d   : > { %v12703_v19 = vadd.f32 %v21812_v55, %v12664_v28  ;;  %v12263_v8 = vmul.f32 %v21779_v63, %v12224_v44  ;;  %v12702_v9 = vadd.f32 %v21812_v55, %v12663_v53  ;;  %v12226_v58 = vadd.f32 %v16239_v17, %v21749_v48  ;;  %v16292_v4 = vpop.f32.mrf.mxu1 }
 0x62e   : > { %v12262_v41 = vmul.f32 %v21779_v63, %v12223_v16  ;;  %vm12764_vm4 = vcmp.ge.f32.partialorder %v12732_v7, 0.0  ;;  %v12796_v14 = vmul.f32 0.1, %v12732_v7  ;;  %v12299_v25 = vadd.f32 %v21791_v18, %v12260_v34  ;;  %v16245_v49 = vpop.f32.mrf.mxu0 }
 0x62f   : > { %v12735_v36 = vadd.f32 %v12703_v19, %v12300_v42  ;;  %v12302_v51 = vadd.f32 %v21791_v18, %v12263_v8  ;;  %v12705_v46 = vadd.f32 %v21812_v55, %v12666_v29  ;;  %v12265_v59 = vmul.f32 %v21779_v63, %v12226_v58  ;;  %v12607_v47 = vpop.f32.mrf.mxu1 }
 0x630   : > { %v12301_v26 = vadd.f32 %v21791_v18, %v12262_v41  ;;  %v12888_v23 = vld [vmem:[#allocation5 + $0x70] ss:$2 sm:$0xff]  ;;  %v12920_v5 = vld [vmem:[#allocation5 + $0x71] ss:$2 sm:$0xff]  ;;  %v12828_v52 = vsel %vm12764_vm4, %v12732_v7, %v12796_v14  ;;  %v12734_v21 = vadd.f32 %v12702_v9, %v12299_v25  ;;  %v12665_v48 = vmul.f32 %v21796_v33, %v12587_v50  ;;  %v12182_v42 = vpop.f32.mrf.mxu0 }
 0x631   : > { %vm12767_vm5 = vcmp.ge.f32.partialorder %v12735_v36, 0.0  ;;  %v12944_v6 = vmax.f32 %v12888_v23, %v12920_v5  ;;  %v12890_v17 = vld [vmem:[#allocation5 + $0x80] ss:$2 sm:$0xff]  ;;  %v12922_v0 = vld [vmem:[#allocation5 + $0x81] ss:$2 sm:$0xff]  ;;  %12860 = vst.msk [vmem:[#allocation5 + $0x90] sm:$0xff] %vm598_vm1, %v12828_v52  ;;  %v12737_v57 = vadd.f32 %v12705_v46, %v12302_v51  ;;  %v12304_v24 = vadd.f32 %v21791_v18, %v12265_v59  ;;  %v16295_v54 = vpop.f32.mrf.mxu1 }
 0x632   : > { %v12799_v61 = vmul.f32 0.1, %v12735_v36  ;;  %v12945_v30 = vmax.f32 %v12890_v17, %v12922_v0  ;;  %vm12766_vm6 = vcmp.ge.f32.partialorder %v12734_v21, 0.0  ;;  %v12798_v2 = vmul.f32 0.1, %v12734_v21  ;;  %v16248_v29 = vpop.f32.mrf.mxu0 }
 0x633   : > { %v12704_v45 = vadd.f32 %v21812_v55, %v12665_v48  ;;  %v12956_v37 = vmax.f32 %v12943_v12, %v12944_v6  ;;  %vm12769_vm7 = vcmp.ge.f32.partialorder %v12737_v57, 0.0  ;;  %v12801_v43 = vmul.f32 0.1, %v12737_v57  ;;  %v12617_v58 = vpop.f32.mrf.mxu1 }
 0x634   : > { %v12831_v50 = vsel %vm12767_vm5, %v12735_v36, %v12799_v61  ;;  %v12830_v31 = vsel %vm12766_vm6, %v12734_v21, %v12798_v2  ;;  %v12225_v11 = vadd.f32 %v21947_v13, %v21752_v62  ;;  %v12668_v27 = vmul.f32 %v16289_v60, %v21796_v33  ;;  %v12192_v21 = vpop.f32.mrf.mxu0 }
 0x635   : > { %12863 = vst.msk [vmem:[#allocation5 + $0xa8] sm:$0xff] %vm598_vm1, %v12831_v50  ;;  %v12736_v22 = vadd.f32 %v12704_v45, %v12301_v26  ;;  %12964 = vst.msk [vmem:[%s21887_s20 + $0x18] sm:$0xff] %vm598_vm1, %v12956_v37  ;;  %v12833_v38 = vsel %vm12769_vm7, %v12737_v57, %v12801_v43  ;;  %v12228_v12 = vadd.f32 %v21956_v20, %v21755_v39  ;;  %v16298_v17 = vpop.f32.mrf.mxu1 }
 0x636   : > { %12862 = vst.msk [vmem:[#allocation5 + $0xa0] sm:$0xff] %vm598_vm1, %v12830_v31  ;;  %v12667_v15 = vmul.f32 %v21796_v33, %v12597_v32  ;;  %v12227_v28 = vadd.f32 %v12172_v40, %v21760_v35  ;;  %12865 = vst.msk [vmem:[#allocation5 + $0xb8] sm:$0xff] %vm598_vm1, %v12833_v38  ;;  %v12264_v13 = vmul.f32 %v21779_v63, %v12225_v11 }
 0x637   : > { %vm12768_vm8 = vcmp.ge.f32.partialorder %v12736_v22, 0.0  ;;  %v12800_v62 = vmul.f32 0.1, %v12736_v22  ;;  %v12707_v60 = vadd.f32 %v21812_v55, %v12668_v27  ;;  %v12267_v44 = vmul.f32 %v21779_v63, %v12228_v12 }
 0x638   : > { %v12706_v53 = vadd.f32 %v21812_v55, %v12667_v15  ;;  %v12266_v16 = vmul.f32 %v21779_v63, %v12227_v28  ;;  %v12670_v39 = vmul.f32 %v16292_v4, %v21796_v33  ;;  %v12892_v20 = vld [vmem:[#allocation5 + $0x90] ss:$2 sm:$0xff]  ;;  %v12924_v32 = vld [vmem:[#allocation5 + $0x91] ss:$2 sm:$0xff]  ;;  %v12303_v7 = vadd.f32 %v21791_v18, %v12264_v13 }
 0x639   : > { %v12832_v35 = vsel %vm12768_vm8, %v12736_v22, %v12800_v62  ;;  %v12739_v34 = vadd.f32 %v12707_v60, %v12304_v24  ;;  %v12230_v19 = vadd.f32 %v16245_v49, %v21765_v56  ;;  %v12946_v40 = vmax.f32 %v12892_v20, %v12924_v32 }
 0x63a   : > { %12864 = vst.msk [vmem:[#allocation5 + $0xb0] sm:$0xff] %vm598_vm1, %v12832_v35  ;;  %v12306_v8 = vadd.f32 %v21791_v18, %v12267_v44  ;;  %v12305_v9 = vadd.f32 %v21791_v18, %v12266_v16  ;;  %v12709_v41 = vadd.f32 %v21812_v55, %v12670_v39  ;;  %v12738_v14 = vadd.f32 %v12706_v53, %v12303_v7 }
 0x63b   : > { %vm12771_vm9 = vcmp.ge.f32.partialorder %v12739_v34, 0.0  ;;  %v12803_v4 = vmul.f32 0.1, %v12739_v34  ;;  %v12269_v25 = vmul.f32 %v21779_v63, %v12230_v19  ;;  %v12957_v36 = vmax.f32 %v12945_v30, %v12946_v40 }
 0x63c   : > { %v12741_v51 = vadd.f32 %v12709_v41, %v12306_v8  ;;  %v12669_v56 = vmul.f32 %v21796_v33, %v12607_v47  ;;  %v12229_v26 = vadd.f32 %v12182_v42, %v21771_v3  ;;  %vm12770_vm10 = vcmp.ge.f32.partialorder %v12738_v14, 0.0  ;;  %v12627_v42 = vpop.f32.mrf.mxu1 }
 0x63d   : > { %v12894_v46 = vld [vmem:[#allocation5 + $0xa0] ss:$2 sm:$0xff]  ;;  %v12926_v59 = vld [vmem:[#allocation5 + $0xa1] ss:$2 sm:$0xff]  ;;  %v12835_v23 = vsel %vm12771_vm9, %v12739_v34, %v12803_v4  ;;  %v12308_v5 = vadd.f32 %v21791_v18, %v12269_v25  ;;  %v12672_v52 = vmul.f32 %v16295_v54, %v21796_v33  ;;  %12965 = vst.msk [vmem:[%s21887_s20 + $0x20] sm:$0xff] %vm598_vm1, %v12957_v36  ;;  %v12232_v57 = vadd.f32 %v16248_v29, %v21782_v1 }
 0x63e   : > { %v12947_v48 = vmax.f32 %v12894_v46, %v12926_v59  ;;  %12867 = vst.msk [vmem:[#allocation5 + $0xc8] sm:$0xff] %vm598_vm1, %v12835_v23  ;;  %v12802_v49 = vmul.f32 0.1, %v12738_v14  ;;  %vm12773_vm11 = vcmp.ge.f32.partialorder %v12741_v51, 0.0  ;;  %v12805_v6 = vmul.f32 0.1, %v12741_v51 }
 0x63f   : > { %v12708_v3 = vadd.f32 %v21812_v55, %v12669_v56  ;;  %v12268_v0 = vmul.f32 %v21779_v63, %v12229_v26  ;;  %v12711_v61 = vadd.f32 %v21812_v55, %v12672_v52  ;;  %v12671_v30 = vmul.f32 %v21796_v33, %v12617_v58 }
 0x640   : > { %v12834_v24 = vsel %vm12770_vm10, %v12738_v14, %v12802_v49  ;;  %v12837_v47 = vsel %vm12773_vm11, %v12741_v51, %v12805_v6  ;;  %v12231_v2 = vadd.f32 %v12192_v21, %v21799_v10  ;;  %v12271_v22 = vmul.f32 %v21779_v63, %v12232_v57 }
 0x641   : > { %v12896_v45 = vld [vmem:[#allocation5 + $0xb0] ss:$2 sm:$0xff]  ;;  %v12928_v37 = vld [vmem:[#allocation5 + $0xb1] ss:$2 sm:$0xff]  ;;  %12866 = vst.msk [vmem:[#allocation5 + $0xc0] sm:$0xff] %vm598_vm1, %v12834_v24  ;;  %12869 = vst.msk [vmem:[#allocation5 + $0xd8] sm:$0xff] %vm598_vm1, %v12837_v47  ;;  %v12740_v50 = vadd.f32 %v12708_v3, %v12305_v9  ;;  %v12307_v43 = vadd.f32 %v21791_v18, %v12268_v0  ;;  %v12743_v31 = vadd.f32 %v12711_v61, %v12308_v5 }
 0x642   : > { %v12948_v11 = vmax.f32 %v12896_v45, %v12928_v37  ;;  %v12710_v1 = vadd.f32 %v21812_v55, %v12671_v30  ;;  %v12270_v27 = vmul.f32 %v21779_v63, %v12231_v2  ;;  %v12674_v10 = vmul.f32 %v16298_v17, %v21796_v33 }
 0x643   : > { %vm12772_vm12 = vcmp.ge.f32.partialorder %v12740_v50, 0.0  ;;  %v12804_v38 = vmul.f32 0.1, %v12740_v50  ;;  %vm12775_vm13 = vcmp.ge.f32.partialorder %v12743_v31, 0.0  ;;  %v12807_v12 = vmul.f32 0.1, %v12743_v31 }
 0x644   : > { %v12958_v15 = vmax.f32 %v12947_v48, %v12948_v11  ;;  %v12310_v28 = vadd.f32 %v21791_v18, %v12271_v22  ;;  %v12742_v54 = vadd.f32 %v12710_v1, %v12307_v43  ;;  %v12309_v62 = vadd.f32 %v21791_v18, %v12270_v27 }
 0x645   : > { %v12836_v13 = vsel %vm12772_vm12, %v12740_v50, %v12804_v38  ;;  %v12839_v60 = vsel %vm12775_vm13, %v12743_v31, %v12807_v12  ;;  %v12713_v44 = vadd.f32 %v21812_v55, %v12674_v10  ;;  %v12673_v53 = vmul.f32 %v21796_v33, %v12627_v42 }
 0x646   : > { %12966 = vst.msk [vmem:[%s21887_s20 + $0x28] sm:$0xff] %vm598_vm1, %v12958_v15  ;;  %12868 = vst.msk [vmem:[#allocation5 + $0xd0] sm:$0xff] %vm598_vm1, %v12836_v13  ;;  %vm12774_vm14 = vcmp.ge.f32.partialorder %v12742_v54, 0.0  ;;  %v12806_v63 = vmul.f32 0.1, %v12742_v54 }
 0x647   : > { %12871 = vst.msk [vmem:[#allocation5 + $0xe8] sm:$0xff] %vm598_vm1, %v12839_v60  ;;  %v12745_v16 = vadd.f32 %v12713_v44, %v12310_v28  ;;  %v12712_v39 = vadd.f32 %v21812_v55, %v12673_v53 }
 0x648   : > { %v12838_v20 = vsel %vm12774_vm14, %v12742_v54, %v12806_v63  ;;  %v12898_v35 = vld [vmem:[#allocation5 + $0xc0] ss:$2 sm:$0xff]  ;;  %v12930_v33 = vld [vmem:[#allocation5 + $0xc1] ss:$2 sm:$0xff] }
 0x649   : > { %12870 = vst.msk [vmem:[#allocation5 + $0xe0] sm:$0xff] %vm598_vm1, %v12838_v20  ;;  %vm12777_vm0 = vcmp.ge.f32.partialorder %v12745_v16, 0.0  ;;  %v12809_v18 = vmul.f32 0.1, %v12745_v16  ;;  %v12744_v32 = vadd.f32 %v12712_v39, %v12309_v62  ;;  %v12949_v8 = vmax.f32 %v12898_v35, %v12930_v33 }
 0x64b   : > { %v12841_v7 = vsel %vm12777_vm0, %v12745_v16, %v12809_v18  ;;  %vm12776_vm2 = vcmp.ge.f32.partialorder %v12744_v32, 0.0  ;;  %v12808_v34 = vmul.f32 0.1, %v12744_v32 }
 0x64c   : > { %12873 = vst.msk [vmem:[#allocation5 + $0xf8] sm:$0xff] %vm598_vm1, %v12841_v7 }
 0x64d   : > { %v12900_v19 = vld [vmem:[#allocation5 + $0xd0] ss:$2 sm:$0xff]  ;;  %v12932_v29 = vld [vmem:[#allocation5 + $0xd1] ss:$2 sm:$0xff]  ;;  %v12840_v40 = vsel %vm12776_vm2, %v12744_v32, %v12808_v34 }
 0x64e   : > { %v12950_v55 = vmax.f32 %v12900_v19, %v12932_v29  ;;  %12872 = vst.msk [vmem:[#allocation5 + $0xf0] sm:$0xff] %vm598_vm1, %v12840_v40 }
 0x650   : > { %v12959_v9 = vmax.f32 %v12949_v8, %v12950_v55  ;;  %v12902_v41 = vld [vmem:[#allocation5 + $0xe0] ss:$2 sm:$0xff]  ;;  %v12934_v58 = vld [vmem:[#allocation5 + $0xe1] ss:$2 sm:$0xff] }
 0x651   : > { %v12951_v25 = vmax.f32 %v12902_v41, %v12934_v58 }
 0x652   : > { %12967 = vst.msk [vmem:[%s21887_s20 + $0x30] sm:$0xff] %vm598_vm1, %v12959_v9 }
 0x655   : > { %v12904_v4 = vld [vmem:[#allocation5 + $0xf0] ss:$2 sm:$0xff]  ;;  %v12936_v14 = vld [vmem:[#allocation5 + $0xf1] ss:$2 sm:$0xff] }
 0x656   : > { %v12952_v36 = vmax.f32 %v12904_v4, %v12936_v14 }
 0x658   : > { %v12960_v51 = vmax.f32 %v12951_v25, %v12952_v36 }
 0x65a   : > { %12968 = vst.msk [vmem:[%s21887_s20 + $0x38] sm:$0xff] %vm598_vm1, %v12960_v51 }
 0x65b PF: > { %s25_s18 = sadd.s32 1, %s16320_s18  }
 0x65c   : > { %p22_p4 = scmp.ge.s32.totalorder %s25_s18, 4  }
 0x65e   :  { %24 = sbr.rel (!%p22_p4) target bundleno = 1 (0x1), region = 165 }

</bundles_post_ra>
